<compile_context>
chip_gen: v7x
topology: tpu7x:2x2x1
jax: 0.10.0
libtpu: 0.0.40
codegen_flags: <defaults>
</compile_context>

<pallas_src>
import functools

import jax
import jax.numpy as jnp
from jax.experimental import pallas as pl
from jax.experimental.pallas import tpu as pltpu


def _round_up(x: int, m: int) -> int:
    return ((x + m - 1) // m) * m


def mha_kernel(k_ref, q_ref, v_ref,
               wk_ref, bk_ref, wq_ref, bq_ref, wv_ref, bv_ref,
               wo_ref, bo_ref, o_ref, attn_ref, *, num_head: int, mxu_dtype):
    bt, s_in, e_in = k_ref.shape          # e_in may be zero-padded to 128k
    _, s_out, _ = q_ref.shape
    e = wq_ref.shape[1]                   # true embed width (projection output)
    d = e // num_head
    e_pad = o_ref.shape[-1]               # lane-dense output-projection width

    # ---- fused K/Q/V projections: one (Bt*S, E_in) @ (E_in, E) MXU matmul each
    # Operands stay in their native dtype; accumulation + bias math in f32.
    k_in = k_ref[...].reshape(bt * s_in, e_in)
    q_in = q_ref[...].reshape(bt * s_out, e_in)
    v_in = v_ref[...].reshape(bt * s_in, e_in)

    k_emb = jnp.dot(k_in, wk_ref[...], preferred_element_type=jnp.float32)
    k_emb = k_emb + bk_ref[0].astype(jnp.float32)
    q_emb = jnp.dot(q_in, wq_ref[...], preferred_element_type=jnp.float32)
    q_emb = q_emb + bq_ref[0].astype(jnp.float32)
    v_emb = jnp.dot(v_in, wv_ref[...], preferred_element_type=jnp.float32)
    v_emb = v_emb + bv_ref[0].astype(jnp.float32)

    # fold 1/sqrt(d) into Q once (instead of scaling every (S_out,S_in) tile)
    q_emb = q_emb * (d ** -0.5)

    # MXU operands for the attention matmuls (bf16 on v6e/v7x doubles the MXU
    # rate and halves the bytes moved by the per-head lane slices);
    # accumulation stays f32 via preferred_element_type, softmax math stays f32.
    q3 = q_emb.astype(mxu_dtype).reshape(bt, s_out, e)
    k3 = k_emb.astype(mxu_dtype).reshape(bt, s_in, e)
    v3 = v_emb.astype(mxu_dtype).reshape(bt, s_in, e)

    # ---- per-head attention, batched over the Bt batch tile -----------------
    # TODO(synk): the 3 per-head D-wide lane slices below remain; removing them
    # needs a minor-dim (R,E)->(R,H,D) reshape or a 2-batch-dim dot_general,
    # both fragile to lower on current Mosaic — revisit.
    for h in range(num_head):             # static unroll
        lo = h * d
        q_h = q3[:, :, lo:lo + d]         # (Bt, S_out, D)
        k_h = k3[:, :, lo:lo + d]         # (Bt, S_in,  D)
        v_h = v3[:, :, lo:lo + d]         # (Bt, S_in,  D)

        # K-transpose folded into the contraction dims (no explicit .T)
        s = jnp.einsum("bqd,bkd->bqk", q_h, k_h,
                       preferred_element_type=jnp.float32)  # (Bt,S_out,S_in) f32
        # TODO(synk): mask path (attn_mask / key_padding_mask) not implemented —
        # the module's forward default is mask=None.
        m = jnp.max(s, axis=-1, keepdims=True)
        p = jnp.exp(s - m)
        denom = jnp.sum(p, axis=-1, keepdims=True)
        p = p * pl.reciprocal(denom, approx=True)            # divide -> EUP slot

        o_h = jnp.einsum("bqk,bkd->bqd", p.astype(mxu_dtype), v_h,
                         preferred_element_type=jnp.float32)  # (Bt,S_out,D) f32

        # assemble heads into a VMEM scratch: concat([o_0 .. o_{H-1}], -1)
        attn_ref[:, lo:lo + d] = (
            o_h.reshape(bt * s_out, d).astype(attn_ref.dtype))

    # ---- output projection: ONE K=E matmul over the assembled heads ---------
    out = jnp.dot(attn_ref[...], wo_ref[...].astype(mxu_dtype),
                  preferred_element_type=jnp.float32)          # (Bt*S_out,E_pad)
    out = out + bo_ref[0].astype(jnp.float32)
    o_ref[...] = out.reshape(bt, s_out, e_pad).astype(o_ref.dtype)


_V7X_VMEM_BYTES = 64 << 20   # smallest per-TC VMEM across v5e / v6e / v7x


def _vmem_capacity_bytes() -> int:
    try:
        return int(pltpu.get_tpu_info().vmem_capacity_bytes)
    except Exception:
        return _V7X_VMEM_BYTES   # conservative fallback (v7x floor)


def _vmem_footprint_bytes(bt, s_in, s_out, e_in, e, e_pad,
                          in_itemsize, out_itemsize, mxu_itemsize) -> int:
    """Rough per-grid-step VMEM footprint (bytes) of mha_kernel."""
    rows_in, rows_out = bt * s_in, bt * s_out
    # activation blocks: BlockSpec double-buffers each pipelined operand
    act = (2 * in_itemsize * (2 * rows_in + rows_out) * e_in
           + 2 * out_itemsize * rows_out * e_pad)
    # weights/biases: single-buffered (constant index_map + pl.Buffered(1))
    wts = in_itemsize * (3 * e_in * e + 3 * e + e * e_pad + e_pad)
    # f32 projection outputs, one live head's score/prob tiles, output-proj acc
    interm = 4 * ((2 * rows_in + rows_out) * e
                  + 2 * bt * s_out * s_in
                  + rows_out * e_pad)
    scratch = mxu_itemsize * rows_out * e        # assembled per-head outputs
    return act + wts + interm + scratch


def _choose_batch_tile(n, s_in, s_out, e_in, e, e_pad,
                       in_itemsize, out_itemsize, mxu_itemsize,
                       vmem_budget) -> int:
    """Largest divisor-of-N batch tile whose footprint fits the VMEM budget.

    Preference order (per review): keep >= 2 grid steps (DMA/compute overlap,
    lets v7x's 2 TCs share the 'parallel' axis); keep the step count even
    (balanced across v7x's TensorCores); grow rows/step toward the 256-512-row
    MXU sweet spot; then take the biggest tile (fewest per-step overheads).
    """
    divisors = [t for t in range(1, n + 1) if n % t == 0]
    fitting = [t for t in divisors
               if _vmem_footprint_bytes(t, s_in, s_out, e_in, e, e_pad,
                                        in_itemsize, out_itemsize,
                                        mxu_itemsize) <= vmem_budget]
    if not fitting:          # even Bt=1 exceeds budget; sequence tiling would
        fitting = [1]        # be the next lever (out of scope here)
    s_rows = max(s_in, s_out)

    def pref(bt):
        steps = n // bt
        return (steps >= 2,
                steps % 2 == 0 or steps == 1,
                min(bt * s_rows, 512),
                bt)

    return max(fitting, key=pref)


def _cost_estimate(n, s_in, s_out, e_in, e, e_pad, num_head,
                   in_itemsize, out_itemsize):
    flops = (2 * n * e_in * e * (2 * s_in + s_out)       # K/V/Q projections
             + 2 * 2 * n * s_out * s_in * e              # QK^T and P@V, all heads
             + 2 * n * s_out * e * e_pad)                # output projection
    transcendentals = n * num_head * s_out * (s_in + 1)  # exp + reciprocal
    bytes_accessed = (in_itemsize * (n * (2 * s_in + s_out) * e_in
                                     + 3 * e_in * e + 3 * e
                                     + e * e_pad + e_pad)
                      + out_itemsize * n * s_out * e_pad)
    return pl.CostEstimate(flops=int(flops),
                           transcendentals=int(transcendentals),
                           bytes_accessed=int(bytes_accessed))


def multi_head_attention(key, query, value, params, *, num_head: int,
                         mxu_dtype=None):
    N, S_in, E = key.shape
    _, S_out, _ = query.shape
    wk, bk, wq, bq, wv, bv, wo, bo = params
    assert E % num_head == 0, "embed_dim must be divisible by num_head"

    # MXU-operand dtype for the attention matmuls (accumulation is always f32).
    mxu_dtype = jnp.dtype(key.dtype if mxu_dtype is None else mxu_dtype)

    # Lane-dense output: pad the output-projection width to a multiple of 128
    # so in-kernel stores are full unmasked vst's; sliced off after the call.
    E_pad = _round_up(E, 128)
    wo_p = jnp.pad(wo, ((0, 0), (0, E_pad - E))) if E_pad != E else wo
    bo_p = jnp.pad(bo, (0, E_pad - E)) if E_pad != E else bo

    # Lane-dense contraction: zero-pad the input embed dim (and the matching
    # weight rows) to a multiple of 128 — exact (zero rows contribute nothing)
    # and a no-op at production E.
    E_in = _round_up(E, 128)
    if E_in != E:
        pad_in = ((0, 0), (0, 0), (0, E_in - E))
        key_p = jnp.pad(key, pad_in)
        query_p = jnp.pad(query, pad_in)
        value_p = jnp.pad(value, pad_in)
        pad_w = ((0, E_in - E), (0, 0))
        wk_p, wq_p, wv_p = (jnp.pad(w, pad_w) for w in (wk, wq, wv))
    else:
        key_p, query_p, value_p = key, query, value
        wk_p, wq_p, wv_p = wk, wq, wv

    # biases passed as (1, E) so every operand is >= 2-D
    bk2, bq2, bv2 = (b.reshape(1, E) for b in (bk, bq, bv))
    bo2 = bo_p.reshape(1, E_pad)

    in_itemsize = key.dtype.itemsize
    out_itemsize = query.dtype.itemsize
    mxu_itemsize = mxu_dtype.itemsize

    # ---- per-generation tiling: budget against THIS chip's VMEM -------------
    vmem_cap = _vmem_capacity_bytes()        # 128 MiB v5e/v6e, 64 MiB v7x
    vmem_budget = (vmem_cap * 3) // 4        # 25% headroom for compiler temps
    Bt = _choose_batch_tile(N, S_in, S_out, E_in, E, E_pad,
                            in_itemsize, out_itemsize, mxu_itemsize,
                            vmem_budget)
    grid = (N // Bt,)
    footprint = _vmem_footprint_bytes(Bt, S_in, S_out, E_in, E, E_pad,
                                      in_itemsize, out_itemsize, mxu_itemsize)
    vmem_limit = int(min(vmem_cap,
                         max(footprint * 5 // 4 + (2 << 20), 32 << 20)))

    kernel = functools.partial(mha_kernel, num_head=num_head,
                               mxu_dtype=mxu_dtype)
    cost = _cost_estimate(N, S_in, S_out, E_in, E, E_pad, num_head,
                          in_itemsize, out_itemsize)

    def run(single_buffer_weights: bool):
        # Weights/biases have a constant index_map — single-buffer them so the
        # pipeline does not keep two copies of the 3*E^2 + E*E_pad bytes resident.
        wmode = ({"pipeline_mode": pl.Buffered(1)}
                 if single_buffer_weights else {})
        seq_spec_in = pl.BlockSpec((Bt, S_in, E_in), lambda b: (b, 0, 0))
        seq_spec_out = pl.BlockSpec((Bt, S_out, E_in), lambda b: (b, 0, 0))
        w_spec = pl.BlockSpec((E_in, E), lambda b: (0, 0), **wmode)
        b_spec = pl.BlockSpec((1, E), lambda b: (0, 0), **wmode)
        wo_spec = pl.BlockSpec((E, E_pad), lambda b: (0, 0), **wmode)
        bo_spec = pl.BlockSpec((1, E_pad), lambda b: (0, 0), **wmode)
        out_spec = pl.BlockSpec((Bt, S_out, E_pad), lambda b: (b, 0, 0))

        return pl.pallas_call(
            kernel,
            out_shape=jax.ShapeDtypeStruct((N, S_out, E_pad), query.dtype),
            grid_spec=pltpu.PrefetchScalarGridSpec(
                num_scalar_prefetch=0,
                grid=grid,
                in_specs=[seq_spec_in, seq_spec_out, seq_spec_in,
                          w_spec, b_spec, w_spec, b_spec, w_spec, b_spec,
                          wo_spec, bo_spec],
                out_specs=out_spec,
                scratch_shapes=[pltpu.VMEM((Bt * S_out, E), mxu_dtype)]),
            compiler_params=pltpu.CompilerParams(
                dimension_semantics=("parallel",),
                vmem_limit_bytes=vmem_limit),
            cost_estimate=cost,
        )(key_p, query_p, value_p, wk_p, bk2, wq_p, bq2, wv_p, bv2, wo_p, bo2)

    try:
        out_padded = run(single_buffer_weights=True)
    except Exception:
        # pl.Buffered(1) single-buffering unavailable on this jax build —
        # fall back to the default (double-buffered) weight pipelining.
        out_padded = run(single_buffer_weights=False)

    return out_padded[..., :E] if E_pad != E else out_padded


def reference_mha(key, query, value, params, *, num_head: int):
    """Pure-JAX reference mirroring the PyTorch forward."""
    N, S_in, E = key.shape
    _, S_out, _ = query.shape
    D = E // num_head
    wk, bk, wq, bq, wv, bv, wo, bo = params

    k_e = (key @ wk + bk).reshape(N, S_in, num_head, D).transpose(0, 2, 1, 3)
    q_e = (query @ wq + bq).reshape(N, S_out, num_head, D).transpose(0, 2, 1, 3)
    v_e = (value @ wv + bv).reshape(N, S_in, num_head, D).transpose(0, 2, 1, 3)

    w = jnp.einsum("nhqd,nhkd->nhqk", q_e, k_e) / jnp.sqrt(jnp.float32(D))
    w = jax.nn.softmax(w, axis=-1)
    attn = jnp.einsum("nhqk,nhkd->nhqd", w, v_e)
    attn = attn.transpose(0, 2, 1, 3).reshape(N, S_out, E)
    return attn @ wo + bo


if __name__ == "__main__":
    N, S_in, S_out, E, H = 32, 8, 8, 32, 4

    root = jax.random.PRNGKey(0)
    keys = jax.random.split(root, 12)
    scale = 0.1
    # weights stored (in, out); equivalent to PyTorch Linear weight.T
    wk = scale * jax.random.normal(keys[0], (E, E), jnp.float32)
    bk = scale * jax.random.normal(keys[1], (E,), jnp.float32)
    wq = scale * jax.random.normal(keys[2], (E, E), jnp.float32)
    bq = scale * jax.random.normal(keys[3], (E,), jnp.float32)
    wv = scale * jax.random.normal(keys[4], (E, E), jnp.float32)
    bv = scale * jax.random.normal(keys[5], (E,), jnp.float32)
    wo = scale * jax.random.normal(keys[6], (E, E), jnp.float32)
    bo = scale * jax.random.normal(keys[7], (E,), jnp.float32)
    params = (wk, bk, wq, bq, wv, bv, wo, bo)

    key_in = jax.random.normal(keys[8], (N, S_in, E), jnp.float32)
    query_in = jax.random.normal(keys[9], (N, S_out, E), jnp.float32)
    value_in = jax.random.normal(keys[10], (N, S_in, E), jnp.float32)

    ref = reference_mha(key_in, query_in, value_in, params, num_head=H)

    # default path: MXU operands in the input dtype (f32 here)
    out = multi_head_attention(key_in, query_in, value_in, params, num_head=H)
    out = jax.block_until_ready(out)
    assert out.shape == (N, S_out, E)
    # tolerance relaxed slightly vs 1e-4: softmax uses the EUP approx reciprocal
    assert jnp.allclose(out, ref, atol=2e-3, rtol=2e-3), "f32 path mismatch"

    # bf16 MXU-operand path (review item for v6e/v7x); accumulation stays f32,
    # so only operand rounding loosens the tolerance.
    out_bf16 = multi_head_attention(key_in, query_in, value_in, params,
                                    num_head=H, mxu_dtype=jnp.bfloat16)
    out_bf16 = jax.block_until_ready(out_bf16)
    assert out_bf16.shape == (N, S_out, E)
    assert jnp.allclose(out_bf16, ref, atol=3e-2, rtol=3e-2), "bf16 path mismatch"

    print("KERNEL_OK")
</pallas_src>

<mosaic_0001>
module attributes {stable_mosaic.version = 11 : i64} {
  func.func @mha_kernel(%arg0: i32, %arg1: memref<16x8x128xf32, #tpu.memory_space<vmem>>, %arg2: memref<16x8x128xf32, #tpu.memory_space<vmem>>, %arg3: memref<16x8x128xf32, #tpu.memory_space<vmem>>, %arg4: memref<128x32xf32, #tpu.memory_space<vmem>>, %arg5: memref<1x32xf32, #tpu.memory_space<vmem>>, %arg6: memref<128x32xf32, #tpu.memory_space<vmem>>, %arg7: memref<1x32xf32, #tpu.memory_space<vmem>>, %arg8: memref<128x32xf32, #tpu.memory_space<vmem>>, %arg9: memref<1x32xf32, #tpu.memory_space<vmem>>, %arg10: memref<32x128xf32, #tpu.memory_space<vmem>>, %arg11: memref<1x128xf32, #tpu.memory_space<vmem>>, %arg12: memref<16x8x128xf32, #tpu.memory_space<vmem>>, %arg13: memref<128x32xf32, #tpu.memory_space<vmem>>) attributes {dimension_semantics = [#tpu.dimension_semantics<parallel>], iteration_bounds = array<i64: 2>, scalar_prefetch = 0 : i64, scratch_operands = 1 : i64, tpu.core_type = #tpu.core_type<tc>, window_params = [{transform_indices = @transform_0, window_bounds = array<i64: 16, 8, 128>}, {transform_indices = @transform_1, window_bounds = array<i64: 16, 8, 128>}, {transform_indices = @transform_2, window_bounds = array<i64: 16, 8, 128>}, {pipeline_mode = #tpu.pipeline_mode<synchronous>, transform_indices = @transform_3, window_bounds = array<i64: 128, 32>}, {pipeline_mode = #tpu.pipeline_mode<synchronous>, transform_indices = @transform_4, window_bounds = array<i64: 1, 32>}, {pipeline_mode = #tpu.pipeline_mode<synchronous>, transform_indices = @transform_5, window_bounds = array<i64: 128, 32>}, {pipeline_mode = #tpu.pipeline_mode<synchronous>, transform_indices = @transform_6, window_bounds = array<i64: 1, 32>}, {pipeline_mode = #tpu.pipeline_mode<synchronous>, transform_indices = @transform_7, window_bounds = array<i64: 128, 32>}, {pipeline_mode = #tpu.pipeline_mode<synchronous>, transform_indices = @transform_8, window_bounds = array<i64: 1, 32>}, {pipeline_mode = #tpu.pipeline_mode<synchronous>, transform_indices = @transform_9, window_bounds = array<i64: 32, 128>}, {pipeline_mode = #tpu.pipeline_mode<synchronous>, transform_indices = @transform_10, window_bounds = array<i64: 1, 128>}, {transform_indices = @transform_11, window_bounds = array<i64: 16, 8, 128>}]} {
    %c0 = arith.constant 0 : index
    %c0_0 = arith.constant 0 : index
    %c0_1 = arith.constant 0 : index
    %0 = vector.load %arg1[%c0, %c0_0, %c0_1] : memref<16x8x128xf32, #tpu.memory_space<vmem>>, vector<16x8x128xf32>
    %1 = vector.shape_cast %0 : vector<16x8x128xf32> to vector<128x128xf32>
    %c0_2 = arith.constant 0 : index
    %c0_3 = arith.constant 0 : index
    %c0_4 = arith.constant 0 : index
    %2 = vector.load %arg2[%c0_2, %c0_3, %c0_4] : memref<16x8x128xf32, #tpu.memory_space<vmem>>, vector<16x8x128xf32>
    %3 = vector.shape_cast %2 : vector<16x8x128xf32> to vector<128x128xf32>
    %c0_5 = arith.constant 0 : index
    %c0_6 = arith.constant 0 : index
    %c0_7 = arith.constant 0 : index
    %4 = vector.load %arg3[%c0_5, %c0_6, %c0_7] : memref<16x8x128xf32, #tpu.memory_space<vmem>>, vector<16x8x128xf32>
    %5 = vector.shape_cast %4 : vector<16x8x128xf32> to vector<128x128xf32>
    %c0_8 = arith.constant 0 : index
    %c0_9 = arith.constant 0 : index
    %6 = vector.load %arg4[%c0_8, %c0_9] : memref<128x32xf32, #tpu.memory_space<vmem>>, vector<128x32xf32>
    %cst = arith.constant dense<0.000000e+00> : vector<128x32xf32>
    %7 = tpu.matmul %1, %6, %cst {dimension_numbers = #tpu.dot_dimension_numbers<[1], [0], [0], [1], [0, 0, 1, 1], [], []>} : vector<128x128xf32>, vector<128x32xf32>, vector<128x32xf32> -> vector<128x32xf32>
    %c0_10 = arith.constant 0 : index
    %c0_11 = arith.constant 0 : index
    %8 = vector.load %arg5[%c0_10, %c0_11] : memref<1x32xf32, #tpu.memory_space<vmem>>, vector<1x32xf32>
    %9 = vector.shape_cast %8 : vector<1x32xf32> to vector<32xf32>
    %10 = vector.shape_cast %9 : vector<32xf32> to vector<1x32xf32>
    %11 = vector.broadcast %10 : vector<1x32xf32> to vector<128x32xf32>
    %12 = arith.addf %7, %11 : vector<128x32xf32>
    %c0_12 = arith.constant 0 : index
    %c0_13 = arith.constant 0 : index
    %13 = vector.load %arg6[%c0_12, %c0_13] : memref<128x32xf32, #tpu.memory_space<vmem>>, vector<128x32xf32>
    %cst_14 = arith.constant dense<0.000000e+00> : vector<128x32xf32>
    %14 = tpu.matmul %3, %13, %cst_14 {dimension_numbers = #tpu.dot_dimension_numbers<[1], [0], [0], [1], [0, 0, 1, 1], [], []>} : vector<128x128xf32>, vector<128x32xf32>, vector<128x32xf32> -> vector<128x32xf32>
    %c0_15 = arith.constant 0 : index
    %c0_16 = arith.constant 0 : index
    %15 = vector.load %arg7[%c0_15, %c0_16] : memref<1x32xf32, #tpu.memory_space<vmem>>, vector<1x32xf32>
    %16 = vector.shape_cast %15 : vector<1x32xf32> to vector<32xf32>
    %17 = vector.shape_cast %16 : vector<32xf32> to vector<1x32xf32>
    %18 = vector.broadcast %17 : vector<1x32xf32> to vector<128x32xf32>
    %19 = arith.addf %14, %18 : vector<128x32xf32>
    %c0_17 = arith.constant 0 : index
    %c0_18 = arith.constant 0 : index
    %20 = vector.load %arg8[%c0_17, %c0_18] : memref<128x32xf32, #tpu.memory_space<vmem>>, vector<128x32xf32>
    %cst_19 = arith.constant dense<0.000000e+00> : vector<128x32xf32>
    %21 = tpu.matmul %5, %20, %cst_19 {dimension_numbers = #tpu.dot_dimension_numbers<[1], [0], [0], [1], [0, 0, 1, 1], [], []>} : vector<128x128xf32>, vector<128x32xf32>, vector<128x32xf32> -> vector<128x32xf32>
    %c0_20 = arith.constant 0 : index
    %c0_21 = arith.constant 0 : index
    %22 = vector.load %arg9[%c0_20, %c0_21] : memref<1x32xf32, #tpu.memory_space<vmem>>, vector<1x32xf32>
    %23 = vector.shape_cast %22 : vector<1x32xf32> to vector<32xf32>
    %24 = vector.shape_cast %23 : vector<32xf32> to vector<1x32xf32>
    %25 = vector.broadcast %24 : vector<1x32xf32> to vector<128x32xf32>
    %26 = arith.addf %21, %25 : vector<128x32xf32>
    %cst_22 = arith.constant 0.353553385 : f32
    %27 = vector.broadcast %cst_22 : f32 to vector<128x32xf32>
    %28 = arith.mulf %19, %27 : vector<128x32xf32>
    %29 = vector.shape_cast %28 : vector<128x32xf32> to vector<16x8x32xf32>
    %30 = vector.shape_cast %12 : vector<128x32xf32> to vector<16x8x32xf32>
    %31 = vector.shape_cast %26 : vector<128x32xf32> to vector<16x8x32xf32>
    %32 = vector.extract_strided_slice %29 {offsets = [0, 0, 0], sizes = [16, 8, 8], strides = [1, 1, 1]} : vector<16x8x32xf32> to vector<16x8x8xf32>
    %33 = vector.extract_strided_slice %30 {offsets = [0, 0, 0], sizes = [16, 8, 8], strides = [1, 1, 1]} : vector<16x8x32xf32> to vector<16x8x8xf32>
    %34 = vector.extract_strided_slice %31 {offsets = [0, 0, 0], sizes = [16, 8, 8], strides = [1, 1, 1]} : vector<16x8x32xf32> to vector<16x8x8xf32>
    "tpu.trace_start"() <{level = 10 : i32, message = "bqd,bkd->bqk"}> : () -> ()
    %cst_23 = arith.constant dense<0.000000e+00> : vector<16x8x8xf32>
    %35 = tpu.matmul %32, %33, %cst_23 {dimension_numbers = #tpu.dot_dimension_numbers<[2], [2], [1], [1], [0, 0, 0, 1, 1, 1], [0], [0]>} : vector<16x8x8xf32>, vector<16x8x8xf32>, vector<16x8x8xf32> -> vector<16x8x8xf32>
    "tpu.trace_stop"() : () -> ()
    %cst_24 = arith.constant dense<0xFF800000> : vector<16x8xf32>
    %36 = vector.multi_reduction <maximumf>, %35, %cst_24 [2] : vector<16x8x8xf32> to vector<16x8xf32>
    %37 = vector.shape_cast %36 : vector<16x8xf32> to vector<16x8x1xf32>
    %38 = vector.broadcast %37 : vector<16x8x1xf32> to vector<16x8x8xf32>
    %39 = arith.subf %35, %38 : vector<16x8x8xf32>
    %40 = math.exp %39 : vector<16x8x8xf32>
    %cst_25 = arith.constant dense<0.000000e+00> : vector<16x8xf32>
    %41 = vector.multi_reduction <add>, %40, %cst_25 [2] : vector<16x8x8xf32> to vector<16x8xf32>
    %42 = vector.shape_cast %41 : vector<16x8xf32> to vector<16x8x1xf32>
    %43 = tpu.reciprocal %42 {approx = true} : vector<16x8x1xf32> -> vector<16x8x1xf32>
    %44 = vector.broadcast %43 : vector<16x8x1xf32> to vector<16x8x8xf32>
    %45 = arith.mulf %40, %44 : vector<16x8x8xf32>
    "tpu.trace_start"() <{level = 10 : i32, message = "bqk,bkd->bqd"}> : () -> ()
    %cst_26 = arith.constant dense<0.000000e+00> : vector<16x8x8xf32>
    %46 = tpu.matmul %45, %34, %cst_26 {dimension_numbers = #tpu.dot_dimension_numbers<[2], [1], [1], [2], [0, 0, 0, 1, 1, 2], [0], [0]>} : vector<16x8x8xf32>, vector<16x8x8xf32>, vector<16x8x8xf32> -> vector<16x8x8xf32>
    "tpu.trace_stop"() : () -> ()
    %47 = vector.shape_cast %46 : vector<16x8x8xf32> to vector<128x8xf32>
    %c0_27 = arith.constant 0 : index
    %c0_28 = arith.constant 0 : index
    %48 = vector.load %arg13[%c0_27, %c0_28] : memref<128x32xf32, #tpu.memory_space<vmem>>, vector<128x8xf32>
    tpu.vector_store %arg13[%c0_27, %c0_28], %47 {strides = array<i32>} : memref<128x32xf32, #tpu.memory_space<vmem>>, vector<128x8xf32>,
    %49 = vector.extract_strided_slice %29 {offsets = [0, 0, 8], sizes = [16, 8, 8], strides = [1, 1, 1]} : vector<16x8x32xf32> to vector<16x8x8xf32>
    %50 = vector.extract_strided_slice %30 {offsets = [0, 0, 8], sizes = [16, 8, 8], strides = [1, 1, 1]} : vector<16x8x32xf32> to vector<16x8x8xf32>
    %51 = vector.extract_strided_slice %31 {offsets = [0, 0, 8], sizes = [16, 8, 8], strides = [1, 1, 1]} : vector<16x8x32xf32> to vector<16x8x8xf32>
    "tpu.trace_start"() <{level = 10 : i32, message = "bqd,bkd->bqk"}> : () -> ()
    %cst_29 = arith.constant dense<0.000000e+00> : vector<16x8x8xf32>
    %52 = tpu.matmul %49, %50, %cst_29 {dimension_numbers = #tpu.dot_dimension_numbers<[2], [2], [1], [1], [0, 0, 0, 1, 1, 1], [0], [0]>} : vector<16x8x8xf32>, vector<16x8x8xf32>, vector<16x8x8xf32> -> vector<16x8x8xf32>
    "tpu.trace_stop"() : () -> ()
    %cst_30 = arith.constant dense<0xFF800000> : vector<16x8xf32>
    %53 = vector.multi_reduction <maximumf>, %52, %cst_30 [2] : vector<16x8x8xf32> to vector<16x8xf32>
    %54 = vector.shape_cast %53 : vector<16x8xf32> to vector<16x8x1xf32>
    %55 = vector.broadcast %54 : vector<16x8x1xf32> to vector<16x8x8xf32>
    %56 = arith.subf %52, %55 : vector<16x8x8xf32>
    %57 = math.exp %56 : vector<16x8x8xf32>
    %cst_31 = arith.constant dense<0.000000e+00> : vector<16x8xf32>
    %58 = vector.multi_reduction <add>, %57, %cst_31 [2] : vector<16x8x8xf32> to vector<16x8xf32>
    %59 = vector.shape_cast %58 : vector<16x8xf32> to vector<16x8x1xf32>
    %60 = tpu.reciprocal %59 {approx = true} : vector<16x8x1xf32> -> vector<16x8x1xf32>
    %61 = vector.broadcast %60 : vector<16x8x1xf32> to vector<16x8x8xf32>
    %62 = arith.mulf %57, %61 : vector<16x8x8xf32>
    "tpu.trace_start"() <{level = 10 : i32, message = "bqk,bkd->bqd"}> : () -> ()
    %cst_32 = arith.constant dense<0.000000e+00> : vector<16x8x8xf32>
    %63 = tpu.matmul %62, %51, %cst_32 {dimension_numbers = #tpu.dot_dimension_numbers<[2], [1], [1], [2], [0, 0, 0, 1, 1, 2], [0], [0]>} : vector<16x8x8xf32>, vector<16x8x8xf32>, vector<16x8x8xf32> -> vector<16x8x8xf32>
    "tpu.trace_stop"() : () -> ()
    %64 = vector.shape_cast %63 : vector<16x8x8xf32> to vector<128x8xf32>
    %c0_33 = arith.constant 0 : index
    %c8 = arith.constant 8 : index
    %65 = vector.load %arg13[%c0_33, %c8] : memref<128x32xf32, #tpu.memory_space<vmem>>, vector<128x8xf32>
    tpu.vector_store %arg13[%c0_33, %c8], %64 {strides = array<i32>} : memref<128x32xf32, #tpu.memory_space<vmem>>, vector<128x8xf32>,
    %66 = vector.extract_strided_slice %29 {offsets = [0, 0, 16], sizes = [16, 8, 8], strides = [1, 1, 1]} : vector<16x8x32xf32> to vector<16x8x8xf32>
    %67 = vector.extract_strided_slice %30 {offsets = [0, 0, 16], sizes = [16, 8, 8], strides = [1, 1, 1]} : vector<16x8x32xf32> to vector<16x8x8xf32>
    %68 = vector.extract_strided_slice %31 {offsets = [0, 0, 16], sizes = [16, 8, 8], strides = [1, 1, 1]} : vector<16x8x32xf32> to vector<16x8x8xf32>
    "tpu.trace_start"() <{level = 10 : i32, message = "bqd,bkd->bqk"}> : () -> ()
    %cst_34 = arith.constant dense<0.000000e+00> : vector<16x8x8xf32>
    %69 = tpu.matmul %66, %67, %cst_34 {dimension_numbers = #tpu.dot_dimension_numbers<[2], [2], [1], [1], [0, 0, 0, 1, 1, 1], [0], [0]>} : vector<16x8x8xf32>, vector<16x8x8xf32>, vector<16x8x8xf32> -> vector<16x8x8xf32>
    "tpu.trace_stop"() : () -> ()
    %cst_35 = arith.constant dense<0xFF800000> : vector<16x8xf32>
    %70 = vector.multi_reduction <maximumf>, %69, %cst_35 [2] : vector<16x8x8xf32> to vector<16x8xf32>
    %71 = vector.shape_cast %70 : vector<16x8xf32> to vector<16x8x1xf32>
    %72 = vector.broadcast %71 : vector<16x8x1xf32> to vector<16x8x8xf32>
    %73 = arith.subf %69, %72 : vector<16x8x8xf32>
    %74 = math.exp %73 : vector<16x8x8xf32>
    %cst_36 = arith.constant dense<0.000000e+00> : vector<16x8xf32>
    %75 = vector.multi_reduction <add>, %74, %cst_36 [2] : vector<16x8x8xf32> to vector<16x8xf32>
    %76 = vector.shape_cast %75 : vector<16x8xf32> to vector<16x8x1xf32>
    %77 = tpu.reciprocal %76 {approx = true} : vector<16x8x1xf32> -> vector<16x8x1xf32>
    %78 = vector.broadcast %77 : vector<16x8x1xf32> to vector<16x8x8xf32>
    %79 = arith.mulf %74, %78 : vector<16x8x8xf32>
    "tpu.trace_start"() <{level = 10 : i32, message = "bqk,bkd->bqd"}> : () -> ()
    %cst_37 = arith.constant dense<0.000000e+00> : vector<16x8x8xf32>
    %80 = tpu.matmul %79, %68, %cst_37 {dimension_numbers = #tpu.dot_dimension_numbers<[2], [1], [1], [2], [0, 0, 0, 1, 1, 2], [0], [0]>} : vector<16x8x8xf32>, vector<16x8x8xf32>, vector<16x8x8xf32> -> vector<16x8x8xf32>
    "tpu.trace_stop"() : () -> ()
    %81 = vector.shape_cast %80 : vector<16x8x8xf32> to vector<128x8xf32>
    %c0_38 = arith.constant 0 : index
    %c16 = arith.constant 16 : index
    %82 = vector.load %arg13[%c0_38, %c16] : memref<128x32xf32, #tpu.memory_space<vmem>>, vector<128x8xf32>
    tpu.vector_store %arg13[%c0_38, %c16], %81 {strides = array<i32>} : memref<128x32xf32, #tpu.memory_space<vmem>>, vector<128x8xf32>,
    %83 = vector.extract_strided_slice %29 {offsets = [0, 0, 24], sizes = [16, 8, 8], strides = [1, 1, 1]} : vector<16x8x32xf32> to vector<16x8x8xf32>
    %84 = vector.extract_strided_slice %30 {offsets = [0, 0, 24], sizes = [16, 8, 8], strides = [1, 1, 1]} : vector<16x8x32xf32> to vector<16x8x8xf32>
    %85 = vector.extract_strided_slice %31 {offsets = [0, 0, 24], sizes = [16, 8, 8], strides = [1, 1, 1]} : vector<16x8x32xf32> to vector<16x8x8xf32>
    "tpu.trace_start"() <{level = 10 : i32, message = "bqd,bkd->bqk"}> : () -> ()
    %cst_39 = arith.constant dense<0.000000e+00> : vector<16x8x8xf32>
    %86 = tpu.matmul %83, %84, %cst_39 {dimension_numbers = #tpu.dot_dimension_numbers<[2], [2], [1], [1], [0, 0, 0, 1, 1, 1], [0], [0]>} : vector<16x8x8xf32>, vector<16x8x8xf32>, vector<16x8x8xf32> -> vector<16x8x8xf32>
    "tpu.trace_stop"() : () -> ()
    %cst_40 = arith.constant dense<0xFF800000> : vector<16x8xf32>
    %87 = vector.multi_reduction <maximumf>, %86, %cst_40 [2] : vector<16x8x8xf32> to vector<16x8xf32>
    %88 = vector.shape_cast %87 : vector<16x8xf32> to vector<16x8x1xf32>
    %89 = vector.broadcast %88 : vector<16x8x1xf32> to vector<16x8x8xf32>
    %90 = arith.subf %86, %89 : vector<16x8x8xf32>
    %91 = math.exp %90 : vector<16x8x8xf32>
    %cst_41 = arith.constant dense<0.000000e+00> : vector<16x8xf32>
    %92 = vector.multi_reduction <add>, %91, %cst_41 [2] : vector<16x8x8xf32> to vector<16x8xf32>
    %93 = vector.shape_cast %92 : vector<16x8xf32> to vector<16x8x1xf32>
    %94 = tpu.reciprocal %93 {approx = true} : vector<16x8x1xf32> -> vector<16x8x1xf32>
    %95 = vector.broadcast %94 : vector<16x8x1xf32> to vector<16x8x8xf32>
    %96 = arith.mulf %91, %95 : vector<16x8x8xf32>
    "tpu.trace_start"() <{level = 10 : i32, message = "bqk,bkd->bqd"}> : () -> ()
    %cst_42 = arith.constant dense<0.000000e+00> : vector<16x8x8xf32>
    %97 = tpu.matmul %96, %85, %cst_42 {dimension_numbers = #tpu.dot_dimension_numbers<[2], [1], [1], [2], [0, 0, 0, 1, 1, 2], [0], [0]>} : vector<16x8x8xf32>, vector<16x8x8xf32>, vector<16x8x8xf32> -> vector<16x8x8xf32>
    "tpu.trace_stop"() : () -> ()
    %98 = vector.shape_cast %97 : vector<16x8x8xf32> to vector<128x8xf32>
    %c0_43 = arith.constant 0 : index
    %c24 = arith.constant 24 : index
    %99 = vector.load %arg13[%c0_43, %c24] : memref<128x32xf32, #tpu.memory_space<vmem>>, vector<128x8xf32>
    tpu.vector_store %arg13[%c0_43, %c24], %98 {strides = array<i32>} : memref<128x32xf32, #tpu.memory_space<vmem>>, vector<128x8xf32>,
    %c0_44 = arith.constant 0 : index
    %c0_45 = arith.constant 0 : index
    %100 = vector.load %arg13[%c0_44, %c0_45] : memref<128x32xf32, #tpu.memory_space<vmem>>, vector<128x32xf32>
    %c0_46 = arith.constant 0 : index
    %c0_47 = arith.constant 0 : index
    %101 = vector.load %arg10[%c0_46, %c0_47] : memref<32x128xf32, #tpu.memory_space<vmem>>, vector<32x128xf32>
    %cst_48 = arith.constant dense<0.000000e+00> : vector<128x128xf32>
    %102 = tpu.matmul %100, %101, %cst_48 {dimension_numbers = #tpu.dot_dimension_numbers<[1], [0], [0], [1], [0, 0, 1, 1], [], []>} : vector<128x32xf32>, vector<32x128xf32>, vector<128x128xf32> -> vector<128x128xf32>
    %c0_49 = arith.constant 0 : index
    %c0_50 = arith.constant 0 : index
    %103 = vector.load %arg11[%c0_49, %c0_50] : memref<1x128xf32, #tpu.memory_space<vmem>>, vector<1x128xf32>
    %104 = vector.shape_cast %103 : vector<1x128xf32> to vector<128xf32>
    %105 = vector.shape_cast %104 : vector<128xf32> to vector<1x128xf32>
    %106 = vector.broadcast %105 : vector<1x128xf32> to vector<128x128xf32>
    %107 = arith.addf %102, %106 : vector<128x128xf32>
    %108 = vector.shape_cast %107 : vector<128x128xf32> to vector<16x8x128xf32>
    %c0_51 = arith.constant 0 : index
    %c0_52 = arith.constant 0 : index
    %c0_53 = arith.constant 0 : index
    %109 = vector.load %arg12[%c0_51, %c0_52, %c0_53] : memref<16x8x128xf32, #tpu.memory_space<vmem>>, vector<16x8x128xf32>
    tpu.vector_store %arg12[%c0_51, %c0_52, %c0_53], %108 {strides = array<i32>} : memref<16x8x128xf32, #tpu.memory_space<vmem>>, vector<16x8x128xf32>,
    return
  }
  func.func @transform_0(%arg0: i32) -> (i32, i32, i32) {
    %c0_i32 = arith.constant 0 : i32
    %c0_i32_0 = arith.constant 0 : i32
    %c0_i32_1 = arith.constant 0 : i32
    return %arg0, %c0_i32, %c0_i32_0 : i32, i32, i32
  }
  func.func @transform_1(%arg0: i32) -> (i32, i32, i32) {
    %c0_i32 = arith.constant 0 : i32
    %c0_i32_0 = arith.constant 0 : i32
    %c0_i32_1 = arith.constant 0 : i32
    return %arg0, %c0_i32, %c0_i32_0 : i32, i32, i32
  }
  func.func @transform_2(%arg0: i32) -> (i32, i32, i32) {
    %c0_i32 = arith.constant 0 : i32
    %c0_i32_0 = arith.constant 0 : i32
    %c0_i32_1 = arith.constant 0 : i32
    return %arg0, %c0_i32, %c0_i32_0 : i32, i32, i32
  }
  func.func @transform_3(%arg0: i32) -> (i32, i32) {
    %c0_i32 = arith.constant 0 : i32
    %c0_i32_0 = arith.constant 0 : i32
    %c0_i32_1 = arith.constant 0 : i32
    return %c0_i32, %c0_i32_0 : i32, i32
  }
  func.func @transform_4(%arg0: i32) -> (i32, i32) {
    %c0_i32 = arith.constant 0 : i32
    %c0_i32_0 = arith.constant 0 : i32
    %c0_i32_1 = arith.constant 0 : i32
    return %c0_i32, %c0_i32_0 : i32, i32
  }
  func.func @transform_5(%arg0: i32) -> (i32, i32) {
    %c0_i32 = arith.constant 0 : i32
    %c0_i32_0 = arith.constant 0 : i32
    %c0_i32_1 = arith.constant 0 : i32
    return %c0_i32, %c0_i32_0 : i32, i32
  }
  func.func @transform_6(%arg0: i32) -> (i32, i32) {
    %c0_i32 = arith.constant 0 : i32
    %c0_i32_0 = arith.constant 0 : i32
    %c0_i32_1 = arith.constant 0 : i32
    return %c0_i32, %c0_i32_0 : i32, i32
  }
  func.func @transform_7(%arg0: i32) -> (i32, i32) {
    %c0_i32 = arith.constant 0 : i32
    %c0_i32_0 = arith.constant 0 : i32
    %c0_i32_1 = arith.constant 0 : i32
    return %c0_i32, %c0_i32_0 : i32, i32
  }
  func.func @transform_8(%arg0: i32) -> (i32, i32) {
    %c0_i32 = arith.constant 0 : i32
    %c0_i32_0 = arith.constant 0 : i32
    %c0_i32_1 = arith.constant 0 : i32
    return %c0_i32, %c0_i32_0 : i32, i32
  }
  func.func @transform_9(%arg0: i32) -> (i32, i32) {
    %c0_i32 = arith.constant 0 : i32
    %c0_i32_0 = arith.constant 0 : i32
    %c0_i32_1 = arith.constant 0 : i32
    return %c0_i32, %c0_i32_0 : i32, i32
  }
  func.func @transform_10(%arg0: i32) -> (i32, i32) {
    %c0_i32 = arith.constant 0 : i32
    %c0_i32_0 = arith.constant 0 : i32
    %c0_i32_1 = arith.constant 0 : i32
    return %c0_i32, %c0_i32_0 : i32, i32
  }
  func.func @transform_11(%arg0: i32) -> (i32, i32, i32) {
    %c0_i32 = arith.constant 0 : i32
    %c0_i32_0 = arith.constant 0 : i32
    %c0_i32_1 = arith.constant 0 : i32
    return %arg0, %c0_i32, %c0_i32_0 : i32, i32, i32
  }
}

module attributes {stable_mosaic.version = 11 : i64} {
  func.func @mha_kernel(%arg0: i32, %arg1: memref<16x8x128xf32, #tpu.memory_space<vmem>>, %arg2: memref<16x8x128xf32, #tpu.memory_space<vmem>>, %arg3: memref<16x8x128xf32, #tpu.memory_space<vmem>>, %arg4: memref<128x32xf32, #tpu.memory_space<vmem>>, %arg5: memref<1x32xf32, #tpu.memory_space<vmem>>, %arg6: memref<128x32xf32, #tpu.memory_space<vmem>>, %arg7: memref<1x32xf32, #tpu.memory_space<vmem>>, %arg8: memref<128x32xf32, #tpu.memory_space<vmem>>, %arg9: memref<1x32xf32, #tpu.memory_space<vmem>>, %arg10: memref<32x128xf32, #tpu.memory_space<vmem>>, %arg11: memref<1x128xf32, #tpu.memory_space<vmem>>, %arg12: memref<16x8x128xf32, #tpu.memory_space<vmem>>, %arg13: memref<128x32xf32, #tpu.memory_space<vmem>>) attributes {dimension_semantics = [#tpu.dimension_semantics<parallel>], iteration_bounds = array<i64: 2>, scalar_prefetch = 0 : i64, scratch_operands = 1 : i64, tpu.core_type = #tpu.core_type<tc>, window_params = [{transform_indices = @transform_0, window_bounds = array<i64: 16, 8, 128>}, {transform_indices = @transform_1, window_bounds = array<i64: 16, 8, 128>}, {transform_indices = @transform_2, window_bounds = array<i64: 16, 8, 128>}, {pipeline_mode = #tpu.pipeline_mode<synchronous>, transform_indices = @transform_3, window_bounds = array<i64: 128, 32>}, {pipeline_mode = #tpu.pipeline_mode<synchronous>, transform_indices = @transform_4, window_bounds = array<i64: 1, 32>}, {pipeline_mode = #tpu.pipeline_mode<synchronous>, transform_indices = @transform_5, window_bounds = array<i64: 128, 32>}, {pipeline_mode = #tpu.pipeline_mode<synchronous>, transform_indices = @transform_6, window_bounds = array<i64: 1, 32>}, {pipeline_mode = #tpu.pipeline_mode<synchronous>, transform_indices = @transform_7, window_bounds = array<i64: 128, 32>}, {pipeline_mode = #tpu.pipeline_mode<synchronous>, transform_indices = @transform_8, window_bounds = array<i64: 1, 32>}, {pipeline_mode = #tpu.pipeline_mode<synchronous>, transform_indices = @transform_9, window_bounds = array<i64: 32, 128>}, {pipeline_mode = #tpu.pipeline_mode<synchronous>, transform_indices = @transform_10, window_bounds = array<i64: 1, 128>}, {transform_indices = @transform_11, window_bounds = array<i64: 16, 8, 128>}]} {
    %c0 = arith.constant 0 : index
    %c0_0 = arith.constant 0 : index
    %c0_1 = arith.constant 0 : index
    %0 = vector.load %arg1[%c0, %c0_0, %c0_1] : memref<16x8x128xf32, #tpu.memory_space<vmem>>, vector<16x8x128xf32>
    %1 = vector.shape_cast %0 : vector<16x8x128xf32> to vector<128x128xf32>
    %c0_2 = arith.constant 0 : index
    %c0_3 = arith.constant 0 : index
    %c0_4 = arith.constant 0 : index
    %2 = vector.load %arg2[%c0_2, %c0_3, %c0_4] : memref<16x8x128xf32, #tpu.memory_space<vmem>>, vector<16x8x128xf32>
    %3 = vector.shape_cast %2 : vector<16x8x128xf32> to vector<128x128xf32>
    %c0_5 = arith.constant 0 : index
    %c0_6 = arith.constant 0 : index
    %c0_7 = arith.constant 0 : index
    %4 = vector.load %arg3[%c0_5, %c0_6, %c0_7] : memref<16x8x128xf32, #tpu.memory_space<vmem>>, vector<16x8x128xf32>
    %5 = vector.shape_cast %4 : vector<16x8x128xf32> to vector<128x128xf32>
    %c0_8 = arith.constant 0 : index
    %c0_9 = arith.constant 0 : index
    %6 = vector.load %arg4[%c0_8, %c0_9] : memref<128x32xf32, #tpu.memory_space<vmem>>, vector<128x32xf32>
    %cst = arith.constant dense<0.000000e+00> : vector<128x32xf32>
    %7 = tpu.matmul %1, %6, %cst {dimension_numbers = #tpu.dot_dimension_numbers<[1], [0], [0], [1], [0, 0, 1, 1], [], []>} : vector<128x128xf32>, vector<128x32xf32>, vector<128x32xf32> -> vector<128x32xf32>
    %c0_10 = arith.constant 0 : index
    %c0_11 = arith.constant 0 : index
    %8 = vector.load %arg5[%c0_10, %c0_11] : memref<1x32xf32, #tpu.memory_space<vmem>>, vector<1x32xf32>
    %9 = vector.shape_cast %8 : vector<1x32xf32> to vector<32xf32>
    %10 = vector.shape_cast %9 : vector<32xf32> to vector<1x32xf32>
    %11 = vector.broadcast %10 : vector<1x32xf32> to vector<128x32xf32>
    %12 = arith.addf %7, %11 : vector<128x32xf32>
    %c0_12 = arith.constant 0 : index
    %c0_13 = arith.constant 0 : index
    %13 = vector.load %arg6[%c0_12, %c0_13] : memref<128x32xf32, #tpu.memory_space<vmem>>, vector<128x32xf32>
    %cst_14 = arith.constant dense<0.000000e+00> : vector<128x32xf32>
    %14 = tpu.matmul %3, %13, %cst_14 {dimension_numbers = #tpu.dot_dimension_numbers<[1], [0], [0], [1], [0, 0, 1, 1], [], []>} : vector<128x128xf32>, vector<128x32xf32>, vector<128x32xf32> -> vector<128x32xf32>
    %c0_15 = arith.constant 0 : index
    %c0_16 = arith.constant 0 : index
    %15 = vector.load %arg7[%c0_15, %c0_16] : memref<1x32xf32, #tpu.memory_space<vmem>>, vector<1x32xf32>
    %16 = vector.shape_cast %15 : vector<1x32xf32> to vector<32xf32>
    %17 = vector.shape_cast %16 : vector<32xf32> to vector<1x32xf32>
    %18 = vector.broadcast %17 : vector<1x32xf32> to vector<128x32xf32>
    %19 = arith.addf %14, %18 : vector<128x32xf32>
    %c0_17 = arith.constant 0 : index
    %c0_18 = arith.constant 0 : index
    %20 = vector.load %arg8[%c0_17, %c0_18] : memref<128x32xf32, #tpu.memory_space<vmem>>, vector<128x32xf32>
    %cst_19 = arith.constant dense<0.000000e+00> : vector<128x32xf32>
    %21 = tpu.matmul %5, %20, %cst_19 {dimension_numbers = #tpu.dot_dimension_numbers<[1], [0], [0], [1], [0, 0, 1, 1], [], []>} : vector<128x128xf32>, vector<128x32xf32>, vector<128x32xf32> -> vector<128x32xf32>
    %c0_20 = arith.constant 0 : index
    %c0_21 = arith.constant 0 : index
    %22 = vector.load %arg9[%c0_20, %c0_21] : memref<1x32xf32, #tpu.memory_space<vmem>>, vector<1x32xf32>
    %23 = vector.shape_cast %22 : vector<1x32xf32> to vector<32xf32>
    %24 = vector.shape_cast %23 : vector<32xf32> to vector<1x32xf32>
    %25 = vector.broadcast %24 : vector<1x32xf32> to vector<128x32xf32>
    %26 = arith.addf %21, %25 : vector<128x32xf32>
    %cst_22 = arith.constant 0.353553385 : f32
    %27 = vector.broadcast %cst_22 : f32 to vector<128x32xf32>
    %28 = arith.mulf %19, %27 : vector<128x32xf32>
    %29 = vector.shape_cast %28 : vector<128x32xf32> to vector<16x8x32xf32>
    %30 = vector.shape_cast %12 : vector<128x32xf32> to vector<16x8x32xf32>
    %31 = vector.shape_cast %26 : vector<128x32xf32> to vector<16x8x32xf32>
    %32 = vector.extract_strided_slice %29 {offsets = [0, 0, 0], sizes = [16, 8, 8], strides = [1, 1, 1]} : vector<16x8x32xf32> to vector<16x8x8xf32>
    %33 = vector.extract_strided_slice %30 {offsets = [0, 0, 0], sizes = [16, 8, 8], strides = [1, 1, 1]} : vector<16x8x32xf32> to vector<16x8x8xf32>
    %34 = vector.extract_strided_slice %31 {offsets = [0, 0, 0], sizes = [16, 8, 8], strides = [1, 1, 1]} : vector<16x8x32xf32> to vector<16x8x8xf32>
    "tpu.trace_start"() <{level = 10 : i32, message = "bqd,bkd->bqk"}> : () -> ()
    %cst_23 = arith.constant dense<0.000000e+00> : vector<16x8x8xf32>
    %35 = tpu.matmul %32, %33, %cst_23 {dimension_numbers = #tpu.dot_dimension_numbers<[2], [2], [1], [1], [0, 0, 0, 1, 1, 1], [0], [0]>} : vector<16x8x8xf32>, vector<16x8x8xf32>, vector<16x8x8xf32> -> vector<16x8x8xf32>
    "tpu.trace_stop"() : () -> ()
    %cst_24 = arith.constant dense<0xFF800000> : vector<16x8xf32>
    %36 = vector.multi_reduction <maximumf>, %35, %cst_24 [2] : vector<16x8x8xf32> to vector<16x8xf32>
    %37 = vector.shape_cast %36 : vector<16x8xf32> to vector<16x8x1xf32>
    %38 = vector.broadcast %37 : vector<16x8x1xf32> to vector<16x8x8xf32>
    %39 = arith.subf %35, %38 : vector<16x8x8xf32>
    %40 = math.exp %39 : vector<16x8x8xf32>
    %cst_25 = arith.constant dense<0.000000e+00> : vector<16x8xf32>
    %41 = vector.multi_reduction <add>, %40, %cst_25 [2] : vector<16x8x8xf32> to vector<16x8xf32>
    %42 = vector.shape_cast %41 : vector<16x8xf32> to vector<16x8x1xf32>
    %43 = tpu.reciprocal %42 {approx = true} : vector<16x8x1xf32> -> vector<16x8x1xf32>
    %44 = vector.broadcast %43 : vector<16x8x1xf32> to vector<16x8x8xf32>
    %45 = arith.mulf %40, %44 : vector<16x8x8xf32>
    "tpu.trace_start"() <{level = 10 : i32, message = "bqk,bkd->bqd"}> : () -> ()
    %cst_26 = arith.constant dense<0.000000e+00> : vector<16x8x8xf32>
    %46 = tpu.matmul %45, %34, %cst_26 {dimension_numbers = #tpu.dot_dimension_numbers<[2], [1], [1], [2], [0, 0, 0, 1, 1, 2], [0], [0]>} : vector<16x8x8xf32>, vector<16x8x8xf32>, vector<16x8x8xf32> -> vector<16x8x8xf32>
    "tpu.trace_stop"() : () -> ()
    %47 = vector.shape_cast %46 : vector<16x8x8xf32> to vector<128x8xf32>
    %c0_27 = arith.constant 0 : index
    %c0_28 = arith.constant 0 : index
    %48 = vector.load %arg13[%c0_27, %c0_28] : memref<128x32xf32, #tpu.memory_space<vmem>>, vector<128x8xf32>
    tpu.vector_store %arg13[%c0_27, %c0_28], %47 {strides = array<i32>} : memref<128x32xf32, #tpu.memory_space<vmem>>, vector<128x8xf32>,
    %49 = vector.extract_strided_slice %29 {offsets = [0, 0, 8], sizes = [16, 8, 8], strides = [1, 1, 1]} : vector<16x8x32xf32> to vector<16x8x8xf32>
    %50 = vector.extract_strided_slice %30 {offsets = [0, 0, 8], sizes = [16, 8, 8], strides = [1, 1, 1]} : vector<16x8x32xf32> to vector<16x8x8xf32>
    %51 = vector.extract_strided_slice %31 {offsets = [0, 0, 8], sizes = [16, 8, 8], strides = [1, 1, 1]} : vector<16x8x32xf32> to vector<16x8x8xf32>
    "tpu.trace_start"() <{level = 10 : i32, message = "bqd,bkd->bqk"}> : () -> ()
    %cst_29 = arith.constant dense<0.000000e+00> : vector<16x8x8xf32>
    %52 = tpu.matmul %49, %50, %cst_29 {dimension_numbers = #tpu.dot_dimension_numbers<[2], [2], [1], [1], [0, 0, 0, 1, 1, 1], [0], [0]>} : vector<16x8x8xf32>, vector<16x8x8xf32>, vector<16x8x8xf32> -> vector<16x8x8xf32>
    "tpu.trace_stop"() : () -> ()
    %cst_30 = arith.constant dense<0xFF800000> : vector<16x8xf32>
    %53 = vector.multi_reduction <maximumf>, %52, %cst_30 [2] : vector<16x8x8xf32> to vector<16x8xf32>
    %54 = vector.shape_cast %53 : vector<16x8xf32> to vector<16x8x1xf32>
    %55 = vector.broadcast %54 : vector<16x8x1xf32> to vector<16x8x8xf32>
    %56 = arith.subf %52, %55 : vector<16x8x8xf32>
    %57 = math.exp %56 : vector<16x8x8xf32>
    %cst_31 = arith.constant dense<0.000000e+00> : vector<16x8xf32>
    %58 = vector.multi_reduction <add>, %57, %cst_31 [2] : vector<16x8x8xf32> to vector<16x8xf32>
    %59 = vector.shape_cast %58 : vector<16x8xf32> to vector<16x8x1xf32>
    %60 = tpu.reciprocal %59 {approx = true} : vector<16x8x1xf32> -> vector<16x8x1xf32>
    %61 = vector.broadcast %60 : vector<16x8x1xf32> to vector<16x8x8xf32>
    %62 = arith.mulf %57, %61 : vector<16x8x8xf32>
    "tpu.trace_start"() <{level = 10 : i32, message = "bqk,bkd->bqd"}> : () -> ()
    %cst_32 = arith.constant dense<0.000000e+00> : vector<16x8x8xf32>
    %63 = tpu.matmul %62, %51, %cst_32 {dimension_numbers = #tpu.dot_dimension_numbers<[2], [1], [1], [2], [0, 0, 0, 1, 1, 2], [0], [0]>} : vector<16x8x8xf32>, vector<16x8x8xf32>, vector<16x8x8xf32> -> vector<16x8x8xf32>
    "tpu.trace_stop"() : () -> ()
    %64 = vector.shape_cast %63 : vector<16x8x8xf32> to vector<128x8xf32>
    %c0_33 = arith.constant 0 : index
    %c8 = arith.constant 8 : index
    %65 = vector.load %arg13[%c0_33, %c8] : memref<128x32xf32, #tpu.memory_space<vmem>>, vector<128x8xf32>
    tpu.vector_store %arg13[%c0_33, %c8], %64 {strides = array<i32>} : memref<128x32xf32, #tpu.memory_space<vmem>>, vector<128x8xf32>,
    %66 = vector.extract_strided_slice %29 {offsets = [0, 0, 16], sizes = [16, 8, 8], strides = [1, 1, 1]} : vector<16x8x32xf32> to vector<16x8x8xf32>
    %67 = vector.extract_strided_slice %30 {offsets = [0, 0, 16], sizes = [16, 8, 8], strides = [1, 1, 1]} : vector<16x8x32xf32> to vector<16x8x8xf32>
    %68 = vector.extract_strided_slice %31 {offsets = [0, 0, 16], sizes = [16, 8, 8], strides = [1, 1, 1]} : vector<16x8x32xf32> to vector<16x8x8xf32>
    "tpu.trace_start"() <{level = 10 : i32, message = "bqd,bkd->bqk"}> : () -> ()
    %cst_34 = arith.constant dense<0.000000e+00> : vector<16x8x8xf32>
    %69 = tpu.matmul %66, %67, %cst_34 {dimension_numbers = #tpu.dot_dimension_numbers<[2], [2], [1], [1], [0, 0, 0, 1, 1, 1], [0], [0]>} : vector<16x8x8xf32>, vector<16x8x8xf32>, vector<16x8x8xf32> -> vector<16x8x8xf32>
    "tpu.trace_stop"() : () -> ()
    %cst_35 = arith.constant dense<0xFF800000> : vector<16x8xf32>
    %70 = vector.multi_reduction <maximumf>, %69, %cst_35 [2] : vector<16x8x8xf32> to vector<16x8xf32>
    %71 = vector.shape_cast %70 : vector<16x8xf32> to vector<16x8x1xf32>
    %72 = vector.broadcast %71 : vector<16x8x1xf32> to vector<16x8x8xf32>
    %73 = arith.subf %69, %72 : vector<16x8x8xf32>
    %74 = math.exp %73 : vector<16x8x8xf32>
    %cst_36 = arith.constant dense<0.000000e+00> : vector<16x8xf32>
    %75 = vector.multi_reduction <add>, %74, %cst_36 [2] : vector<16x8x8xf32> to vector<16x8xf32>
    %76 = vector.shape_cast %75 : vector<16x8xf32> to vector<16x8x1xf32>
    %77 = tpu.reciprocal %76 {approx = true} : vector<16x8x1xf32> -> vector<16x8x1xf32>
    %78 = vector.broadcast %77 : vector<16x8x1xf32> to vector<16x8x8xf32>
    %79 = arith.mulf %74, %78 : vector<16x8x8xf32>
    "tpu.trace_start"() <{level = 10 : i32, message = "bqk,bkd->bqd"}> : () -> ()
    %cst_37 = arith.constant dense<0.000000e+00> : vector<16x8x8xf32>
    %80 = tpu.matmul %79, %68, %cst_37 {dimension_numbers = #tpu.dot_dimension_numbers<[2], [1], [1], [2], [0, 0, 0, 1, 1, 2], [0], [0]>} : vector<16x8x8xf32>, vector<16x8x8xf32>, vector<16x8x8xf32> -> vector<16x8x8xf32>
    "tpu.trace_stop"() : () -> ()
    %81 = vector.shape_cast %80 : vector<16x8x8xf32> to vector<128x8xf32>
    %c0_38 = arith.constant 0 : index
    %c16 = arith.constant 16 : index
    %82 = vector.load %arg13[%c0_38, %c16] : memref<128x32xf32, #tpu.memory_space<vmem>>, vector<128x8xf32>
    tpu.vector_store %arg13[%c0_38, %c16], %81 {strides = array<i32>} : memref<128x32xf32, #tpu.memory_space<vmem>>, vector<128x8xf32>,
    %83 = vector.extract_strided_slice %29 {offsets = [0, 0, 24], sizes = [16, 8, 8], strides = [1, 1, 1]} : vector<16x8x32xf32> to vector<16x8x8xf32>
    %84 = vector.extract_strided_slice %30 {offsets = [0, 0, 24], sizes = [16, 8, 8], strides = [1, 1, 1]} : vector<16x8x32xf32> to vector<16x8x8xf32>
    %85 = vector.extract_strided_slice %31 {offsets = [0, 0, 24], sizes = [16, 8, 8], strides = [1, 1, 1]} : vector<16x8x32xf32> to vector<16x8x8xf32>
    "tpu.trace_start"() <{level = 10 : i32, message = "bqd,bkd->bqk"}> : () -> ()
    %cst_39 = arith.constant dense<0.000000e+00> : vector<16x8x8xf32>
    %86 = tpu.matmul %83, %84, %cst_39 {dimension_numbers = #tpu.dot_dimension_numbers<[2], [2], [1], [1], [0, 0, 0, 1, 1, 1], [0], [0]>} : vector<16x8x8xf32>, vector<16x8x8xf32>, vector<16x8x8xf32> -> vector<16x8x8xf32>
    "tpu.trace_stop"() : () -> ()
    %cst_40 = arith.constant dense<0xFF800000> : vector<16x8xf32>
    %87 = vector.multi_reduction <maximumf>, %86, %cst_40 [2] : vector<16x8x8xf32> to vector<16x8xf32>
    %88 = vector.shape_cast %87 : vector<16x8xf32> to vector<16x8x1xf32>
    %89 = vector.broadcast %88 : vector<16x8x1xf32> to vector<16x8x8xf32>
    %90 = arith.subf %86, %89 : vector<16x8x8xf32>
    %91 = math.exp %90 : vector<16x8x8xf32>
    %cst_41 = arith.constant dense<0.000000e+00> : vector<16x8xf32>
    %92 = vector.multi_reduction <add>, %91, %cst_41 [2] : vector<16x8x8xf32> to vector<16x8xf32>
    %93 = vector.shape_cast %92 : vector<16x8xf32> to vector<16x8x1xf32>
    %94 = tpu.reciprocal %93 {approx = true} : vector<16x8x1xf32> -> vector<16x8x1xf32>
    %95 = vector.broadcast %94 : vector<16x8x1xf32> to vector<16x8x8xf32>
    %96 = arith.mulf %91, %95 : vector<16x8x8xf32>
    "tpu.trace_start"() <{level = 10 : i32, message = "bqk,bkd->bqd"}> : () -> ()
    %cst_42 = arith.constant dense<0.000000e+00> : vector<16x8x8xf32>
    %97 = tpu.matmul %96, %85, %cst_42 {dimension_numbers = #tpu.dot_dimension_numbers<[2], [1], [1], [2], [0, 0, 0, 1, 1, 2], [0], [0]>} : vector<16x8x8xf32>, vector<16x8x8xf32>, vector<16x8x8xf32> -> vector<16x8x8xf32>
    "tpu.trace_stop"() : () -> ()
    %98 = vector.shape_cast %97 : vector<16x8x8xf32> to vector<128x8xf32>
    %c0_43 = arith.constant 0 : index
    %c24 = arith.constant 24 : index
    %99 = vector.load %arg13[%c0_43, %c24] : memref<128x32xf32, #tpu.memory_space<vmem>>, vector<128x8xf32>
    tpu.vector_store %arg13[%c0_43, %c24], %98 {strides = array<i32>} : memref<128x32xf32, #tpu.memory_space<vmem>>, vector<128x8xf32>,
    %c0_44 = arith.constant 0 : index
    %c0_45 = arith.constant 0 : index
    %100 = vector.load %arg13[%c0_44, %c0_45] : memref<128x32xf32, #tpu.memory_space<vmem>>, vector<128x32xf32>
    %c0_46 = arith.constant 0 : index
    %c0_47 = arith.constant 0 : index
    %101 = vector.load %arg10[%c0_46, %c0_47] : memref<32x128xf32, #tpu.memory_space<vmem>>, vector<32x128xf32>
    %cst_48 = arith.constant dense<0.000000e+00> : vector<128x128xf32>
    %102 = tpu.matmul %100, %101, %cst_48 {dimension_numbers = #tpu.dot_dimension_numbers<[1], [0], [0], [1], [0, 0, 1, 1], [], []>} : vector<128x32xf32>, vector<32x128xf32>, vector<128x128xf32> -> vector<128x128xf32>
    %c0_49 = arith.constant 0 : index
    %c0_50 = arith.constant 0 : index
    %103 = vector.load %arg11[%c0_49, %c0_50] : memref<1x128xf32, #tpu.memory_space<vmem>>, vector<1x128xf32>
    %104 = vector.shape_cast %103 : vector<1x128xf32> to vector<128xf32>
    %105 = vector.shape_cast %104 : vector<128xf32> to vector<1x128xf32>
    %106 = vector.broadcast %105 : vector<1x128xf32> to vector<128x128xf32>
    %107 = arith.addf %102, %106 : vector<128x128xf32>
    %108 = vector.shape_cast %107 : vector<128x128xf32> to vector<16x8x128xf32>
    %c0_51 = arith.constant 0 : index
    %c0_52 = arith.constant 0 : index
    %c0_53 = arith.constant 0 : index
    %109 = vector.load %arg12[%c0_51, %c0_52, %c0_53] : memref<16x8x128xf32, #tpu.memory_space<vmem>>, vector<16x8x128xf32>
    tpu.vector_store %arg12[%c0_51, %c0_52, %c0_53], %108 {strides = array<i32>} : memref<16x8x128xf32, #tpu.memory_space<vmem>>, vector<16x8x128xf32>,
    return
  }
  func.func @transform_0(%arg0: i32) -> (i32, i32, i32) {
    %c0_i32 = arith.constant 0 : i32
    %c0_i32_0 = arith.constant 0 : i32
    %c0_i32_1 = arith.constant 0 : i32
    return %arg0, %c0_i32, %c0_i32_0 : i32, i32, i32
  }
  func.func @transform_1(%arg0: i32) -> (i32, i32, i32) {
    %c0_i32 = arith.constant 0 : i32
    %c0_i32_0 = arith.constant 0 : i32
    %c0_i32_1 = arith.constant 0 : i32
    return %arg0, %c0_i32, %c0_i32_0 : i32, i32, i32
  }
  func.func @transform_2(%arg0: i32) -> (i32, i32, i32) {
    %c0_i32 = arith.constant 0 : i32
    %c0_i32_0 = arith.constant 0 : i32
    %c0_i32_1 = arith.constant 0 : i32
    return %arg0, %c0_i32, %c0_i32_0 : i32, i32, i32
  }
  func.func @transform_3(%arg0: i32) -> (i32, i32) {
    %c0_i32 = arith.constant 0 : i32
    %c0_i32_0 = arith.constant 0 : i32
    %c0_i32_1 = arith.constant 0 : i32
    return %c0_i32, %c0_i32_0 : i32, i32
  }
  func.func @transform_4(%arg0: i32) -> (i32, i32) {
    %c0_i32 = arith.constant 0 : i32
    %c0_i32_0 = arith.constant 0 : i32
    %c0_i32_1 = arith.constant 0 : i32
    return %c0_i32, %c0_i32_0 : i32, i32
  }
  func.func @transform_5(%arg0: i32) -> (i32, i32) {
    %c0_i32 = arith.constant 0 : i32
    %c0_i32_0 = arith.constant 0 : i32
    %c0_i32_1 = arith.constant 0 : i32
    return %c0_i32, %c0_i32_0 : i32, i32
  }
  func.func @transform_6(%arg0: i32) -> (i32, i32) {
    %c0_i32 = arith.constant 0 : i32
    %c0_i32_0 = arith.constant 0 : i32
    %c0_i32_1 = arith.constant 0 : i32
    return %c0_i32, %c0_i32_0 : i32, i32
  }
  func.func @transform_7(%arg0: i32) -> (i32, i32) {
    %c0_i32 = arith.constant 0 : i32
    %c0_i32_0 = arith.constant 0 : i32
    %c0_i32_1 = arith.constant 0 : i32
    return %c0_i32, %c0_i32_0 : i32, i32
  }
  func.func @transform_8(%arg0: i32) -> (i32, i32) {
    %c0_i32 = arith.constant 0 : i32
    %c0_i32_0 = arith.constant 0 : i32
    %c0_i32_1 = arith.constant 0 : i32
    return %c0_i32, %c0_i32_0 : i32, i32
  }
  func.func @transform_9(%arg0: i32) -> (i32, i32) {
    %c0_i32 = arith.constant 0 : i32
    %c0_i32_0 = arith.constant 0 : i32
    %c0_i32_1 = arith.constant 0 : i32
    return %c0_i32, %c0_i32_0 : i32, i32
  }
  func.func @transform_10(%arg0: i32) -> (i32, i32) {
    %c0_i32 = arith.constant 0 : i32
    %c0_i32_0 = arith.constant 0 : i32
    %c0_i32_1 = arith.constant 0 : i32
    return %c0_i32, %c0_i32_0 : i32, i32
  }
  func.func @transform_11(%arg0: i32) -> (i32, i32, i32) {
    %c0_i32 = arith.constant 0 : i32
    %c0_i32_0 = arith.constant 0 : i32
    %c0_i32_1 = arith.constant 0 : i32
    return %arg0, %c0_i32, %c0_i32_0 : i32, i32, i32
  }
}

</mosaic_0001>

<bundles_post_ra>
// kernel: tpu_custom_call.1
= control target key start
LH: loop header
LB: loop body
LE: loop exit
PB: predicated region body
PF: predicated region fallthrough
CT: control target
= control target key end

     0   :  { %s16944_s0 = inlined_call_operand.vmem [shape: f32[32,8,128], index: 0, kind: input, shape index: {}]   ;;  %s16945_s1 = inlined_call_operand.hbm [shape: f32[32,8,128], index: 1, kind: input, shape index: {}]   ;;  %s16946_s2 = inlined_call_operand.hbm [shape: f32[32,8,128], index: 2, kind: input, shape index: {}]   ;;  %s16947_s3 = inlined_call_operand.vmem [shape: f32[128,32], index: 3, kind: input, shape index: {}]   ;;  %s16948_s4 = inlined_call_operand.vmem [shape: f32[1,32], index: 4, kind: input, shape index: {}]   ;;  %s16949_s5 = inlined_call_operand.vmem [shape: f32[128,32], index: 5, kind: input, shape index: {}]   ;;  %s16950_s6 = inlined_call_operand.vmem [shape: f32[1,32], index: 6, kind: input, shape index: {}]   ;;  %s16951_s7 = inlined_call_operand.vmem [shape: f32[128,32], index: 7, kind: input, shape index: {}]   ;;  %s16952_s8 = inlined_call_operand.vmem [shape: f32[1,32], index: 8, kind: input, shape index: {}]   ;;  %s16953_s9 = inlined_call_operand.vmem [shape: f32[32,128], index: 9, kind: input, shape index: {}]   ;;  %s16954_s10 = inlined_call_operand.vmem [shape: f32[1,128], index: 10, kind: input, shape index: {}]   ;;  %s16955_s11 = inlined_call_operand.hbm [shape: f32[32,8,128], index: 11, kind: output, shape index: {}]  }
   0x1   :  { %17013 = sst [smem:[#allocation60_spill]] %s16945_s1 }
   0x2   :  { %16 = vsyncpa [#allocation4], 0 }
   0x3   :  { %18 = vsyncpa [#allocation4 + $0x1], 0 }
   0x4   :  { %19 = vsyncpa [#allocation7], 0 }
   0x5   :  { %21 = vsyncpa [#allocation7 + $0x1], 0 }
   0x6   :  { %22 = vsyncpa [#allocation5], 0 }
   0x7   :  { %24 = vsyncpa [#allocation5 + $0x1], 0  ;;  %s14244_s17 = smov 0   ;;  %s14246_s18 = smov 0  }
   0x8   :  { %s14248_s19 = smov 0   ;;  %s14250_s20 = smov 0  }
   0x9 LB: > { %17014 = sst [smem:[#allocation12_spill]] %s14156_s17  ;;  %s14265_s21 = sadd.s32 4294967295, %s14168_s20   ;;  %s14168_s20 = sphi %s14250_s20, %s17237_s20   ;;  %s14164_s19 = sphi %s14248_s19, %s17239_s19   ;;  %s14160_s18 = sphi %s14246_s18, %s17241_s18   ;;  %s14156_s17 = sphi %s14244_s17, %s17240_s17  }
   0xa   : > { %17015 = sst [smem:[#allocation13_spill]] %s14164_s19  ;;  %s12153_s22 = sadd.s32 4294967294, %s14168_s20  }
   0xb   : > { %s14269_s23 = sadd.s32 1, %s14168_s20   ;;  %s63_s24 = sadd.s32 1, %s14164_s19 }
   0xc   : > { %17016 = sst [smem:[#allocation14_spill]] %s14269_s23  ;;  %s60_s25 = ssub.s32 %s14168_s20, %s14269_s23 }
   0xd   : > { %p70_p0 = scmp.ne.s32.totalorder %s14164_s19, %s14160_s18  ;;  %p61_p1 = scmp.eq.s32.totalorder %s60_s25, 0 }
   0xe   : > { %p71_p2 = scmp.eq.s32.totalorder %s14168_s20, 0  ;;  %p76_p3 = scmp.ne.s32.totalorder %s14160_s18, %s14156_s17 }
   0xf   : > { %p77_p4 = scmp.eq.s32.totalorder %s14265_s21, 0  ;;  %p294_p7 = scmp.eq.s32.totalorder %s14265_s21, 1 }
  0x10   : > { %s14281_s26 = scalar_select %p61_p1, %s14164_s19, %s63_s24  }
  0x11   : > { %p14283_p5 = por %p71_p2, %p70_p0  ;;  %p14287_p6 = por %p77_p4, %p76_p3 }
  0x12   : > { %17017 = sst [smem:[#allocation15_spill]] %s14281_s26  ;;  %p300_p8 = scmp.eq.s32.totalorder %s12153_s22, 1 }
  0x13   : > { %s17019_s28 = scalar_select %p14287_p6, 1, 0 }
  0x14   : > { %p13737_p10 = scmp.lt.s32.totalorder %s14168_s20, 2  ;;  %p14294_p11 = por %p294_p7, %p70_p0 }
  0x15   : > { %p14298_p12 = por %p300_p8, %p76_p3  ;;  %s14303_s12 = sand.u32 1, %s14164_s19  }
  0x16   : > { %s17020_s29 = scalar_select %p14294_p11, 1, 0 }
  0x17   : > { %s17021_s30 = scalar_select %p14298_p12, 1, 0 }
  0x18   : > { %s16958_s13 = sshll.u32 %s14168_s20, 11  ;;  %s16957_s14 = sshll.u32 %s14303_s12, 7 }
  0x19   : > { %17022 = sst [smem:[#allocation16_spill]] %s17021_s30  ;;  %s17023_s1 = sld [smem:[#allocation60_spill]] }
  0x1a   : > { %s357_s24 = scalar_lea.vmem [#allocation3], %s16957_s14  ;;  %p14318_p13 = pnand %p13737_p10, %p14283_p5 }
  0x1b   : > { %s364_s25 = sshll.u32 %s357_s24, 4  ;;  %s14322_s25 = int_to_ptr.vmem [resolvable:$true] %s364_s25 }
  0x1c   : > { %p14040_p1 = pneg %p14318_p13 }
  0x1f   : > { %s14312_s22 = scalar_lea.hbm %s17023_s1, %s16958_s13  ;;  %s14043_s27 = scalar_lea.hbm %s17023_s1, 4096 }
  0x20   : > { %s14038_s15 = scalar_lea.hbm %s14312_s22, 2048  ;;  %p14044_p4 = scmp.lt.u32.totalorder %s14312_s22, %s17023_s1 }
  0x21   : > { %p14039_p0 = scmp.ne.s32.totalorder %s14312_s22, %s14038_s15  ;;  %p14045_p5 = scmp.lt.u32.totalorder %s14043_s27, %s14038_s15 }
  0x22   : > { %p14047_p8 = scmp.lt.u32.totalorder %s14038_s15, %s14312_s22 }
  0x23   : > { %p14041_p2 = pnand %p14040_p1, %p14039_p0  ;;  %p14046_p7 = por %p14045_p5, %p14044_p4 }
  0x25   : > { %p14042_p3 = pneg %p14041_p2  ;;  %p14048_p10 = por %p14047_p8, %p14046_p7 }
  0x27   : > { %p14049_p9 = pnand %p14048_p10, %p14042_p3 }
  0x29   : > { %14052 = shalt.err (!%p14049_p9)
}
  0x2a   : > { %s14053_s19 = scalar_lea.vmem %s14322_s25, 2048  ;;  %s14170_s16 = smov [#allocation3]  }
  0x2b   : > { %p14054_p0 = scmp.ne.s32.totalorder %s14322_s25, %s14053_s19  ;;  %s14058_s24 = sshll.u32 %s14170_s16, 4  ;;  %s14059_s24 = int_to_ptr.vmem [resolvable:$false] %s14058_s24 }
  0x2c   : > { %s14060_s13 = scalar_lea.vmem %s14059_s24, 4096  ;;  %p14061_p11 = scmp.lt.s32.totalorder %s14322_s25, %s14059_s24 }
  0x2d   : > { %p14056_p2 = pnand %p14054_p0, %p14040_p1  ;;  %p14062_p4 = scmp.lt.s32.totalorder %s14060_s13, %s14053_s19 }
  0x2f   : > { %p14057_p12 = pneg %p14056_p2  ;;  %p14063_p5 = por %p14062_p4, %p14061_p11 }
  0x31   : > { %p14064_p7 = pnand %p14063_p5, %p14057_p12 }
  0x33   : > { %14067 = shalt.err (!%p14064_p7)
}
  0x34   : > { %s16964_s14 = smov 128   ;;  %s14172_s15 = smov 8  }
  0x35   : > { %s17025_s19 = scalar_lea.sflag [#allocation4], %s14303_s12  ;;  %p12162_p9 = scmp.ge.s32.totalorder %s14168_s20, 1 }
  0x36   : > { %13729 = dma.hbm_to_vmem [thread:$0]  (!%p14318_p13), %s14312_s22, 2048, %s14322_s25, %s17025_s19, %s16964_s14, %s16964_s14, %s14172_s15  }
  0x37   : > { %p393_p11 = scmp.lt.s32.totalorder %s14168_s20, 3  ;;  %s17027_s16 = sshll.u32 %s14168_s20, 11 }
  0x38   : > { %s14366_s1 = scalar_lea.hbm %s16946_s2, %s17027_s16  ;;  %s17028_s23 = sshll.u32 %s14303_s12, 7 }
  0x39   : > { %p14357_p12 = pnand %p12162_p9, %p393_p11  ;;  %s378_s30 = scalar_lea.vmem [#allocation6], %s17028_s23 }
  0x3a   : > { %s385_s17 = sshll.u32 %s378_s30, 4  ;;  %s375_s22 = scalar_lea.sflag [#allocation7], %s14303_s12  ;;  %s14370_s17 = int_to_ptr.vmem [resolvable:$true] %s385_s17 }
  0x3b   : > { %s14068_s25 = scalar_lea.hbm %s14366_s1, 2048  ;;  %s14073_s16 = scalar_lea.hbm %s16946_s2, 4096 }
  0x3c   : > { %p14069_p3 = scmp.ne.s32.totalorder %s14366_s1, %s14068_s25  ;;  %p14074_p0 = scmp.lt.u32.totalorder %s14366_s1, %s16946_s2 }
  0x3d   : > { %p14075_p2 = scmp.lt.u32.totalorder %s14073_s16, %s14068_s25  ;;  %p14077_p5 = scmp.lt.u32.totalorder %s14068_s25, %s14366_s1 }
  0x3e   : > { %p14071_p8 = pnand %p14069_p3, %p14040_p1 }
  0x3f   : > { %p14076_p4 = por %p14075_p2, %p14074_p0 }
  0x40   : > { %p14072_p10 = pneg %p14071_p8 }
  0x41   : > { %p14078_p7 = por %p14077_p5, %p14076_p4 }
  0x43   : > { %p14079_p9 = pnand %p14078_p7, %p14072_p10 }
  0x45   : > { %14082 = shalt.err (!%p14079_p9)
}
  0x46   : > { %s14083_s23 = scalar_lea.vmem %s14370_s17, 2048  ;;  %s14173_s30 = smov [#allocation6]  }
  0x47   : > { %p14084_p11 = scmp.ne.s32.totalorder %s14370_s17, %s14083_s23  ;;  %s14088_s19 = sshll.u32 %s14173_s30, 4  ;;  %s14089_s19 = int_to_ptr.vmem [resolvable:$false] %s14088_s19 }
  0x48   : > { %s14090_s14 = scalar_lea.vmem %s14089_s19, 4096  ;;  %p14091_p6 = scmp.lt.s32.totalorder %s14370_s17, %s14089_s19 }
  0x49   : > { %p14086_p3 = pnand %p14084_p11, %p14040_p1  ;;  %p14092_p0 = scmp.lt.s32.totalorder %s14090_s14, %s14083_s23 }
  0x4b   : > { %p14087_p8 = pneg %p14086_p3  ;;  %p14093_p2 = por %p14092_p0, %p14091_p6 }
  0x4d   : > { %p14094_p4 = pnand %p14093_p2, %p14087_p8 }
  0x4f   : > { %14097 = shalt.err (!%p14094_p4)
}
  0x50   : > { %s17029_s25 = smov 128   ;;  %397 = sbr.rel (%p14357_p12) target bundleno = 3408 (0xd50), region = 64 }
  0x51   : > { %13732 = dma.hbm_to_vmem [thread:$0]  (!%p14318_p13), %s14366_s1, 2048, %s14370_s17, %s375_s22, %s17029_s25, %s17029_s25, %s14172_s15  }
  0x57   : > { %s14404_s24 = sand.u32 1, %s14160_s18   ;;  %p17030_p6 = scmp.ne.s32.totalorder %s17019_s28, 0 }
  0x58   : > { %s14407_s16 = sshll.u32 %s14404_s24, 7  ;;  %s400_s26 = scalar_lea.sflag [#allocation4], %s14404_s24 }
  0x59   : > { %s14411_s13 = scalar_lea.vmem [#allocation3], %s14407_s16 }
  0x5a   : > { %14143 = dma.done.wait (%p17030_p6), %s400_s26, 2048  }
  0x5b   : > { %14145 = vsyncadd (%p17030_p6), %s400_s26, 4294965248  ;;  %s409_s1 = scalar_lea.sflag [#allocation7], %s14404_s24  ;;  %s14419_s17 = scalar_lea.vmem [#allocation6], %s14407_s16 }
  0x5c   : > { %14147 = dma.done.wait (%p17030_p6), %s409_s1, 2048  }
  0x5d   : > { %14149 = vsyncadd (%p17030_p6), %s409_s1, 4294965248  ;;  %s12166_s12 = sshll.u32 %s14265_s21, 4  ;;  %v518_v0 = vld [vmem:[%s16947_s3] sm:$0xff]  ;;  %v519_v1 = vld [vmem:[%s16947_s3 + $0x8] sm:$0xff]  ;;  %vm14175_vm0 = vmmov 0   ;;  %vm1038_vm1 = vcmask 64512  }
  0x5e   : > { %p462_p13 = scmp.lt.s32.totalorder %s12166_s12, 31  ;;  %v686_v2 = vld [vmem:[%s16949_s5] sm:$0xff]  ;;  %v13600_v3 = vpack.c.bf16 %v519_v1, %v518_v0  ;;  %v687_v4 = vld [vmem:[%s16949_s5 + $0x8] sm:$0xff]  ;;  %v520_v5 = vld [vmem:[%s16947_s3 + $0x10] sm:$0xff]  ;;  %s14177_s19 = smov 112   ;;  %vm6335_vm2 = vcmask 130112  }
  0x5f   : > { %v521_v6 = vld [vmem:[%s16947_s3 + $0x18] sm:$0xff]  ;;  %v13632_v7 = vpack.c.bf16 %v687_v4, %v686_v2  ;;  %v688_v9 = vld [vmem:[%s16949_s5 + $0x10] sm:$0xff]  ;;  %v522_v11 = vld [vmem:[%s16947_s3 + $0x20] sm:$0xff]  ;;  %s14178_s14 = smov 104   ;;  %s14179_s28 = smov 8   ;;  %vm9056_vm3 = vcmask 195712  }
  0x60   : > { %s17243_s12 = smov (!%p462_p13, %s12166_s12), 31  ;;  %v13604_v8 = vpack.c.bf16 %v521_v6, %v520_v5  ;;  %v689_v10 = vld [vmem:[%s16949_s5 + $0x18] sm:$0xff]  ;;  %13601 = vmatprep.subr.bf16.mxu0 %v13600_v3  ;;  %v523_v13 = vld [vmem:[%s16947_s3 + $0x28] sm:$0xff]  ;;  %v690_v14 = vld [vmem:[%s16949_s5 + $0x20] sm:$0xff]  ;;  %s14180_s25 = smov 16   ;;  %vm11777_vm4 = vcmask 261312  }
  0x61   : > { %v13636_v12 = vpack.c.bf16 %v689_v10, %v688_v9  ;;  %v691_v15 = vld [vmem:[%s16949_s5 + $0x28] sm:$0xff]  ;;  %13603 = vmatpush3.bf16.msra.mxu0 %v13600_v3  ;;  %13633 = vmatprep.subr.bf16.mxu1 %v13632_v7  ;;  %s12167_s22 = sshll.u32 %s17243_s12, 3  ;;  %v13608_v16 = vpack.c.bf16 %v523_v13, %v522_v11  ;;  %v524_v18 = vld [vmem:[%s16947_s3 + $0x30] sm:$0xff]  ;;  %v525_v19 = vld [vmem:[%s16947_s3 + $0x38] sm:$0xff]  ;;  %s14181_s23 = smov 24   ;;  %vm11821_vm5 = vcmask 261120  }
  0x62   : > { %13635 = vmatpush3.bf16.msra.mxu1 %v13632_v7  ;;  %13605 = vmatprep.subr.bf16.mxu0 %v13604_v8  ;;  %v13640_v17 = vpack.c.bf16 %v691_v15, %v690_v14  ;;  %v692_v20 = vld [vmem:[%s16949_s5 + $0x30] sm:$0xff]  ;;  %v693_v21 = vld [vmem:[%s16949_s5 + $0x38] sm:$0xff]  ;;  %s14477_s27 = scalar_lea.vmem %s16944_s0, %s12167_s22  ;;  %v13612_v22 = vpack.c.bf16 %v525_v19, %v524_v18  ;;  %v526_v24 = vld [vmem:[%s16947_s3 + $0x40] sm:$0xff]  ;;  %p17232_p12 = scmp.ne.s32.totalorder %s17020_s29, 0 }
  0x63   : > { %13637 = vmatprep.subr.bf16.mxu1 %v13636_v12  ;;  %v13644_v23 = vpack.c.bf16 %v693_v21, %v692_v20  ;;  %v527_v25 = vld [vmem:[%s16947_s3 + $0x48] sm:$0xff]  ;;  %v470_v26 = vld [vmem:[%s14477_s27] sm:$0xff]  ;;  %v528_v32 = vld [vmem:[%s16947_s3 + $0x50] sm:$0xff] }
  0x64   : > { %v694_v27 = vld [vmem:[%s16949_s5 + $0x40] sm:$0xff]  ;;  %v695_v28 = vld [vmem:[%s16949_s5 + $0x48] sm:$0xff]  ;;  %12792 = vmatprep.mubr.f32.mxu0 %v470_v26  ;;  %v13616_v30 = vpack.c.bf16 %v527_v25, %v526_v24  ;;  %v529_v33 = vld [vmem:[%s16947_s3 + $0x58] sm:$0xff] }
  0x65   : > { %13607 = vmatpush3.bf16.msra.mxu0 %v13604_v8  ;;  %v486_v29 = vld [vmem:[%s14411_s13] sm:$0xff]  ;;  %v13648_v31 = vpack.c.bf16 %v695_v28, %v694_v27  ;;  %v696_v34 = vld [vmem:[%s16949_s5 + $0x50] sm:$0xff]  ;;  %v697_v35 = vld [vmem:[%s16949_s5 + $0x58] sm:$0xff]  ;;  %v13620_v36 = vpack.c.bf16 %v529_v33, %v528_v32 }
  0x66   : > { %13639 = vmatpush3.bf16.msra.mxu1 %v13636_v12  ;;  %13609 = vmatprep.subr.bf16.mxu0 %v13608_v16  ;;  %v13652_v37 = vpack.c.bf16 %v697_v35, %v696_v34  ;;  %v530_v38 = vld [vmem:[%s16947_s3 + $0x60] sm:$0xff]  ;;  %v531_v39 = vld [vmem:[%s16947_s3 + $0x68] sm:$0xff]  ;;  %v532_v44 = vld [vmem:[%s16947_s3 + $0x70] sm:$0xff] }
  0x67   : > { %13641 = vmatprep.subr.bf16.mxu1 %v13640_v17  ;;  %12848 = vmatprep.mubr.f32.mxu1 %v486_v29  ;;  %v698_v40 = vld [vmem:[%s16949_s5 + $0x60] sm:$0xff]  ;;  %v699_v41 = vld [vmem:[%s16949_s5 + $0x68] sm:$0xff]  ;;  %v13624_v42 = vpack.c.bf16 %v531_v39, %v530_v38  ;;  %v533_v45 = vld [vmem:[%s16947_s3 + $0x78] sm:$0xff] }
  0x68   : > { %v13656_v43 = vpack.c.bf16 %v699_v41, %v698_v40  ;;  %v700_v46 = vld [vmem:[%s16949_s5 + $0x70] sm:$0xff]  ;;  %v701_v47 = vld [vmem:[%s16949_s5 + $0x78] sm:$0xff]  ;;  %v13628_v48 = vpack.c.bf16 %v533_v45, %v532_v44  ;;  %v854_v50 = vld [vmem:[%s16951_s7] sm:$0xff] }
  0x69   : > { %13611 = vmatpush3.bf16.msra.mxu0 %v13608_v16  ;;  %v13660_v49 = vpack.c.bf16 %v701_v47, %v700_v46  ;;  %v855_v51 = vld [vmem:[%s16951_s7 + $0x8] sm:$0xff]  ;;  %v856_v53 = vld [vmem:[%s16951_s7 + $0x10] sm:$0xff]  ;;  %v857_v54 = vld [vmem:[%s16951_s7 + $0x18] sm:$0xff] }
  0x6a   : > { %13643 = vmatpush3.bf16.msra.mxu1 %v13640_v17  ;;  %13613 = vmatprep.subr.bf16.mxu0 %v13612_v22  ;;  %v13664_v52 = vpack.c.bf16 %v855_v51, %v854_v50  ;;  %v471_v55 = vld [vmem:[%s14477_s27 + $0x8] sm:$0xff]  ;;  %v472_v57 = vld [vmem:[%s14477_s27 + $0x10] sm:$0xff]  ;;  %v13668_v59 = vpack.c.bf16 %v857_v54, %v856_v53  ;;  %v858_v60 = vld [vmem:[%s16951_s7 + $0x20] sm:$0xff] }
  0x6b   : > { %13645 = vmatprep.subr.bf16.mxu1 %v13644_v23  ;;  %v487_v56 = vld [vmem:[%s14411_s13 + $0x8] sm:$0xff]  ;;  %v488_v58 = vld [vmem:[%s14411_s13 + $0x10] sm:$0xff]  ;;  %v473_v62 = vld [vmem:[%s14477_s27 + $0x18] sm:$0xff] }
  0x6c   : > { %v859_v61 = vld [vmem:[%s16951_s7 + $0x28] sm:$0xff]  ;;  %v489_v63 = vld [vmem:[%s14411_s13 + $0x18] sm:$0xff]  ;;  %v474_v0 = vld [vmem:[%s14477_s27 + $0x20] sm:$0xff] }
  0x6d   : > { %13615 = vmatpush3.bf16.msra.mxu0 %v13612_v22  ;;  %v490_v1 = vld [vmem:[%s14411_s13 + $0x20] sm:$0xff]  ;;  %v13672_v2 = vpack.c.bf16 %v859_v61, %v858_v60  ;;  %v860_v3 = vld [vmem:[%s16951_s7 + $0x30] sm:$0xff]  ;;  %v861_v4 = vld [vmem:[%s16951_s7 + $0x38] sm:$0xff] }
  0x6e   : > { %13647 = vmatpush3.bf16.msra.mxu1 %v13644_v23  ;;  %13617 = vmatprep.subr.bf16.mxu0 %v13616_v30  ;;  %v475_v5 = vld [vmem:[%s14477_s27 + $0x28] sm:$0xff]  ;;  %v476_v7 = vld [vmem:[%s14477_s27 + $0x30] sm:$0xff]  ;;  %v13676_v9 = vpack.c.bf16 %v861_v4, %v860_v3  ;;  %v862_v10 = vld [vmem:[%s16951_s7 + $0x40] sm:$0xff] }
  0x6f   : > { %13649 = vmatprep.subr.bf16.mxu1 %v13648_v31  ;;  %v491_v6 = vld [vmem:[%s14411_s13 + $0x28] sm:$0xff]  ;;  %v492_v8 = vld [vmem:[%s14411_s13 + $0x30] sm:$0xff]  ;;  %v477_v12 = vld [vmem:[%s14477_s27 + $0x38] sm:$0xff] }
  0x70   : > { %v863_v11 = vld [vmem:[%s16951_s7 + $0x48] sm:$0xff]  ;;  %v493_v13 = vld [vmem:[%s14411_s13 + $0x38] sm:$0xff]  ;;  %v478_v14 = vld [vmem:[%s14477_s27 + $0x40] sm:$0xff] }
  0x71   : > { %13619 = vmatpush3.bf16.msra.mxu0 %v13616_v30  ;;  %v494_v15 = vld [vmem:[%s14411_s13 + $0x40] sm:$0xff]  ;;  %v13680_v16 = vpack.c.bf16 %v863_v11, %v862_v10  ;;  %v864_v17 = vld [vmem:[%s16951_s7 + $0x50] sm:$0xff]  ;;  %v865_v18 = vld [vmem:[%s16951_s7 + $0x58] sm:$0xff] }
  0x72   : > { %13651 = vmatpush3.bf16.msra.mxu1 %v13648_v31  ;;  %13621 = vmatprep.subr.bf16.mxu0 %v13620_v36  ;;  %v479_v19 = vld [vmem:[%s14477_s27 + $0x48] sm:$0xff]  ;;  %v480_v21 = vld [vmem:[%s14477_s27 + $0x50] sm:$0xff]  ;;  %v13684_v23 = vpack.c.bf16 %v865_v18, %v864_v17  ;;  %v866_v24 = vld [vmem:[%s16951_s7 + $0x60] sm:$0xff] }
  0x73   : > { %13653 = vmatprep.subr.bf16.mxu1 %v13652_v37  ;;  %v495_v20 = vld [vmem:[%s14411_s13 + $0x48] sm:$0xff]  ;;  %v496_v22 = vld [vmem:[%s14411_s13 + $0x50] sm:$0xff]  ;;  %v481_v26 = vld [vmem:[%s14477_s27 + $0x58] sm:$0xff] }
  0x74   : > { %v867_v25 = vld [vmem:[%s16951_s7 + $0x68] sm:$0xff]  ;;  %v497_v27 = vld [vmem:[%s14411_s13 + $0x58] sm:$0xff]  ;;  %v482_v28 = vld [vmem:[%s14477_s27 + $0x60] sm:$0xff] }
  0x75   : > { %13623 = vmatpush3.bf16.msra.mxu0 %v13620_v36  ;;  %v498_v29 = vld [vmem:[%s14411_s13 + $0x60] sm:$0xff]  ;;  %v13688_v30 = vpack.c.bf16 %v867_v25, %v866_v24  ;;  %v868_v31 = vld [vmem:[%s16951_s7 + $0x70] sm:$0xff]  ;;  %v869_v32 = vld [vmem:[%s16951_s7 + $0x78] sm:$0xff] }
  0x76   : > { %13655 = vmatpush3.bf16.msra.mxu1 %v13652_v37  ;;  %13625 = vmatprep.subr.bf16.mxu0 %v13624_v42  ;;  %v483_v33 = vld [vmem:[%s14477_s27 + $0x68] sm:$0xff]  ;;  %v484_v35 = vld [vmem:[%s14477_s27 + $0x70] sm:$0xff]  ;;  %v13692_v37 = vpack.c.bf16 %v869_v32, %v868_v31  ;;  %v485_v38 = vld [vmem:[%s14477_s27 + $0x78] sm:$0xff] }
  0x77   : > { %13657 = vmatprep.subr.bf16.mxu1 %v13656_v43  ;;  %v499_v34 = vld [vmem:[%s14411_s13 + $0x68] sm:$0xff]  ;;  %v500_v36 = vld [vmem:[%s14411_s13 + $0x70] sm:$0xff]  ;;  %v501_v39 = vld [vmem:[%s14411_s13 + $0x78] sm:$0xff]  ;;  %s12032_s13 = scalar_lea.sflag [#allocation5], %s14404_s24 }
  0x78   : > { %v510_v40 = vld [vmem:[%s14419_s17 + $0x40] sm:$0xff]  ;;  %v511_v41 = vld [vmem:[%s14419_s17 + $0x48] sm:$0xff]  ;;  %v516_v46 = vld [vmem:[%s14419_s17 + $0x70] sm:$0xff] }
  0x79   : > { %13627 = vmatpush3.bf16.msra.mxu0 %v13624_v42  ;;  %v512_v42 = vld [vmem:[%s14419_s17 + $0x50] sm:$0xff]  ;;  %v514_v44 = vld [vmem:[%s14419_s17 + $0x60] sm:$0xff]  ;;  %v515_v45 = vld [vmem:[%s14419_s17 + $0x68] sm:$0xff] }
  0x7a   : > { %13659 = vmatpush3.bf16.msra.mxu1 %v13656_v43  ;;  %13629 = vmatprep.subr.bf16.mxu0 %v13628_v48  ;;  %v513_v43 = vld [vmem:[%s14419_s17 + $0x58] sm:$0xff]  ;;  %v503_v50 = vld [vmem:[%s14419_s17 + $0x8] sm:$0xff]  ;;  %v504_v51 = vld [vmem:[%s14419_s17 + $0x10] sm:$0xff] }
  0x7b   : > { %13661 = vmatprep.subr.bf16.mxu1 %v13660_v49  ;;  %v517_v47 = vld [vmem:[%s14419_s17 + $0x78] sm:$0xff]  ;;  %v506_v53 = vld [vmem:[%s14419_s17 + $0x20] sm:$0xff]  ;;  %v507_v54 = vld [vmem:[%s14419_s17 + $0x28] sm:$0xff] }
  0x7d   : > { %13631 = vmatpush3.bf16.msra.mxu0 %v13628_v48  ;;  %v16966_v48 = vmov 0.0  }
  0x7e   : > { %13663 = vmatpush3.bf16.msra.mxu1 %v13660_v49  ;;  %13665 = vmatprep.subr.bf16.mxu0 %v13664_v52  ;;  %v502_v49 = vld [vmem:[%s14419_s17] sm:$0xff] }
  0x7f   : > { %13704 = vmatprep.subr.bf16.mxu1 %v13664_v52 }
  0x80   : > { %12793 = vmatmul.mubr.f32.vlgmr.msra.gmra.mrb[0].mxu0 %v471_v55  ;;  %v508_v55 = vld [vmem:[%s14419_s17 + $0x30] sm:$0xff] }
  0x81   : > { %12849 = vmatmul.mubr.f32.vlgmr.msra.gmra.mrb[0].mxu1 %v487_v56  ;;  %12795 = vmatprep.mubr.f32.mxu0 %v472_v57  ;;  %v509_v56 = vld [vmem:[%s14419_s17 + $0x38] sm:$0xff]  ;;  %v14632_v57 = vld [vmem:[%s16948_s4] ss:$0 sm:$0xff] }
  0x82   : > { %12851 = vmatprep.mubr.f32.mxu1 %v488_v58  ;;  %13712 = vmatpush3.bf16.msra.mxu1 %v13664_v52  ;;  %v14637_v58 = vld [vmem:[%s16950_s6] ss:$0 sm:$0xff] }
  0x83   : > { %13705 = vmatprep.subr.bf16.mxu1 %v13668_v59  ;;  %13667 = vmatpush3.bf16.msra.mxu0 %v13664_v52  ;;  %v505_v52 = vld [vmem:[%s14419_s17 + $0x18] sm:$0xff]  ;;  %s14176_s17 = smov 120  }
  0x84   : > { %12796 = vmatmul.mubr.f32.gmra.mrb[2].mxu0 %v473_v62  ;;  %13669 = vmatprep.subr.bf16.mxu0 %v13668_v59 }
  0x85   : > { %12852 = vmatmul.mubr.f32.gmra.mrb[2].mxu1 %v489_v63  ;;  %12798 = vmatprep.mubr.f32.mxu0 %v474_v0 }
  0x86   : > { %12854 = vmatprep.mubr.f32.mxu1 %v490_v1  ;;  %13713 = vmatpush3.bf16.msra.mxu1 %v13668_v59 }
  0x87   : > { %13706 = vmatprep.subr.bf16.mxu1 %v13672_v2  ;;  %13671 = vmatpush3.bf16.msra.mxu0 %v13668_v59 }
  0x88   : > { %12799 = vmatmul.mubr.f32.gmra.mrb[4].mxu0 %v475_v5  ;;  %13673 = vmatprep.subr.bf16.mxu0 %v13672_v2 }
  0x89   : > { %12855 = vmatmul.mubr.f32.gmra.mrb[4].mxu1 %v491_v6  ;;  %12801 = vmatprep.mubr.f32.mxu0 %v476_v7 }
  0x8a   : > { %12857 = vmatprep.mubr.f32.mxu1 %v492_v8  ;;  %13714 = vmatpush3.bf16.msra.mxu1 %v13672_v2 }
  0x8b   : > { %13707 = vmatprep.subr.bf16.mxu1 %v13676_v9  ;;  %13675 = vmatpush3.bf16.msra.mxu0 %v13672_v2 }
  0x8c   : > { %12802 = vmatmul.mubr.f32.gmra.mrb[6].mxu0 %v477_v12  ;;  %13677 = vmatprep.subr.bf16.mxu0 %v13676_v9 }
  0x8d   : > { %12858 = vmatmul.mubr.f32.gmra.mrb[6].mxu1 %v493_v13  ;;  %12804 = vmatprep.mubr.f32.mxu0 %v478_v14 }
  0x8e   : > { %12860 = vmatprep.mubr.f32.mxu1 %v494_v15  ;;  %13715 = vmatpush3.bf16.msra.mxu1 %v13676_v9 }
  0x8f   : > { %13708 = vmatprep.subr.bf16.mxu1 %v13680_v16  ;;  %13679 = vmatpush3.bf16.msra.mxu0 %v13676_v9 }
  0x90   : > { %12805 = vmatmul.mubr.f32.gmra.mrb[8].mxu0 %v479_v19  ;;  %13681 = vmatprep.subr.bf16.mxu0 %v13680_v16 }
  0x91   : > { %12861 = vmatmul.mubr.f32.gmra.mrb[8].mxu1 %v495_v20  ;;  %12807 = vmatprep.mubr.f32.mxu0 %v480_v21 }
  0x92   : > { %12863 = vmatprep.mubr.f32.mxu1 %v496_v22  ;;  %13716 = vmatpush3.bf16.msra.mxu1 %v13680_v16 }
  0x93   : > { %13709 = vmatprep.subr.bf16.mxu1 %v13684_v23  ;;  %13683 = vmatpush3.bf16.msra.mxu0 %v13680_v16 }
  0x94   : > { %12808 = vmatmul.mubr.f32.gmra.mrb[10].mxu0 %v481_v26  ;;  %13685 = vmatprep.subr.bf16.mxu0 %v13684_v23 }
  0x95   : > { %12864 = vmatmul.mubr.f32.gmra.mrb[10].mxu1 %v497_v27  ;;  %12810 = vmatprep.mubr.f32.mxu0 %v482_v28 }
  0x96   : > { %12866 = vmatprep.mubr.f32.mxu1 %v498_v29  ;;  %13717 = vmatpush3.bf16.msra.mxu1 %v13684_v23 }
  0x97   : > { %13710 = vmatprep.subr.bf16.mxu1 %v13688_v30  ;;  %13687 = vmatpush3.bf16.msra.mxu0 %v13684_v23 }
  0x98   : > { %12811 = vmatmul.mubr.f32.gmra.mrb[12].mxu0 %v483_v33  ;;  %13689 = vmatprep.subr.bf16.mxu0 %v13688_v30 }
  0x99   : > { %12867 = vmatmul.mubr.f32.gmra.mrb[12].mxu1 %v499_v34  ;;  %12813 = vmatprep.mubr.f32.mxu0 %v484_v35 }
  0x9a   : > { %12869 = vmatprep.mubr.f32.mxu1 %v500_v36  ;;  %13718 = vmatpush3.bf16.msra.mxu1 %v13688_v30 }
  0x9b   : > { %13711 = vmatprep.subr.bf16.mxu1 %v13692_v37  ;;  %13691 = vmatpush3.bf16.msra.mxu0 %v13688_v30 }
  0x9c   : > { %12814 = vmatmul.mubr.f32.gmra.mrb[14].mxu0 %v485_v38  ;;  %13693 = vmatprep.subr.bf16.mxu0 %v13692_v37 }
  0x9d   : > { %12870 = vmatmul.mubr.f32.gmra.mrb[14].mxu1 %v501_v39  ;;  %12904 = vmatprep.mubr.f32.mxu0 %v502_v49 }
  0x9e   : > { %13719 = vmatpush3.bf16.msra.mxu1 %v13692_v37  ;;  %12916 = vmatprep.mubr.f32.mxu1 %v510_v40 }
  0x9f   : > { %13695 = vmatpush3.bf16.msra.mxu0 %v13692_v37  ;;  %12928 = vmatprep.subr.mxu1 %v16966_v48 }
  0xa0   : > { %12968 = vmatprep.subr.mxu0 %v16966_v48 }
  0xa1   : > { %12917 = vmatmul.mubr.f32.vlgmr.msra.gmra.mrb[16].mxu1 %v511_v41 }
  0xa2   : > { %12919 = vmatprep.mubr.f32.mxu1 %v512_v42  ;;  %12905 = vmatmul.mubr.f32.vlgmr.msra.gmra.mrb[16].mxu0 %v503_v50 }
  0xa3   : > { %12907 = vmatprep.mubr.f32.mxu0 %v504_v51 }
  0xa5   : > { %12920 = vmatmul.mubr.f32.gmra.mrb[18].mxu1 %v513_v43 }
  0xa6   : > { %12922 = vmatprep.mubr.f32.mxu1 %v514_v44  ;;  %12908 = vmatmul.mubr.f32.gmra.mrb[18].mxu0 %v505_v52 }
  0xa7   : > { %12910 = vmatprep.mubr.f32.mxu0 %v506_v53 }
  0xa9   : > { %12923 = vmatmul.mubr.f32.gmra.mrb[20].mxu1 %v515_v45 }
  0xaa   : > { %12925 = vmatprep.mubr.f32.mxu1 %v516_v46  ;;  %12911 = vmatmul.mubr.f32.gmra.mrb[20].mxu0 %v507_v54 }
  0xab   : > { %12913 = vmatprep.mubr.f32.mxu0 %v508_v55 }
  0xad   : > { %12926 = vmatmul.mubr.f32.gmra.mrb[22].mxu1 %v517_v47 }
  0xae   : > { %12930 = vmatprep.mubr.msk.f32.mxu1 %vm14175_vm0, %v16966_v48  ;;  %12914 = vmatmul.mubr.f32.gmra.mrb[22].mxu0 %v509_v56 }
  0xaf   : > { %12970 = vmatprep.mubr.msk.f32.mxu0 %vm14175_vm0, %v16966_v48 }
 0x153   : > { %v12794_v59 = vpop.f32.mrb[0].mxu0 }
 0x154   : > { %v14640_v60 = vadd.f32 %v12794_v59, %v14632_v57  ;;  %v607_v61 = vpop.f32.mrb[1].mxu0  ;;  %v12850_v62 = vpop.f32.mrb[0].mxu1 }
 0x155   : > { %v14643_v63 = vadd.f32 %v14632_v57, %v607_v61  ;;  %v781_v0 = vadd.f32 %v12850_v62, %v14637_v58  ;;  %v775_v1 = vpop.f32.mrb[1].mxu1 }
 0x156   : > { %17031 = vst [vmem:[#allocation17_spill] sm:$0xff] %v14640_v60  ;;  %v776_v2 = vadd.f32 %v14637_v58, %v775_v1  ;;  %3695 = vrot.lane.b32.xlu1 %v14640_v60, %s14176_s17 }
 0x157   : > { %17032 = vst [vmem:[#allocation18_spill] sm:$0xff] %v14643_v63  ;;  %v14649_v3 = vmul.f32 0.35355338, %v781_v0  ;;  %3617 = vrot.lane.b32.xlu0 %v14643_v63, %s14176_s17  ;;  %12929 = vmatpush3.xpose.msk.msra.mxu1 %vm1038_vm1, %v14643_v63  ;;  %v12797_v4 = vpop.f32.mrb[2].mxu0 }
 0x158   : > { %v14655_v5 = vmul.f32 0.35355338, %v776_v2  ;;  %12933 = vmatprep.subr.mxu1 %v16966_v48  ;;  %v617_v6 = vpop.f32.mrb[3].mxu0  ;;  %v12853_v7 = vpop.f32.mrb[2].mxu1  ;;  %v14684_v17 = vadd.f32 %v12797_v4, %v14632_v57 }
 0x159   : > { %17033 = vst [vmem:[#allocation19_spill] sm:$0xff] %v14649_v3  ;;  %v14659_v8 = vadd.f32 %v14632_v57, %v617_v6  ;;  %v785_v9 = vpop.f32.mrb[3].mxu1  ;;  %v791_v18 = vadd.f32 %v12853_v7, %v14637_v58 }
 0x15a   : > { %17034 = vst [vmem:[#allocation20_spill] sm:$0xff] %v14655_v5  ;;  %12931 = vmatmul.mubr.msk.f32.vlgmr.msra.gmra.mrb[24].mxu1 %vm1038_vm1, %v14655_v5  ;;  %v786_v10 = vadd.f32 %v14637_v58, %v785_v9  ;;  %3693 = vrot.lane.b32.xlu1 %v14649_v3, %s14176_s17  ;;  %17037 = vst [vmem:[#allocation23_spill] sm:$0xff] %v14684_v17 }
 0x15b   : > { %17035 = vst [vmem:[#allocation21_spill] sm:$0xff] %v14659_v8  ;;  %12934 = vmatpush3.xpose.msk.msra.mxu1 %vm1038_vm1, %v14640_v60  ;;  %12935 = vmatprep.mubr.msk.f32.mxu1 %vm14175_vm0, %v16966_v48  ;;  %v12800_v11 = vpop.f32.mrb[4].mxu0  ;;  %v14704_v25 = vmul.f32 0.35355338, %v791_v18 }
 0x15c   : > { %v14670_v12 = vmul.f32 0.35355338, %v786_v10  ;;  %12938 = vmatprep.subr.mxu1 %v16966_v48  ;;  %v627_v13 = vpop.f32.mrb[5].mxu0  ;;  %v12856_v14 = vpop.f32.mrb[4].mxu1  ;;  %3773 = vrot.lane.b32.xlu0 %v14659_v8, %s14176_s17  ;;  %v14726_v33 = vadd.f32 %v12800_v11, %v14632_v57 }
 0x15d   : > { %v795_v15 = vpop.f32.mrb[5].mxu1  ;;  %v14689_v19 = vadd.f32 %v14632_v57, %v627_v13  ;;  %17039 = vst [vmem:[#allocation25_spill] sm:$0xff] %v14704_v25  ;;  %v801_v34 = vadd.f32 %v12856_v14, %v14637_v58 }
 0x15e   : > { %17036 = vst [vmem:[#allocation22_spill] sm:$0xff] %v14670_v12  ;;  %12936 = vmatmul.mubr.msk.f32.vlgmr.msra.gmra.mrb[26].mxu1 %vm1038_vm1, %v14649_v3  ;;  %3615 = vrot.lane.b32.xlu1 %v14655_v5, %s14176_s17  ;;  %v796_v23 = vadd.f32 %v14637_v58, %v795_v15  ;;  %17041 = vst [vmem:[#allocation27_spill] sm:$0xff] %v14726_v33 }
 0x15f   : > { %12939 = vmatpush3.xpose.msk.msra.mxu1 %vm1038_vm1, %v14659_v8  ;;  %12940 = vmatprep.mubr.msk.f32.mxu1 %vm14175_vm0, %v16966_v48  ;;  %v12803_v16 = vpop.f32.mrb[6].mxu0  ;;  %17038 = vst [vmem:[#allocation24_spill] sm:$0xff] %v14689_v19  ;;  %v14751_v44 = vmul.f32 0.35355338, %v801_v34 }
 0x160   : > { %12943 = vmatprep.subr.mxu1 %v16966_v48  ;;  %v637_v20 = vpop.f32.mrb[7].mxu0  ;;  %v12859_v21 = vpop.f32.mrb[6].mxu1  ;;  %3771 = vrot.lane.b32.xlu0 %v14670_v12, %s14176_s17  ;;  %v14712_v30 = vmul.f32 0.35355338, %v796_v23  ;;  %v14773_v54 = vadd.f32 %v12803_v16, %v14632_v57 }
 0x161   : > { %v805_v22 = vpop.f32.mrb[7].mxu1  ;;  %v14745_v42 = vadd.f32 %v14632_v57, %v637_v20  ;;  %17043 = vst [vmem:[#allocation29_spill] sm:$0xff] %v14751_v44  ;;  %v811_v51 = vadd.f32 %v12859_v21, %v14637_v58 }
 0x162   : > { %12941 = vmatmul.mubr.msk.f32.vlgmr.msra.gmra.mrb[28].mxu1 %vm1038_vm1, %v14670_v12  ;;  %3851 = vrot.lane.b32.xlu1 %v14684_v17, %s14176_s17  ;;  %17040 = vst [vmem:[#allocation26_spill] sm:$0xff] %v14712_v30  ;;  %v806_v40 = vadd.f32 %v14637_v58, %v805_v22  ;;  %17044 = vst [vmem:[#allocation30_spill] sm:$0xff] %v14773_v54 }
 0x163   : > { %12944 = vmatpush3.xpose.msk.msra.mxu1 %vm1038_vm1, %v14684_v17  ;;  %12945 = vmatprep.mubr.msk.f32.mxu1 %vm14175_vm0, %v16966_v48  ;;  %v14702_v24 = vpop.f32.mrb[8].mxu0  ;;  %17042 = vst [vmem:[#allocation28_spill] sm:$0xff] %v14745_v42  ;;  %v14791_v1 = vmul.f32 0.35355338, %v811_v51 }
 0x164   : > { %12948 = vmatprep.subr.mxu1 %v16966_v48  ;;  %v647_v26 = vpop.f32.mrb[9].mxu0  ;;  %v12862_v27 = vpop.f32.mrb[8].mxu1  ;;  %3929 = vrot.lane.b32.xlu0 %v14689_v19, %s14176_s17  ;;  %v14766_v52 = vmul.f32 0.35355338, %v806_v40  ;;  %v14800_v6 = vadd.f32 %v14702_v24, %v14632_v57 }
 0x165   : > { %v14710_v28 = vadd.f32 %v14632_v57, %v647_v26  ;;  %v815_v29 = vpop.f32.mrb[9].mxu1  ;;  %v821_v2 = vadd.f32 %v12862_v27, %v14637_v58 }
 0x166   : > { %12946 = vmatmul.mubr.msk.f32.vlgmr.msra.gmra.mrb[30].mxu1 %vm1038_vm1, %v14704_v25  ;;  %v816_v31 = vadd.f32 %v14637_v58, %v815_v29  ;;  %3849 = vrot.lane.b32.xlu1 %v14704_v25, %s14176_s17 }
 0x167   : > { %12949 = vmatpush3.xpose.msk.msra.mxu1 %vm1038_vm1, %v14689_v19  ;;  %12950 = vmatprep.mubr.msk.f32.mxu1 %vm14175_vm0, %v16966_v48  ;;  %v14723_v32 = vpop.f32.mrb[10].mxu0  ;;  %v14819_v11 = vmul.f32 0.35355338, %v821_v2 }
 0x168   : > { %v14729_v35 = vmul.f32 0.35355338, %v816_v31  ;;  %12953 = vmatprep.subr.mxu1 %v16966_v48  ;;  %12969 = vmatpush3.xpose.msk.msra.mxu0 %vm1038_vm1, %v14710_v28  ;;  %v657_v36 = vpop.f32.mrb[11].mxu0  ;;  %v12865_v37 = vpop.f32.mrb[10].mxu1  ;;  %v14827_v14 = vadd.f32 %v14723_v32, %v14632_v57  ;;  %v14892_v31 = vld [vmem:[%s16952_s8] ss:$0 sm:$0xff] }
 0x169   : > { %v14735_v38 = vadd.f32 %v14632_v57, %v657_v36  ;;  %v825_v39 = vpop.f32.mrb[11].mxu1  ;;  %12978 = vmatprep.subr.mxu0 %v16966_v48  ;;  %v831_v13 = vadd.f32 %v12865_v37, %v14637_v58 }
 0x16a   : > { %12951 = vmatmul.mubr.msk.f32.vlgmr.msra.gmra.mrb[32].mxu1 %vm1038_vm1, %v14712_v30  ;;  %v826_v41 = vadd.f32 %v14637_v58, %v825_v39  ;;  %4007 = vrot.lane.b32.xlu1 %v14726_v33, %s14176_s17 }
 0x16b   : > { %12954 = vmatpush3.xpose.msk.msra.mxu1 %vm1038_vm1, %v14726_v33  ;;  %12955 = vmatprep.mubr.msk.f32.mxu1 %vm14175_vm0, %v16966_v48  ;;  %v12812_v43 = vpop.f32.mrb[12].mxu0  ;;  %v14842_v18 = vmul.f32 0.35355338, %v831_v13 }
 0x16c   : > { %v14753_v45 = vmul.f32 0.35355338, %v826_v41  ;;  %12958 = vmatprep.subr.mxu1 %v16966_v48  ;;  %12971 = vmatmul.mubr.msk.f32.vlgmr.msra.gmra.mrb[24].mxu0 %vm1038_vm1, %v14729_v35  ;;  %v667_v46 = vpop.f32.mrb[13].mxu0  ;;  %v12868_v47 = vpop.f32.mrb[12].mxu1  ;;  %v14848_v21 = vadd.f32 %v12812_v43, %v14632_v57 }
 0x16d   : > { %12979 = vmatpush3.xpose.msk.msra.mxu0 %vm1038_vm1, %v14735_v38  ;;  %12980 = vmatprep.mubr.msk.f32.mxu0 %vm14175_vm0, %v16966_v48  ;;  %v14763_v49 = vadd.f32 %v14632_v57, %v667_v46  ;;  %v835_v50 = vpop.f32.mrb[13].mxu1  ;;  %v841_v20 = vadd.f32 %v12868_v47, %v14637_v58 }
 0x16e   : > { %12956 = vmatmul.mubr.msk.f32.vlgmr.msra.gmra.mrb[34].mxu1 %vm1038_vm1, %v14751_v44  ;;  %v836_v53 = vadd.f32 %v14637_v58, %v835_v50  ;;  %12988 = vmatprep.subr.mxu0 %v16966_v48 }
 0x16f   : > { %12959 = vmatpush3.xpose.msk.msra.mxu1 %vm1038_vm1, %v14745_v42  ;;  %12960 = vmatprep.mubr.msk.f32.mxu1 %vm14175_vm0, %v16966_v48  ;;  %v12815_v55 = vpop.f32.mrb[14].mxu0  ;;  %v14859_v24 = vmul.f32 0.35355338, %v841_v20 }
 0x170   : > { %12981 = vmatmul.mubr.msk.f32.vlgmr.msra.gmra.mrb[26].mxu0 %vm1038_vm1, %v14753_v45  ;;  %12963 = vmatprep.subr.mxu1 %v16966_v48  ;;  %v14782_v56 = vmul.f32 0.35355338, %v836_v53  ;;  %v677_v59 = vpop.f32.mrb[15].mxu0  ;;  %v12871_v61 = vpop.f32.mrb[14].mxu1  ;;  %v14865_v27 = vadd.f32 %v12815_v55, %v14632_v57 }
 0x171   : > { %12989 = vmatpush3.xpose.msk.msra.mxu0 %vm1038_vm1, %v14763_v49  ;;  %v14787_v62 = vadd.f32 %v14632_v57, %v677_v59  ;;  %v845_v0 = vpop.f32.mrb[15].mxu1  ;;  %12990 = vmatprep.mubr.msk.f32.mxu0 %vm14175_vm0, %v16966_v48  ;;  %v851_v26 = vadd.f32 %v12871_v61, %v14637_v58 }
 0x172   : > { %12961 = vmatmul.mubr.msk.f32.vlgmr.msra.gmra.mrb[36].mxu1 %vm1038_vm1, %v14766_v52  ;;  %v846_v4 = vadd.f32 %v14637_v58, %v845_v0  ;;  %12998 = vmatprep.subr.mxu0 %v16966_v48 }
 0x173   : > { %12964 = vmatpush3.xpose.msk.msra.mxu1 %vm1038_vm1, %v14773_v54  ;;  %12965 = vmatprep.mubr.msk.f32.mxu1 %vm14175_vm0, %v16966_v48  ;;  %v14872_v29 = vmul.f32 0.35355338, %v851_v26 }
 0x174   : > { %v14806_v7 = vmul.f32 0.35355338, %v846_v4  ;;  %12991 = vmatmul.mubr.msk.f32.vlgmr.msra.gmra.mrb[28].mxu0 %vm1038_vm1, %v14782_v56  ;;  %12973 = vmatprep.subr.mxu1 %v16966_v48  ;;  %v14811_v9 = vpop.f32.mrb[16].mxu1 }
 0x175   : > { %17046 = vst [vmem:[#allocation32_spill] sm:$0xff] %v14811_v9  ;;  %12999 = vmatpush3.xpose.msk.msra.mxu0 %vm1038_vm1, %v14787_v62  ;;  %13000 = vmatprep.mubr.msk.f32.mxu0 %vm14175_vm0, %v16966_v48  ;;  %v14817_v10 = vpop.f32.mrb[17].mxu1  ;;  %17049 = vst [vmem:[#allocation35_spill] sm:$0xff] %v14872_v29  ;;  %v12906_v32 = vpop.f32.mrb[16].mxu0 }
 0x176   : > { %17045 = vst [vmem:[#allocation31_spill] sm:$0xff] %v14806_v7  ;;  %12966 = vmatmul.mubr.msk.f32.vlgmr.msra.gmra.mrb[38].mxu1 %vm1038_vm1, %v14791_v1  ;;  %13008 = vmatprep.subr.mxu0 %v16966_v48  ;;  %v14895_v34 = vadd.f32 %v12906_v32, %v14892_v31  ;;  %v943_v36 = vpop.f32.mrb[17].mxu0 }
 0x177   : > { %12974 = vmatpush3.xpose.msk.msra.mxu1 %vm1038_vm1, %v14800_v6  ;;  %12975 = vmatprep.mubr.msk.f32.mxu1 %vm14175_vm0, %v16966_v48  ;;  %v14898_v37 = vadd.f32 %v14892_v31, %v943_v36 }
 0x178   : > { %13001 = vmatmul.mubr.msk.f32.vlgmr.msra.gmra.mrb[30].mxu0 %vm1038_vm1, %v14806_v7  ;;  %12983 = vmatprep.subr.mxu1 %v16966_v48  ;;  %v14836_v15 = vpop.f32.mrb[18].mxu1  ;;  %17051 = vst [vmem:[#allocation37_spill] sm:$0xff] %v14895_v34 }
 0x179   : > { %17047 = vst [vmem:[#allocation33_spill] sm:$0xff] %v14836_v15  ;;  %v14838_v16 = vpop.f32.mrb[19].mxu1  ;;  %13010 = vmatprep.mubr.msk.f32.mxu0 %vm14175_vm0, %v16966_v48  ;;  %17052 = vst [vmem:[#allocation38_spill] sm:$0xff] %v14898_v37  ;;  %v14900_v39 = vpop.f32.mrb[18].mxu0  ;;  %13009 = vmatpush3.msra.mxu0 %v14898_v37 }
 0x17a   : > { %12976 = vmatmul.mubr.msk.f32.vlgmr.msra.gmra.mrb[40].mxu1 %vm1038_vm1, %v14819_v11  ;;  %v14903_v40 = vpop.f32.mrb[19].mxu0  ;;  %13018 = vmatprep.subr.mxu0 %v16966_v48 }
 0x17b   : > { %12984 = vmatpush3.xpose.msk.msra.mxu1 %vm1038_vm1, %v14827_v14  ;;  %12985 = vmatprep.mubr.msk.f32.mxu1 %vm14175_vm0, %v16966_v48 }
 0x17c   : > { %12993 = vmatprep.subr.mxu1 %v16966_v48  ;;  %v14855_v22 = vpop.f32.mrb[20].mxu1 }
 0x17d   : > { %17048 = vst [vmem:[#allocation34_spill] sm:$0xff] %v14855_v22  ;;  %v14857_v23 = vpop.f32.mrb[21].mxu1  ;;  %v14906_v41 = vpop.f32.mrb[20].mxu0 }
 0x17e   : > { %12986 = vmatmul.mubr.msk.f32.vlgmr.msra.gmra.mrb[42].mxu1 %vm1038_vm1, %v14842_v18  ;;  %v14909_v43 = vpop.f32.mrb[21].mxu0 }
 0x17f   : > { %12994 = vmatpush3.xpose.msk.msra.mxu1 %vm1038_vm1, %v14848_v21  ;;  %12995 = vmatprep.mubr.msk.f32.mxu1 %vm14175_vm0, %v16966_v48 }
 0x180   : > { %13003 = vmatprep.subr.mxu1 %v16966_v48  ;;  %v14885_v57 = vpop.f32.mrb[22].mxu1 }
 0x181   : > { %17050 = vst [vmem:[#allocation36_spill] sm:$0xff] %v14885_v57  ;;  %v14887_v58 = vpop.f32.mrb[23].mxu1  ;;  %v14912_v46 = vpop.f32.mrb[22].mxu0 }
 0x182   : > { %12996 = vmatmul.mubr.msk.f32.vlgmr.msra.gmra.mrb[44].mxu1 %vm1038_vm1, %v14859_v24  ;;  %v14914_v47 = vpop.f32.mrb[23].mxu0 }
 0x183   : > { %13004 = vmatpush3.xpose.msk.msra.mxu1 %vm1038_vm1, %v14865_v27  ;;  %13005 = vmatprep.mubr.msk.f32.mxu1 %vm14175_vm0, %v16966_v48 }
 0x184   : > { %13013 = vmatprep.subr.mxu1 %v16966_v48 }
 0x186   : > { %13006 = vmatmul.mubr.msk.f32.vlgmr.msra.gmra.mrb[46].mxu1 %vm1038_vm1, %v14872_v29 }
 0x187   : > { %13015 = vmatprep.mubr.msk.f32.mxu1 %vm14175_vm0, %v16966_v48  ;;  %13014 = vmatpush3.msra.mxu1 %v14895_v34 }
 0x188   : > { %13023 = vmatprep.subr.mxu1 %v16966_v48 }
 0x22d   : > { %v14916_v50 = vpop.f32.mrb[24].mxu1 }
 0x22e   : > { %v2255_v51 = vsel %vm1038_vm1, %v14916_v50, -inf  ;;  %v12932_v53 = vpop.f32.mrb[25].mxu1 }
 0x22f   : > { %2256 = vmax.xlane.f32.xlu0 %v2255_v51 }
 0x231   : > { %v14920_v55 = vpop.f32.mrb[26].mxu1 }
 0x232   : > { %v2258_v59 = vsel %vm1038_vm1, %v14920_v55, -inf  ;;  %v12937_v61 = vpop.f32.mrb[27].mxu1 }
 0x233   : > { %2259 = vmax.xlane.f32.xlu0 %v2258_v59 }
 0x235   : > { %v14924_v0 = vpop.f32.mrb[28].mxu1 }
 0x236   : > { %v2261_v2 = vsel %vm1038_vm1, %v14924_v0, -inf  ;;  %v12942_v4 = vpop.f32.mrb[29].mxu1 }
 0x237   : > { %2262 = vmax.xlane.f32.xlu1 %v2261_v2 }
 0x239   : > { %v14928_v13 = vpop.f32.mrb[30].mxu1 }
 0x23a   : > { %v2264_v20 = vsel %vm1038_vm1, %v14928_v13, -inf  ;;  %v12947_v26 = vpop.f32.mrb[31].mxu1 }
 0x23b   : > { %2265 = vmax.xlane.f32.xlu1 %v2264_v20 }
 0x23d   : > { %v14932_v32 = vpop.f32.mrb[32].mxu1 }
 0x23e   : > { %v2267_v36 = vsel %vm1038_vm1, %v14932_v32, -inf  ;;  %v12952_v51 = vpop.f32.mrb[33].mxu1 }
 0x23f   : > { %2268 = vmax.xlane.f32.xlu0 %v2267_v36  ;;  %v14936_v53 = vpop.f32.mrb[24].mxu0 }
 0x240   : > { %v2279_v59 = vsel %vm1038_vm1, %v14936_v53, -inf  ;;  %v12972_v61 = vpop.f32.mrb[25].mxu0 }
 0x241   : > { %v14940_v2 = vpop.f32.mrb[34].mxu1 }
 0x242   : > { %v2270_v4 = vsel %vm1038_vm1, %v14940_v2, -inf  ;;  %v12957_v26 = vpop.f32.mrb[35].mxu1 }
 0x243   : > { %2280 = vmax.xlane.f32.xlu0 %v2279_v59  ;;  %2271 = vmax.xlane.f32.xlu1 %v2270_v4  ;;  %v14944_v20 = vpop.f32.mrb[26].mxu0 }
 0x244   : > { %v2285_v51 = vsel %vm1038_vm1, %v14944_v20, -inf  ;;  %v12982_v36 = vpop.f32.mrb[27].mxu0 }
 0x245   : > { %v14948_v48 = vpop.f32.mrb[36].mxu1 }
 0x246   : > { %v12962_v19 = vpop.f32.mrb[37].mxu1  ;;  %v2273_v61 = vsel %vm1038_vm1, %v14948_v48, -inf }
 0x247   : > { %2286 = vmax.xlane.f32.xlu0 %v2285_v51  ;;  %v14950_v33 = vpop.f32.mrb[28].mxu0 }
 0x248   : > { %v12992_v25 = vpop.f32.mrb[29].mxu0  ;;  %v2291_v19 = vsel %vm1038_vm1, %v14950_v33, -inf }
 0x249   : > { %v14954_v17 = vpop.f32.mrb[38].mxu1 }
 0x24a   : > { %v2276_v59 = vsel %vm1038_vm1, %v14954_v17, -inf  ;;  %v12967_v4 = vpop.f32.mrb[39].mxu1 }
 0x24b   : > { %2274 = vmax.xlane.f32.xlu0 %v2273_v61  ;;  %2277 = vmax.xlane.f32.xlu1 %v2276_v59  ;;  %v14958_v26 = vpop.f32.mrb[30].mxu0 }
 0x24c   : > { %v13002_v51 = vpop.f32.mrb[31].mxu0  ;;  %v2297_v25 = vsel %vm1038_vm1, %v14958_v26, -inf }
 0x24d   : > { %v14962_v36 = vpop.f32.mrb[40].mxu1  ;;  %v14984_v51 = vpop.permute.xlu1 %3695 }
 0x24e   : > { %v12977_v3 = vpop.f32.mrb[41].mxu1  ;;  %17053 = vst [vmem:[#allocation39_spill] sm:$0xff] %v14984_v51 }
 0x24f   : > { %2292 = vmax.xlane.f32.xlu0 %v2291_v19  ;;  %v2282_v3 = vsel %vm1038_vm1, %v14962_v36, -inf }
 0x251   : > { %v14966_v60 = vpop.f32.mrb[42].mxu1 }
 0x252   : > { %v12987_v57 = vpop.f32.mrb[43].mxu1 }
 0x253   : > { %2298 = vmax.xlane.f32.xlu0 %v2297_v25  ;;  %v2288_v57 = vsel %vm1038_vm1, %v14966_v60, -inf  ;;  %v14986_v25 = vpop.permute.xlu0 %3617 }
 0x254   : > { %17054 = vst [vmem:[#allocation40_spill] sm:$0xff] %v14986_v25 }
 0x255   : > { %v14968_v4 = vpop.f32.mrb[44].mxu1 }
 0x256   : > { %v12997_v61 = vpop.f32.mrb[45].mxu1  ;;  %v2294_v19 = vsel %vm1038_vm1, %v14968_v4, -inf }
 0x257   : > { %v14988_v61 = vpop.permute.xlu1 %3693 }
 0x258   : > { %17055 = vst [vmem:[#allocation41_spill] sm:$0xff] %v14988_v61 }
 0x259   : > { %v14970_v59 = vpop.f32.mrb[46].mxu1 }
 0x25a   : > { %v13007_v22 = vpop.f32.mrb[47].mxu1 }
 0x25b   : > { %v2300_v22 = vsel %vm1038_vm1, %v14970_v59, -inf }
 0x25c   : > { %4005 = vrot.lane.b32.xlu1 %v14751_v44, %s14176_s17 }
 0x269   : > { %3927 = vrot.lane.b32.xlu0 %v14712_v30, %s14176_s17  ;;  %v14990_v30 = vpop.permute.xlu0 %3773 }
 0x26a   : > { %17056 = vst [vmem:[#allocation42_spill] sm:$0xff] %v14990_v30 }
 0x26d   : > { %v14994_v44 = vpop.permute.xlu0 %3771 }
 0x26e   : > { %17058 = vst [vmem:[#allocation44_spill] sm:$0xff] %v14994_v44 }
 0x271   : > { %v14998_v15 = vpop.permute.xlu0 %3929 }
 0x272   : > { %17060 = vst [vmem:[#allocation46_spill] sm:$0xff] %v14998_v15 }
 0x280   : > { %2283 = vmax.xlane.f32.xlu1 %v2282_v3  ;;  %v14992_v3 = vpop.permute.xlu1 %3615 }
 0x281   : > { %17057 = vst [vmem:[#allocation43_spill] sm:$0xff] %v14992_v3 }
 0x284   : > { %2289 = vmax.xlane.f32.xlu1 %v2288_v57  ;;  %v14996_v57 = vpop.permute.xlu1 %3851 }
 0x285   : > { %17059 = vst [vmem:[#allocation45_spill] sm:$0xff] %v14996_v57 }
 0x288   : > { %2295 = vmax.xlane.f32.xlu1 %v2294_v19  ;;  %v15000_v19 = vpop.permute.xlu1 %3849 }
 0x289   : > { %17061 = vst [vmem:[#allocation47_spill] sm:$0xff] %v15000_v19 }
 0x28c   : > { %2301 = vmax.xlane.f32.xlu1 %v2300_v22  ;;  %v15003_v34 = vpop.permute.xlu1 %4007 }
 0x2bc   : > { %v2257_v9 = vpop.xlane.xlu0 %2256 }
 0x2bd   : > { %v2303_v22 = vsub.f32 %v14916_v50, %v2257_v9 }
 0x2bf   : > { %v2319_v51 = vmul.f32 1.442695, %v2303_v22 }
 0x2c0   : > { %v2260_v25 = vpop.xlane.xlu0 %2259 }
 0x2c1   : > { %13782 = vpow2.f32 %v2319_v51  ;;  %v2304_v61 = vsub.f32 %v14920_v55, %v2260_v25 }
 0x2c3   : > { %v2321_v30 = vmul.f32 1.442695, %v2304_v61 }
 0x2c4   : > { %v2263_v3 = vpop.xlane.xlu1 %2262 }
 0x2c5   : > { %13784 = vpow2.f32 %v2321_v30  ;;  %v2305_v44 = vsub.f32 %v14924_v0, %v2263_v3 }
 0x2c7   : > { %v2323_v57 = vmul.f32 1.442695, %v2305_v44 }
 0x2c8   : > { %v2266_v29 = vpop.xlane.xlu1 %2265 }
 0x2c9   : > { %13786 = vpow2.f32 %v2323_v57  ;;  %v2306_v19 = vsub.f32 %v14928_v13, %v2266_v29 }
 0x2cb   : > { %v15008_v15 = vpop.eup %13782  ;;  %v2325_v9 = vmul.f32 1.442695, %v2306_v19 }
 0x2cc   : > { %v2269_v50 = vpop.xlane.xlu0 %2268  ;;  %v2351_v22 = vsel %vm1038_vm1, %v15008_v15, 0.0 }
 0x2cd   : > { %13788 = vpow2.f32 %v2325_v9  ;;  %v2307_v55 = vsub.f32 %v14932_v32, %v2269_v50  ;;  %2352 = vadd.xlane.f32.xlu0 %v2351_v22 }
 0x2cf   : > { %v15013_v51 = vpop.eup %13784  ;;  %v2327_v30 = vmul.f32 1.442695, %v2307_v55 }
 0x2d0   : > { %v2281_v0 = vpop.xlane.xlu0 %2280  ;;  %v2272_v44 = vpop.xlane.xlu1 %2271  ;;  %v2354_v25 = vsel %vm1038_vm1, %v15013_v51, 0.0 }
 0x2d1   : > { %13790 = vpow2.f32 %v2327_v30  ;;  %v2311_v29 = vsub.f32 %v14936_v53, %v2281_v0  ;;  %v2308_v13 = vsub.f32 %v14940_v2, %v2272_v44  ;;  %2355 = vadd.xlane.f32.xlu1 %v2354_v25 }
 0x2d3   : > { %v15019_v61 = vpop.eup %13786  ;;  %v2335_v3 = vmul.f32 1.442695, %v2311_v29  ;;  %v2329_v57 = vmul.f32 1.442695, %v2308_v13 }
 0x2d4   : > { %v2287_v32 = vpop.xlane.xlu0 %2286  ;;  %v2357_v19 = vsel %vm1038_vm1, %v15019_v61, 0.0 }
 0x2d5   : > { %13792 = vpow2.f32 %v2335_v3  ;;  %v2313_v9 = vsub.f32 %v14944_v20, %v2287_v32  ;;  %2358 = vadd.xlane.f32.xlu0 %v2357_v19 }
 0x2d6   : > { %13794 = vpow2.f32 %v2329_v57 }
 0x2d7   : > { %v15024_v50 = vpop.eup %13788  ;;  %v2339_v22 = vmul.f32 1.442695, %v2313_v9 }
 0x2d8   : > { %v2275_v53 = vpop.xlane.xlu0 %2274  ;;  %v2360_v2 = vsel %vm1038_vm1, %v15024_v50, 0.0  ;;  %v2278_v19 = vpop.xlane.xlu1 %2277 }
 0x2d9   : > { %13796 = vpow2.f32 %v2339_v22  ;;  %v2309_v55 = vsub.f32 %v14948_v48, %v2275_v53  ;;  %2361 = vadd.xlane.f32.xlu1 %v2360_v2  ;;  %v2310_v9 = vsub.f32 %v14954_v17, %v2278_v19 }
 0x2db   : > { %v15029_v30 = vpop.eup %13790  ;;  %v2331_v0 = vmul.f32 1.442695, %v2309_v55  ;;  %v2333_v53 = vmul.f32 1.442695, %v2310_v9 }
 0x2dc   : > { %v2363_v44 = vsel %vm1038_vm1, %v15029_v30, 0.0  ;;  %v2293_v22 = vpop.xlane.xlu0 %2292  ;;  %v15070_v19 = vpop.permute.xlu1 %4005 }
 0x2dd   : > { %13798 = vpow2.f32 %v2331_v0  ;;  %2364 = vadd.xlane.f32.xlu0 %v2363_v44  ;;  %v2315_v2 = vsub.f32 %v14950_v33, %v2293_v22 }
 0x2de   : > { %13800 = vpow2.f32 %v2333_v53 }
 0x2df   : > { %v15033_v20 = vpop.eup %13792  ;;  %v2343_v0 = vmul.f32 1.442695, %v2315_v2 }
 0x2e0   : > { %v15035_v25 = vpop.eup %13794  ;;  %v2375_v29 = vsel %vm1038_vm1, %v15033_v20, 0.0  ;;  %v2299_v55 = vpop.xlane.xlu0 %2298 }
 0x2e1   : > { %2376 = vadd.xlane.f32.xlu0 %v2375_v29  ;;  %v2366_v48 = vsel %vm1038_vm1, %v15035_v25, 0.0  ;;  %v2317_v44 = vsub.f32 %v14958_v26, %v2299_v55  ;;  %13802 = vpow2.f32 %v2343_v0 }
 0x2e2   : > { %2367 = vadd.xlane.f32.xlu1 %v2366_v48 }
 0x2e3   : > { %v15041_v13 = vpop.eup %13796  ;;  %v2347_v29 = vmul.f32 1.442695, %v2317_v44 }
 0x2e4   : > { %v2381_v3 = vsel %vm1038_vm1, %v15041_v13, 0.0 }
 0x2e5   : > { %2382 = vadd.xlane.f32.xlu0 %v2381_v3  ;;  %13804 = vpow2.f32 %v2347_v29 }
 0x2e7   : > { %v15045_v57 = vpop.eup %13798 }
 0x2e8   : > { %v2369_v32 = vsel %vm1038_vm1, %v15045_v57, 0.0  ;;  %v15056_v48 = vpop.eup %13800 }
 0x2e9   : > { %2370 = vadd.xlane.f32.xlu0 %v2369_v32  ;;  %v2372_v3 = vsel %vm1038_vm1, %v15056_v48, 0.0 }
 0x2eb   : > { %v15060_v32 = vpop.eup %13802 }
 0x2ec   : > { %v2387_v17 = vsel %vm1038_vm1, %v15060_v32, 0.0 }
 0x2ef   : > { %v15064_v33 = vpop.eup %13804 }
 0x2f0   : > { %v2393_v26 = vsel %vm1038_vm1, %v15064_v33, 0.0 }
 0x2f3   : > { %4163 = vrot.lane.b32.xlu1 %v14773_v54, %s14176_s17 }
 0x2ff   : > { %4085 = vrot.lane.b32.xlu0 %v14745_v42, %s14176_s17 }
 0x30d   : > { %v2284_v9 = vpop.xlane.xlu1 %2283 }
 0x30e   : > { %v2312_v53 = vsub.f32 %v14962_v36, %v2284_v9 }
 0x310   : > { %v2337_v55 = vmul.f32 1.442695, %v2312_v53 }
 0x311   : > { %v2290_v22 = vpop.xlane.xlu1 %2289 }
 0x312   : > { %v2314_v0 = vsub.f32 %v14966_v60, %v2290_v22  ;;  %13806 = vpow2.f32 %v2337_v55  ;;  %v15106_v55 = vpop.permute.xlu0 %3927 }
 0x314   : > { %v2341_v44 = vmul.f32 1.442695, %v2314_v0 }
 0x315   : > { %v2296_v2 = vpop.xlane.xlu1 %2295 }
 0x316   : > { %v2316_v29 = vsub.f32 %v14968_v4, %v2296_v2  ;;  %13808 = vpow2.f32 %v2341_v44 }
 0x317   : > { %2373 = vadd.xlane.f32.xlu1 %v2372_v3 }
 0x318   : > { %v2345_v36 = vmul.f32 1.442695, %v2316_v29  ;;  %v15116_v29 = vadd.f32 %v14892_v31, %v14903_v40 }
 0x319   : > { %v2302_v3 = vpop.xlane.xlu1 %2301 }
 0x31a   : > { %13810 = vpow2.f32 %v2345_v36  ;;  %17062 = vst [vmem:[#allocation48_spill] sm:$0xff] %v15116_v29  ;;  %v15122_v36 = vadd.f32 %v14892_v31, %v14909_v43 }
 0x31c   : > { %17063 = vst [vmem:[#allocation49_spill] sm:$0xff] %v15122_v36 }
 0x31e   : > { %2388 = vadd.xlane.f32.xlu0 %v2387_v17  ;;  %v2318_v17 = vsub.f32 %v14970_v59, %v2302_v3 }
 0x320   : > { %v2349_v60 = vmul.f32 1.442695, %v2318_v17 }
 0x322   : > { %2394 = vadd.xlane.f32.xlu0 %v2393_v26  ;;  %v15084_v26 = vpop.eup %13806  ;;  %13812 = vpow2.f32 %v2349_v60 }
 0x323   : > { %v2378_v4 = vsel %vm1038_vm1, %v15084_v26, 0.0  ;;  %v15090_v9 = vpop.eup %13808 }
 0x324   : > { %v2384_v59 = vsel %vm1038_vm1, %v15090_v9, 0.0  ;;  %v15096_v22 = vpop.eup %13810 }
 0x325   : > { %v2390_v53 = vsel %vm1038_vm1, %v15096_v22, 0.0 }
 0x328   : > { %4161 = vrot.lane.b32.xlu1 %v14791_v1, %s14176_s17 }
 0x32c   : > { %v15102_v2 = vpop.eup %13812 }
 0x32d   : > { %v2396_v0 = vsel %vm1038_vm1, %v15102_v2, 0.0 }
 0x338   : > { %4083 = vrot.lane.b32.xlu0 %v14766_v52, %s14176_s17 }
 0x33c   : > { %4241 = vrot.lane.b32.xlu0 %v14710_v28, %s14176_s17 }
 0x340   : > { %4239 = vrot.lane.b32.xlu0 %v14729_v35, %s14176_s17 }
 0x344   : > { %4397 = vrot.lane.b32.xlu0 %v14735_v38, %s14176_s17 }
 0x348   : > { %4395 = vrot.lane.b32.xlu0 %v14753_v45, %s14176_s17 }
 0x34c   : > { %2379 = vadd.xlane.f32.xlu1 %v2378_v4  ;;  %4553 = vrot.lane.b32.xlu0 %v14763_v49, %s14176_s17  ;;  %v15128_v4 = vadd.f32 %v14892_v31, %v14817_v10 }
 0x34e   : > { %17064 = vst [vmem:[#allocation50_spill] sm:$0xff] %v15128_v4 }
 0x350   : > { %2385 = vadd.xlane.f32.xlu1 %v2384_v59  ;;  %4551 = vrot.lane.b32.xlu0 %v14782_v56, %s14176_s17 }
 0x354   : > { %2391 = vadd.xlane.f32.xlu1 %v2390_v53  ;;  %4709 = vrot.lane.b32.xlu0 %v14787_v62, %s14176_s17  ;;  %v15139_v53 = vadd.f32 %v14892_v31, %v14838_v16 }
 0x356   : > { %17065 = vst [vmem:[#allocation51_spill] sm:$0xff] %v15139_v53 }
 0x358   : > { %2397 = vadd.xlane.f32.xlu1 %v2396_v0  ;;  %4707 = vrot.lane.b32.xlu0 %v14806_v7, %s14176_s17 }
 0x35a   : > { %v2353_v44 = vpop.xlane.xlu0 %2352 }
 0x35b   : > { %13814 = vrcp.f32 %v2353_v44  ;;  %v15147_v44 = vadd.f32 %v14900_v39, %v14892_v31 }
 0x35c   : > { %5040 = vrot.lane.b32.xlu0 %v14898_v37, %s14176_s17 }
 0x35e   : > { %v2356_v3 = vpop.xlane.xlu1 %2355 }
 0x35f   : > { %13816 = vrcp.f32 %v2356_v3 }
 0x360   : > { %5194 = vrot.lane.b32.xlu0 %v15116_v29, %s14176_s17 }
 0x362   : > { %v2359_v17 = vpop.xlane.xlu0 %2358 }
 0x363   : > { %13818 = vrcp.f32 %v2359_v17 }
 0x364   : > { %5348 = vrot.lane.b32.xlu0 %v15122_v36, %s14176_s17 }
 0x365   : > { %v13815_v60 = vpop.eup %13814 }
 0x366   : > { %v2362_v40 = vpop.xlane.xlu1 %2361  ;;  %v2415_v59 = vmul.f32 %v13815_v60, %v15008_v15  ;;  %v17066_v15 = vmov 0.0  }
 0x367   : > { %13820 = vrcp.f32 %v2362_v40 }
 0x368   : > { %5656 = vrot.lane.b32.xlu0 %v15128_v4, %s14176_s17  ;;  %13011 = vmatmul.mubr.msk.f32.vlgmr.msra.gmra.mrb[32].mxu0 %vm1038_vm1, %v2415_v59  ;;  %v15179_v59 = vadd.f32 %v14906_v41, %v14892_v31  ;;  %v15193_v41 = vadd.f32 %v14892_v31, %v14914_v47 }
 0x369   : > { %v13817_v43 = vpop.eup %13816  ;;  %13019 = vmatpush3.msra.mxu0 %v15116_v29  ;;  %4319 = vrot.lane.b32.xlu1 %v14800_v6, %s14176_s17 }
 0x36a   : > { %v2365_v10 = vpop.xlane.xlu0 %2364  ;;  %v2416_v0 = vmul.f32 %v13817_v43, %v15013_v51  ;;  %13020 = vmatprep.mubr.msk.f32.mxu0 %vm14175_vm0, %v17066_v15  ;;  %13028 = vmatprep.subr.mxu0 %v17066_v15  ;;  %v15157_v51 = vadd.f32 %v14892_v31, %v14857_v23  ;;  %v15171_v23 = vadd.f32 %v14892_v31, %v14887_v58 }
 0x36b   : > { %13822 = vrcp.f32 %v2365_v10  ;;  %v15207_v10 = vadd.f32 %v14912_v46, %v14892_v31 }
 0x36c   : > { %5810 = vrot.lane.b32.xlu0 %v15139_v53, %s14176_s17  ;;  %13016 = vmatmul.mubr.msk.f32.vlgmr.msra.gmra.mrb[48].mxu1 %vm1038_vm1, %v2416_v0  ;;  %17067 = vst [vmem:[#allocation52_spill] sm:$0xff] %v15157_v51  ;;  %17068 = vst [vmem:[#allocation53_spill] sm:$0xff] %v15171_v23 }
 0x36d   : > { %v13819_v16 = vpop.eup %13818  ;;  %4317 = vrot.lane.b32.xlu1 %v14819_v11, %s14176_s17  ;;  %13024 = vmatpush3.msra.mxu1 %v15147_v44 }
 0x36e   : > { %v2377_v3 = vpop.xlane.xlu0 %2376  ;;  %v2417_v39 = vmul.f32 %v13819_v16, %v15019_v61  ;;  %13025 = vmatprep.mubr.msk.f32.mxu1 %vm14175_vm0, %v17066_v15  ;;  %13033 = vmatprep.subr.mxu1 %v17066_v15  ;;  %v17069_v16 = vld [vmem:[#allocation35_spill] sm:$0xff] }
 0x36f   : > { %v2368_v17 = vpop.xlane.xlu1 %2367 }
 0x370   : > { %13824 = vrcp.f32 %v2368_v17  ;;  %5964 = vrot.lane.b32.xlu0 %v15157_v51, %s14176_s17  ;;  %13021 = vmatmul.mubr.msk.f32.vlgmr.msra.gmra.mrb[34].mxu0 %vm1038_vm1, %v2417_v39 }
 0x371   : > { %v13821_v60 = vpop.eup %13820  ;;  %13029 = vmatpush3.msra.mxu0 %v15122_v36  ;;  %4475 = vrot.lane.b32.xlu1 %v14827_v14, %s14176_s17 }
 0x372   : > { %v2383_v61 = vpop.xlane.xlu0 %2382  ;;  %v2418_v40 = vmul.f32 %v13821_v60, %v15024_v50  ;;  %13030 = vmatprep.mubr.msk.f32.mxu0 %vm14175_vm0, %v17066_v15  ;;  %13038 = vmatprep.subr.mxu0 %v17066_v15  ;;  %v17072_v60 = vld [vmem:[#allocation33_spill] sm:$0xff] }
 0x374   : > { %6118 = vrot.lane.b32.xlu0 %v15171_v23, %s14176_s17  ;;  %13026 = vmatmul.mubr.msk.f32.vlgmr.msra.gmra.mrb[50].mxu1 %vm1038_vm1, %v2418_v40  ;;  %v15264_v40 = vpop.permute.xlu1 %4163 }
 0x375   : > { %v13823_v43 = vpop.eup %13822  ;;  %4473 = vrot.lane.b32.xlu1 %v14842_v18, %s14176_s17  ;;  %13034 = vmatpush3.msra.mxu1 %v15179_v59 }
 0x376   : > { %v2371_v58 = vpop.xlane.xlu0 %2370  ;;  %v2419_v50 = vmul.f32 %v13823_v43, %v15029_v30  ;;  %13035 = vmatprep.mubr.msk.f32.mxu1 %vm14175_vm0, %v17066_v15  ;;  %13043 = vmatprep.subr.mxu1 %v17066_v15  ;;  %v17074_v43 = vld [vmem:[#allocation34_spill] sm:$0xff] }
 0x377   : > { %13826 = vrcp.f32 %v2371_v58  ;;  %v15270_v58 = vadd.f32 %v17074_v43, %v14892_v31 }
 0x378   : > { %6354 = vrot.lane.b32.xlu0 %v14643_v63, %s14177_s19  ;;  %13031 = vmatmul.mubr.msk.f32.vlgmr.msra.gmra.mrb[36].mxu0 %vm1038_vm1, %v2419_v50  ;;  %13828 = vrcp.f32 %v2377_v3 }
 0x379   : > { %13039 = vmatpush3.msra.mxu0 %v15193_v41  ;;  %4631 = vrot.lane.b32.xlu1 %v14848_v21, %s14176_s17  ;;  %13830 = vrcp.f32 %v2383_v61  ;;  %v15262_v61 = vadd.f32 %v17072_v60, %v14892_v31  ;;  %v17080_v60 = vld [vmem:[#allocation23_spill] sm:$0xff] }
 0x37a   : > { %v13825_v30 = vpop.eup %13824  ;;  %13040 = vmatprep.mubr.msk.f32.mxu0 %vm14175_vm0, %v17066_v15  ;;  %13048 = vmatprep.subr.mxu0 %v17066_v15 }
 0x37b   : > { %v2420_v47 = vmul.f32 %v13825_v30, %v15035_v25  ;;  %17073 = vst [vmem:[#allocation35_spill] sm:$0xff] %v15262_v61  ;;  %v17076_v30 = vld [vmem:[#allocation36_spill] sm:$0xff] }
 0x37c   : > { %6352 = vrot.lane.b32.xlu0 %v14655_v5, %s14177_s19 }
 0x37d   : > { %4629 = vrot.lane.b32.xlu1 %v14859_v24, %s14176_s17  ;;  %13036 = vmatmul.mubr.msk.f32.vlgmr.msra.gmra.mrb[52].mxu1 %vm1038_vm1, %v2420_v47  ;;  %v15276_v47 = vadd.f32 %v17076_v30, %v14892_v31  ;;  %v17081_v30 = vld [vmem:[#allocation25_spill] sm:$0xff] }
 0x37e   : > { %13044 = vmatpush3.msra.mxu1 %v15207_v10  ;;  %13045 = vmatprep.mubr.msk.f32.mxu1 %vm14175_vm0, %v17066_v15 }
 0x37f   : > { %13053 = vmatprep.subr.mxu1 %v17066_v15 }
 0x380   : > { %6510 = vrot.lane.b32.xlu0 %v14659_v8, %s14177_s19 }
 0x381   : > { %v13827_v46 = vpop.eup %13826  ;;  %4787 = vrot.lane.b32.xlu1 %v14865_v27, %s14176_s17 }
 0x382   : > { %v2421_v25 = vmul.f32 %v13827_v46, %v15045_v57  ;;  %v13829_v0 = vpop.eup %13828  ;;  %v17070_v57 = vld [vmem:[#allocation37_spill] sm:$0xff]  ;;  %v4086_v46 = vpop.permute.xlu0 %4085 }
 0x383   : > { %v2423_v3 = vmul.f32 %v13829_v0, %v15033_v20  ;;  %v13831_v39 = vpop.eup %13830  ;;  %v17071_v20 = vld [vmem:[#allocation32_spill] sm:$0xff]  ;;  %17075 = vst [vmem:[#allocation37_spill] sm:$0xff] %v15270_v58  ;;  %v17078_v0 = vld [vmem:[#allocation17_spill] sm:$0xff] }
 0x384   : > { %6508 = vrot.lane.b32.xlu0 %v14670_v12, %s14177_s19  ;;  %13041 = vmatmul.mubr.msk.f32.vlgmr.msra.gmra.mrb[38].mxu0 %vm1038_vm1, %v2421_v25  ;;  %v2425_v17 = vmul.f32 %v13831_v39, %v15041_v13  ;;  %v15256_v13 = vadd.f32 %v17071_v20, %v14892_v31  ;;  %17077 = vst [vmem:[#allocation32_spill] sm:$0xff] %v15276_v47  ;;  %v17079_v20 = vld [vmem:[#allocation19_spill] sm:$0xff]  ;;  %v17084_v12 = vld [vmem:[#allocation42_spill] sm:$0xff] }
 0x385   : > { %13049 = vmatpush3.msra.mxu0 %v15128_v4  ;;  %4785 = vrot.lane.b32.xlu1 %v17069_v16, %s14176_s17 }
 0x386   : > { %13050 = vmatprep.mubr.msk.f32.mxu0 %vm14175_vm0, %v17066_v15  ;;  %13058 = vmatprep.subr.mxu0 %v17066_v15 }
 0x388   : > { %13051 = vmatmul.mubr.msk.f32.vlgmr.msra.gmra.mrb[40].mxu0 %vm1038_vm1, %v2423_v3 }
 0x389   : > { %13059 = vmatpush3.msra.mxu0 %v15139_v53  ;;  %5117 = vrot.lane.b32.xlu1 %v17070_v57, %s14176_s17 }
 0x38a   : > { %13060 = vmatprep.mubr.msk.f32.mxu0 %vm14175_vm0, %v17066_v15  ;;  %13068 = vmatprep.subr.mxu0 %v17066_v15 }
 0x38c   : > { %13061 = vmatmul.mubr.msk.f32.vlgmr.msra.gmra.mrb[42].mxu0 %vm1038_vm1, %v2425_v17 }
 0x38d   : > { %13069 = vmatpush3.msra.mxu0 %v15157_v51  ;;  %5271 = vrot.lane.b32.xlu1 %v15147_v44, %s14176_s17  ;;  %v17093_v51 = vld [vmem:[#allocation29_spill] sm:$0xff] }
 0x38e   : > { %13070 = vmatprep.mubr.msk.f32.mxu0 %vm14175_vm0, %v17066_v15  ;;  %13078 = vmatprep.subr.mxu0 %v17066_v15 }
 0x391   : > { %5425 = vrot.lane.b32.xlu1 %v15179_v59, %s14176_s17 }
 0x395   : > { %5502 = vrot.lane.b32.xlu1 %v15193_v41, %s14176_s17 }
 0x399   : > { %5579 = vrot.lane.b32.xlu1 %v15207_v10, %s14176_s17 }
 0x39d   : > { %5733 = vrot.lane.b32.xlu1 %v15256_v13, %s14176_s17 }
 0x3a1   : > { %5887 = vrot.lane.b32.xlu1 %v15262_v61, %s14176_s17 }
 0x3a4   : > { %v2374_v50 = vpop.xlane.xlu1 %2373 }
 0x3a5   : > { %13832 = vrcp.f32 %v2374_v50  ;;  %6041 = vrot.lane.b32.xlu1 %v15270_v58, %s14176_s17 }
 0x3a9   : > { %6195 = vrot.lane.b32.xlu1 %v15276_v47, %s14176_s17 }
 0x3ab   : > { %v2389_v25 = vpop.xlane.xlu0 %2388 }
 0x3ac   : > { %13834 = vrcp.f32 %v2389_v25 }
 0x3ad   : > { %6432 = vrot.lane.b32.xlu1 %v17078_v0, %s14177_s19 }
 0x3af   : > { %v13833_v3 = vpop.eup %13832  ;;  %v2395_v39 = vpop.xlane.xlu0 %2394 }
 0x3b0   : > { %13836 = vrcp.f32 %v2395_v39  ;;  %v2422_v17 = vmul.f32 %v13833_v3, %v15056_v48 }
 0x3b1   : > { %6430 = vrot.lane.b32.xlu1 %v17079_v20, %s14177_s19 }
 0x3b2   : > { %13046 = vmatmul.mubr.msk.f32.vlgmr.msra.gmra.mrb[54].mxu1 %vm1038_vm1, %v2422_v17  ;;  %v17082_v17 = vld [vmem:[#allocation40_spill] sm:$0xff] }
 0x3b3   : > { %13054 = vmatpush3.msra.mxu1 %v15256_v13  ;;  %v4084_v31 = vpop.permute.xlu0 %4083  ;;  %13055 = vmatprep.mubr.msk.f32.mxu1 %vm14175_vm0, %v17066_v15 }
 0x3b4   : > { %13063 = vmatprep.subr.mxu1 %v17066_v15 }
 0x3b5   : > { %6588 = vrot.lane.b32.xlu1 %v17080_v60, %s14177_s19 }
 0x3b6   : > { %v13835_v43 = vpop.eup %13834 }
 0x3b7   : > { %v4242_v50 = vpop.permute.xlu0 %4241  ;;  %v2427_v48 = vmul.f32 %v13835_v43, %v15060_v32 }
 0x3b9   : > { %6586 = vrot.lane.b32.xlu1 %v17081_v30, %s14177_s19  ;;  %13071 = vmatmul.mubr.msk.f32.vlgmr.msra.gmra.mrb[44].mxu0 %vm1038_vm1, %v2427_v48  ;;  %v17083_v48 = vld [vmem:[#allocation43_spill] sm:$0xff] }
 0x3ba   : > { %v13837_v25 = vpop.eup %13836  ;;  %13079 = vmatpush3.msra.mxu0 %v15171_v23  ;;  %13080 = vmatprep.mubr.msk.f32.mxu0 %vm14175_vm0, %v17066_v15  ;;  %v17092_v23 = vld [vmem:[#allocation27_spill] sm:$0xff] }
 0x3bb   : > { %v4240_v3 = vpop.permute.xlu0 %4239  ;;  %v2429_v39 = vmul.f32 %v13837_v25, %v15064_v33  ;;  %13088 = vmatprep.subr.mxu0 %v17066_v15  ;;  %v17085_v33 = vld [vmem:[#allocation44_spill] sm:$0xff] }
 0x3bd   : > { %13081 = vmatmul.mubr.msk.f32.vlgmr.msra.gmra.mrb[46].mxu0 %vm1038_vm1, %v2429_v39  ;;  %v17086_v39 = vld [vmem:[#allocation46_spill] sm:$0xff] }
 0x3be   : > { %13090 = vmatprep.mubr.msk.f32.mxu0 %vm14175_vm0, %v17066_v15 }
 0x3bf   : > { %v4398_v32 = vpop.permute.xlu0 %4397 }
 0x3c1   : > { %13089 = vmatpush3.xpose.msk.msra.mxu0 %vm1038_vm1, %v17082_v17 }
 0x3c2   : > { %13098 = vmatprep.subr.mxu0 %v17066_v15 }
 0x3c3   : > { %v4396_v43 = vpop.permute.xlu0 %4395 }
 0x3c4   : > { %13091 = vmatmul.mubr.msk.f32.vlgmr.msra.gmra.mrb[48].mxu0 %vm1038_vm1, %v17083_v48 }
 0x3c5   : > { %13099 = vmatpush3.xpose.msk.msra.mxu0 %vm1038_vm1, %v17084_v12  ;;  %13100 = vmatprep.mubr.msk.f32.mxu0 %vm14175_vm0, %v17066_v15 }
 0x3c6   : > { %13108 = vmatprep.subr.mxu0 %v17066_v15 }
 0x3c7   : > { %v4554_v25 = vpop.permute.xlu0 %4553 }
 0x3c8   : > { %13101 = vmatmul.mubr.msk.f32.vlgmr.msra.gmra.mrb[50].mxu0 %vm1038_vm1, %v17085_v33 }
 0x3c9   : > { %13109 = vmatpush3.xpose.msk.msra.mxu0 %vm1038_vm1, %v17086_v39  ;;  %13110 = vmatprep.mubr.msk.f32.mxu0 %vm14175_vm0, %v17066_v15 }
 0x3ca   : > { %13118 = vmatprep.subr.mxu0 %v17066_v15 }
 0x3cb   : > { %v4552_v12 = vpop.permute.xlu0 %4551 }
 0x3cc   : > { %13111 = vmatmul.mubr.msk.f32.vlgmr.msra.gmra.mrb[52].mxu0 %vm1038_vm1, %v15106_v55  ;;  %v15333_v55 = vpop.permute.xlu1 %4161 }
 0x3cd   : > { %13119 = vmatpush3.xpose.msk.msra.mxu0 %vm1038_vm1, %v4086_v46  ;;  %13120 = vmatprep.mubr.msk.f32.mxu0 %vm14175_vm0, %v17066_v15 }
 0x3ce   : > { %13128 = vmatprep.subr.mxu0 %v17066_v15 }
 0x3cf   : > { %v4710_v17 = vpop.permute.xlu0 %4709 }
 0x3d0   : > { %13121 = vmatmul.mubr.msk.f32.vlgmr.msra.gmra.mrb[54].mxu0 %vm1038_vm1, %v4084_v31 }
 0x3d1   : > { %13129 = vmatpush3.xpose.msk.msra.mxu0 %vm1038_vm1, %v4242_v50  ;;  %13130 = vmatprep.mubr.msk.f32.mxu0 %vm14175_vm0, %v17066_v15 }
 0x3d2   : > { %13138 = vmatprep.subr.mxu0 %v17066_v15 }
 0x3d3   : > { %v4708_v31 = vpop.permute.xlu0 %4707 }
 0x3d4   : > { %13131 = vmatmul.mubr.msk.f32.vlgmr.msra.gmra.mrb[56].mxu0 %vm1038_vm1, %v4240_v3 }
 0x3d5   : > { %13139 = vmatpush3.xpose.msk.msra.mxu0 %vm1038_vm1, %v4398_v32  ;;  %13140 = vmatprep.mubr.msk.f32.mxu0 %vm14175_vm0, %v17066_v15 }
 0x3d6   : > { %13148 = vmatprep.subr.mxu0 %v17066_v15 }
 0x3d7   : > { %v5041_v3 = vpop.permute.xlu0 %5040 }
 0x3d8   : > { %13141 = vmatmul.mubr.msk.f32.vlgmr.msra.gmra.mrb[58].mxu0 %vm1038_vm1, %v4396_v43 }
 0x3d9   : > { %13149 = vmatpush3.xpose.msk.msra.mxu0 %vm1038_vm1, %v4554_v25  ;;  %v2380_v46 = vpop.xlane.xlu1 %2379  ;;  %13150 = vmatprep.mubr.msk.f32.mxu0 %vm14175_vm0, %v17066_v15 }
 0x3da   : > { %13838 = vrcp.f32 %v2380_v46  ;;  %13158 = vmatprep.subr.mxu0 %v17066_v15 }
 0x3dc   : > { %13151 = vmatmul.mubr.msk.f32.vlgmr.msra.gmra.mrb[60].mxu0 %vm1038_vm1, %v4552_v12 }
 0x3dd   : > { %13159 = vmatpush3.xpose.msk.msra.mxu0 %vm1038_vm1, %v4710_v17  ;;  %v2386_v50 = vpop.xlane.xlu1 %2385  ;;  %13160 = vmatprep.mubr.msk.f32.mxu0 %vm14175_vm0, %v17066_v15 }
 0x3de   : > { %13840 = vrcp.f32 %v2386_v50  ;;  %13168 = vmatprep.subr.mxu0 %v17066_v15 }
 0x3e0   : > { %13161 = vmatmul.mubr.msk.f32.vlgmr.msra.gmra.mrb[62].mxu0 %vm1038_vm1, %v4708_v31 }
 0x3e1   : > { %13169 = vmatpush3.msra.mxu0 %v5041_v3  ;;  %v2392_v32 = vpop.xlane.xlu1 %2391  ;;  %13170 = vmatprep.mubr.msk.f32.mxu0 %vm14175_vm0, %v17066_v15  ;;  %v17087_v3 = vld [vmem:[#allocation39_spill] sm:$0xff] }
 0x3e2   : > { %13842 = vrcp.f32 %v2392_v32  ;;  %13178 = vmatprep.subr.mxu0 %v17066_v15  ;;  %v17088_v32 = vld [vmem:[#allocation41_spill] sm:$0xff] }
 0x3e4   : > { %v13839_v43 = vpop.eup %13838 }
 0x3e5   : > { %v2398_v48 = vpop.xlane.xlu1 %2397  ;;  %v2424_v33 = vmul.f32 %v13839_v43, %v15084_v26  ;;  %v17089_v43 = vld [vmem:[#allocation45_spill] sm:$0xff] }
 0x3e6   : > { %13844 = vrcp.f32 %v2398_v48  ;;  %v17090_v48 = vld [vmem:[#allocation47_spill] sm:$0xff] }
 0x3e7   : > { %13056 = vmatmul.mubr.msk.f32.vlgmr.msra.gmra.mrb[56].mxu1 %vm1038_vm1, %v2424_v33 }
 0x3e8   : > { %v13841_v25 = vpop.eup %13840  ;;  %13064 = vmatpush3.msra.mxu1 %v15262_v61  ;;  %13065 = vmatprep.mubr.msk.f32.mxu1 %vm14175_vm0, %v17066_v15 }
 0x3e9   : > { %v4320_v39 = vpop.permute.xlu1 %4319  ;;  %13073 = vmatprep.subr.mxu1 %v17066_v15  ;;  %v2426_v12 = vmul.f32 %v13841_v25, %v15090_v9 }
 0x3eb   : > { %13066 = vmatmul.mubr.msk.f32.vlgmr.msra.gmra.mrb[58].mxu1 %vm1038_vm1, %v2426_v12 }
 0x3ec   : > { %v13843_v17 = vpop.eup %13842  ;;  %13074 = vmatpush3.msra.mxu1 %v15270_v58  ;;  %13075 = vmatprep.mubr.msk.f32.mxu1 %vm14175_vm0, %v17066_v15 }
 0x3ed   : > { %v4318_v26 = vpop.permute.xlu1 %4317  ;;  %13083 = vmatprep.subr.mxu1 %v17066_v15  ;;  %v2428_v46 = vmul.f32 %v13843_v17, %v15096_v22 }
 0x3ef   : > { %13076 = vmatmul.mubr.msk.f32.vlgmr.msra.gmra.mrb[60].mxu1 %vm1038_vm1, %v2428_v46 }
 0x3f0   : > { %v13845_v31 = vpop.eup %13844  ;;  %13084 = vmatpush3.msra.mxu1 %v15276_v47  ;;  %13085 = vmatprep.mubr.msk.f32.mxu1 %vm14175_vm0, %v17066_v15 }
 0x3f1   : > { %v2430_v9 = vmul.f32 %v13845_v31, %v15102_v2  ;;  %13093 = vmatprep.subr.mxu1 %v17066_v15  ;;  %v4476_v50 = vpop.permute.xlu1 %4475 }
 0x3f3   : > { %13086 = vmatmul.mubr.msk.f32.vlgmr.msra.gmra.mrb[62].mxu1 %vm1038_vm1, %v2430_v9 }
 0x3f4   : > { %13095 = vmatprep.mubr.msk.f32.mxu1 %vm14175_vm0, %v17066_v15 }
 0x3f5   : > { %v4474_v22 = vpop.permute.xlu1 %4473 }
 0x3f7   : > { %13094 = vmatpush3.xpose.msk.msra.mxu1 %vm1038_vm1, %v17087_v3 }
 0x3f8   : > { %13103 = vmatprep.subr.mxu1 %v17066_v15 }
 0x3f9   : > { %v4632_v2 = vpop.permute.xlu1 %4631 }
 0x3fa   : > { %13096 = vmatmul.mubr.msk.f32.vlgmr.msra.gmra.mrb[64].mxu1 %vm1038_vm1, %v17088_v32 }
 0x3fb   : > { %13104 = vmatpush3.xpose.msk.msra.mxu1 %vm1038_vm1, %v17089_v43  ;;  %13105 = vmatprep.mubr.msk.f32.mxu1 %vm14175_vm0, %v17066_v15 }
 0x3fc   : > { %13113 = vmatprep.subr.mxu1 %v17066_v15 }
 0x3fd   : > { %v4630_v33 = vpop.permute.xlu1 %4629 }
 0x3fe   : > { %13106 = vmatmul.mubr.msk.f32.vlgmr.msra.gmra.mrb[66].mxu1 %vm1038_vm1, %v17090_v48 }
 0x3ff   : > { %13114 = vmatpush3.xpose.msk.msra.mxu1 %vm1038_vm1, %v15003_v34  ;;  %13115 = vmatprep.mubr.msk.f32.mxu1 %vm14175_vm0, %v17066_v15 }
 0x400   : > { %13123 = vmatprep.subr.mxu1 %v17066_v15 }
 0x401   : > { %v4788_v34 = vpop.permute.xlu1 %4787 }
 0x402   : > { %13116 = vmatmul.mubr.msk.f32.vlgmr.msra.gmra.mrb[68].mxu1 %vm1038_vm1, %v15070_v19 }
 0x403   : > { %13124 = vmatpush3.xpose.msk.msra.mxu1 %vm1038_vm1, %v15264_v40  ;;  %13125 = vmatprep.mubr.msk.f32.mxu1 %vm14175_vm0, %v17066_v15 }
 0x404   : > { %13133 = vmatprep.subr.mxu1 %v17066_v15 }
 0x405   : > { %v4786_v19 = vpop.permute.xlu1 %4785 }
 0x406   : > { %13126 = vmatmul.mubr.msk.f32.vlgmr.msra.gmra.mrb[70].mxu1 %vm1038_vm1, %v15333_v55 }
 0x407   : > { %13134 = vmatpush3.xpose.msk.msra.mxu1 %vm1038_vm1, %v4320_v39  ;;  %13135 = vmatprep.mubr.msk.f32.mxu1 %vm14175_vm0, %v17066_v15 }
 0x408   : > { %13143 = vmatprep.subr.mxu1 %v17066_v15 }
 0x409   : > { %v5118_v40 = vpop.permute.xlu1 %5117 }
 0x40a   : > { %13136 = vmatmul.mubr.msk.f32.vlgmr.msra.gmra.mrb[72].mxu1 %vm1038_vm1, %v4318_v26 }
 0x40b   : > { %13144 = vmatpush3.xpose.msk.msra.mxu1 %vm1038_vm1, %v4476_v50  ;;  %13145 = vmatprep.mubr.msk.f32.mxu1 %vm14175_vm0, %v17066_v15 }
 0x40c   : > { %13153 = vmatprep.subr.mxu1 %v17066_v15 }
 0x40d   : > { %v15528_v36 = vpop.permute.xlu1 %5271 }
 0x40e   : > { %13146 = vmatmul.mubr.msk.f32.vlgmr.msra.gmra.mrb[74].mxu1 %vm1038_vm1, %v4474_v22  ;;  %17101 = vst [vmem:[#allocation25_spill] sm:$0xff] %v15528_v36 }
 0x40f   : > { %13154 = vmatpush3.xpose.msk.msra.mxu1 %vm1038_vm1, %v4632_v2  ;;  %13155 = vmatprep.mubr.msk.f32.mxu1 %vm14175_vm0, %v17066_v15 }
 0x410   : > { %13163 = vmatprep.subr.mxu1 %v17066_v15 }
 0x411   : > { %v15532_v29 = vpop.permute.xlu1 %5425 }
 0x412   : > { %13156 = vmatmul.mubr.msk.f32.vlgmr.msra.gmra.mrb[76].mxu1 %vm1038_vm1, %v4630_v33  ;;  %17103 = vst [vmem:[#allocation43_spill] sm:$0xff] %v15532_v29 }
 0x413   : > { %13164 = vmatpush3.xpose.msk.msra.mxu1 %vm1038_vm1, %v4788_v34  ;;  %13165 = vmatprep.mubr.msk.f32.mxu1 %vm14175_vm0, %v17066_v15 }
 0x414   : > { %13173 = vmatprep.subr.mxu1 %v17066_v15 }
 0x416   : > { %13166 = vmatmul.mubr.msk.f32.vlgmr.msra.gmra.mrb[78].mxu1 %vm1038_vm1, %v4786_v19 }
 0x417   : > { %13174 = vmatpush3.msra.mxu1 %v5118_v40  ;;  %13175 = vmatprep.mubr.msk.f32.mxu1 %vm14175_vm0, %v17066_v15 }
 0x418   : > { %13183 = vmatprep.subr.mxu1 %v17066_v15 }
 0x43b   : > { %v2500_v55 = vpop.f32.mrb[32].mxu0 }
 0x43c   : > { %3599 = vst.msk [vmem:[#allocation2] sm:$0xff] %vm1038_vm1, %v2500_v55  ;;  %v13012_v25 = vpop.f32.mrb[33].mxu0 }
 0x43f   : > { %v2573_v39 = vpop.f32.mrb[48].mxu1 }
 0x440   : > { %3600 = vst.msk [vmem:[#allocation2 + $0x8] sm:$0xff] %vm1038_vm1, %v2573_v39  ;;  %v13017_v12 = vpop.f32.mrb[49].mxu1 }
 0x443   : > { %v2646_v17 = vpop.f32.mrb[34].mxu0 }
 0x444   : > { %3601 = vst.msk [vmem:[#allocation2 + $0x10] sm:$0xff] %vm1038_vm1, %v2646_v17  ;;  %v13022_v26 = vpop.f32.mrb[35].mxu0 }
 0x447   : > { %v2719_v46 = vpop.f32.mrb[50].mxu1 }
 0x448   : > { %3602 = vst.msk [vmem:[#allocation2 + $0x18] sm:$0xff] %vm1038_vm1, %v2719_v46  ;;  %v13027_v31 = vpop.f32.mrb[51].mxu1 }
 0x44b   : > { %v2792_v9 = vpop.f32.mrb[36].mxu0 }
 0x44c   : > { %3603 = vst.msk [vmem:[#allocation2 + $0x20] sm:$0xff] %vm1038_vm1, %v2792_v9  ;;  %v13032_v50 = vpop.f32.mrb[37].mxu0 }
 0x450   : > { %v2865_v3 = vpop.f32.mrb[52].mxu1 }
 0x451   : > { %3604 = vst.msk [vmem:[#allocation2 + $0x28] sm:$0xff] %vm1038_vm1, %v2865_v3  ;;  %v13037_v22 = vpop.f32.mrb[53].mxu1 }
 0x457   : > { %v2938_v32 = vpop.f32.mrb[38].mxu0 }
 0x458   : > { %3605 = vst.msk [vmem:[#allocation2 + $0x30] sm:$0xff] %vm1038_vm1, %v2938_v32  ;;  %v13042_v43 = vpop.f32.mrb[39].mxu0 }
 0x45b   : > { %v3084_v2 = vpop.f32.mrb[40].mxu0 }
 0x45c   : > { %3607 = vst.msk [vmem:[#allocation2 + $0x40] sm:$0xff] %vm1038_vm1, %v3084_v2  ;;  %v13052_v48 = vpop.f32.mrb[41].mxu0 }
 0x45f   : > { %v3230_v33 = vpop.f32.mrb[42].mxu0 }
 0x460   : > { %3609 = vst.msk [vmem:[#allocation2 + $0x50] sm:$0xff] %vm1038_vm1, %v3230_v33  ;;  %v13062_v34 = vpop.f32.mrb[43].mxu0 }
 0x485   : > { %v3011_v19 = vpop.f32.mrb[54].mxu1 }
 0x486   : > { %3606 = vst.msk [vmem:[#allocation2 + $0x38] sm:$0xff] %vm1038_vm1, %v3011_v19  ;;  %v13047_v40 = vpop.f32.mrb[55].mxu1 }
 0x48c   : > { %v3376_v55 = vpop.f32.mrb[44].mxu0 }
 0x48d   : > { %3611 = vst.msk [vmem:[#allocation2 + $0x60] sm:$0xff] %vm1038_vm1, %v3376_v55  ;;  %v13072_v25 = vpop.f32.mrb[45].mxu0 }
 0x490   : > { %v3522_v39 = vpop.f32.mrb[46].mxu0 }
 0x491   : > { %3613 = vst.msk [vmem:[#allocation2 + $0x70] sm:$0xff] %vm1038_vm1, %v3522_v39  ;;  %v13082_v12 = vpop.f32.mrb[47].mxu0 }
 0x497   : > { %v15436_v17 = vpop.f32.mrb[48].mxu0 }
 0x498   : > { %v13092_v26 = vpop.f32.mrb[49].mxu0  ;;  %v4863_v46 = vsel %vm1038_vm1, %v15436_v17, -inf }
 0x499   : > { %4864 = vmax.xlane.f32.xlu0 %v4863_v46 }
 0x49b   : > { %v15440_v31 = vpop.f32.mrb[50].mxu0 }
 0x49c   : > { %v13102_v9 = vpop.f32.mrb[51].mxu0  ;;  %v4869_v50 = vsel %vm1038_vm1, %v15440_v31, -inf }
 0x49d   : > { %4870 = vmax.xlane.f32.xlu0 %v4869_v50 }
 0x49f   : > { %v15444_v3 = vpop.f32.mrb[52].mxu0 }
 0x4a0   : > { %v13112_v22 = vpop.f32.mrb[53].mxu0 }
 0x4a3   : > { %v15446_v32 = vpop.f32.mrb[54].mxu0 }
 0x4a4   : > { %v13122_v43 = vpop.f32.mrb[55].mxu0 }
 0x4a7   : > { %v15448_v2 = vpop.f32.mrb[56].mxu0 }
 0x4a8   : > { %v13132_v48 = vpop.f32.mrb[57].mxu0 }
 0x4ab   : > { %v15450_v33 = vpop.f32.mrb[58].mxu0 }
 0x4ac   : > { %v13142_v34 = vpop.f32.mrb[59].mxu0  ;;  %v4893_v8 = vsel %vm1038_vm1, %v15450_v33, -inf }
 0x4af   : > { %v15452_v19 = vpop.f32.mrb[60].mxu0 }
 0x4b0   : > { %v13152_v40 = vpop.f32.mrb[61].mxu0  ;;  %v4899_v5 = vsel %vm1038_vm1, %v15452_v19, -inf }
 0x4b3   : > { %v15454_v55 = vpop.f32.mrb[62].mxu0 }
 0x4b4   : > { %v13162_v25 = vpop.f32.mrb[63].mxu0  ;;  %v4905_v63 = vsel %vm1038_vm1, %v15454_v55, -inf }
 0x4ba   : > { %v3157_v39 = vpop.f32.mrb[56].mxu1 }
 0x4bb   : > { %3608 = vst.msk [vmem:[#allocation2 + $0x48] sm:$0xff] %vm1038_vm1, %v3157_v39  ;;  %v13057_v12 = vpop.f32.mrb[57].mxu1 }
 0x4be   : > { %v3303_v26 = vpop.f32.mrb[58].mxu1 }
 0x4bf   : > { %3610 = vst.msk [vmem:[#allocation2 + $0x58] sm:$0xff] %vm1038_vm1, %v3303_v26  ;;  %v13067_v46 = vpop.f32.mrb[59].mxu1 }
 0x4c2   : > { %v3449_v9 = vpop.f32.mrb[60].mxu1 }
 0x4c3   : > { %3612 = vst.msk [vmem:[#allocation2 + $0x68] sm:$0xff] %vm1038_vm1, %v3449_v9  ;;  %v13077_v50 = vpop.f32.mrb[61].mxu1  ;;  %v4875_v9 = vsel %vm1038_vm1, %v15444_v3, -inf }
 0x4c6   : > { %v3595_v22 = vpop.f32.mrb[62].mxu1 }
 0x4c7   : > { %3614 = vst.msk [vmem:[#allocation2 + $0x78] sm:$0xff] %vm1038_vm1, %v3595_v22  ;;  %v13087_v43 = vpop.f32.mrb[63].mxu1 }
 0x4cd   : > { %v15460_v48 = vpop.f32.mrb[64].mxu1 }
 0x4ce   : > { %v13097_v34 = vpop.f32.mrb[65].mxu1  ;;  %v4866_v40 = vsel %vm1038_vm1, %v15460_v48, -inf }
 0x4cf   : > { %4867 = vmax.xlane.f32.xlu1 %v4866_v40  ;;  %v4881_v34 = vsel %vm1038_vm1, %v15446_v32, -inf }
 0x4d1   : > { %v15464_v25 = vpop.f32.mrb[66].mxu1 }
 0x4d2   : > { %v13107_v39 = vpop.f32.mrb[67].mxu1  ;;  %v4872_v12 = vsel %vm1038_vm1, %v15464_v25, -inf }
 0x4d3   : > { %4873 = vmax.xlane.f32.xlu0 %v4872_v12 }
 0x4d5   : > { %v15468_v26 = vpop.f32.mrb[68].mxu1 }
 0x4d6   : > { %v13117_v46 = vpop.f32.mrb[69].mxu1  ;;  %v4878_v50 = vsel %vm1038_vm1, %v15468_v26, -inf }
 0x4d7   : > { %4876 = vmax.xlane.f32.xlu0 %v4875_v9  ;;  %4879 = vmax.xlane.f32.xlu1 %v4878_v50  ;;  %v4887_v46 = vsel %vm1038_vm1, %v15448_v2, -inf }
 0x4d9   : > { %v15474_v22 = vpop.f32.mrb[70].mxu1 }
 0x4da   : > { %v13127_v43 = vpop.f32.mrb[71].mxu1  ;;  %v4884_v40 = vsel %vm1038_vm1, %v15474_v22, -inf }
 0x4db   : > { %4882 = vmax.xlane.f32.xlu0 %v4881_v34  ;;  %4885 = vmax.xlane.f32.xlu1 %v4884_v40 }
 0x4dd   : > { %v15480_v39 = vpop.f32.mrb[72].mxu1 }
 0x4de   : > { %v13137_v12 = vpop.f32.mrb[73].mxu1  ;;  %v4890_v9 = vsel %vm1038_vm1, %v15480_v39, -inf }
 0x4df   : > { %4888 = vmax.xlane.f32.xlu0 %v4887_v46  ;;  %4891 = vmax.xlane.f32.xlu1 %v4890_v9 }
 0x4e1   : > { %v15486_v50 = vpop.f32.mrb[74].mxu1 }
 0x4e2   : > { %v13147_v43 = vpop.f32.mrb[75].mxu1  ;;  %v4896_v34 = vsel %vm1038_vm1, %v15486_v50, -inf }
 0x4e3   : > { %4894 = vmax.xlane.f32.xlu0 %v4893_v8  ;;  %4897 = vmax.xlane.f32.xlu1 %v4896_v34  ;;  %v15502_v8 = vpop.permute.xlu0 %5194 }
 0x4e5   : > { %v15492_v40 = vpop.f32.mrb[76].mxu1 }
 0x4e6   : > { %v13157_v12 = vpop.f32.mrb[77].mxu1  ;;  %v4902_v46 = vsel %vm1038_vm1, %v15492_v40, -inf }
 0x4e7   : > { %4900 = vmax.xlane.f32.xlu0 %v4899_v5  ;;  %4903 = vmax.xlane.f32.xlu1 %v4902_v46  ;;  %v15504_v34 = vpop.permute.xlu0 %5348  ;;  %v17095_v46 = vld [vmem:[#allocation24_spill] sm:$0xff] }
 0x4e9   : > { %v15498_v9 = vpop.f32.mrb[78].mxu1 }
 0x4ea   : > { %v13167_v43 = vpop.f32.mrb[79].mxu1 }
 0x4eb   : > { %4906 = vmax.xlane.f32.xlu0 %v4905_v63  ;;  %v15506_v12 = vpop.permute.xlu0 %5656  ;;  %v17097_v63 = vld [vmem:[#allocation26_spill] sm:$0xff] }
 0x4ec   : > { %17091 = vst [vmem:[#allocation33_spill] sm:$0xff] %v15506_v12 }
 0x4ef   : > { %v15512_v5 = vpop.permute.xlu0 %5810 }
 0x4f0   : > { %17094 = vst [vmem:[#allocation34_spill] sm:$0xff] %v15512_v5 }
 0x4f3   : > { %v15516_v43 = vpop.permute.xlu0 %5964 }
 0x4f4   : > { %17096 = vst [vmem:[#allocation36_spill] sm:$0xff] %v15516_v43  ;;  %v15538_v43 = vpop.permute.xlu1 %5502 }
 0x4f5   : > { %17105 = vst [vmem:[#allocation44_spill] sm:$0xff] %v15538_v43 }
 0x4f7   : > { %v15522_v12 = vpop.permute.xlu0 %6118 }
 0x4f8   : > { %6744 = vrot.lane.b32.xlu1 %v17092_v23, %s14177_s19  ;;  %17098 = vst [vmem:[#allocation17_spill] sm:$0xff] %v15522_v12 }
 0x4fb   : > { %v15524_v53 = vpop.permute.xlu0 %6354 }
 0x4fc   : > { %6742 = vrot.lane.b32.xlu1 %v17093_v51, %s14177_s19  ;;  %17099 = vst [vmem:[#allocation19_spill] sm:$0xff] %v15524_v53  ;;  %v15541_v53 = vpop.permute.xlu1 %5579 }
 0x4fd   : > { %17106 = vst [vmem:[#allocation46_spill] sm:$0xff] %v15541_v53 }
 0x4ff   : > { %v15526_v4 = vpop.permute.xlu0 %6352 }
 0x500   : > { %17100 = vst [vmem:[#allocation23_spill] sm:$0xff] %v15526_v4  ;;  %v15544_v29 = vpop.permute.xlu1 %5733 }
 0x501   : > { %6666 = vrot.lane.b32.xlu0 %v17095_v46, %s14177_s19  ;;  %v4908_v46 = vsel %vm1038_vm1, %v15498_v9, -inf  ;;  %17107 = vst [vmem:[#allocation39_spill] sm:$0xff] %v15544_v29 }
 0x503   : > { %v15530_v5 = vpop.permute.xlu0 %6510 }
 0x504   : > { %17102 = vst [vmem:[#allocation40_spill] sm:$0xff] %v15530_v5 }
 0x505   : > { %6664 = vrot.lane.b32.xlu0 %v17097_v63, %s14177_s19 }
 0x507   : > { %v15536_v63 = vpop.permute.xlu0 %6508 }
 0x508   : > { %17104 = vst [vmem:[#allocation42_spill] sm:$0xff] %v15536_v63 }
 0x509   : > { %6822 = vrot.lane.b32.xlu0 %v14745_v42, %s14177_s19 }
 0x520   : > { %4909 = vmax.xlane.f32.xlu1 %v4908_v46  ;;  %v15548_v46 = vpop.permute.xlu1 %5887 }
 0x521   : > { %17108 = vst [vmem:[#allocation41_spill] sm:$0xff] %v15548_v46 }
 0x526   : > { %v4865_v42 = vpop.xlane.xlu0 %4864 }
 0x527   : > { %v4911_v12 = vsub.f32 %v15436_v17, %v4865_v42 }
 0x529   : > { %v4927_v4 = vmul.f32 1.442695, %v4911_v12 }
 0x52a   : > { %v4871_v37 = vpop.xlane.xlu0 %4870 }
 0x52b   : > { %13846 = vpow2.f32 %v4927_v4  ;;  %v4913_v5 = vsub.f32 %v15440_v31, %v4871_v37  ;;  %v15556_v4 = vpop.permute.xlu1 %6041 }
 0x52c   : > { %17109 = vst [vmem:[#allocation45_spill] sm:$0xff] %v15556_v4 }
 0x52d   : > { %v4931_v36 = vmul.f32 1.442695, %v4913_v5 }
 0x52f   : > { %13848 = vpow2.f32 %v4931_v36  ;;  %v15560_v36 = vpop.permute.xlu1 %6195 }
 0x530   : > { %17110 = vst [vmem:[#allocation47_spill] sm:$0xff] %v15560_v36 }
 0x531   : > { %6900 = vrot.lane.b32.xlu1 %v14773_v54, %s14177_s19 }
 0x533   : > { %v15562_v31 = vpop.permute.xlu1 %6432 }
 0x534   : > { %17111 = vst [vmem:[#allocation27_spill] sm:$0xff] %v15562_v31 }
 0x535   : > { %v15550_v63 = vpop.eup %13846 }
 0x536   : > { %v4959_v42 = vsel %vm1038_vm1, %v15550_v63, 0.0 }
 0x537   : > { %4960 = vadd.xlane.f32.xlu0 %v4959_v42  ;;  %v15564_v12 = vpop.permute.xlu1 %6430 }
 0x538   : > { %17112 = vst [vmem:[#allocation54_spill] sm:$0xff] %v15564_v12 }
 0x539   : > { %v15554_v17 = vpop.eup %13848 }
 0x53a   : > { %v4965_v37 = vsel %vm1038_vm1, %v15554_v17, 0.0 }
 0x53b   : > { %4966 = vadd.xlane.f32.xlu0 %v4965_v37  ;;  %v15566_v5 = vpop.permute.xlu1 %6588 }
 0x53c   : > { %17113 = vst [vmem:[#allocation55_spill] sm:$0xff] %v15566_v5 }
 0x53f   : > { %v15568_v54 = vpop.permute.xlu1 %6586 }
 0x540   : > { %17114 = vst [vmem:[#allocation56_spill] sm:$0xff] %v15568_v54 }
 0x55c   : > { %v4868_v46 = vpop.xlane.xlu1 %4867 }
 0x55d   : > { %v4912_v42 = vsub.f32 %v15460_v48, %v4868_v46 }
 0x55f   : > { %v4929_v29 = vmul.f32 1.442695, %v4912_v42 }
 0x560   : > { %v4874_v53 = vpop.xlane.xlu0 %4873 }
 0x561   : > { %13850 = vpow2.f32 %v4929_v29  ;;  %v4914_v4 = vsub.f32 %v15464_v25, %v4874_v53 }
 0x563   : > { %v4933_v43 = vmul.f32 1.442695, %v4914_v4 }
 0x564   : > { %v4877_v37 = vpop.xlane.xlu0 %4876  ;;  %v4880_v51 = vpop.xlane.xlu1 %4879 }
 0x565   : > { %13852 = vpow2.f32 %v4933_v43  ;;  %v4915_v31 = vsub.f32 %v15444_v3, %v4877_v37  ;;  %v4916_v12 = vsub.f32 %v15468_v26, %v4880_v51 }
 0x567   : > { %v4935_v36 = vmul.f32 1.442695, %v4915_v31  ;;  %v4937_v5 = vmul.f32 1.442695, %v4916_v12 }
 0x568   : > { %v4883_v7 = vpop.xlane.xlu0 %4882  ;;  %v4886_v54 = vpop.xlane.xlu1 %4885 }
 0x569   : > { %13854 = vpow2.f32 %v4935_v36  ;;  %v4917_v48 = vsub.f32 %v15446_v32, %v4883_v7  ;;  %v4918_v46 = vsub.f32 %v15474_v22, %v4886_v54 }
 0x56a   : > { %13856 = vpow2.f32 %v4937_v5 }
 0x56b   : > { %v15576_v29 = vpop.eup %13850  ;;  %v4939_v53 = vmul.f32 1.442695, %v4917_v48  ;;  %v4941_v25 = vmul.f32 1.442695, %v4918_v46 }
 0x56c   : > { %v4889_v4 = vpop.xlane.xlu0 %4888  ;;  %v4892_v43 = vpop.xlane.xlu1 %4891  ;;  %v4962_v3 = vsel %vm1038_vm1, %v15576_v29, 0.0 }
 0x56d   : > { %13858 = vpow2.f32 %v4939_v53  ;;  %v4919_v51 = vsub.f32 %v15448_v2, %v4889_v4  ;;  %v4920_v26 = vsub.f32 %v15480_v39, %v4892_v43  ;;  %4963 = vadd.xlane.f32.xlu1 %v4962_v3 }
 0x56e   : > { %13860 = vpow2.f32 %v4941_v25 }
 0x56f   : > { %v15582_v7 = vpop.eup %13852  ;;  %v4943_v54 = vmul.f32 1.442695, %v4919_v51  ;;  %v4945_v32 = vmul.f32 1.442695, %v4920_v26 }
 0x570   : > { %v4895_v22 = vpop.xlane.xlu0 %4894  ;;  %v4898_v36 = vpop.xlane.xlu1 %4897  ;;  %v4968_v31 = vsel %vm1038_vm1, %v15582_v7, 0.0 }
 0x571   : > { %13862 = vpow2.f32 %v4943_v54  ;;  %v4921_v12 = vsub.f32 %v15450_v33, %v4895_v22  ;;  %v4922_v5 = vsub.f32 %v15486_v50, %v4898_v36  ;;  %4969 = vadd.xlane.f32.xlu1 %v4968_v31 }
 0x572   : > { %13864 = vpow2.f32 %v4945_v32 }
 0x573   : > { %v15588_v2 = vpop.eup %13854  ;;  %v4947_v39 = vmul.f32 1.442695, %v4921_v12  ;;  %v4949_v42 = vmul.f32 1.442695, %v4922_v5 }
 0x574   : > { %v15590_v37 = vpop.eup %13856  ;;  %v4901_v48 = vpop.xlane.xlu0 %4900  ;;  %v4971_v53 = vsel %vm1038_vm1, %v15588_v2, 0.0 }
 0x575   : > { %v4904_v46 = vpop.xlane.xlu1 %4903  ;;  %13866 = vpow2.f32 %v4947_v39  ;;  %v4923_v25 = vsub.f32 %v15452_v19, %v4901_v48  ;;  %4972 = vadd.xlane.f32.xlu0 %v4971_v53  ;;  %v4974_v50 = vsel %vm1038_vm1, %v15590_v37, 0.0 }
 0x576   : > { %v4924_v33 = vsub.f32 %v15492_v40, %v4904_v46  ;;  %13868 = vpow2.f32 %v4949_v42  ;;  %4975 = vadd.xlane.f32.xlu1 %v4974_v50 }
 0x577   : > { %v15598_v4 = vpop.eup %13858  ;;  %v4951_v43 = vmul.f32 1.442695, %v4923_v25 }
 0x578   : > { %v4953_v3 = vmul.f32 1.442695, %v4924_v33  ;;  %v15600_v51 = vpop.eup %13860  ;;  %v4907_v26 = vpop.xlane.xlu0 %4906  ;;  %v4977_v54 = vsel %vm1038_vm1, %v15598_v4, 0.0 }
 0x579   : > { %13870 = vpow2.f32 %v4951_v43  ;;  %v4925_v19 = vsub.f32 %v15454_v55, %v4907_v26  ;;  %4978 = vadd.xlane.f32.xlu0 %v4977_v54  ;;  %v4980_v40 = vsel %vm1038_vm1, %v15600_v51, 0.0  ;;  %v15639_v43 = vpop.permute.xlu1 %6744 }
 0x57a   : > { %13872 = vpow2.f32 %v4953_v3  ;;  %4981 = vadd.xlane.f32.xlu1 %v4980_v40 }
 0x57b   : > { %v15607_v32 = vpop.eup %13862  ;;  %v4955_v22 = vmul.f32 1.442695, %v4925_v19 }
 0x57c   : > { %v15609_v36 = vpop.eup %13864  ;;  %v4983_v31 = vsel %vm1038_vm1, %v15607_v32, 0.0  ;;  %v15654_v40 = vpop.permute.xlu0 %6666 }
 0x57d   : > { %13874 = vpow2.f32 %v4955_v22  ;;  %4984 = vadd.xlane.f32.xlu0 %v4983_v31  ;;  %v4986_v12 = vsel %vm1038_vm1, %v15609_v36, 0.0  ;;  %v15645_v3 = vpop.permute.xlu1 %6742 }
 0x57e   : > { %4987 = vadd.xlane.f32.xlu1 %v4986_v12 }
 0x57f   : > { %v15615_v55 = vpop.eup %13866 }
 0x580   : > { %v15617_v5 = vpop.eup %13868  ;;  %v4989_v39 = vsel %vm1038_vm1, %v15615_v55, 0.0  ;;  %v15658_v22 = vpop.permute.xlu0 %6664 }
 0x581   : > { %4990 = vadd.xlane.f32.xlu0 %v4989_v39  ;;  %v4992_v42 = vsel %vm1038_vm1, %v15617_v5, 0.0 }
 0x582   : > { %4993 = vadd.xlane.f32.xlu1 %v4992_v42 }
 0x583   : > { %v15623_v48 = vpop.eup %13870 }
 0x584   : > { %v15625_v46 = vpop.eup %13872  ;;  %v4995_v53 = vsel %vm1038_vm1, %v15623_v48, 0.0  ;;  %v15668_v12 = vpop.permute.xlu0 %6822 }
 0x585   : > { %4996 = vadd.xlane.f32.xlu0 %v4995_v53  ;;  %v4998_v25 = vsel %vm1038_vm1, %v15625_v46, 0.0 }
 0x586   : > { %4999 = vadd.xlane.f32.xlu1 %v4998_v25 }
 0x587   : > { %v15631_v33 = vpop.eup %13874 }
 0x588   : > { %v5001_v50 = vsel %vm1038_vm1, %v15631_v33, 0.0 }
 0x58a   : > { %5002 = vadd.xlane.f32.xlu1 %v5001_v50 }
 0x59b   : > { %6898 = vrot.lane.b32.xlu1 %v14791_v1, %s14177_s19 }
 0x59f   : > { %7056 = vrot.lane.b32.xlu1 %v14800_v6, %s14177_s19 }
 0x5a3   : > { %7054 = vrot.lane.b32.xlu1 %v14819_v11, %s14177_s19 }
 0x5a7   : > { %7212 = vrot.lane.b32.xlu1 %v14827_v14, %s14177_s19 }
 0x5ab   : > { %7210 = vrot.lane.b32.xlu1 %v14842_v18, %s14177_s19 }
 0x5ad   : > { %v4910_v26 = vpop.xlane.xlu1 %4909 }
 0x5ae   : > { %v4926_v54 = vsub.f32 %v15498_v9, %v4910_v26 }
 0x5af   : > { %7368 = vrot.lane.b32.xlu1 %v14848_v21, %s14177_s19 }
 0x5b0   : > { %v4957_v19 = vmul.f32 1.442695, %v4926_v54 }
 0x5b2   : > { %13876 = vpow2.f32 %v4957_v19  ;;  %v17120_v19 = vld [vmem:[#allocation50_spill] sm:$0xff] }
 0x5b3   : > { %7366 = vrot.lane.b32.xlu1 %v14859_v24, %s14177_s19 }
 0x5b7   : > { %7524 = vrot.lane.b32.xlu1 %v14865_v27, %s14177_s19 }
 0x5bb   : > { %7522 = vrot.lane.b32.xlu1 %v17069_v16, %s14177_s19 }
 0x5bc   : > { %v15662_v31 = vpop.eup %13876 }
 0x5bd   : > { %v5004_v9 = vsel %vm1038_vm1, %v15662_v31, 0.0 }
 0x5be   : > { %5005 = vadd.xlane.f32.xlu0 %v5004_v9 }
 0x5bf   : > { %7852 = vrot.lane.b32.xlu1 %v17070_v57, %s14177_s19 }
 0x5c3   : > { %8004 = vrot.lane.b32.xlu1 %v15147_v44, %s14177_s19 }
 0x5c4   : > { %v4961_v39 = vpop.xlane.xlu0 %4960 }
 0x5c5   : > { %13878 = vrcp.f32 %v4961_v39 }
 0x5c7   : > { %8156 = vrot.lane.b32.xlu1 %v15179_v59, %s14177_s19 }
 0x5c8   : > { %v4967_v42 = vpop.xlane.xlu0 %4966 }
 0x5c9   : > { %13880 = vrcp.f32 %v4967_v42 }
 0x5cb   : > { %8232 = vrot.lane.b32.xlu1 %v15193_v41, %s14177_s19 }
 0x5cf   : > { %v13879_v53 = vpop.eup %13878  ;;  %8308 = vrot.lane.b32.xlu1 %v15207_v10, %s14177_s19 }
 0x5d0   : > { %v5023_v25 = vmul.f32 %v13879_v53, %v15550_v63 }
 0x5d2   : > { %13171 = vmatmul.mubr.msk.f32.vlgmr.msra.gmra.mrb[64].mxu0 %vm1038_vm1, %v5023_v25  ;;  %v17121_v25 = vld [vmem:[#allocation51_spill] sm:$0xff] }
 0x5d3   : > { %v13881_v50 = vpop.eup %13880  ;;  %8460 = vrot.lane.b32.xlu1 %v15256_v13, %s14177_s19  ;;  %13179 = vmatpush3.msra.mxu0 %v15502_v8  ;;  %v17116_v8 = vld [vmem:[#allocation29_spill] sm:$0xff] }
 0x5d4   : > { %6820 = vrot.lane.b32.xlu0 %v14766_v52, %s14177_s19  ;;  %13180 = vmatprep.mubr.msk.f32.mxu0 %vm14175_vm0, %v17066_v15  ;;  %v5025_v26 = vmul.f32 %v13881_v50, %v15554_v17 }
 0x5d5   : > { %13188 = vmatprep.subr.mxu0 %v17066_v15 }
 0x5d6   : > { %13181 = vmatmul.mubr.msk.f32.vlgmr.msra.gmra.mrb[66].mxu0 %vm1038_vm1, %v5025_v26  ;;  %v17122_v26 = vld [vmem:[#allocation25_spill] sm:$0xff] }
 0x5d7   : > { %8612 = vrot.lane.b32.xlu1 %v15262_v61, %s14177_s19  ;;  %13189 = vmatpush3.msra.mxu0 %v15504_v34 }
 0x5d8   : > { %6978 = vrot.lane.b32.xlu0 %v14710_v28, %s14177_s19  ;;  %13190 = vmatprep.mubr.msk.f32.mxu0 %vm14175_vm0, %v17066_v15 }
 0x5d9   : > { %13198 = vmatprep.subr.mxu0 %v17066_v15 }
 0x5db   : > { %8764 = vrot.lane.b32.xlu1 %v15270_v58, %s14177_s19 }
 0x5dc   : > { %6976 = vrot.lane.b32.xlu0 %v14729_v35, %s14177_s19 }
 0x5df   : > { %8916 = vrot.lane.b32.xlu1 %v15276_v47, %s14177_s19 }
 0x5e0   : > { %7134 = vrot.lane.b32.xlu0 %v14735_v38, %s14177_s19 }
 0x5e3   : > { %9153 = vrot.lane.b32.xlu1 %v17078_v0, %s14178_s14  ;;  %v17115_v0 = vld [vmem:[#allocation31_spill] sm:$0xff] }
 0x5e4   : > { %7132 = vrot.lane.b32.xlu0 %v14753_v45, %s14177_s19 }
 0x5e7   : > { %9151 = vrot.lane.b32.xlu1 %v17079_v20, %s14178_s14  ;;  %v15726_v20 = vpop.permute.xlu1 %6900 }
 0x5e8   : > { %7290 = vrot.lane.b32.xlu0 %v14763_v49, %s14177_s19 }
 0x5eb   : > { %9309 = vrot.lane.b32.xlu1 %v17080_v60, %s14178_s14  ;;  %v17117_v60 = vld [vmem:[#allocation38_spill] sm:$0xff] }
 0x5ec   : > { %7288 = vrot.lane.b32.xlu0 %v14782_v56, %s14177_s19 }
 0x5ef   : > { %9307 = vrot.lane.b32.xlu1 %v17081_v30, %s14178_s14  ;;  %v17118_v30 = vld [vmem:[#allocation48_spill] sm:$0xff] }
 0x5f0   : > { %7446 = vrot.lane.b32.xlu0 %v14787_v62, %s14177_s19 }
 0x5f3   : > { %9465 = vrot.lane.b32.xlu1 %v17092_v23, %s14178_s14  ;;  %v17119_v23 = vld [vmem:[#allocation49_spill] sm:$0xff] }
 0x5f4   : > { %7444 = vrot.lane.b32.xlu0 %v17115_v0, %s14177_s19 }
 0x5f7   : > { %9463 = vrot.lane.b32.xlu1 %v17116_v8, %s14178_s14 }
 0x5f8   : > { %7776 = vrot.lane.b32.xlu0 %v17117_v60, %s14177_s19 }
 0x5fa   : > { %v4964_v34 = vpop.xlane.xlu1 %4963 }
 0x5fb   : > { %13882 = vrcp.f32 %v4964_v34 }
 0x5fc   : > { %7928 = vrot.lane.b32.xlu0 %v17118_v30, %s14177_s19 }
 0x5fe   : > { %v4970_v63 = vpop.xlane.xlu1 %4969 }
 0x5ff   : > { %13884 = vrcp.f32 %v4970_v63  ;;  %v17123_v63 = vld [vmem:[#allocation52_spill] sm:$0xff] }
 0x600   : > { %8080 = vrot.lane.b32.xlu0 %v17119_v23, %s14177_s19 }
 0x602   : > { %v4973_v17 = vpop.xlane.xlu0 %4972 }
 0x603   : > { %13886 = vrcp.f32 %v4973_v17  ;;  %v4976_v54 = vpop.xlane.xlu1 %4975 }
 0x604   : > { %13888 = vrcp.f32 %v4976_v54  ;;  %8384 = vrot.lane.b32.xlu0 %v17120_v19, %s14177_s19  ;;  %v17124_v54 = vld [vmem:[#allocation43_spill] sm:$0xff] }
 0x605   : > { %v13883_v9 = vpop.eup %13882 }
 0x606   : > { %v4979_v39 = vpop.xlane.xlu0 %4978  ;;  %v5024_v42 = vmul.f32 %v13883_v9, %v15576_v29 }
 0x607   : > { %13890 = vrcp.f32 %v4979_v39  ;;  %v4982_v53 = vpop.xlane.xlu1 %4981 }
 0x608   : > { %13892 = vrcp.f32 %v4982_v53  ;;  %8536 = vrot.lane.b32.xlu0 %v17121_v25, %s14177_s19  ;;  %13176 = vmatmul.mubr.msk.f32.vlgmr.msra.gmra.mrb[80].mxu1 %vm1038_vm1, %v5024_v42 }
 0x609   : > { %v13885_v50 = vpop.eup %13884  ;;  %13184 = vmatpush3.msra.mxu1 %v17122_v26  ;;  %13185 = vmatprep.mubr.msk.f32.mxu1 %vm14175_vm0, %v17066_v15 }
 0x60a   : > { %v4985_v8 = vpop.xlane.xlu0 %4984  ;;  %13193 = vmatprep.subr.mxu1 %v17066_v15  ;;  %v5026_v34 = vmul.f32 %v13885_v50, %v15582_v7  ;;  %v17125_v50 = vld [vmem:[#allocation53_spill] sm:$0xff] }
 0x60b   : > { %13894 = vrcp.f32 %v4985_v8  ;;  %v4988_v29 = vpop.xlane.xlu1 %4987  ;;  %v17126_v8 = vld [vmem:[#allocation44_spill] sm:$0xff] }
 0x60c   : > { %13896 = vrcp.f32 %v4988_v29  ;;  %8688 = vrot.lane.b32.xlu0 %v17123_v63, %s14177_s19  ;;  %13186 = vmatmul.mubr.msk.f32.vlgmr.msra.gmra.mrb[82].mxu1 %vm1038_vm1, %v5026_v34  ;;  %v17127_v29 = vld [vmem:[#allocation46_spill] sm:$0xff] }
 0x60d   : > { %v13887_v17 = vpop.eup %13886  ;;  %13194 = vmatpush3.msra.mxu1 %v17124_v54  ;;  %13195 = vmatprep.mubr.msk.f32.mxu1 %vm14175_vm0, %v17066_v15 }
 0x60e   : > { %v13889_v9 = vpop.eup %13888  ;;  %v4991_v39 = vpop.xlane.xlu0 %4990  ;;  %13203 = vmatprep.subr.mxu1 %v17066_v15  ;;  %v5027_v7 = vmul.f32 %v13887_v17, %v15588_v2 }
 0x60f   : > { %13898 = vrcp.f32 %v4991_v39  ;;  %v4994_v42 = vpop.xlane.xlu1 %4993  ;;  %v5028_v53 = vmul.f32 %v13889_v9, %v15590_v37  ;;  %v17128_v39 = vld [vmem:[#allocation33_spill] sm:$0xff] }
 0x610   : > { %13900 = vrcp.f32 %v4994_v42  ;;  %13191 = vmatmul.mubr.msk.f32.vlgmr.msra.gmra.mrb[68].mxu0 %vm1038_vm1, %v5027_v7  ;;  %8840 = vrot.lane.b32.xlu0 %v17125_v50, %s14177_s19  ;;  %v17129_v7 = vld [vmem:[#allocation18_spill] sm:$0xff] }
 0x611   : > { %v13891_v26 = vpop.eup %13890  ;;  %13199 = vmatpush3.msra.mxu0 %v17126_v8  ;;  %13196 = vmatmul.mubr.msk.f32.vlgmr.msra.gmra.mrb[84].mxu1 %vm1038_vm1, %v5028_v53 }
 0x612   : > { %v13893_v34 = vpop.eup %13892  ;;  %13204 = vmatpush3.msra.mxu1 %v17127_v29  ;;  %v4997_v54 = vpop.xlane.xlu0 %4996  ;;  %13200 = vmatprep.mubr.msk.f32.mxu0 %vm14175_vm0, %v17066_v15  ;;  %v5029_v2 = vmul.f32 %v13891_v26, %v15598_v4  ;;  %v17132_v29 = vld [vmem:[#allocation34_spill] sm:$0xff] }
 0x613   : > { %13902 = vrcp.f32 %v4997_v54  ;;  %v5000_v37 = vpop.xlane.xlu1 %4999  ;;  %13205 = vmatprep.mubr.msk.f32.mxu1 %vm14175_vm0, %v17066_v15  ;;  %13208 = vmatprep.subr.mxu0 %v17066_v15  ;;  %v5030_v17 = vmul.f32 %v13893_v34, %v15600_v51  ;;  %v17130_v51 = vld [vmem:[#allocation39_spill] sm:$0xff]  ;;  %v17131_v34 = vld [vmem:[#allocation20_spill] sm:$0xff] }
 0x614   : > { %13904 = vrcp.f32 %v5000_v37  ;;  %13213 = vmatprep.subr.mxu1 %v17066_v15  ;;  %13201 = vmatmul.mubr.msk.f32.vlgmr.msra.gmra.mrb[70].mxu0 %vm1038_vm1, %v5029_v2  ;;  %v17133_v2 = vld [vmem:[#allocation41_spill] sm:$0xff] }
 0x615   : > { %v13895_v9 = vpop.eup %13894  ;;  %13209 = vmatpush3.msra.mxu0 %v17128_v39  ;;  %9075 = vrot.lane.b32.xlu0 %v17129_v7, %s14178_s14  ;;  %v17136_v7 = vld [vmem:[#allocation45_spill] sm:$0xff] }
 0x616   : > { %v13897_v4 = vpop.eup %13896  ;;  %13206 = vmatmul.mubr.msk.f32.vlgmr.msra.gmra.mrb[86].mxu1 %vm1038_vm1, %v5030_v17  ;;  %13210 = vmatprep.mubr.msk.f32.mxu0 %vm14175_vm0, %v17066_v15  ;;  %v5031_v42 = vmul.f32 %v13895_v9, %v15607_v32  ;;  %v17134_v9 = vld [vmem:[#allocation36_spill] sm:$0xff] }
 0x617   : > { %13214 = vmatpush3.msra.mxu1 %v17130_v51  ;;  %v5003_v53 = vpop.xlane.xlu1 %5002  ;;  %13215 = vmatprep.mubr.msk.f32.mxu1 %vm14175_vm0, %v17066_v15  ;;  %v5032_v26 = vmul.f32 %v13897_v4, %v15609_v36  ;;  %v17139_v51 = vld [vmem:[#allocation47_spill] sm:$0xff] }
 0x618   : > { %13906 = vrcp.f32 %v5003_v53  ;;  %13218 = vmatprep.subr.mxu0 %v17066_v15  ;;  %13223 = vmatprep.subr.mxu1 %v17066_v15  ;;  %v17140_v53 = vld [vmem:[#allocation24_spill] sm:$0xff] }
 0x619   : > { %v13899_v8 = vpop.eup %13898  ;;  %13211 = vmatmul.mubr.msk.f32.vlgmr.msra.gmra.mrb[72].mxu0 %vm1038_vm1, %v5031_v42  ;;  %9073 = vrot.lane.b32.xlu0 %v17131_v34, %s14178_s14  ;;  %v17138_v42 = vld [vmem:[#allocation17_spill] sm:$0xff]  ;;  %v17144_v34 = vld [vmem:[#allocation40_spill] sm:$0xff] }
 0x61a   : > { %v13901_v32 = vpop.eup %13900  ;;  %13219 = vmatpush3.msra.mxu0 %v17132_v29  ;;  %13216 = vmatmul.mubr.msk.f32.vlgmr.msra.gmra.mrb[88].mxu1 %vm1038_vm1, %v5032_v26  ;;  %v5033_v54 = vmul.f32 %v13899_v8, %v15615_v55  ;;  %v17135_v55 = vld [vmem:[#allocation21_spill] sm:$0xff]  ;;  %v17142_v26 = vld [vmem:[#allocation26_spill] sm:$0xff]  ;;  %v17143_v8 = vld [vmem:[#allocation23_spill] sm:$0xff] }
 0x61b   : > { %13224 = vmatpush3.msra.mxu1 %v17133_v2  ;;  %13220 = vmatprep.mubr.msk.f32.mxu0 %vm14175_vm0, %v17066_v15  ;;  %v5034_v36 = vmul.f32 %v13901_v32, %v15617_v5  ;;  %v17145_v32 = vld [vmem:[#allocation42_spill] sm:$0xff]  ;;  %v6899_v29 = vpop.permute.xlu1 %6898 }
 0x61c   : > { %13225 = vmatprep.mubr.msk.f32.mxu1 %vm14175_vm0, %v17066_v15  ;;  %13228 = vmatprep.subr.mxu0 %v17066_v15 }
 0x61d   : > { %v13903_v37 = vpop.eup %13902  ;;  %13233 = vmatprep.subr.mxu1 %v17066_v15  ;;  %13221 = vmatmul.mubr.msk.f32.vlgmr.msra.gmra.mrb[74].mxu0 %vm1038_vm1, %v5033_v54 }
 0x61e   : > { %v13905_v17 = vpop.eup %13904  ;;  %13229 = vmatpush3.msra.mxu0 %v17134_v9  ;;  %9231 = vrot.lane.b32.xlu0 %v17135_v55, %s14178_s14  ;;  %v5035_v39 = vmul.f32 %v13903_v37, %v15623_v48  ;;  %v17137_v48 = vld [vmem:[#allocation22_spill] sm:$0xff]  ;;  %v17146_v55 = vld [vmem:[#allocation27_spill] sm:$0xff] }
 0x61f   : > { %13226 = vmatmul.mubr.msk.f32.vlgmr.msra.gmra.mrb[90].mxu1 %vm1038_vm1, %v5034_v36  ;;  %13230 = vmatprep.mubr.msk.f32.mxu0 %vm14175_vm0, %v17066_v15  ;;  %v5036_v5 = vmul.f32 %v13905_v17, %v15625_v46  ;;  %v7057_v54 = vpop.permute.xlu1 %7056 }
 0x620   : > { %13234 = vmatpush3.msra.mxu1 %v17136_v7  ;;  %13235 = vmatprep.mubr.msk.f32.mxu1 %vm14175_vm0, %v17066_v15  ;;  %v17148_v7 = vld [vmem:[#allocation55_spill] sm:$0xff] }
 0x621   : > { %13238 = vmatprep.subr.mxu0 %v17066_v15  ;;  %13243 = vmatprep.subr.mxu1 %v17066_v15 }
 0x622   : > { %v13907_v4 = vpop.eup %13906  ;;  %13231 = vmatmul.mubr.msk.f32.vlgmr.msra.gmra.mrb[76].mxu0 %vm1038_vm1, %v5035_v39  ;;  %9229 = vrot.lane.b32.xlu0 %v17137_v48, %s14178_s14 }
 0x623   : > { %13239 = vmatpush3.msra.mxu0 %v17138_v42  ;;  %13236 = vmatmul.mubr.msk.f32.vlgmr.msra.gmra.mrb[92].mxu1 %vm1038_vm1, %v5036_v5  ;;  %v5037_v46 = vmul.f32 %v13907_v4, %v15631_v33  ;;  %v17141_v33 = vld [vmem:[#allocation19_spill] sm:$0xff]  ;;  %v17149_v42 = vld [vmem:[#allocation56_spill] sm:$0xff] }
 0x624   : > { %13244 = vmatpush3.msra.mxu1 %v17139_v51  ;;  %13240 = vmatprep.mubr.msk.f32.mxu0 %vm14175_vm0, %v17066_v15 }
 0x625   : > { %13248 = vmatprep.subr.mxu0 %v17066_v15  ;;  %13245 = vmatprep.mubr.msk.f32.mxu1 %vm14175_vm0, %v17066_v15 }
 0x626   : > { %9387 = vrot.lane.b32.xlu0 %v17140_v53, %s14178_s14  ;;  %13241 = vmatmul.mubr.msk.f32.vlgmr.msra.gmra.mrb[78].mxu0 %vm1038_vm1, %v5037_v46 }
 0x627   : > { %13250 = vmatprep.mubr.msk.f32.mxu0 %vm14175_vm0, %v17066_v15  ;;  %13253 = vmatprep.subr.mxu1 %v17066_v15 }
 0x62a   : > { %13249 = vmatpush3.xpose.msk.msra.mxu0 %vm1038_vm1, %v17141_v33  ;;  %9385 = vrot.lane.b32.xlu0 %v17142_v26, %s14178_s14 }
 0x62b   : > { %13258 = vmatprep.subr.mxu0 %v17066_v15 }
 0x62d   : > { %13251 = vmatmul.mubr.msk.f32.vlgmr.msra.gmra.mrb[80].mxu0 %vm1038_vm1, %v17143_v8 }
 0x62e   : > { %13259 = vmatpush3.xpose.msk.msra.mxu0 %vm1038_vm1, %v17144_v34  ;;  %13260 = vmatprep.mubr.msk.f32.mxu0 %vm14175_vm0, %v17066_v15 }
 0x62f   : > { %13268 = vmatprep.subr.mxu0 %v17066_v15 }
 0x631   : > { %13261 = vmatmul.mubr.msk.f32.vlgmr.msra.gmra.mrb[82].mxu0 %vm1038_vm1, %v17145_v32 }
 0x632   : > { %13269 = vmatpush3.xpose.msk.msra.mxu0 %vm1038_vm1, %v15654_v40  ;;  %13270 = vmatprep.mubr.msk.f32.mxu0 %vm14175_vm0, %v17066_v15  ;;  %v7055_v40 = vpop.permute.xlu1 %7054 }
 0x633   : > { %13278 = vmatprep.subr.mxu0 %v17066_v15 }
 0x635   : > { %13271 = vmatmul.mubr.msk.f32.vlgmr.msra.gmra.mrb[84].mxu0 %vm1038_vm1, %v15658_v22 }
 0x636   : > { %13279 = vmatpush3.xpose.msk.msra.mxu0 %vm1038_vm1, %v15668_v12  ;;  %13280 = vmatprep.mubr.msk.f32.mxu0 %vm14175_vm0, %v17066_v15  ;;  %v7213_v12 = vpop.permute.xlu1 %7212 }
 0x637   : > { %13288 = vmatprep.subr.mxu0 %v17066_v15 }
 0x63a   : > { %v7211_v39 = vpop.permute.xlu1 %7210 }
 0x63e   : > { %v7369_v48 = vpop.permute.xlu1 %7368 }
 0x64b   : > { %v5006_v2 = vpop.xlane.xlu0 %5005 }
 0x64c   : > { %13908 = vrcp.f32 %v5006_v2 }
 0x64f   : > { %v6821_v36 = vpop.permute.xlu0 %6820 }
 0x650   : > { %13281 = vmatmul.mubr.msk.f32.vlgmr.msra.gmra.mrb[86].mxu0 %vm1038_vm1, %v6821_v36 }
 0x651   : > { %13290 = vmatprep.mubr.msk.f32.mxu0 %vm14175_vm0, %v17066_v15 }
 0x653   : > { %v6979_v22 = vpop.permute.xlu0 %6978 }
 0x654   : > { %13289 = vmatpush3.xpose.msk.msra.mxu0 %vm1038_vm1, %v6979_v22 }
 0x655   : > { %13298 = vmatprep.subr.mxu0 %v17066_v15 }
 0x656   : > { %v13909_v37 = vpop.eup %13908 }
 0x657   : > { %v6977_v17 = vpop.permute.xlu0 %6976  ;;  %v5038_v9 = vmul.f32 %v13909_v37, %v15662_v31  ;;  %v17147_v31 = vld [vmem:[#allocation54_spill] sm:$0xff] }
 0x658   : > { %13291 = vmatmul.mubr.msk.f32.vlgmr.msra.gmra.mrb[88].mxu0 %vm1038_vm1, %v6977_v17 }
 0x659   : > { %13246 = vmatmul.mubr.msk.f32.vlgmr.msra.gmra.mrb[94].mxu1 %vm1038_vm1, %v5038_v9  ;;  %13300 = vmatprep.mubr.msk.f32.mxu0 %vm14175_vm0, %v17066_v15 }
 0x65a   : > { %13254 = vmatpush3.xpose.msk.msra.mxu1 %vm1038_vm1, %v17146_v55  ;;  %13255 = vmatprep.mubr.msk.f32.mxu1 %vm14175_vm0, %v17066_v15 }
 0x65b   : > { %v7135_v5 = vpop.permute.xlu0 %7134  ;;  %13263 = vmatprep.subr.mxu1 %v17066_v15 }
 0x65c   : > { %13299 = vmatpush3.xpose.msk.msra.mxu0 %vm1038_vm1, %v7135_v5 }
 0x65d   : > { %13256 = vmatmul.mubr.msk.f32.vlgmr.msra.gmra.mrb[96].mxu1 %vm1038_vm1, %v17147_v31  ;;  %13308 = vmatprep.subr.mxu0 %v17066_v15 }
 0x65e   : > { %13264 = vmatpush3.xpose.msk.msra.mxu1 %vm1038_vm1, %v17148_v7  ;;  %13265 = vmatprep.mubr.msk.f32.mxu1 %vm14175_vm0, %v17066_v15 }
 0x65f   : > { %v7133_v4 = vpop.permute.xlu0 %7132  ;;  %13273 = vmatprep.subr.mxu1 %v17066_v15 }
 0x660   : > { %13301 = vmatmul.mubr.msk.f32.vlgmr.msra.gmra.mrb[90].mxu0 %vm1038_vm1, %v7133_v4 }
 0x661   : > { %13266 = vmatmul.mubr.msk.f32.vlgmr.msra.gmra.mrb[98].mxu1 %vm1038_vm1, %v17149_v42  ;;  %13310 = vmatprep.mubr.msk.f32.mxu0 %vm14175_vm0, %v17066_v15 }
 0x662   : > { %13274 = vmatpush3.xpose.msk.msra.mxu1 %vm1038_vm1, %v15639_v43  ;;  %13275 = vmatprep.mubr.msk.f32.mxu1 %vm14175_vm0, %v17066_v15  ;;  %v7367_v43 = vpop.permute.xlu1 %7366 }
 0x663   : > { %v7291_v46 = vpop.permute.xlu0 %7290  ;;  %13283 = vmatprep.subr.mxu1 %v17066_v15 }
 0x664   : > { %13309 = vmatpush3.xpose.msk.msra.mxu0 %vm1038_vm1, %v7291_v46 }
 0x665   : > { %13276 = vmatmul.mubr.msk.f32.vlgmr.msra.gmra.mrb[100].mxu1 %vm1038_vm1, %v15645_v3  ;;  %13318 = vmatprep.subr.mxu0 %v17066_v15 }
 0x666   : > { %13284 = vmatpush3.xpose.msk.msra.mxu1 %vm1038_vm1, %v15726_v20  ;;  %13285 = vmatprep.mubr.msk.f32.mxu1 %vm14175_vm0, %v17066_v15  ;;  %v7525_v20 = vpop.permute.xlu1 %7524 }
 0x667   : > { %v7289_v51 = vpop.permute.xlu0 %7288  ;;  %13293 = vmatprep.subr.mxu1 %v17066_v15 }
 0x668   : > { %13311 = vmatmul.mubr.msk.f32.vlgmr.msra.gmra.mrb[92].mxu0 %vm1038_vm1, %v7289_v51 }
 0x669   : > { %13286 = vmatmul.mubr.msk.f32.vlgmr.msra.gmra.mrb[102].mxu1 %vm1038_vm1, %v6899_v29  ;;  %13320 = vmatprep.mubr.msk.f32.mxu0 %vm14175_vm0, %v17066_v15 }
 0x66a   : > { %13294 = vmatpush3.xpose.msk.msra.mxu1 %vm1038_vm1, %v7057_v54  ;;  %13295 = vmatprep.mubr.msk.f32.mxu1 %vm14175_vm0, %v17066_v15  ;;  %v7523_v33 = vpop.permute.xlu1 %7522 }
 0x66b   : > { %v7447_v3 = vpop.permute.xlu0 %7446  ;;  %13303 = vmatprep.subr.mxu1 %v17066_v15 }
 0x66c   : > { %13319 = vmatpush3.xpose.msk.msra.mxu0 %vm1038_vm1, %v7447_v3 }
 0x66d   : > { %13296 = vmatmul.mubr.msk.f32.vlgmr.msra.gmra.mrb[104].mxu1 %vm1038_vm1, %v7055_v40  ;;  %13328 = vmatprep.subr.mxu0 %v17066_v15 }
 0x66e   : > { %13304 = vmatpush3.xpose.msk.msra.mxu1 %vm1038_vm1, %v7213_v12  ;;  %13305 = vmatprep.mubr.msk.f32.mxu1 %vm14175_vm0, %v17066_v15  ;;  %v7853_v8 = vpop.permute.xlu1 %7852 }
 0x66f   : > { %v7445_v53 = vpop.permute.xlu0 %7444  ;;  %13313 = vmatprep.subr.mxu1 %v17066_v15 }
 0x670   : > { %13321 = vmatmul.mubr.msk.f32.vlgmr.msra.gmra.mrb[94].mxu0 %vm1038_vm1, %v7445_v53 }
 0x671   : > { %13306 = vmatmul.mubr.msk.f32.vlgmr.msra.gmra.mrb[106].mxu1 %vm1038_vm1, %v7211_v39  ;;  %13330 = vmatprep.mubr.msk.f32.mxu0 %vm14175_vm0, %v17066_v15 }
 0x672   : > { %13314 = vmatpush3.xpose.msk.msra.mxu1 %vm1038_vm1, %v7369_v48  ;;  %13315 = vmatprep.mubr.msk.f32.mxu1 %vm14175_vm0, %v17066_v15 }
 0x673   : > { %v7777_v26 = vpop.permute.xlu0 %7776  ;;  %13323 = vmatprep.subr.mxu1 %v17066_v15 }
 0x674   : > { %13329 = vmatpush3.msra.mxu0 %v7777_v26 }
 0x675   : > { %13316 = vmatmul.mubr.msk.f32.vlgmr.msra.gmra.mrb[108].mxu1 %vm1038_vm1, %v7367_v43  ;;  %13338 = vmatprep.subr.mxu0 %v17066_v15 }
 0x676   : > { %13324 = vmatpush3.xpose.msk.msra.mxu1 %vm1038_vm1, %v7525_v20  ;;  %13325 = vmatprep.mubr.msk.f32.mxu1 %vm14175_vm0, %v17066_v15 }
 0x677   : > { %13333 = vmatprep.subr.mxu1 %v17066_v15 }
 0x679   : > { %13326 = vmatmul.mubr.msk.f32.vlgmr.msra.gmra.mrb[110].mxu1 %vm1038_vm1, %v7523_v33 }
 0x67a   : > { %13334 = vmatpush3.msra.mxu1 %v7853_v8  ;;  %13335 = vmatprep.mubr.msk.f32.mxu1 %vm14175_vm0, %v17066_v15 }
 0x67b   : > { %13343 = vmatprep.subr.mxu1 %v17066_v15 }
 0x6a5   : > { %v15932_v34 = vpop.f32.mrb[64].mxu0 }
 0x6a6   : > { %17150 = vst [vmem:[#allocation31_spill] sm:$0xff] %v15932_v34  ;;  %v13172_v32 = vpop.f32.mrb[65].mxu0  ;;  %v16018_v34 = vpop.permute.xlu0 %7928 }
 0x6a9   : > { %v15934_v29 = vpop.f32.mrb[66].mxu0 }
 0x6aa   : > { %17151 = vst [vmem:[#allocation29_spill] sm:$0xff] %v15934_v29  ;;  %v13182_v54 = vpop.f32.mrb[67].mxu0 }
 0x6db   : > { %v15936_v2 = vpop.f32.mrb[80].mxu1 }
 0x6dc   : > { %17152 = vst [vmem:[#allocation38_spill] sm:$0xff] %v15936_v2  ;;  %v13177_v40 = vpop.f32.mrb[81].mxu1 }
 0x6df   : > { %v15938_v36 = vpop.f32.mrb[82].mxu1 }
 0x6e0   : > { %17153 = vst [vmem:[#allocation48_spill] sm:$0xff] %v15938_v36  ;;  %v13187_v22 = vpop.f32.mrb[83].mxu1 }
 0x6e3   : > { %v15940_v12 = vpop.f32.mrb[68].mxu0 }
 0x6e4   : > { %17154 = vst [vmem:[#allocation49_spill] sm:$0xff] %v15940_v12  ;;  %v15942_v37 = vpop.f32.mrb[84].mxu1  ;;  %v13192_v17 = vpop.f32.mrb[69].mxu0 }
 0x6e5   : > { %17155 = vst [vmem:[#allocation50_spill] sm:$0xff] %v15942_v37  ;;  %v13197_v9 = vpop.f32.mrb[85].mxu1 }
 0x6e7   : > { %v15944_v55 = vpop.f32.mrb[70].mxu0 }
 0x6e8   : > { %17156 = vst [vmem:[#allocation25_spill] sm:$0xff] %v15944_v55  ;;  %v13202_v39 = vpop.f32.mrb[71].mxu0 }
 0x6e9   : > { %v15946_v5 = vpop.f32.mrb[86].mxu1 }
 0x6ea   : > { %17157 = vst [vmem:[#allocation43_spill] sm:$0xff] %v15946_v5  ;;  %v13207_v31 = vpop.f32.mrb[87].mxu1  ;;  %v16044_v5 = vpop.permute.xlu1 %8004 }
 0x6ec   : > { %v15948_v7 = vpop.f32.mrb[72].mxu0 }
 0x6ed   : > { %17158 = vst [vmem:[#allocation44_spill] sm:$0xff] %v15948_v7  ;;  %v15950_v4 = vpop.f32.mrb[88].mxu1  ;;  %v13212_v48 = vpop.f32.mrb[73].mxu0 }
 0x6ee   : > { %17159 = vst [vmem:[#allocation46_spill] sm:$0xff] %v15950_v4  ;;  %v13217_v42 = vpop.f32.mrb[89].mxu1 }
 0x6f0   : > { %v15952_v46 = vpop.f32.mrb[74].mxu0 }
 0x6f1   : > { %17160 = vst [vmem:[#allocation33_spill] sm:$0xff] %v15952_v46  ;;  %v13222_v43 = vpop.f32.mrb[75].mxu0 }
 0x6f2   : > { %v15954_v51 = vpop.f32.mrb[90].mxu1 }
 0x6f3   : > { %17161 = vst [vmem:[#allocation18_spill] sm:$0xff] %v15954_v51  ;;  %v13227_v3 = vpop.f32.mrb[91].mxu1 }
 0x6f5   : > { %v15956_v20 = vpop.f32.mrb[76].mxu0 }
 0x6f6   : > { %17162 = vst [vmem:[#allocation39_spill] sm:$0xff] %v15956_v20  ;;  %v15958_v53 = vpop.f32.mrb[92].mxu1  ;;  %v13232_v33 = vpop.f32.mrb[77].mxu0 }
 0x6f7   : > { %17163 = vst [vmem:[#allocation20_spill] sm:$0xff] %v15958_v53  ;;  %v13237_v26 = vpop.f32.mrb[93].mxu1 }
 0x6f9   : > { %v15960_v8 = vpop.f32.mrb[78].mxu0 }
 0x6fa   : > { %17164 = vst [vmem:[#allocation34_spill] sm:$0xff] %v15960_v8  ;;  %v13242_v32 = vpop.f32.mrb[79].mxu0 }
 0x700   : > { %v15962_v54 = vpop.f32.mrb[80].mxu0 }
 0x701   : > { %v13252_v40 = vpop.f32.mrb[81].mxu0  ;;  %v7600_v22 = vsel %vm1038_vm1, %v15962_v54, -inf }
 0x702   : > { %7601 = vmax.xlane.f32.xlu0 %v7600_v22 }
 0x704   : > { %v15966_v17 = vpop.f32.mrb[82].mxu0 }
 0x705   : > { %v13262_v9 = vpop.f32.mrb[83].mxu0  ;;  %v7606_v39 = vsel %vm1038_vm1, %v15966_v17, -inf }
 0x706   : > { %7607 = vmax.xlane.f32.xlu0 %v7606_v39 }
 0x708   : > { %v15970_v31 = vpop.f32.mrb[84].mxu0 }
 0x709   : > { %v13272_v48 = vpop.f32.mrb[85].mxu0 }
 0x723   : > { %v15972_v42 = vpop.f32.mrb[86].mxu0 }
 0x724   : > { %v13282_v43 = vpop.f32.mrb[87].mxu0 }
 0x72b   : > { %v15974_v3 = vpop.f32.mrb[88].mxu0 }
 0x72c   : > { %v15976_v33 = vpop.f32.mrb[94].mxu1  ;;  %v13292_v26 = vpop.f32.mrb[89].mxu0 }
 0x72d   : > { %17165 = vst [vmem:[#allocation41_spill] sm:$0xff] %v15976_v33  ;;  %v13247_v32 = vpop.f32.mrb[95].mxu1 }
 0x72e   : > { %v7612_v32 = vsel %vm1038_vm1, %v15970_v31, -inf }
 0x730   : > { %v15978_v40 = vpop.f32.mrb[96].mxu1 }
 0x731   : > { %v13257_v22 = vpop.f32.mrb[97].mxu1  ;;  %v7603_v9 = vsel %vm1038_vm1, %v15978_v40, -inf }
 0x732   : > { %7604 = vmax.xlane.f32.xlu1 %v7603_v9 }
 0x733   : > { %v15982_v39 = vpop.f32.mrb[90].mxu0 }
 0x734   : > { %v15984_v8 = vpop.f32.mrb[98].mxu1  ;;  %v13302_v48 = vpop.f32.mrb[91].mxu0 }
 0x735   : > { %v13267_v20 = vpop.f32.mrb[99].mxu1  ;;  %v7609_v43 = vsel %vm1038_vm1, %v15984_v8, -inf }
 0x736   : > { %7610 = vmax.xlane.f32.xlu0 %v7609_v43  ;;  %v7618_v43 = vsel %vm1038_vm1, %v15972_v42, -inf }
 0x738   : > { %v15988_v46 = vpop.f32.mrb[100].mxu1 }
 0x739   : > { %v13277_v26 = vpop.f32.mrb[101].mxu1  ;;  %v7615_v22 = vsel %vm1038_vm1, %v15988_v46, -inf }
 0x73a   : > { %7613 = vmax.xlane.f32.xlu0 %v7612_v32  ;;  %7616 = vmax.xlane.f32.xlu1 %v7615_v22  ;;  %v7624_v32 = vsel %vm1038_vm1, %v15974_v3, -inf }
 0x73b   : > { %v15994_v9 = vpop.f32.mrb[92].mxu0 }
 0x73c   : > { %v15996_v7 = vpop.f32.mrb[102].mxu1  ;;  %v13312_v20 = vpop.f32.mrb[93].mxu0 }
 0x73d   : > { %v13287_v48 = vpop.f32.mrb[103].mxu1  ;;  %v7621_v26 = vsel %vm1038_vm1, %v15996_v7, -inf }
 0x73e   : > { %7619 = vmax.xlane.f32.xlu0 %v7618_v43  ;;  %7622 = vmax.xlane.f32.xlu1 %v7621_v26  ;;  %v7630_v43 = vsel %vm1038_vm1, %v15982_v39, -inf }
 0x740   : > { %v16002_v55 = vpop.f32.mrb[104].mxu1 }
 0x741   : > { %v13297_v12 = vpop.f32.mrb[105].mxu1  ;;  %v7627_v22 = vsel %vm1038_vm1, %v16002_v55, -inf }
 0x742   : > { %7625 = vmax.xlane.f32.xlu0 %v7624_v32  ;;  %7628 = vmax.xlane.f32.xlu1 %v7627_v22  ;;  %v7636_v22 = vsel %vm1038_vm1, %v15994_v9, -inf }
 0x743   : > { %v16008_v20 = vpop.f32.mrb[94].mxu0 }
 0x744   : > { %v16010_v48 = vpop.f32.mrb[106].mxu1  ;;  %v13322_v29 = vpop.f32.mrb[95].mxu0 }
 0x745   : > { %v13307_v33 = vpop.f32.mrb[107].mxu1  ;;  %v7633_v12 = vsel %vm1038_vm1, %v16010_v48, -inf }
 0x746   : > { %7631 = vmax.xlane.f32.xlu0 %v7630_v43  ;;  %7634 = vmax.xlane.f32.xlu1 %v7633_v12  ;;  %v7642_v43 = vsel %vm1038_vm1, %v16008_v20, -inf }
 0x748   : > { %v16016_v26 = vpop.f32.mrb[108].mxu1 }
 0x749   : > { %v13317_v32 = vpop.f32.mrb[109].mxu1  ;;  %v7639_v29 = vsel %vm1038_vm1, %v16016_v26, -inf }
 0x74a   : > { %7637 = vmax.xlane.f32.xlu0 %v7636_v22  ;;  %7640 = vmax.xlane.f32.xlu1 %v7639_v29  ;;  %v16030_v32 = vpop.permute.xlu0 %8080  ;;  %v17168_v22 = vld [vmem:[#allocation30_spill] sm:$0xff] }
 0x74c   : > { %v16024_v33 = vpop.f32.mrb[110].mxu1 }
 0x74d   : > { %v13327_v50 = vpop.f32.mrb[111].mxu1  ;;  %v7645_v12 = vsel %vm1038_vm1, %v16024_v33, -inf }
 0x74e   : > { %7643 = vmax.xlane.f32.xlu0 %v7642_v43  ;;  %7646 = vmax.xlane.f32.xlu1 %v7645_v12  ;;  %v16032_v53 = vpop.permute.xlu0 %8384  ;;  %v17170_v50 = vld [vmem:[#allocation28_spill] sm:$0xff]  ;;  %v16048_v12 = vpop.permute.xlu1 %8156 }
 0x74f   : > { %17166 = vst [vmem:[#allocation36_spill] sm:$0xff] %v16032_v53 }
 0x752   : > { %v16034_v51 = vpop.permute.xlu0 %8536  ;;  %v16052_v36 = vpop.permute.xlu1 %8232 }
 0x753   : > { %17167 = vst [vmem:[#allocation21_spill] sm:$0xff] %v16034_v51 }
 0x756   : > { %v16038_v29 = vpop.permute.xlu0 %8688 }
 0x757   : > { %17169 = vst [vmem:[#allocation45_spill] sm:$0xff] %v16038_v29 }
 0x75a   : > { %v16042_v4 = vpop.permute.xlu0 %8840 }
 0x75b   : > { %17171 = vst [vmem:[#allocation22_spill] sm:$0xff] %v16042_v4 }
 0x75e   : > { %v16046_v43 = vpop.permute.xlu0 %9075 }
 0x75f   : > { %9621 = vrot.lane.b32.xlu1 %v17168_v22, %s14178_s14  ;;  %17172 = vst [vmem:[#allocation17_spill] sm:$0xff] %v16046_v43  ;;  %v16056_v22 = vpop.permute.xlu1 %8308 }
 0x760   : > { %17175 = vst [vmem:[#allocation19_spill] sm:$0xff] %v16056_v22 }
 0x762   : > { %v16050_v37 = vpop.permute.xlu0 %9073 }
 0x763   : > { %17173 = vst [vmem:[#allocation47_spill] sm:$0xff] %v16050_v37  ;;  %v16060_v58 = vpop.permute.xlu1 %8460 }
 0x764   : > { %9543 = vrot.lane.b32.xlu0 %v17170_v50, %s14178_s14  ;;  %17177 = vst [vmem:[#allocation23_spill] sm:$0xff] %v16060_v58 }
 0x766   : > { %v16054_v2 = vpop.permute.xlu0 %9231 }
 0x767   : > { %17174 = vst [vmem:[#allocation24_spill] sm:$0xff] %v16054_v2  ;;  %v16064_v63 = vpop.permute.xlu1 %8612 }
 0x768   : > { %17179 = vst [vmem:[#allocation42_spill] sm:$0xff] %v16064_v63 }
 0x76a   : > { %v16058_v47 = vpop.permute.xlu0 %9229 }
 0x76b   : > { %17176 = vst [vmem:[#allocation26_spill] sm:$0xff] %v16058_v47  ;;  %v16069_v37 = vpop.permute.xlu1 %8764 }
 0x76c   : > { %17181 = vst [vmem:[#allocation54_spill] sm:$0xff] %v16069_v37 }
 0x76e   : > { %v16062_v50 = vpop.permute.xlu0 %9387 }
 0x76f   : > { %17178 = vst [vmem:[#allocation40_spill] sm:$0xff] %v16062_v50  ;;  %v16072_v47 = vpop.permute.xlu1 %8916 }
 0x770   : > { %17182 = vst [vmem:[#allocation55_spill] sm:$0xff] %v16072_v47 }
 0x772   : > { %v16066_v25 = vpop.permute.xlu0 %9385 }
 0x773   : > { %17180 = vst [vmem:[#allocation27_spill] sm:$0xff] %v16066_v25  ;;  %v16074_v58 = vpop.permute.xlu1 %9153 }
 0x774   : > { %17183 = vst [vmem:[#allocation56_spill] sm:$0xff] %v16074_v58 }
 0x78f   : > { %v7602_v61 = vpop.xlane.xlu0 %7601 }
 0x790   : > { %v7648_v43 = vsub.f32 %v15962_v54, %v7602_v61  ;;  %v16082_v54 = vpop.permute.xlu1 %9151 }
 0x791   : > { %17184 = vst [vmem:[#allocation30_spill] sm:$0xff] %v16082_v54 }
 0x792   : > { %v7664_v4 = vmul.f32 1.442695, %v7648_v43 }
 0x793   : > { %v7608_v29 = vpop.xlane.xlu0 %7607 }
 0x794   : > { %13910 = vpow2.f32 %v7664_v4  ;;  %v7650_v2 = vsub.f32 %v15966_v17, %v7608_v29 }
 0x796   : > { %v7668_v51 = vmul.f32 1.442695, %v7650_v2  ;;  %v16086_v2 = vpop.permute.xlu1 %9309 }
 0x797   : > { %17185 = vst [vmem:[#allocation28_spill] sm:$0xff] %v16086_v2 }
 0x798   : > { %13912 = vpow2.f32 %v7668_v51 }
 0x79a   : > { %v16088_v17 = vpop.permute.xlu1 %9307 }
 0x79b   : > { %17186 = vst [vmem:[#allocation57_spill] sm:$0xff] %v16088_v17 }
 0x79e   : > { %v16076_v50 = vpop.eup %13910  ;;  %v16090_v51 = vpop.permute.xlu1 %9465 }
 0x79f   : > { %v7696_v25 = vsel %vm1038_vm1, %v16076_v50, 0.0  ;;  %17187 = vst [vmem:[#allocation58_spill] sm:$0xff] %v16090_v51 }
 0x7a0   : > { %7697 = vadd.xlane.f32.xlu0 %v7696_v25 }
 0x7a2   : > { %v16080_v61 = vpop.eup %13912  ;;  %v16092_v29 = vpop.permute.xlu1 %9463 }
 0x7a3   : > { %v7702_v4 = vsel %vm1038_vm1, %v16080_v61, 0.0  ;;  %17188 = vst [vmem:[#allocation59_spill] sm:$0xff] %v16092_v29 }
 0x7a4   : > { %7703 = vadd.xlane.f32.xlu0 %v7702_v4 }
 0x7bf   : > { %v7605_v43 = vpop.xlane.xlu1 %7604 }
 0x7c0   : > { %v7649_v58 = vsub.f32 %v15978_v40, %v7605_v43 }
 0x7c2   : > { %v7666_v25 = vmul.f32 1.442695, %v7649_v58 }
 0x7c3   : > { %v7611_v47 = vpop.xlane.xlu0 %7610 }
 0x7c4   : > { %13914 = vpow2.f32 %v7666_v25  ;;  %v7651_v54 = vsub.f32 %v15984_v8, %v7611_v47 }
 0x7c6   : > { %v7670_v37 = vmul.f32 1.442695, %v7651_v54 }
 0x7c7   : > { %v7614_v63 = vpop.xlane.xlu0 %7613  ;;  %v7617_v53 = vpop.xlane.xlu1 %7616 }
 0x7c8   : > { %13916 = vpow2.f32 %v7670_v37  ;;  %v7652_v4 = vsub.f32 %v15970_v31, %v7614_v63  ;;  %v7653_v17 = vsub.f32 %v15988_v46, %v7617_v53 }
 0x7ca   : > { %v7672_v2 = vmul.f32 1.442695, %v7652_v4  ;;  %v7674_v51 = vmul.f32 1.442695, %v7653_v17 }
 0x7cb   : > { %v7620_v22 = vpop.xlane.xlu0 %7619  ;;  %v7623_v29 = vpop.xlane.xlu1 %7622 }
 0x7cc   : > { %13918 = vpow2.f32 %v7672_v2  ;;  %v7654_v40 = vsub.f32 %v15972_v42, %v7620_v22  ;;  %v7655_v58 = vsub.f32 %v15996_v7, %v7623_v29 }
 0x7cd   : > { %13920 = vpow2.f32 %v7674_v51 }
 0x7ce   : > { %v16100_v43 = vpop.eup %13914  ;;  %v7676_v47 = vmul.f32 1.442695, %v7654_v40  ;;  %v7678_v8 = vmul.f32 1.442695, %v7655_v58 }
 0x7cf   : > { %v7626_v54 = vpop.xlane.xlu0 %7625  ;;  %v7629_v37 = vpop.xlane.xlu1 %7628  ;;  %v7699_v63 = vsel %vm1038_vm1, %v16100_v43, 0.0 }
 0x7d0   : > { %13922 = vpow2.f32 %v7676_v47  ;;  %v7656_v46 = vsub.f32 %v15974_v3, %v7626_v54  ;;  %v7657_v53 = vsub.f32 %v16002_v55, %v7629_v37  ;;  %7700 = vadd.xlane.f32.xlu1 %v7699_v63 }
 0x7d1   : > { %13924 = vpow2.f32 %v7678_v8 }
 0x7d2   : > { %v16106_v31 = vpop.eup %13916  ;;  %v7680_v7 = vmul.f32 1.442695, %v7656_v46  ;;  %v7682_v42 = vmul.f32 1.442695, %v7657_v53 }
 0x7d3   : > { %v7632_v22 = vpop.xlane.xlu0 %7631  ;;  %v7635_v2 = vpop.xlane.xlu1 %7634  ;;  %v7705_v17 = vsel %vm1038_vm1, %v16106_v31, 0.0 }
 0x7d4   : > { %13926 = vpow2.f32 %v7680_v7  ;;  %v7658_v51 = vsub.f32 %v15982_v39, %v7632_v22  ;;  %v7659_v29 = vsub.f32 %v16010_v48, %v7635_v2  ;;  %7706 = vadd.xlane.f32.xlu1 %v7705_v17 }
 0x7d5   : > { %13928 = vpow2.f32 %v7682_v42 }
 0x7d6   : > { %v16112_v3 = vpop.eup %13918  ;;  %v7684_v55 = vmul.f32 1.442695, %v7658_v51  ;;  %v7686_v25 = vmul.f32 1.442695, %v7659_v29 }
 0x7d7   : > { %v16114_v4 = vpop.eup %13920  ;;  %v7638_v40 = vpop.xlane.xlu0 %7637  ;;  %v7708_v58 = vsel %vm1038_vm1, %v16112_v3, 0.0 }
 0x7d8   : > { %13930 = vpow2.f32 %v7684_v55  ;;  %v7660_v47 = vsub.f32 %v15994_v9, %v7638_v40  ;;  %7709 = vadd.xlane.f32.xlu0 %v7708_v58  ;;  %v7711_v39 = vsel %vm1038_vm1, %v16114_v4, 0.0  ;;  %v7641_v55 = vpop.xlane.xlu1 %7640 }
 0x7d9   : > { %13932 = vpow2.f32 %v7686_v25  ;;  %7712 = vadd.xlane.f32.xlu1 %v7711_v39  ;;  %v7661_v25 = vsub.f32 %v16016_v26, %v7641_v55 }
 0x7da   : > { %v16121_v48 = vpop.eup %13922  ;;  %v7688_v8 = vmul.f32 1.442695, %v7660_v47 }
 0x7db   : > { %v16123_v54 = vpop.eup %13924  ;;  %v7714_v37 = vsel %vm1038_vm1, %v16121_v48, 0.0  ;;  %v7644_v58 = vpop.xlane.xlu0 %7643  ;;  %v7690_v39 = vmul.f32 1.442695, %v7661_v25  ;;  %v17195_v25 = vld [vmem:[#allocation54_spill] sm:$0xff] }
 0x7dc   : > { %13934 = vpow2.f32 %v7688_v8  ;;  %7715 = vadd.xlane.f32.xlu0 %v7714_v37  ;;  %v7717_v63 = vsel %vm1038_vm1, %v16123_v54, 0.0  ;;  %v7647_v40 = vpop.xlane.xlu1 %7646  ;;  %v7662_v8 = vsub.f32 %v16008_v20, %v7644_v58 }
 0x7dd   : > { %7718 = vadd.xlane.f32.xlu1 %v7717_v63  ;;  %v7663_v47 = vsub.f32 %v16024_v33, %v7647_v40  ;;  %13936 = vpow2.f32 %v7690_v39 }
 0x7de   : > { %v16129_v9 = vpop.eup %13926  ;;  %v7692_v63 = vmul.f32 1.442695, %v7662_v8 }
 0x7df   : > { %v16131_v46 = vpop.eup %13928  ;;  %v7720_v53 = vsel %vm1038_vm1, %v16129_v9, 0.0  ;;  %v7694_v37 = vmul.f32 1.442695, %v7663_v47 }
 0x7e0   : > { %7721 = vadd.xlane.f32.xlu0 %v7720_v53  ;;  %v7723_v7 = vsel %vm1038_vm1, %v16131_v46, 0.0 }
 0x7e1   : > { %7724 = vadd.xlane.f32.xlu1 %v7723_v7  ;;  %13938 = vpow2.f32 %v7694_v37  ;;  %v16168_v7 = vpop.permute.xlu0 %9543 }
 0x7e2   : > { %v16137_v42 = vpop.eup %13930  ;;  %13940 = vpow2.f32 %v7692_v63 }
 0x7e3   : > { %v16139_v22 = vpop.eup %13932  ;;  %v7726_v2 = vsel %vm1038_vm1, %v16137_v42, 0.0 }
 0x7e4   : > { %7727 = vadd.xlane.f32.xlu0 %v7726_v2  ;;  %v7729_v17 = vsel %vm1038_vm1, %v16139_v22, 0.0 }
 0x7e5   : > { %7730 = vadd.xlane.f32.xlu1 %v7729_v17 }
 0x7e6   : > { %v16145_v51 = vpop.eup %13934 }
 0x7e7   : > { %v7732_v29 = vsel %vm1038_vm1, %v16145_v51, 0.0  ;;  %v16156_v53 = vpop.eup %13936 }
 0x7e8   : > { %7733 = vadd.xlane.f32.xlu0 %v7732_v29 }
 0x7f6   : > { %9619 = vrot.lane.b32.xlu1 %v14791_v1, %s14178_s14  ;;  %v16158_v1 = vpop.eup %13938 }
 0x7f7   : > { %v16162_v26 = vpop.eup %13940  ;;  %v7741_v33 = vsel %vm1038_vm1, %v16158_v1, 0.0 }
 0x7f8   : > { %v7738_v20 = vsel %vm1038_vm1, %v16162_v26, 0.0 }
 0x7fe   : > { %9541 = vrot.lane.b32.xlu0 %v14766_v52, %s14178_s14  ;;  %v7735_v52 = vsel %vm1038_vm1, %v16156_v53, 0.0 }
 0x81a   : > { %7736 = vadd.xlane.f32.xlu1 %v7735_v52 }
 0x81d   : > { %7742 = vadd.xlane.f32.xlu0 %v7741_v33 }
 0x81e   : > { %7739 = vadd.xlane.f32.xlu1 %v7738_v20 }
 0x82d   : > { %v7698_v2 = vpop.xlane.xlu0 %7697 }
 0x82e   : > { %13942 = vrcp.f32 %v7698_v2 }
 0x82f   : > { %9777 = vrot.lane.b32.xlu1 %v14800_v6, %s14178_s14 }
 0x831   : > { %v7704_v17 = vpop.xlane.xlu0 %7703 }
 0x832   : > { %13944 = vrcp.f32 %v7704_v17 }
 0x833   : > { %9775 = vrot.lane.b32.xlu1 %v14819_v11, %s14178_s14  ;;  %9699 = vrot.lane.b32.xlu0 %v14710_v28, %s14178_s14 }
 0x837   : > { %9933 = vrot.lane.b32.xlu1 %v14827_v14, %s14178_s14  ;;  %9697 = vrot.lane.b32.xlu0 %v14729_v35, %s14178_s14  ;;  %v16222_v35 = vpop.permute.xlu1 %9621 }
 0x838   : > { %v13943_v29 = vpop.eup %13942 }
 0x839   : > { %v7760_v55 = vmul.f32 %v13943_v29, %v16076_v50  ;;  %v17197_v29 = vld [vmem:[#allocation55_spill] sm:$0xff] }
 0x83b   : > { %13331 = vmatmul.mubr.msk.f32.vlgmr.msra.gmra.mrb[96].mxu0 %vm1038_vm1, %v7760_v55  ;;  %9931 = vrot.lane.b32.xlu1 %v14842_v18, %s14178_s14 }
 0x83c   : > { %v13945_v6 = vpop.eup %13944  ;;  %13339 = vmatpush3.msra.mxu0 %v16018_v34  ;;  %13340 = vmatprep.mubr.msk.f32.mxu0 %vm14175_vm0, %v17066_v15 }
 0x83d   : > { %13348 = vmatprep.subr.mxu0 %v17066_v15  ;;  %9855 = vrot.lane.b32.xlu0 %v14735_v38, %s14178_s14  ;;  %v7762_v28 = vmul.f32 %v13945_v6, %v16080_v61 }
 0x83f   : > { %13341 = vmatmul.mubr.msk.f32.vlgmr.msra.gmra.mrb[98].mxu0 %vm1038_vm1, %v7762_v28  ;;  %10089 = vrot.lane.b32.xlu1 %v14848_v21, %s14178_s14 }
 0x840   : > { %13349 = vmatpush3.msra.mxu0 %v16030_v32  ;;  %13350 = vmatprep.mubr.msk.f32.mxu0 %vm14175_vm0, %v17066_v15 }
 0x841   : > { %9853 = vrot.lane.b32.xlu0 %v14753_v45, %s14178_s14  ;;  %13358 = vmatprep.subr.mxu0 %v17066_v15 }
 0x843   : > { %10087 = vrot.lane.b32.xlu1 %v14859_v24, %s14178_s14 }
 0x845   : > { %10011 = vrot.lane.b32.xlu0 %v14763_v49, %s14178_s14 }
 0x847   : > { %10245 = vrot.lane.b32.xlu1 %v14865_v27, %s14178_s14 }
 0x849   : > { %10009 = vrot.lane.b32.xlu0 %v14782_v56, %s14178_s14 }
 0x84b   : > { %10243 = vrot.lane.b32.xlu1 %v17069_v16, %s14178_s14 }
 0x84d   : > { %10167 = vrot.lane.b32.xlu0 %v14787_v62, %s14178_s14 }
 0x84f   : > { %10573 = vrot.lane.b32.xlu1 %v17070_v57, %s14178_s14 }
 0x851   : > { %10165 = vrot.lane.b32.xlu0 %v17115_v0, %s14178_s14 }
 0x853   : > { %10725 = vrot.lane.b32.xlu1 %v15147_v44, %s14178_s14 }
 0x855   : > { %10497 = vrot.lane.b32.xlu0 %v17117_v60, %s14178_s14 }
 0x857   : > { %10801 = vrot.lane.b32.xlu1 %v17119_v23, %s14178_s14 }
 0x859   : > { %10649 = vrot.lane.b32.xlu0 %v17118_v30, %s14178_s14  ;;  %v17189_v30 = vld [vmem:[#allocation19_spill] sm:$0xff] }
 0x85b   : > { %10877 = vrot.lane.b32.xlu1 %v15179_v59, %s14178_s14 }
 0x85d   : > { %10953 = vrot.lane.b32.xlu0 %v15193_v41, %s14178_s14  ;;  %v7701_v38 = vpop.xlane.xlu1 %7700 }
 0x85e   : > { %13946 = vrcp.f32 %v7701_v38 }
 0x85f   : > { %11029 = vrot.lane.b32.xlu1 %v15207_v10, %s14178_s14 }
 0x861   : > { %11105 = vrot.lane.b32.xlu0 %v17120_v19, %s14178_s14  ;;  %v7707_v45 = vpop.xlane.xlu1 %7706 }
 0x862   : > { %13948 = vrcp.f32 %v7707_v45 }
 0x863   : > { %11181 = vrot.lane.b32.xlu1 %v15256_v13, %s14178_s14 }
 0x865   : > { %v7710_v49 = vpop.xlane.xlu0 %7709 }
 0x866   : > { %13950 = vrcp.f32 %v7710_v49  ;;  %v7713_v56 = vpop.xlane.xlu1 %7712 }
 0x867   : > { %13952 = vrcp.f32 %v7713_v56  ;;  %v17201_v56 = vld [vmem:[#allocation24_spill] sm:$0xff] }
 0x868   : > { %v13947_v62 = vpop.eup %13946 }
 0x869   : > { %v7716_v11 = vpop.xlane.xlu0 %7715  ;;  %v7761_v14 = vmul.f32 %v13947_v62, %v16100_v43  ;;  %v17202_v62 = vld [vmem:[#allocation30_spill] sm:$0xff] }
 0x86a   : > { %13954 = vrcp.f32 %v7716_v11  ;;  %v7719_v18 = vpop.xlane.xlu1 %7718 }
 0x86b   : > { %13956 = vrcp.f32 %v7719_v18  ;;  %13336 = vmatmul.mubr.msk.f32.vlgmr.msra.gmra.mrb[112].mxu1 %vm1038_vm1, %v7761_v14  ;;  %v17203_v14 = vld [vmem:[#allocation28_spill] sm:$0xff]  ;;  %v17204_v18 = vld [vmem:[#allocation26_spill] sm:$0xff] }
 0x86c   : > { %v13949_v21 = vpop.eup %13948  ;;  %13344 = vmatpush3.msra.mxu1 %v16044_v5  ;;  %13345 = vmatprep.mubr.msk.f32.mxu1 %vm14175_vm0, %v17066_v15  ;;  %v17190_v5 = vld [vmem:[#allocation36_spill] sm:$0xff] }
 0x86d   : > { %v7722_v24 = vpop.xlane.xlu0 %7721  ;;  %13353 = vmatprep.subr.mxu1 %v17066_v15  ;;  %v7763_v27 = vmul.f32 %v13949_v21, %v16106_v31  ;;  %v17192_v31 = vld [vmem:[#allocation21_spill] sm:$0xff]  ;;  %v17205_v21 = vld [vmem:[#allocation40_spill] sm:$0xff] }
 0x86e   : > { %13958 = vrcp.f32 %v7722_v24  ;;  %v7725_v44 = vpop.xlane.xlu1 %7724 }
 0x86f   : > { %13960 = vrcp.f32 %v7725_v44  ;;  %13346 = vmatmul.mubr.msk.f32.vlgmr.msra.gmra.mrb[114].mxu1 %vm1038_vm1, %v7763_v27  ;;  %v17206_v27 = vld [vmem:[#allocation57_spill] sm:$0xff]  ;;  %v17207_v44 = vld [vmem:[#allocation58_spill] sm:$0xff] }
 0x870   : > { %v13951_v59 = vpop.eup %13950  ;;  %13354 = vmatpush3.msra.mxu1 %v16048_v12  ;;  %13355 = vmatprep.mubr.msk.f32.mxu1 %vm14175_vm0, %v17066_v15  ;;  %v17191_v12 = vld [vmem:[#allocation23_spill] sm:$0xff] }
 0x871   : > { %v13953_v41 = vpop.eup %13952  ;;  %v7728_v10 = vpop.xlane.xlu0 %7727  ;;  %13363 = vmatprep.subr.mxu1 %v17066_v15  ;;  %v7764_v16 = vmul.f32 %v13951_v59, %v16112_v3  ;;  %v17208_v59 = vld [vmem:[#allocation27_spill] sm:$0xff] }
 0x872   : > { %13962 = vrcp.f32 %v7728_v10  ;;  %v7731_v57 = vpop.xlane.xlu1 %7730  ;;  %v7765_v13 = vmul.f32 %v13953_v41, %v16114_v4  ;;  %v17193_v4 = vld [vmem:[#allocation42_spill] sm:$0xff]  ;;  %v17209_v10 = vld [vmem:[#allocation59_spill] sm:$0xff] }
 0x873   : > { %13964 = vrcp.f32 %v7731_v57  ;;  %13351 = vmatmul.mubr.msk.f32.vlgmr.msra.gmra.mrb[100].mxu0 %vm1038_vm1, %v7764_v16 }
 0x874   : > { %v13955_v0 = vpop.eup %13954  ;;  %13356 = vmatmul.mubr.msk.f32.vlgmr.msra.gmra.mrb[116].mxu1 %vm1038_vm1, %v7765_v13  ;;  %13359 = vmatpush3.msra.mxu0 %v16052_v36 }
 0x875   : > { %v13957_v60 = vpop.eup %13956  ;;  %13364 = vmatpush3.msra.mxu1 %v17189_v30  ;;  %v7734_v23 = vpop.xlane.xlu0 %7733  ;;  %13360 = vmatprep.mubr.msk.f32.mxu0 %vm14175_vm0, %v17066_v15  ;;  %v7766_v19 = vmul.f32 %v13955_v0, %v16121_v48 }
 0x876   : > { %13966 = vrcp.f32 %v7734_v23  ;;  %13365 = vmatprep.mubr.msk.f32.mxu1 %vm14175_vm0, %v17066_v15  ;;  %13368 = vmatprep.subr.mxu0 %v17066_v15  ;;  %v7767_v34 = vmul.f32 %v13957_v60, %v16123_v54  ;;  %v16302_v40 = vpop.permute.xlu1 %9619 }
 0x877   : > { %13373 = vmatprep.subr.mxu1 %v17066_v15  ;;  %13361 = vmatmul.mubr.msk.f32.vlgmr.msra.gmra.mrb[102].mxu0 %vm1038_vm1, %v7766_v19 }
 0x878   : > { %v13959_v36 = vpop.eup %13958  ;;  %13366 = vmatmul.mubr.msk.f32.vlgmr.msra.gmra.mrb[118].mxu1 %vm1038_vm1, %v7767_v34  ;;  %13369 = vmatpush3.msra.mxu0 %v17190_v5 }
 0x879   : > { %v13961_v32 = vpop.eup %13960  ;;  %13374 = vmatpush3.msra.mxu1 %v17191_v12  ;;  %13370 = vmatprep.mubr.msk.f32.mxu0 %vm14175_vm0, %v17066_v15  ;;  %v7768_v50 = vmul.f32 %v13959_v36, %v16129_v9  ;;  %v9542_v58 = vpop.permute.xlu0 %9541 }
 0x87a   : > { %13375 = vmatprep.mubr.msk.f32.mxu1 %vm14175_vm0, %v17066_v15  ;;  %13378 = vmatprep.subr.mxu0 %v17066_v15  ;;  %v7769_v61 = vmul.f32 %v13961_v32, %v16131_v46  ;;  %v17194_v46 = vld [vmem:[#allocation45_spill] sm:$0xff] }
 0x87b   : > { %13383 = vmatprep.subr.mxu1 %v17066_v15  ;;  %13371 = vmatmul.mubr.msk.f32.vlgmr.msra.gmra.mrb[104].mxu0 %vm1038_vm1, %v7768_v50 }
 0x87c   : > { %v13963_v43 = vpop.eup %13962  ;;  %13376 = vmatmul.mubr.msk.f32.vlgmr.msra.gmra.mrb[120].mxu1 %vm1038_vm1, %v7769_v61  ;;  %13379 = vmatpush3.msra.mxu0 %v17192_v31 }
 0x87d   : > { %v13965_v3 = vpop.eup %13964  ;;  %13384 = vmatpush3.msra.mxu1 %v17193_v4  ;;  %13380 = vmatprep.mubr.msk.f32.mxu0 %vm14175_vm0, %v17066_v15  ;;  %v7770_v48 = vmul.f32 %v13963_v43, %v16137_v42 }
 0x87e   : > { %13385 = vmatprep.mubr.msk.f32.mxu1 %vm14175_vm0, %v17066_v15  ;;  %13388 = vmatprep.subr.mxu0 %v17066_v15  ;;  %v7771_v54 = vmul.f32 %v13965_v3, %v16139_v22  ;;  %v17196_v22 = vld [vmem:[#allocation22_spill] sm:$0xff] }
 0x87f   : > { %13393 = vmatprep.subr.mxu1 %v17066_v15  ;;  %13381 = vmatmul.mubr.msk.f32.vlgmr.msra.gmra.mrb[106].mxu0 %vm1038_vm1, %v7770_v48 }
 0x880   : > { %v13967_v9 = vpop.eup %13966  ;;  %13386 = vmatmul.mubr.msk.f32.vlgmr.msra.gmra.mrb[122].mxu1 %vm1038_vm1, %v7771_v54  ;;  %13389 = vmatpush3.msra.mxu0 %v17194_v46 }
 0x881   : > { %13394 = vmatpush3.msra.mxu1 %v17195_v25  ;;  %13390 = vmatprep.mubr.msk.f32.mxu0 %vm14175_vm0, %v17066_v15  ;;  %v7772_v42 = vmul.f32 %v13967_v9, %v16145_v51 }
 0x882   : > { %13398 = vmatprep.subr.mxu0 %v17066_v15  ;;  %13395 = vmatprep.mubr.msk.f32.mxu1 %vm14175_vm0, %v17066_v15 }
 0x883   : > { %13391 = vmatmul.mubr.msk.f32.vlgmr.msra.gmra.mrb[108].mxu0 %vm1038_vm1, %v7772_v42  ;;  %13403 = vmatprep.subr.mxu1 %v17066_v15 }
 0x884   : > { %13399 = vmatpush3.msra.mxu0 %v17196_v22  ;;  %13400 = vmatprep.mubr.msk.f32.mxu0 %vm14175_vm0, %v17066_v15 }
 0x885   : > { %13408 = vmatprep.subr.mxu0 %v17066_v15 }
 0x8a7   : > { %v7737_v51 = vpop.xlane.xlu1 %7736 }
 0x8a8   : > { %13968 = vrcp.f32 %v7737_v51 }
 0x8aa   : > { %v7743_v47 = vpop.xlane.xlu0 %7742 }
 0x8ab   : > { %13970 = vrcp.f32 %v7743_v47  ;;  %v7740_v39 = vpop.xlane.xlu1 %7739 }
 0x8ac   : > { %13972 = vrcp.f32 %v7740_v39 }
 0x8ae   : > { %v9700_v8 = vpop.permute.xlu0 %9699 }
 0x8af   : > { %v9778_v37 = vpop.permute.xlu1 %9777 }
 0x8b2   : > { %v13969_v63 = vpop.eup %13968  ;;  %v9698_v52 = vpop.permute.xlu0 %9697 }
 0x8b3   : > { %v16304_v33 = vpop.permute.xlu1 %9775  ;;  %v7773_v20 = vmul.f32 %v13969_v63, %v16156_v53  ;;  %v17198_v53 = vld [vmem:[#allocation17_spill] sm:$0xff] }
 0x8b5   : > { %v13971_v2 = vpop.eup %13970  ;;  %13396 = vmatmul.mubr.msk.f32.vlgmr.msra.gmra.mrb[124].mxu1 %vm1038_vm1, %v7773_v20 }
 0x8b6   : > { %v13973_v17 = vpop.eup %13972  ;;  %13404 = vmatpush3.msra.mxu1 %v17197_v29  ;;  %v9856_v55 = vpop.permute.xlu0 %9855  ;;  %13405 = vmatprep.mubr.msk.f32.mxu1 %vm14175_vm0, %v17066_v15  ;;  %v7775_v6 = vmul.f32 %v13971_v2, %v16158_v1  ;;  %v17199_v1 = vld [vmem:[#allocation56_spill] sm:$0xff] }
 0x8b7   : > { %v7774_v28 = vmul.f32 %v13973_v17, %v16162_v26  ;;  %13413 = vmatprep.subr.mxu1 %v17066_v15  ;;  %v9934_v38 = vpop.permute.xlu1 %9933  ;;  %v17200_v26 = vld [vmem:[#allocation47_spill] sm:$0xff] }
 0x8b9   : > { %13401 = vmatmul.mubr.msk.f32.vlgmr.msra.gmra.mrb[110].mxu0 %vm1038_vm1, %v7774_v28  ;;  %13406 = vmatmul.mubr.msk.f32.vlgmr.msra.gmra.mrb[126].mxu1 %vm1038_vm1, %v7775_v6 }
 0x8ba   : > { %13409 = vmatpush3.xpose.msk.msra.mxu0 %vm1038_vm1, %v17198_v53  ;;  %13410 = vmatprep.mubr.msk.f32.mxu0 %vm14175_vm0, %v17066_v15  ;;  %v9854_v45 = vpop.permute.xlu0 %9853 }
 0x8bb   : > { %13418 = vmatprep.subr.mxu0 %v17066_v15  ;;  %13415 = vmatprep.mubr.msk.f32.mxu1 %vm14175_vm0, %v17066_v15  ;;  %v9932_v49 = vpop.permute.xlu1 %9931 }
 0x8bd   : > { %13414 = vmatpush3.xpose.msk.msra.mxu1 %vm1038_vm1, %v17199_v1  ;;  %13411 = vmatmul.mubr.msk.f32.vlgmr.msra.gmra.mrb[112].mxu0 %vm1038_vm1, %v17200_v26 }
 0x8be   : > { %13419 = vmatpush3.xpose.msk.msra.mxu0 %vm1038_vm1, %v17201_v56  ;;  %13423 = vmatprep.subr.mxu1 %v17066_v15  ;;  %v10012_v11 = vpop.permute.xlu0 %10011 }
 0x8bf   : > { %13420 = vmatprep.mubr.msk.f32.mxu0 %vm14175_vm0, %v17066_v15  ;;  %13428 = vmatprep.subr.mxu0 %v17066_v15  ;;  %v10090_v24 = vpop.permute.xlu1 %10089 }
 0x8c0   : > { %13416 = vmatmul.mubr.msk.f32.vlgmr.msra.gmra.mrb[128].mxu1 %vm1038_vm1, %v17202_v62 }
 0x8c1   : > { %13424 = vmatpush3.xpose.msk.msra.mxu1 %vm1038_vm1, %v17203_v14  ;;  %13421 = vmatmul.mubr.msk.f32.vlgmr.msra.gmra.mrb[114].mxu0 %vm1038_vm1, %v17204_v18 }
 0x8c2   : > { %13429 = vmatpush3.xpose.msk.msra.mxu0 %vm1038_vm1, %v17205_v21  ;;  %13425 = vmatprep.mubr.msk.f32.mxu1 %vm14175_vm0, %v17066_v15  ;;  %v10010_v41 = vpop.permute.xlu0 %10009 }
 0x8c3   : > { %13433 = vmatprep.subr.mxu1 %v17066_v15  ;;  %13430 = vmatprep.mubr.msk.f32.mxu0 %vm14175_vm0, %v17066_v15 }
 0x8c4   : > { %13426 = vmatmul.mubr.msk.f32.vlgmr.msra.gmra.mrb[130].mxu1 %vm1038_vm1, %v17206_v27  ;;  %13438 = vmatprep.subr.mxu0 %v17066_v15 }
 0x8c5   : > { %13434 = vmatpush3.xpose.msk.msra.mxu1 %vm1038_vm1, %v17207_v44  ;;  %13431 = vmatmul.mubr.msk.f32.vlgmr.msra.gmra.mrb[116].mxu0 %vm1038_vm1, %v17208_v59 }
 0x8c6   : > { %13439 = vmatpush3.xpose.msk.msra.mxu0 %vm1038_vm1, %v16168_v7  ;;  %13435 = vmatprep.mubr.msk.f32.mxu1 %vm14175_vm0, %v17066_v15  ;;  %v10088_v7 = vpop.permute.xlu1 %10087  ;;  %v10168_v16 = vpop.permute.xlu0 %10167 }
 0x8c7   : > { %13443 = vmatprep.subr.mxu1 %v17066_v15  ;;  %13440 = vmatprep.mubr.msk.f32.mxu0 %vm14175_vm0, %v17066_v15 }
 0x8c8   : > { %13436 = vmatmul.mubr.msk.f32.vlgmr.msra.gmra.mrb[132].mxu1 %vm1038_vm1, %v17209_v10  ;;  %13448 = vmatprep.subr.mxu0 %v17066_v15 }
 0x8c9   : > { %13444 = vmatpush3.xpose.msk.msra.mxu1 %vm1038_vm1, %v16222_v35  ;;  %13441 = vmatmul.mubr.msk.f32.vlgmr.msra.gmra.mrb[118].mxu0 %vm1038_vm1, %v9542_v58 }
 0x8ca   : > { %13449 = vmatpush3.xpose.msk.msra.mxu0 %vm1038_vm1, %v9700_v8  ;;  %13445 = vmatprep.mubr.msk.f32.mxu1 %vm14175_vm0, %v17066_v15  ;;  %v10246_v35 = vpop.permute.xlu1 %10245  ;;  %v10166_v57 = vpop.permute.xlu0 %10165 }
 0x8cb   : > { %13453 = vmatprep.subr.mxu1 %v17066_v15  ;;  %13450 = vmatprep.mubr.msk.f32.mxu0 %vm14175_vm0, %v17066_v15 }
 0x8cc   : > { %13446 = vmatmul.mubr.msk.f32.vlgmr.msra.gmra.mrb[134].mxu1 %vm1038_vm1, %v16302_v40  ;;  %13458 = vmatprep.subr.mxu0 %v17066_v15 }
 0x8cd   : > { %13454 = vmatpush3.xpose.msk.msra.mxu1 %vm1038_vm1, %v9778_v37  ;;  %13451 = vmatmul.mubr.msk.f32.vlgmr.msra.gmra.mrb[120].mxu0 %vm1038_vm1, %v9698_v52 }
 0x8ce   : > { %13459 = vmatpush3.xpose.msk.msra.mxu0 %vm1038_vm1, %v9856_v55  ;;  %13455 = vmatprep.mubr.msk.f32.mxu1 %vm14175_vm0, %v17066_v15  ;;  %v10244_v13 = vpop.permute.xlu1 %10243  ;;  %v10498_v0 = vpop.permute.xlu0 %10497 }
 0x8cf   : > { %13463 = vmatprep.subr.mxu1 %v17066_v15  ;;  %13460 = vmatprep.mubr.msk.f32.mxu0 %vm14175_vm0, %v17066_v15 }
 0x8d0   : > { %13456 = vmatmul.mubr.msk.f32.vlgmr.msra.gmra.mrb[136].mxu1 %vm1038_vm1, %v16304_v33  ;;  %13468 = vmatprep.subr.mxu0 %v17066_v15 }
 0x8d1   : > { %13464 = vmatpush3.xpose.msk.msra.mxu1 %vm1038_vm1, %v9934_v38  ;;  %13461 = vmatmul.mubr.msk.f32.vlgmr.msra.gmra.mrb[122].mxu0 %vm1038_vm1, %v9854_v45 }
 0x8d2   : > { %13469 = vmatpush3.xpose.msk.msra.mxu0 %vm1038_vm1, %v10012_v11  ;;  %13465 = vmatprep.mubr.msk.f32.mxu1 %vm14175_vm0, %v17066_v15  ;;  %v10574_v60 = vpop.permute.xlu1 %10573 }
 0x8d3   : > { %13473 = vmatprep.subr.mxu1 %v17066_v15  ;;  %13470 = vmatprep.mubr.msk.f32.mxu0 %vm14175_vm0, %v17066_v15 }
 0x8d4   : > { %13466 = vmatmul.mubr.msk.f32.vlgmr.msra.gmra.mrb[138].mxu1 %vm1038_vm1, %v9932_v49  ;;  %13478 = vmatprep.subr.mxu0 %v17066_v15 }
 0x8d5   : > { %13474 = vmatpush3.xpose.msk.msra.mxu1 %vm1038_vm1, %v10090_v24  ;;  %13471 = vmatmul.mubr.msk.f32.vlgmr.msra.gmra.mrb[124].mxu0 %vm1038_vm1, %v10010_v41 }
 0x8d6   : > { %13479 = vmatpush3.xpose.msk.msra.mxu0 %vm1038_vm1, %v10168_v16  ;;  %13475 = vmatprep.mubr.msk.f32.mxu1 %vm14175_vm0, %v17066_v15 }
 0x8d7   : > { %13483 = vmatprep.subr.mxu1 %v17066_v15  ;;  %13480 = vmatprep.mubr.msk.f32.mxu0 %vm14175_vm0, %v17066_v15 }
 0x8d8   : > { %13476 = vmatmul.mubr.msk.f32.vlgmr.msra.gmra.mrb[140].mxu1 %vm1038_vm1, %v10088_v7  ;;  %13488 = vmatprep.subr.mxu0 %v17066_v15 }
 0x8d9   : > { %13484 = vmatpush3.xpose.msk.msra.mxu1 %vm1038_vm1, %v10246_v35  ;;  %13481 = vmatmul.mubr.msk.f32.vlgmr.msra.gmra.mrb[126].mxu0 %vm1038_vm1, %v10166_v57 }
 0x8da   : > { %13489 = vmatpush3.msra.mxu0 %v10498_v0  ;;  %13485 = vmatprep.mubr.msk.f32.mxu1 %vm14175_vm0, %v17066_v15 }
 0x8db   : > { %13493 = vmatprep.subr.mxu1 %v17066_v15  ;;  %13490 = vmatprep.mubr.msk.f32.mxu0 %vm14175_vm0, %v17066_v15 }
 0x8dc   : > { %13486 = vmatmul.mubr.msk.f32.vlgmr.msra.gmra.mrb[142].mxu1 %vm1038_vm1, %v10244_v13  ;;  %13498 = vmatprep.subr.mxu0 %v17066_v15 }
 0x8dd   : > { %13494 = vmatpush3.msra.mxu1 %v10574_v60  ;;  %13495 = vmatprep.mubr.msk.f32.mxu1 %vm14175_vm0, %v17066_v15 }
 0x8de   : > { %13503 = vmatprep.subr.mxu1 %v17066_v15 }
 0x90e   : > { %v16418_v30 = vpop.f32.mrb[96].mxu0 }
 0x90f   : > { %v13332_v23 = vpop.f32.mrb[97].mxu0 }
 0x912   : > { %v16420_v19 = vpop.f32.mrb[98].mxu0 }
 0x913   : > { %v13342_v34 = vpop.f32.mrb[99].mxu0 }
 0x93e   : > { %v16422_v36 = vpop.f32.mrb[112].mxu1 }
 0x93f   : > { %v13337_v5 = vpop.f32.mrb[113].mxu1 }
 0x942   : > { %v16424_v32 = vpop.f32.mrb[114].mxu1 }
 0x943   : > { %v13347_v12 = vpop.f32.mrb[115].mxu1 }
 0x946   : > { %v16426_v50 = vpop.f32.mrb[100].mxu0 }
 0x947   : > { %v16428_v61 = vpop.f32.mrb[116].mxu1  ;;  %v13352_v43 = vpop.f32.mrb[101].mxu0 }
 0x948   : > { %v13357_v31 = vpop.f32.mrb[117].mxu1 }
 0x94a   : > { %v16430_v3 = vpop.f32.mrb[102].mxu0 }
 0x94b   : > { %v16432_v4 = vpop.f32.mrb[118].mxu1  ;;  %v13362_v48 = vpop.f32.mrb[103].mxu0 }
 0x94c   : > { %v13367_v54 = vpop.f32.mrb[119].mxu1 }
 0x94e   : > { %v16434_v9 = vpop.f32.mrb[104].mxu0 }
 0x94f   : > { %v16436_v46 = vpop.f32.mrb[120].mxu1  ;;  %v13372_v25 = vpop.f32.mrb[105].mxu0 }
 0x950   : > { %v13377_v42 = vpop.f32.mrb[121].mxu1 }
 0x952   : > { %v16438_v22 = vpop.f32.mrb[106].mxu0 }
 0x953   : > { %v16440_v40 = vpop.f32.mrb[122].mxu1  ;;  %v13382_v58 = vpop.f32.mrb[107].mxu0 }
 0x954   : > { %v13387_v51 = vpop.f32.mrb[123].mxu1 }
 0x956   : > { %v16442_v47 = vpop.f32.mrb[108].mxu0 }
 0x957   : > { %v13392_v39 = vpop.f32.mrb[109].mxu0 }
 0x988   : > { %v16444_v8 = vpop.f32.mrb[124].mxu1 }
 0x989   : > { %v13397_v37 = vpop.f32.mrb[125].mxu1 }
 0x98c   : > { %v16446_v63 = vpop.f32.mrb[110].mxu0  ;;  %v16448_v52 = vpop.f32.mrb[126].mxu1 }
 0x98d   : > { %v13402_v33 = vpop.f32.mrb[111].mxu0  ;;  %v13407_v20 = vpop.f32.mrb[127].mxu1 }
 0x990   : > { %v16450_v2 = vpop.f32.mrb[112].mxu0 }
 0x991   : > { %v13412_v17 = vpop.f32.mrb[113].mxu0  ;;  %v10321_v29 = vsel %vm1038_vm1, %v16450_v2, -inf }
 0x992   : > { %10322 = vmax.xlane.f32.xlu0 %v10321_v29  ;;  %v17210_v17 = vld [vmem:[#allocation35_spill] sm:$0xff] }
 0x993   : > { %v16454_v55 = vpop.f32.mrb[128].mxu1  ;;  %v17211_v29 = vld [vmem:[#allocation51_spill] sm:$0xff] }
 0x994   : > { %v13417_v6 = vpop.f32.mrb[129].mxu1  ;;  %v16456_v28 = vpop.f32.mrb[114].mxu0  ;;  %v10324_v38 = vsel %vm1038_vm1, %v16454_v55, -inf }
 0x995   : > { %10325 = vmax.xlane.f32.xlu1 %v10324_v38  ;;  %v13422_v53 = vpop.f32.mrb[115].mxu0  ;;  %v10327_v45 = vsel %vm1038_vm1, %v16456_v28, -inf  ;;  %v17212_v6 = vld [vmem:[#allocation52_spill] sm:$0xff] }
 0x996   : > { %10328 = vmax.xlane.f32.xlu0 %v10327_v45  ;;  %v17213_v53 = vld [vmem:[#allocation37_spill] sm:$0xff]  ;;  %v16522_v45 = vpop.permute.xlu1 %10725 }
 0x997   : > { %v16462_v1 = vpop.f32.mrb[130].mxu1 }
 0x998   : > { %v13427_v26 = vpop.f32.mrb[131].mxu1  ;;  %v16464_v49 = vpop.f32.mrb[116].mxu0  ;;  %v10330_v62 = vsel %vm1038_vm1, %v16462_v1, -inf }
 0x999   : > { %v13432_v56 = vpop.f32.mrb[117].mxu0  ;;  %v10333_v27 = vsel %vm1038_vm1, %v16464_v49, -inf }
 0x99a   : > { %10331 = vmax.xlane.f32.xlu0 %v10330_v62  ;;  %v16524_v26 = vpop.permute.xlu1 %10801  ;;  %v16526_v56 = vpop.permute.xlu0 %10649 }
 0x99b   : > { %v16468_v11 = vpop.f32.mrb[132].mxu1 }
 0x99c   : > { %v13437_v14 = vpop.f32.mrb[133].mxu1  ;;  %v16470_v18 = vpop.f32.mrb[118].mxu0  ;;  %v10336_v21 = vsel %vm1038_vm1, %v16468_v11, -inf }
 0x99d   : > { %10337 = vmax.xlane.f32.xlu1 %v10336_v21  ;;  %v13442_v24 = vpop.f32.mrb[119].mxu0  ;;  %v10339_v16 = vsel %vm1038_vm1, %v16470_v18, -inf }
 0x99e   : > { %10334 = vmax.xlane.f32.xlu0 %v10333_v27  ;;  %v16528_v62 = vpop.permute.xlu1 %10877  ;;  %v16530_v14 = vpop.permute.xlu0 %10953 }
 0x99f   : > { %v16476_v44 = vpop.f32.mrb[134].mxu1 }
 0x9a0   : > { %v13447_v59 = vpop.f32.mrb[135].mxu1  ;;  %v16478_v41 = vpop.f32.mrb[120].mxu0  ;;  %v10342_v10 = vsel %vm1038_vm1, %v16476_v44, -inf }
 0x9a1   : > { %10343 = vmax.xlane.f32.xlu1 %v10342_v10  ;;  %v13452_v7 = vpop.f32.mrb[121].mxu0  ;;  %v10345_v23 = vsel %vm1038_vm1, %v16478_v41, -inf }
 0x9a2   : > { %10340 = vmax.xlane.f32.xlu0 %v10339_v16  ;;  %v16532_v21 = vpop.permute.xlu1 %11029  ;;  %v16534_v24 = vpop.permute.xlu0 %11105 }
 0x9a3   : > { %v16484_v35 = vpop.f32.mrb[136].mxu1 }
 0x9a4   : > { %v13457_v57 = vpop.f32.mrb[137].mxu1  ;;  %v16486_v13 = vpop.f32.mrb[122].mxu0  ;;  %v10348_v0 = vsel %vm1038_vm1, %v16484_v35, -inf }
 0x9a5   : > { %10349 = vmax.xlane.f32.xlu1 %v10348_v0  ;;  %v13462_v60 = vpop.f32.mrb[123].mxu0  ;;  %v10351_v48 = vsel %vm1038_vm1, %v16486_v13, -inf }
 0x9a6   : > { %10346 = vmax.xlane.f32.xlu0 %v10345_v23  ;;  %v16536_v27 = vpop.permute.xlu1 %11181 }
 0x9a7   : > { %v16492_v34 = vpop.f32.mrb[138].mxu1 }
 0x9a8   : > { %v13467_v5 = vpop.f32.mrb[139].mxu1  ;;  %v16494_v12 = vpop.f32.mrb[124].mxu0  ;;  %v10354_v43 = vsel %vm1038_vm1, %v16492_v34, -inf }
 0x9a9   : > { %10355 = vmax.xlane.f32.xlu1 %v10354_v43  ;;  %v13472_v31 = vpop.f32.mrb[125].mxu0  ;;  %v10357_v39 = vsel %vm1038_vm1, %v16494_v12, -inf }
 0x9aa   : > { %10352 = vmax.xlane.f32.xlu0 %v10351_v48 }
 0x9ab   : > { %v16500_v54 = vpop.f32.mrb[140].mxu1 }
 0x9ac   : > { %v13477_v25 = vpop.f32.mrb[141].mxu1  ;;  %v16502_v42 = vpop.f32.mrb[126].mxu0  ;;  %v10360_v58 = vsel %vm1038_vm1, %v16500_v54, -inf }
 0x9ad   : > { %10361 = vmax.xlane.f32.xlu1 %v10360_v58  ;;  %v13482_v51 = vpop.f32.mrb[127].mxu0  ;;  %v10363_v20 = vsel %vm1038_vm1, %v16502_v42, -inf }
 0x9ae   : > { %10358 = vmax.xlane.f32.xlu0 %v10357_v39 }
 0x9af   : > { %v16508_v37 = vpop.f32.mrb[142].mxu1 }
 0x9b0   : > { %v13487_v33 = vpop.f32.mrb[143].mxu1  ;;  %v10366_v38 = vsel %vm1038_vm1, %v16508_v37, -inf }
 0x9b2   : > { %10364 = vmax.xlane.f32.xlu0 %v10363_v20 }
 0x9be   : > { %11333 = vrot.lane.b32.xlu1 %v17210_v17, %s14178_s14 }
 0x9c8   : > { %11257 = vrot.lane.b32.xlu0 %v17211_v29, %s14178_s14 }
 0x9cc   : > { %11409 = vrot.lane.b32.xlu0 %v17212_v6, %s14178_s14 }
 0x9e2   : > { %10367 = vmax.xlane.f32.xlu1 %v10366_v38 }
 0x9f3   : > { %11485 = vrot.lane.b32.xlu1 %v17213_v53, %s14178_s14 }
 0xa1f   : > { %v10323_v59 = vpop.xlane.xlu0 %10322 }
 0xa20   : > { %v10369_v10 = vsub.f32 %v16450_v2, %v10323_v59 }
 0xa22   : > { %v10385_v7 = vmul.f32 1.442695, %v10369_v10  ;;  %v10326_v16 = vpop.xlane.xlu1 %10325 }
 0xa23   : > { %v10370_v57 = vsub.f32 %v16454_v55, %v10326_v16  ;;  %v10329_v0 = vpop.xlane.xlu0 %10328 }
 0xa24   : > { %13974 = vpow2.f32 %v10385_v7  ;;  %v10371_v60 = vsub.f32 %v16456_v28, %v10329_v0 }
 0xa25   : > { %v10387_v23 = vmul.f32 1.442695, %v10370_v57 }
 0xa26   : > { %v10389_v5 = vmul.f32 1.442695, %v10371_v60 }
 0xa27   : > { %13976 = vpow2.f32 %v10387_v23  ;;  %v10332_v43 = vpop.xlane.xlu0 %10331 }
 0xa28   : > { %13978 = vpow2.f32 %v10389_v5  ;;  %v10372_v31 = vsub.f32 %v16462_v1, %v10332_v43 }
 0xa2a   : > { %v10391_v48 = vmul.f32 1.442695, %v10372_v31  ;;  %v10338_v25 = vpop.xlane.xlu1 %10337 }
 0xa2b   : > { %v10374_v58 = vsub.f32 %v16468_v11, %v10338_v25  ;;  %v10335_v2 = vpop.xlane.xlu0 %10334 }
 0xa2c   : > { %13980 = vpow2.f32 %v10391_v48  ;;  %v10373_v51 = vsub.f32 %v16464_v49, %v10335_v2 }
 0xa2d   : > { %v10395_v55 = vmul.f32 1.442695, %v10374_v58 }
 0xa2e   : > { %v16544_v39 = vpop.eup %13974  ;;  %v10393_v33 = vmul.f32 1.442695, %v10373_v51  ;;  %v10344_v28 = vpop.xlane.xlu1 %10343 }
 0xa2f   : > { %13982 = vpow2.f32 %v10395_v55  ;;  %v10376_v20 = vsub.f32 %v16476_v44, %v10344_v28  ;;  %v10341_v17 = vpop.xlane.xlu0 %10340  ;;  %v10417_v1 = vsel %vm1038_vm1, %v16544_v39, 0.0 }
 0xa30   : > { %13984 = vpow2.f32 %v10393_v33  ;;  %v10375_v29 = vsub.f32 %v16470_v18, %v10341_v17  ;;  %10418 = vadd.xlane.f32.xlu0 %v10417_v1 }
 0xa31   : > { %v16550_v11 = vpop.eup %13976  ;;  %v10399_v6 = vmul.f32 1.442695, %v10376_v20 }
 0xa32   : > { %v16552_v49 = vpop.eup %13978  ;;  %v10397_v38 = vmul.f32 1.442695, %v10375_v29  ;;  %v10350_v53 = vpop.xlane.xlu1 %10349  ;;  %v10420_v59 = vsel %vm1038_vm1, %v16550_v11, 0.0 }
 0xa33   : > { %13986 = vpow2.f32 %v10399_v6  ;;  %v10378_v44 = vsub.f32 %v16484_v35, %v10350_v53  ;;  %10421 = vadd.xlane.f32.xlu1 %v10420_v59  ;;  %v10347_v10 = vpop.xlane.xlu0 %10346  ;;  %v10423_v7 = vsel %vm1038_vm1, %v16552_v49, 0.0 }
 0xa34   : > { %13988 = vpow2.f32 %v10397_v38  ;;  %v10377_v18 = vsub.f32 %v16478_v41, %v10347_v10  ;;  %10424 = vadd.xlane.f32.xlu0 %v10423_v7 }
 0xa35   : > { %v10403_v16 = vmul.f32 1.442695, %v10378_v44 }
 0xa36   : > { %v16560_v57 = vpop.eup %13980  ;;  %v10401_v0 = vmul.f32 1.442695, %v10377_v18  ;;  %v10356_v60 = vpop.xlane.xlu1 %10355 }
 0xa37   : > { %13990 = vpow2.f32 %v10403_v16  ;;  %v10380_v23 = vsub.f32 %v16492_v34, %v10356_v60  ;;  %v10353_v5 = vpop.xlane.xlu0 %10352  ;;  %v10426_v35 = vsel %vm1038_vm1, %v16560_v57, 0.0 }
 0xa38   : > { %13992 = vpow2.f32 %v10401_v0  ;;  %v10379_v43 = vsub.f32 %v16486_v13, %v10353_v5  ;;  %10427 = vadd.xlane.f32.xlu1 %v10426_v35 }
 0xa39   : > { %v16566_v31 = vpop.eup %13982  ;;  %v10407_v41 = vmul.f32 1.442695, %v10380_v23 }
 0xa3a   : > { %v16568_v48 = vpop.eup %13984  ;;  %v10405_v25 = vmul.f32 1.442695, %v10379_v43  ;;  %v10362_v58 = vpop.xlane.xlu1 %10361  ;;  %v10432_v55 = vsel %vm1038_vm1, %v16566_v31, 0.0  ;;  %v17214_v43 = vld [vmem:[#allocation32_spill] sm:$0xff] }
 0xa3b   : > { %13994 = vpow2.f32 %v10407_v41  ;;  %v10382_v2 = vsub.f32 %v16500_v54, %v10362_v58  ;;  %v10359_v51 = vpop.xlane.xlu0 %10358  ;;  %v10429_v34 = vsel %vm1038_vm1, %v16568_v48, 0.0  ;;  %v17215_v41 = vld [vmem:[#allocation38_spill] sm:$0xff]  ;;  %v17216_v58 = vld [vmem:[#allocation48_spill] sm:$0xff] }
 0xa3c   : > { %13996 = vpow2.f32 %v10405_v25  ;;  %v10381_v13 = vsub.f32 %v16494_v12, %v10359_v51  ;;  %10430 = vadd.xlane.f32.xlu0 %v10429_v34  ;;  %10433 = vadd.xlane.f32.xlu1 %v10432_v55  ;;  %v17217_v55 = vld [vmem:[#allocation50_spill] sm:$0xff] }
 0xa3d   : > { %v16576_v33 = vpop.eup %13986  ;;  %v10411_v28 = vmul.f32 1.442695, %v10382_v2 }
 0xa3e   : > { %v16578_v20 = vpop.eup %13988  ;;  %v10409_v17 = vmul.f32 1.442695, %v10381_v13  ;;  %v10438_v29 = vsel %vm1038_vm1, %v16576_v33, 0.0  ;;  %v16619_v25 = vpop.permute.xlu1 %11333 }
 0xa3f   : > { %13998 = vpow2.f32 %v10411_v28  ;;  %v10365_v54 = vpop.xlane.xlu0 %10364  ;;  %v10435_v1 = vsel %vm1038_vm1, %v16578_v20, 0.0 }
 0xa40   : > { %14000 = vpow2.f32 %v10409_v17  ;;  %v10383_v6 = vsub.f32 %v16502_v42, %v10365_v54  ;;  %10436 = vadd.xlane.f32.xlu0 %v10435_v1  ;;  %10439 = vadd.xlane.f32.xlu1 %v10438_v29  ;;  %v17222_v17 = vld [vmem:[#allocation53_spill] sm:$0xff] }
 0xa41   : > { %v16585_v12 = vpop.eup %13990  ;;  %v17227_v54 = vld [vmem:[#allocation25_spill] sm:$0xff] }
 0xa42   : > { %v16587_v38 = vpop.eup %13992  ;;  %v10413_v53 = vmul.f32 1.442695, %v10383_v6  ;;  %v10444_v44 = vsel %vm1038_vm1, %v16585_v12, 0.0 }
 0xa43   : > { %v10441_v59 = vsel %vm1038_vm1, %v16587_v38, 0.0  ;;  %v16670_v1 = vpop.permute.xlu0 %11257 }
 0xa44   : > { %14002 = vpow2.f32 %v10413_v53  ;;  %10442 = vadd.xlane.f32.xlu0 %v10441_v59  ;;  %10445 = vadd.xlane.f32.xlu1 %v10444_v44  ;;  %v17229_v53 = vld [vmem:[#allocation33_spill] sm:$0xff] }
 0xa45   : > { %v16593_v10 = vpop.eup %13994 }
 0xa46   : > { %v16595_v7 = vpop.eup %13996  ;;  %v10450_v18 = vsel %vm1038_vm1, %v16593_v10, 0.0 }
 0xa47   : > { %v10447_v42 = vsel %vm1038_vm1, %v16595_v7, 0.0 }
 0xa48   : > { %10448 = vadd.xlane.f32.xlu0 %v10447_v42  ;;  %10451 = vadd.xlane.f32.xlu1 %v10450_v18 }
 0xa49   : > { %v16601_v16 = vpop.eup %13998 }
 0xa4a   : > { %v16603_v0 = vpop.eup %14000  ;;  %v10456_v23 = vsel %vm1038_vm1, %v16601_v16, 0.0 }
 0xa4b   : > { %v10453_v60 = vsel %vm1038_vm1, %v16603_v0, 0.0 }
 0xa4c   : > { %10454 = vadd.xlane.f32.xlu0 %v10453_v60  ;;  %10457 = vadd.xlane.f32.xlu1 %v10456_v23 }
 0xa4e   : > { %v16609_v5 = vpop.eup %14002 }
 0xa4f   : > { %v10459_v35 = vsel %vm1038_vm1, %v16609_v5, 0.0 }
 0xa50   : > { %10460 = vadd.xlane.f32.xlu1 %v10459_v35 }
 0xa61   : > { %11637 = vrot.lane.b32.xlu1 %v17214_v43, %s14178_s14 }
 0xa65   : > { %6289 = vrot.lane.b32.xlu1 %v17215_v41, %s14179_s28 }
 0xa69   : > { %9010 = vrot.lane.b32.xlu1 %v16422_v36, %s14180_s25  ;;  %v17218_v36 = vld [vmem:[#allocation43_spill] sm:$0xff] }
 0xa6d   : > { %6293 = vrot.lane.b32.xlu1 %v17216_v58, %s14179_s28 }
 0xa6f   : > { %v10368_v2 = vpop.xlane.xlu1 %10367 }
 0xa70   : > { %v10384_v51 = vsub.f32 %v16508_v37, %v10368_v2  ;;  %v17221_v37 = vld [vmem:[#allocation20_spill] sm:$0xff] }
 0xa71   : > { %9014 = vrot.lane.b32.xlu1 %v16424_v32, %s14180_s25  ;;  %v17219_v32 = vld [vmem:[#allocation46_spill] sm:$0xff] }
 0xa72   : > { %v10415_v34 = vmul.f32 1.442695, %v10384_v51 }
 0xa74   : > { %14004 = vpow2.f32 %v10415_v34 }
 0xa75   : > { %6297 = vrot.lane.b32.xlu1 %v17217_v55, %s14179_s28 }
 0xa79   : > { %9018 = vrot.lane.b32.xlu1 %v16428_v61, %s14180_s25  ;;  %v17220_v61 = vld [vmem:[#allocation18_spill] sm:$0xff] }
 0xa7d   : > { %6301 = vrot.lane.b32.xlu1 %v17218_v36, %s14179_s28 }
 0xa7e   : > { %v16632_v13 = vpop.eup %14004 }
 0xa7f   : > { %v10462_v28 = vsel %vm1038_vm1, %v16632_v13, 0.0 }
 0xa80   : > { %10463 = vadd.xlane.f32.xlu0 %v10462_v28 }
 0xa81   : > { %9022 = vrot.lane.b32.xlu1 %v16432_v4, %s14180_s25  ;;  %v17223_v4 = vld [vmem:[#allocation31_spill] sm:$0xff] }
 0xa85   : > { %6305 = vrot.lane.b32.xlu1 %v17219_v32, %s14179_s28 }
 0xa89   : > { %9026 = vrot.lane.b32.xlu1 %v16436_v46, %s14180_s25  ;;  %v17224_v46 = vld [vmem:[#allocation41_spill] sm:$0xff] }
 0xa8d   : > { %6309 = vrot.lane.b32.xlu1 %v17220_v61, %s14179_s28 }
 0xa91   : > { %9030 = vrot.lane.b32.xlu1 %v16440_v40, %s14180_s25  ;;  %v17225_v40 = vld [vmem:[#allocation29_spill] sm:$0xff] }
 0xa95   : > { %6313 = vrot.lane.b32.xlu1 %v17221_v37, %s14179_s28 }
 0xa96   : > { %11561 = vrot.lane.b32.xlu0 %v17222_v17, %s14178_s14  ;;  %s16874_s14 = scalar_lea.vmem [#allocation8], %s14407_s16  ;;  %s12387_s16 = sshll.u32 %s14265_s21, 11 }
 0xa97   : > { %s16895_s12 = scalar_lea.hbm %s16955_s11, %s12387_s16  ;;  %s14182_s21 = smov [#allocation8]  }
 0xa98   : > { %s14102_s1 = sshll.u32 %s14182_s21, 4  ;;  %s14103_s1 = int_to_ptr.vmem [resolvable:$false] %s14102_s1 }
 0xa99   : > { %9034 = vrot.lane.b32.xlu1 %v16444_v8, %s14180_s25  ;;  %v17226_v8 = vld [vmem:[#allocation49_spill] sm:$0xff]  ;;  %s14104_s15 = scalar_lea.vmem %s14103_s1, 4096 }
 0xa9a   : > { %6287 = vrot.lane.b32.xlu0 %v17223_v4, %s14179_s28 }
 0xa9d   : > { %6317 = vrot.lane.b32.xlu1 %v17224_v46, %s14179_s28 }
 0xa9e   : > { %9008 = vrot.lane.b32.xlu0 %v16418_v30, %s14180_s25  ;;  %v16674_v30 = vpop.permute.xlu0 %11409 }
 0xaa1   : > { %9038 = vrot.lane.b32.xlu1 %v16448_v52, %s14180_s25  ;;  %v17228_v52 = vld [vmem:[#allocation44_spill] sm:$0xff] }
 0xaa2   : > { %6291 = vrot.lane.b32.xlu0 %v17225_v40, %s14179_s28 }
 0xaa6   : > { %9012 = vrot.lane.b32.xlu0 %v16420_v19, %s14180_s25  ;;  %v16678_v19 = vpop.permute.xlu1 %11485 }
 0xaaa   : > { %6295 = vrot.lane.b32.xlu0 %v17226_v8, %s14179_s28 }
 0xaae   : > { %9016 = vrot.lane.b32.xlu0 %v16426_v50, %s14180_s25 }
 0xab2   : > { %6299 = vrot.lane.b32.xlu0 %v17227_v54, %s14179_s28 }
 0xab6   : > { %9020 = vrot.lane.b32.xlu0 %v16430_v3, %s14180_s25 }
 0xaba   : > { %6303 = vrot.lane.b32.xlu0 %v17228_v52, %s14179_s28 }
 0xabd   : > { %v10419_v29 = vpop.xlane.xlu0 %10418 }
 0xabe   : > { %14006 = vrcp.f32 %v10419_v29  ;;  %9024 = vrot.lane.b32.xlu0 %v16434_v9, %s14180_s25  ;;  %v17230_v9 = vld [vmem:[#allocation39_spill] sm:$0xff] }
 0xac0   : > { %v10422_v50 = vpop.xlane.xlu1 %10421 }
 0xac1   : > { %14008 = vrcp.f32 %v10422_v50  ;;  %v10425_v6 = vpop.xlane.xlu0 %10424 }
 0xac2   : > { %14010 = vrcp.f32 %v10425_v6  ;;  %6307 = vrot.lane.b32.xlu0 %v17229_v53, %s14179_s28 }
 0xac5   : > { %v10428_v3 = vpop.xlane.xlu1 %10427 }
 0xac6   : > { %9028 = vrot.lane.b32.xlu0 %v16438_v22, %s14180_s25  ;;  %14012 = vrcp.f32 %v10428_v3 }
 0xac8   : > { %v14007_v59 = vpop.eup %14006 }
 0xac9   : > { %v10481_v44 = vmul.f32 %v14007_v59, %v16544_v39  ;;  %v10431_v42 = vpop.xlane.xlu0 %10430  ;;  %v10434_v18 = vpop.xlane.xlu1 %10433 }
 0xaca   : > { %14014 = vrcp.f32 %v10431_v42  ;;  %6311 = vrot.lane.b32.xlu0 %v17230_v9, %s14179_s28 }
 0xacb   : > { %v14009_v60 = vpop.eup %14008  ;;  %14016 = vrcp.f32 %v10434_v18  ;;  %13491 = vmatmul.mubr.msk.f32.vlgmr.msra.gmra.mrb[128].mxu0 %vm1038_vm1, %v10481_v44 }
 0xacc   : > { %v14011_v23 = vpop.eup %14010  ;;  %v10482_v35 = vmul.f32 %v14009_v60, %v16550_v11  ;;  %13499 = vmatpush3.msra.mxu0 %v16526_v56  ;;  %13500 = vmatprep.mubr.msk.f32.mxu0 %vm14175_vm0, %v17066_v15 }
 0xacd   : > { %v10483_v22 = vmul.f32 %v14011_v23, %v16552_v49  ;;  %v10437_v39 = vpop.xlane.xlu0 %10436  ;;  %v10440_v43 = vpop.xlane.xlu1 %10439  ;;  %13508 = vmatprep.subr.mxu0 %v17066_v15 }
 0xace   : > { %14018 = vrcp.f32 %v10437_v39  ;;  %9032 = vrot.lane.b32.xlu0 %v16442_v47, %s14180_s25  ;;  %13496 = vmatmul.mubr.msk.f32.vlgmr.msra.gmra.mrb[144].mxu1 %vm1038_vm1, %v10482_v35  ;;  %v17231_v47 = vld [vmem:[#allocation34_spill] sm:$0xff] }
 0xacf   : > { %13504 = vmatpush3.msra.mxu1 %v16522_v45  ;;  %14020 = vrcp.f32 %v10440_v43  ;;  %13501 = vmatmul.mubr.msk.f32.vlgmr.msra.gmra.mrb[130].mxu0 %vm1038_vm1, %v10483_v22 }
 0xad0   : > { %v14013_v56 = vpop.eup %14012  ;;  %13509 = vmatpush3.msra.mxu0 %v16524_v26  ;;  %13505 = vmatprep.mubr.msk.f32.mxu1 %vm14175_vm0, %v17066_v15 }
 0xad1   : > { %v10484_v11 = vmul.f32 %v14013_v56, %v16560_v57  ;;  %v10443_v49 = vpop.xlane.xlu0 %10442  ;;  %v10446_v41 = vpop.xlane.xlu1 %10445  ;;  %13513 = vmatprep.subr.mxu1 %v17066_v15  ;;  %13510 = vmatprep.mubr.msk.f32.mxu0 %vm14175_vm0, %v17066_v15 }
 0xad2   : > { %14022 = vrcp.f32 %v10443_v49  ;;  %6315 = vrot.lane.b32.xlu0 %v17231_v47, %s14179_s28  ;;  %13518 = vmatprep.subr.mxu0 %v17066_v15 }
 0xad3   : > { %14024 = vrcp.f32 %v10446_v41  ;;  %13506 = vmatmul.mubr.msk.f32.vlgmr.msra.gmra.mrb[146].mxu1 %vm1038_vm1, %v10484_v11 }
 0xad4   : > { %v14015_v45 = vpop.eup %14014  ;;  %13514 = vmatpush3.msra.mxu1 %v16528_v62  ;;  %13515 = vmatprep.mubr.msk.f32.mxu1 %vm14175_vm0, %v17066_v15 }
 0xad5   : > { %v14017_v26 = vpop.eup %14016  ;;  %v10485_v57 = vmul.f32 %v14015_v45, %v16568_v48  ;;  %v10449_v58 = vpop.xlane.xlu0 %10448  ;;  %13523 = vmatprep.subr.mxu1 %v17066_v15  ;;  %v11810_v45 = vld [vmem:[%s16953_s9] sm:$0xff] }
 0xad6   : > { %v10452_v2 = vpop.xlane.xlu1 %10451  ;;  %v10486_v51 = vmul.f32 %v14017_v26, %v16566_v31  ;;  %14026 = vrcp.f32 %v10449_v58  ;;  %9036 = vrot.lane.b32.xlu0 %v16446_v63, %s14180_s25  ;;  %v11811_v26 = vld [vmem:[%s16953_s9 + $0x8] sm:$0xff]  ;;  %v11812_v58 = vld [vmem:[%s16953_s9 + $0x10] sm:$0xff]  ;;  %s12045_s25 = sshll.u32 %s16874_s14, 4  ;;  %s16897_s25 = int_to_ptr.vmem [resolvable:$true] %s12045_s25 }
 0xad7   : > { %14028 = vrcp.f32 %v10452_v2  ;;  %13511 = vmatmul.mubr.msk.f32.vlgmr.msra.gmra.mrb[132].mxu0 %vm1038_vm1, %v10485_v57  ;;  %v13696_v57 = vpack.c.bf16 %v11811_v26, %v11810_v45  ;;  %v11813_v2 = vld [vmem:[%s16953_s9 + $0x18] sm:$0xff]  ;;  %s14098_s27 = scalar_lea.vmem %s16897_s25, 2048  ;;  %p14105_p7 = scmp.lt.s32.totalorder %s16897_s25, %s14103_s1 }
 0xad8   : > { %v14019_v62 = vpop.eup %14018  ;;  %13516 = vmatmul.mubr.msk.f32.vlgmr.msra.gmra.mrb[148].mxu1 %vm1038_vm1, %v10486_v51  ;;  %13519 = vmatpush3.msra.mxu0 %v16530_v14  ;;  %v13700_v51 = vpack.c.bf16 %v11813_v2, %v11812_v58  ;;  %p14099_p1 = scmp.ne.s32.totalorder %s16897_s25, %s14098_s27  ;;  %p14106_p9 = scmp.lt.s32.totalorder %s14104_s15, %s14098_s27 }
 0xad9   : > { %v14021_v34 = vpop.eup %14020  ;;  %v10487_v48 = vmul.f32 %v14019_v62, %v16578_v20  ;;  %13524 = vmatpush3.msra.mxu1 %v16532_v21  ;;  %v10455_v55 = vpop.xlane.xlu0 %10454  ;;  %13520 = vmatprep.mubr.msk.f32.mxu0 %vm14175_vm0, %v17066_v15 }
 0xada   : > { %v10458_v36 = vpop.xlane.xlu1 %10457  ;;  %v10488_v63 = vmul.f32 %v14021_v34, %v16576_v33  ;;  %14030 = vrcp.f32 %v10455_v55  ;;  %13525 = vmatprep.mubr.msk.f32.mxu1 %vm14175_vm0, %v17066_v15  ;;  %13528 = vmatprep.subr.mxu0 %v17066_v15  ;;  %p14100_p10 = pnand %p14099_p1, %p17232_p12  ;;  %p14107_p11 = por %p14106_p9, %p14105_p7 }
 0xadb   : > { %14032 = vrcp.f32 %v10458_v36  ;;  %13533 = vmatprep.subr.mxu1 %v17066_v15  ;;  %13521 = vmatmul.mubr.msk.f32.vlgmr.msra.gmra.mrb[134].mxu0 %vm1038_vm1, %v10487_v48 }
 0xadc   : > { %v14023_v14 = vpop.eup %14022  ;;  %13526 = vmatmul.mubr.msk.f32.vlgmr.msra.gmra.mrb[150].mxu1 %vm1038_vm1, %v10488_v63  ;;  %13529 = vmatpush3.msra.mxu0 %v16534_v24  ;;  %p14101_p5 = pneg %p14100_p10 }
 0xadd   : > { %v14025_v21 = vpop.eup %14024  ;;  %v10489_v31 = vmul.f32 %v14023_v14, %v16587_v38  ;;  %13534 = vmatpush3.msra.mxu1 %v16536_v27  ;;  %13530 = vmatprep.mubr.msk.f32.mxu0 %vm14175_vm0, %v17066_v15 }
 0xade   : > { %v10461_v33 = vpop.xlane.xlu1 %10460  ;;  %v10490_v20 = vmul.f32 %v14025_v21, %v16585_v12  ;;  %13535 = vmatprep.mubr.msk.f32.mxu1 %vm14175_vm0, %v17066_v15  ;;  %13538 = vmatprep.subr.mxu0 %v17066_v15  ;;  %p14108_p3 = pnand %p14107_p11, %p14101_p5 }
 0xadf   : > { %13543 = vmatprep.subr.mxu1 %v17066_v15  ;;  %13531 = vmatmul.mubr.msk.f32.vlgmr.msra.gmra.mrb[136].mxu0 %vm1038_vm1, %v10489_v31  ;;  %14034 = vrcp.f32 %v10461_v33 }
 0xae0   : > { %v14027_v24 = vpop.eup %14026  ;;  %13536 = vmatmul.mubr.msk.f32.vlgmr.msra.gmra.mrb[152].mxu1 %vm1038_vm1, %v10490_v20  ;;  %13539 = vmatpush3.msra.mxu0 %v16670_v1 }
 0xae1   : > { %v14029_v27 = vpop.eup %14028  ;;  %v10491_v38 = vmul.f32 %v14027_v24, %v16595_v7  ;;  %13544 = vmatpush3.msra.mxu1 %v16619_v25  ;;  %13540 = vmatprep.mubr.msk.f32.mxu0 %vm14175_vm0, %v17066_v15 }
 0xae2   : > { %v11638_v12 = vpop.permute.xlu1 %11637  ;;  %v10492_v28 = vmul.f32 %v14029_v27, %v16593_v10  ;;  %13545 = vmatprep.mubr.msk.f32.mxu1 %vm14175_vm0, %v17066_v15  ;;  %13548 = vmatprep.subr.mxu0 %v17066_v15 }
 0xae3   : > { %13553 = vmatprep.subr.mxu1 %v17066_v15  ;;  %13541 = vmatmul.mubr.msk.f32.vlgmr.msra.gmra.mrb[138].mxu0 %vm1038_vm1, %v10491_v38 }
 0xae4   : > { %v14031_v32 = vpop.eup %14030  ;;  %13546 = vmatmul.mubr.msk.f32.vlgmr.msra.gmra.mrb[154].mxu1 %vm1038_vm1, %v10492_v28  ;;  %13549 = vmatpush3.msra.mxu0 %v16674_v30 }
 0xae5   : > { %v14033_v7 = vpop.eup %14032  ;;  %v10493_v25 = vmul.f32 %v14031_v32, %v16603_v0  ;;  %13554 = vmatpush3.msra.mxu1 %v16678_v19  ;;  %13550 = vmatprep.mubr.msk.f32.mxu0 %vm14175_vm0, %v17066_v15 }
 0xae6   : > { %v6290_v10 = vpop.permute.xlu1 %6289  ;;  %v10494_v61 = vmul.f32 %v14033_v7, %v16601_v16  ;;  %13555 = vmatprep.mubr.msk.f32.mxu1 %vm14175_vm0, %v17066_v15  ;;  %13563 = vmatprep.subr.mxu1 %v17066_v15 }
 0xae7   : > { %6337 = vst.msk [vmem:[#allocation2 + $0x8] sm:$0xff] %vm6335_vm2, %v6290_v10  ;;  %13551 = vmatmul.mubr.msk.f32.vlgmr.msra.gmra.mrb[140].mxu0 %vm1038_vm1, %v10493_v25  ;;  %13558 = vmatprep.subr.mxu0 %v17066_v15 }
 0xae8   : > { %13556 = vmatmul.mubr.msk.f32.vlgmr.msra.gmra.mrb[156].mxu1 %vm1038_vm1, %v10494_v61  ;;  %13560 = vmatprep.mubr.msk.f32.mxu0 %vm14175_vm0, %v17066_v15 }
 0xae9   : > { %13564 = vmatpush3.msra.mxu1 %v11638_v12  ;;  %13565 = vmatprep.mubr.msk.f32.mxu1 %vm14175_vm0, %v17066_v15  ;;  %v14035_v30 = vpop.eup %14034 }
 0xaea   : > { %v9011_v0 = vpop.permute.xlu1 %9010  ;;  %v10495_v52 = vmul.f32 %v14035_v30, %v16609_v5 }
 0xaeb   : > { %9058 = vst.msk [vmem:[#allocation2 + $0x8] sm:$0xff] %vm9056_vm3, %v9011_v0 }
 0xaee   : > { %v6294_v16 = vpop.permute.xlu1 %6293 }
 0xaef   : > { %6339 = vst.msk [vmem:[#allocation2 + $0x18] sm:$0xff] %vm6335_vm2, %v6294_v16 }
 0xaf2   : > { %v9015_v37 = vpop.permute.xlu1 %9014 }
 0xaf3   : > { %9060 = vst.msk [vmem:[#allocation2 + $0x18] sm:$0xff] %vm9056_vm3, %v9015_v37 }
 0xaf6   : > { %v6298_v17 = vpop.permute.xlu1 %6297 }
 0xaf7   : > { %6341 = vst.msk [vmem:[#allocation2 + $0x28] sm:$0xff] %vm6335_vm2, %v6298_v17 }
 0xafa   : > { %v9019_v4 = vpop.permute.xlu1 %9018 }
 0xafb   : > { %9062 = vst.msk [vmem:[#allocation2 + $0x28] sm:$0xff] %vm9056_vm3, %v9019_v4 }
 0xafe   : > { %v6302_v46 = vpop.permute.xlu1 %6301 }
 0xaff   : > { %6343 = vst.msk [vmem:[#allocation2 + $0x38] sm:$0xff] %vm6335_vm2, %v6302_v46 }
 0xb02   : > { %v9023_v40 = vpop.permute.xlu1 %9022 }
 0xb03   : > { %9064 = vst.msk [vmem:[#allocation2 + $0x38] sm:$0xff] %vm9056_vm3, %v9023_v40 }
 0xb06   : > { %v6306_v15 = vpop.permute.xlu1 %6305 }
 0xb07   : > { %6345 = vst.msk [vmem:[#allocation2 + $0x48] sm:$0xff] %vm6335_vm2, %v6306_v15 }
 0xb0a   : > { %v9027_v8 = vpop.permute.xlu1 %9026 }
 0xb0b   : > { %9066 = vst.msk [vmem:[#allocation2 + $0x48] sm:$0xff] %vm9056_vm3, %v9027_v8 }
 0xb0d   : > { %v10464_v54 = vpop.xlane.xlu0 %10463 }
 0xb0e   : > { %v6310_v1 = vpop.permute.xlu1 %6309  ;;  %14036 = vrcp.f32 %v10464_v54 }
 0xb0f   : > { %6347 = vst.msk [vmem:[#allocation2 + $0x58] sm:$0xff] %vm6335_vm2, %v6310_v1 }
 0xb11   : > { %v11562_v19 = vpop.permute.xlu0 %11561 }
 0xb12   : > { %v9031_v29 = vpop.permute.xlu1 %9030  ;;  %13559 = vmatpush3.msra.mxu0 %v11562_v19 }
 0xb13   : > { %9068 = vst.msk [vmem:[#allocation2 + $0x58] sm:$0xff] %vm9056_vm3, %v9031_v29  ;;  %13561 = vmatmul.mubr.msk.f32.vlgmr.msra.gmra.mrb[142].mxu0 %vm1038_vm1, %v10495_v52  ;;  %13697 = vmatprep.subr.bf16.mxu0 %v13696_v57 }
 0xb14   : > { %13699 = vmatpush3.bf16.msra.mxu0 %v13696_v57 }
 0xb15   : > { %v6288_v50 = vpop.permute.xlu0 %6287  ;;  %13701 = vmatprep.subr.bf16.mxu0 %v13700_v51 }
 0xb16   : > { %v6314_v6 = vpop.permute.xlu1 %6313  ;;  %6336 = vst.msk [vmem:[#allocation2] sm:$0xff] %vm6335_vm2, %v6288_v50 }
 0xb17   : > { %6349 = vst.msk [vmem:[#allocation2 + $0x68] sm:$0xff] %vm6335_vm2, %v6314_v6 }
 0xb18   : > { %v14037_v53 = vpop.eup %14036  ;;  %13703 = vmatpush3.bf16.msra.mxu0 %v13700_v51 }
 0xb19   : > { %v10496_v3 = vmul.f32 %v14037_v53, %v16632_v13  ;;  %v9009_v59 = vpop.permute.xlu0 %9008 }
 0xb1a   : > { %v9035_v44 = vpop.permute.xlu1 %9034  ;;  %9057 = vst.msk [vmem:[#allocation2] sm:$0xff] %vm9056_vm3, %v9009_v59 }
 0xb1b   : > { %9070 = vst.msk [vmem:[#allocation2 + $0x68] sm:$0xff] %vm9056_vm3, %v9035_v44  ;;  %13566 = vmatmul.mubr.msk.f32.vlgmr.msra.gmra.mrb[158].mxu1 %vm1038_vm1, %v10496_v3 }
 0xb1d   : > { %v6292_v5 = vpop.permute.xlu0 %6291 }
 0xb1e   : > { %v6318_v42 = vpop.permute.xlu1 %6317  ;;  %6338 = vst.msk [vmem:[#allocation2 + $0x10] sm:$0xff] %vm6335_vm2, %v6292_v5 }
 0xb1f   : > { %6351 = vst.msk [vmem:[#allocation2 + $0x78] sm:$0xff] %vm6335_vm2, %v6318_v42 }
 0xb21   : > { %v9013_v18 = vpop.permute.xlu0 %9012 }
 0xb22   : > { %v9039_v9 = vpop.permute.xlu1 %9038  ;;  %9059 = vst.msk [vmem:[#allocation2 + $0x10] sm:$0xff] %vm9056_vm3, %v9013_v18 }
 0xb23   : > { %9072 = vst.msk [vmem:[#allocation2 + $0x78] sm:$0xff] %vm9056_vm3, %v9039_v9 }
 0xb25   : > { %v6296_v13 = vpop.permute.xlu0 %6295 }
 0xb26   : > { %6340 = vst.msk [vmem:[#allocation2 + $0x20] sm:$0xff] %vm6335_vm2, %v6296_v13 }
 0xb29   : > { %v9017_v60 = vpop.permute.xlu0 %9016 }
 0xb2a   : > { %9061 = vst.msk [vmem:[#allocation2 + $0x20] sm:$0xff] %vm9056_vm3, %v9017_v60 }
 0xb2d   : > { %v6300_v23 = vpop.permute.xlu0 %6299 }
 0xb2e   : > { %6342 = vst.msk [vmem:[#allocation2 + $0x30] sm:$0xff] %vm6335_vm2, %v6300_v23 }
 0xb31   : > { %v9021_v35 = vpop.permute.xlu0 %9020 }
 0xb32   : > { %9063 = vst.msk [vmem:[#allocation2 + $0x30] sm:$0xff] %vm9056_vm3, %v9021_v35 }
 0xb35   : > { %v6304_v22 = vpop.permute.xlu0 %6303 }
 0xb36   : > { %6344 = vst.msk [vmem:[#allocation2 + $0x40] sm:$0xff] %vm6335_vm2, %v6304_v22 }
 0xb39   : > { %v9025_v39 = vpop.permute.xlu0 %9024 }
 0xb3a   : > { %9065 = vst.msk [vmem:[#allocation2 + $0x40] sm:$0xff] %vm9056_vm3, %v9025_v39 }
 0xb3d   : > { %v6308_v43 = vpop.permute.xlu0 %6307 }
 0xb3e   : > { %6346 = vst.msk [vmem:[#allocation2 + $0x50] sm:$0xff] %vm6335_vm2, %v6308_v43 }
 0xb41   : > { %v9029_v56 = vpop.permute.xlu0 %9028 }
 0xb42   : > { %9067 = vst.msk [vmem:[#allocation2 + $0x50] sm:$0xff] %vm9056_vm3, %v9029_v56 }
 0xb45   : > { %v6312_v11 = vpop.permute.xlu0 %6311 }
 0xb46   : > { %6348 = vst.msk [vmem:[#allocation2 + $0x60] sm:$0xff] %vm6335_vm2, %v6312_v11 }
 0xb49   : > { %v9033_v49 = vpop.permute.xlu0 %9032 }
 0xb4a   : > { %9069 = vst.msk [vmem:[#allocation2 + $0x60] sm:$0xff] %vm9056_vm3, %v9033_v49 }
 0xb4d   : > { %v6316_v41 = vpop.permute.xlu0 %6315 }
 0xb4e   : > { %6350 = vst.msk [vmem:[#allocation2 + $0x70] sm:$0xff] %vm6335_vm2, %v6316_v41 }
 0xb51   : > { %v9037_v47 = vpop.permute.xlu0 %9036 }
 0xb52   : > { %9071 = vst.msk [vmem:[#allocation2 + $0x70] sm:$0xff] %vm9056_vm3, %v9037_v47 }
 0xb9e   : > { %v10569_v62 = vpop.f32.mrb[128].mxu0 }
 0xb9f   : > { %v13492_v34 = vpop.f32.mrb[129].mxu0  ;;  %11729 = vrot.lane.b32.xlu0 %v10569_v62, %s14181_s23  ;;  %v12363_v62 = vld [vmem:[%s16954_s10] ss:$0 sm:$0xff] }
 0xba1   : > { %v10645_v48 = vpop.f32.mrb[144].mxu1 }
 0xba2   : > { %11731 = vrot.lane.b32.xlu1 %v10645_v48, %s14181_s23  ;;  %v13497_v55 = vpop.f32.mrb[145].mxu1  ;;  %v10721_v36 = vpop.f32.mrb[130].mxu0 }
 0xba3   : > { %v13502_v63 = vpop.f32.mrb[131].mxu0  ;;  %11733 = vrot.lane.b32.xlu0 %v10721_v36, %s14181_s23 }
 0xba6   : > { %v10797_v14 = vpop.f32.mrb[146].mxu1 }
 0xba7   : > { %11735 = vrot.lane.b32.xlu1 %v10797_v14, %s14181_s23  ;;  %v13507_v21 = vpop.f32.mrb[147].mxu1 }
 0xbaa   : > { %v10873_v31 = vpop.f32.mrb[132].mxu0 }
 0xbab   : > { %v10949_v33 = vpop.f32.mrb[148].mxu1  ;;  %v13512_v20 = vpop.f32.mrb[133].mxu0  ;;  %11737 = vrot.lane.b32.xlu0 %v10873_v31, %s14181_s23 }
 0xbac   : > { %11739 = vrot.lane.b32.xlu1 %v10949_v33, %s14181_s23  ;;  %v13517_v24 = vpop.f32.mrb[149].mxu1 }
 0xbae   : > { %v11025_v27 = vpop.f32.mrb[134].mxu0 }
 0xbaf   : > { %v11101_v38 = vpop.f32.mrb[150].mxu1  ;;  %v13522_v12 = vpop.f32.mrb[135].mxu0  ;;  %11741 = vrot.lane.b32.xlu0 %v11025_v27, %s14181_s23 }
 0xbb0   : > { %11743 = vrot.lane.b32.xlu1 %v11101_v38, %s14181_s23  ;;  %v13527_v28 = vpop.f32.mrb[151].mxu1 }
 0xbb2   : > { %v11177_v32 = vpop.f32.mrb[136].mxu0 }
 0xbb3   : > { %v11253_v7 = vpop.f32.mrb[152].mxu1  ;;  %v13532_v25 = vpop.f32.mrb[137].mxu0  ;;  %11745 = vrot.lane.b32.xlu0 %v11177_v32, %s14181_s23 }
 0xbb4   : > { %11747 = vrot.lane.b32.xlu1 %v11253_v7, %s14181_s23  ;;  %v13537_v10 = vpop.f32.mrb[153].mxu1 }
 0xbb6   : > { %v11329_v61 = vpop.f32.mrb[138].mxu0 }
 0xbb7   : > { %v11405_v0 = vpop.f32.mrb[154].mxu1  ;;  %v13542_v16 = vpop.f32.mrb[139].mxu0  ;;  %11749 = vrot.lane.b32.xlu0 %v11329_v61, %s14181_s23 }
 0xbb8   : > { %11751 = vrot.lane.b32.xlu1 %v11405_v0, %s14181_s23  ;;  %v13547_v37 = vpop.f32.mrb[155].mxu1 }
 0xbba   : > { %v11481_v17 = vpop.f32.mrb[140].mxu0 }
 0xbbb   : > { %v11557_v4 = vpop.f32.mrb[156].mxu1  ;;  %v13552_v46 = vpop.f32.mrb[141].mxu0  ;;  %11753 = vrot.lane.b32.xlu0 %v11481_v17, %s14181_s23 }
 0xbbc   : > { %11755 = vrot.lane.b32.xlu1 %v11557_v4, %s14181_s23  ;;  %v13557_v40 = vpop.f32.mrb[157].mxu1 }
 0xbe6   : > { %v11633_v15 = vpop.f32.mrb[142].mxu0 }
 0xbe7   : > { %11757 = vrot.lane.b32.xlu0 %v11633_v15, %s14181_s23  ;;  %v13562_v8 = vpop.f32.mrb[143].mxu0 }
 0xbee   : > { %v11709_v54 = vpop.f32.mrb[158].mxu1 }
 0xbef   : > { %11759 = vrot.lane.b32.xlu1 %v11709_v54, %s14181_s23  ;;  %v13567_v1 = vpop.f32.mrb[159].mxu1 }
 0xc11   : > { %v11730_v30 = vpop.permute.xlu0 %11729 }
 0xc12   : > { %11778 = vst.msk [vmem:[#allocation2] sm:$0xff] %vm11777_vm4, %v11730_v30 }
 0xc14   : > { %v11732_v52 = vpop.permute.xlu1 %11731 }
 0xc15   : > { %11779 = vst.msk [vmem:[#allocation2 + $0x8] sm:$0xff] %vm11777_vm4, %v11732_v52  ;;  %v11734_v19 = vpop.permute.xlu0 %11733 }
 0xc16   : > { %11780 = vst.msk [vmem:[#allocation2 + $0x10] sm:$0xff] %vm11777_vm4, %v11734_v19 }
 0xc19   : > { %v11736_v29 = vpop.permute.xlu1 %11735  ;;  %v11794_v50 = vld [vmem:[#allocation2] sm:$0xff] }
 0xc1a   : > { %11781 = vst.msk [vmem:[#allocation2 + $0x18] sm:$0xff] %vm11777_vm4, %v11736_v29  ;;  %13576 = vmatprep.mubr.msk.f32.mxu0 %vm11821_vm5, %v11794_v50 }
 0xc1c   : > { %v11795_v6 = vld [vmem:[#allocation2 + $0x8] sm:$0xff] }
 0xc1d   : > { %13577 = vmatmul.mubr.msk.f32.vlgmr.msra.gmra.mrb[144].mxu0 %vm11821_vm5, %v11795_v6  ;;  %v11738_v53 = vpop.permute.xlu0 %11737  ;;  %v11796_v3 = vld [vmem:[#allocation2 + $0x10] sm:$0xff] }
 0xc1e   : > { %11782 = vst.msk [vmem:[#allocation2 + $0x20] sm:$0xff] %vm11777_vm4, %v11738_v53  ;;  %v11740_v59 = vpop.permute.xlu1 %11739  ;;  %13579 = vmatprep.mubr.msk.f32.mxu0 %vm11821_vm5, %v11796_v3 }
 0xc1f   : > { %11783 = vst.msk [vmem:[#allocation2 + $0x28] sm:$0xff] %vm11777_vm4, %v11740_v59 }
 0xc21   : > { %v11742_v44 = vpop.permute.xlu0 %11741  ;;  %v11797_v5 = vld [vmem:[#allocation2 + $0x18] sm:$0xff] }
 0xc22   : > { %11784 = vst.msk [vmem:[#allocation2 + $0x30] sm:$0xff] %vm11777_vm4, %v11742_v44  ;;  %v11744_v42 = vpop.permute.xlu1 %11743  ;;  %13580 = vmatmul.mubr.msk.f32.gmra.mrb[146].mxu0 %vm11821_vm5, %v11797_v5 }
 0xc23   : > { %11785 = vst.msk [vmem:[#allocation2 + $0x38] sm:$0xff] %vm11777_vm4, %v11744_v42 }
 0xc25   : > { %v11746_v18 = vpop.permute.xlu0 %11745  ;;  %v11798_v9 = vld [vmem:[#allocation2 + $0x20] sm:$0xff] }
 0xc26   : > { %11786 = vst.msk [vmem:[#allocation2 + $0x40] sm:$0xff] %vm11777_vm4, %v11746_v18  ;;  %v11748_v13 = vpop.permute.xlu1 %11747  ;;  %13582 = vmatprep.mubr.msk.f32.mxu0 %vm11821_vm5, %v11798_v9  ;;  %v11799_v60 = vld [vmem:[#allocation2 + $0x28] sm:$0xff] }
 0xc27   : > { %11787 = vst.msk [vmem:[#allocation2 + $0x48] sm:$0xff] %vm11777_vm4, %v11748_v13  ;;  %13583 = vmatmul.mubr.msk.f32.gmra.mrb[148].mxu0 %vm11821_vm5, %v11799_v60 }
 0xc29   : > { %v11750_v23 = vpop.permute.xlu0 %11749  ;;  %v11800_v35 = vld [vmem:[#allocation2 + $0x30] sm:$0xff] }
 0xc2a   : > { %11788 = vst.msk [vmem:[#allocation2 + $0x50] sm:$0xff] %vm11777_vm4, %v11750_v23  ;;  %v11752_v22 = vpop.permute.xlu1 %11751  ;;  %13585 = vmatprep.mubr.msk.f32.mxu0 %vm11821_vm5, %v11800_v35  ;;  %v11801_v39 = vld [vmem:[#allocation2 + $0x38] sm:$0xff] }
 0xc2b   : > { %11789 = vst.msk [vmem:[#allocation2 + $0x58] sm:$0xff] %vm11777_vm4, %v11752_v22  ;;  %13586 = vmatmul.mubr.msk.f32.gmra.mrb[150].mxu0 %vm11821_vm5, %v11801_v39 }
 0xc2d   : > { %v11754_v43 = vpop.permute.xlu0 %11753  ;;  %v11802_v56 = vld [vmem:[#allocation2 + $0x40] sm:$0xff] }
 0xc2e   : > { %11790 = vst.msk [vmem:[#allocation2 + $0x60] sm:$0xff] %vm11777_vm4, %v11754_v43  ;;  %v11756_v11 = vpop.permute.xlu1 %11755  ;;  %13588 = vmatprep.mubr.msk.f32.mxu0 %vm11821_vm5, %v11802_v56  ;;  %v11803_v49 = vld [vmem:[#allocation2 + $0x48] sm:$0xff] }
 0xc2f   : > { %11791 = vst.msk [vmem:[#allocation2 + $0x68] sm:$0xff] %vm11777_vm4, %v11756_v11  ;;  %13589 = vmatmul.mubr.msk.f32.gmra.mrb[152].mxu0 %vm11821_vm5, %v11803_v49 }
 0xc31   : > { %v11804_v41 = vld [vmem:[#allocation2 + $0x50] sm:$0xff] }
 0xc32   : > { %13591 = vmatprep.mubr.msk.f32.mxu0 %vm11821_vm5, %v11804_v41  ;;  %v11805_v47 = vld [vmem:[#allocation2 + $0x58] sm:$0xff] }
 0xc33   : > { %13592 = vmatmul.mubr.msk.f32.gmra.mrb[154].mxu0 %vm11821_vm5, %v11805_v47 }
 0xc35   : > { %v11806_v45 = vld [vmem:[#allocation2 + $0x60] sm:$0xff] }
 0xc36   : > { %13594 = vmatprep.mubr.msk.f32.mxu0 %vm11821_vm5, %v11806_v45  ;;  %v11807_v26 = vld [vmem:[#allocation2 + $0x68] sm:$0xff] }
 0xc37   : > { %13595 = vmatmul.mubr.msk.f32.gmra.mrb[156].mxu0 %vm11821_vm5, %v11807_v26 }
 0xc59   : > { %v11758_v57 = vpop.permute.xlu0 %11757 }
 0xc5a   : > { %11792 = vst.msk [vmem:[#allocation2 + $0x70] sm:$0xff] %vm11777_vm4, %v11758_v57 }
 0xc61   : > { %v11760_v58 = vpop.permute.xlu1 %11759  ;;  %v11808_v2 = vld [vmem:[#allocation2 + $0x70] sm:$0xff] }
 0xc62   : > { %11793 = vst.msk [vmem:[#allocation2 + $0x78] sm:$0xff] %vm11777_vm4, %v11760_v58  ;;  %13597 = vmatprep.mubr.msk.f32.mxu0 %vm11821_vm5, %v11808_v2 }
 0xc69   : > { %v11809_v51 = vld [vmem:[#allocation2 + $0x78] sm:$0xff] }
 0xc6a   : > { %13598 = vmatmul.mubr.msk.f32.gmra.mrb[158].mxu0 %vm11821_vm5, %v11809_v51 }
 0xcf0   : > { %v13578_v34 = vpop.f32.mrb[144].mxu0 }
 0xcf1   : > { %v11942_v48 = vadd.f32 %v13578_v34, %v12363_v62  ;;  %v11936_v55 = vpop.f32.mrb[145].mxu0 }
 0xcf2   : > { %v11937_v36 = vadd.f32 %v12363_v62, %v11936_v55 }
 0xcf3   : > { %12016 = vst [vmem:[%s16874_s14 + $0x8] sm:$0xff] %v11942_v48 }
 0xcf4   : > { %12015 = vst [vmem:[%s16874_s14] sm:$0xff] %v11937_v36 }
 0xcf5   : > { %v13581_v63 = vpop.f32.mrb[146].mxu0 }
 0xcf6   : > { %v11952_v14 = vadd.f32 %v13581_v63, %v12363_v62  ;;  %v11946_v21 = vpop.f32.mrb[147].mxu0 }
 0xcf7   : > { %v11947_v31 = vadd.f32 %v12363_v62, %v11946_v21 }
 0xcf8   : > { %12018 = vst [vmem:[%s16874_s14 + $0x18] sm:$0xff] %v11952_v14 }
 0xcf9   : > { %12017 = vst [vmem:[%s16874_s14 + $0x10] sm:$0xff] %v11947_v31 }
 0xcfa   : > { %v13584_v33 = vpop.f32.mrb[148].mxu0 }
 0xcfb   : > { %v11962_v20 = vadd.f32 %v13584_v33, %v12363_v62  ;;  %v11956_v24 = vpop.f32.mrb[149].mxu0 }
 0xcfc   : > { %v11957_v27 = vadd.f32 %v12363_v62, %v11956_v24 }
 0xcfd   : > { %12020 = vst [vmem:[%s16874_s14 + $0x28] sm:$0xff] %v11962_v20 }
 0xcfe   : > { %12019 = vst [vmem:[%s16874_s14 + $0x20] sm:$0xff] %v11957_v27  ;;  %v13587_v38 = vpop.f32.mrb[150].mxu0 }
 0xcff   : > { %v11972_v12 = vadd.f32 %v13587_v38, %v12363_v62  ;;  %v11966_v28 = vpop.f32.mrb[151].mxu0 }
 0xd00   : > { %v11967_v32 = vadd.f32 %v12363_v62, %v11966_v28 }
 0xd01   : > { %12022 = vst [vmem:[%s16874_s14 + $0x38] sm:$0xff] %v11972_v12 }
 0xd02   : > { %12021 = vst [vmem:[%s16874_s14 + $0x30] sm:$0xff] %v11967_v32  ;;  %v13590_v7 = vpop.f32.mrb[152].mxu0 }
 0xd03   : > { %v11982_v25 = vadd.f32 %v13590_v7, %v12363_v62  ;;  %v11976_v10 = vpop.f32.mrb[153].mxu0 }
 0xd04   : > { %v11977_v61 = vadd.f32 %v12363_v62, %v11976_v10 }
 0xd05   : > { %12024 = vst [vmem:[%s16874_s14 + $0x48] sm:$0xff] %v11982_v25 }
 0xd06   : > { %12023 = vst [vmem:[%s16874_s14 + $0x40] sm:$0xff] %v11977_v61  ;;  %v13593_v0 = vpop.f32.mrb[154].mxu0 }
 0xd07   : > { %v11992_v16 = vadd.f32 %v13593_v0, %v12363_v62  ;;  %v11986_v37 = vpop.f32.mrb[155].mxu0 }
 0xd08   : > { %v11987_v17 = vadd.f32 %v12363_v62, %v11986_v37 }
 0xd09   : > { %12026 = vst [vmem:[%s16874_s14 + $0x58] sm:$0xff] %v11992_v16 }
 0xd0a   : > { %12025 = vst [vmem:[%s16874_s14 + $0x50] sm:$0xff] %v11987_v17  ;;  %v13596_v4 = vpop.f32.mrb[156].mxu0 }
 0xd0b   : > { %v12002_v46 = vadd.f32 %v13596_v4, %v12363_v62  ;;  %v11996_v40 = vpop.f32.mrb[157].mxu0 }
 0xd0c   : > { %v11997_v15 = vadd.f32 %v12363_v62, %v11996_v40 }
 0xd0d   : > { %12028 = vst [vmem:[%s16874_s14 + $0x68] sm:$0xff] %v12002_v46 }
 0xd0e   : > { %12027 = vst [vmem:[%s16874_s14 + $0x60] sm:$0xff] %v11997_v15 }
 0xd3d   : > { %v13599_v8 = vpop.f32.mrb[158].mxu0 }
 0xd3e   : > { %v12012_v54 = vadd.f32 %v13599_v8, %v12363_v62  ;;  %v12006_v1 = vpop.f32.mrb[159].mxu0 }
 0xd3f   : > { %v12007_v30 = vadd.f32 %v12363_v62, %v12006_v1 }
 0xd40   : > { %12030 = vst [vmem:[%s16874_s14 + $0x78] sm:$0xff] %v12012_v54 }
 0xd41   : > { %12029 = vst [vmem:[%s16874_s14 + $0x70] sm:$0xff] %v12007_v30 }
 0xd42   : > { %14111 = shalt.err (!%p14108_p3)
}
 0xd43   : > { %s14112_s17 = scalar_lea.hbm %s16895_s12, 2048  ;;  %s14116_s19 = scalar_lea.hbm %s16955_s11, 4096 }
 0xd44   : > { %p14113_p8 = scmp.ne.s32.totalorder %s16895_s12, %s14112_s17  ;;  %p14117_p4 = scmp.lt.u32.totalorder %s16895_s12, %s16955_s11 }
 0xd45   : > { %p14118_p6 = scmp.lt.u32.totalorder %s14116_s19, %s14112_s17  ;;  %p14120_p1 = scmp.lt.u32.totalorder %s14112_s17, %s16895_s12 }
 0xd46   : > { %p14114_p0 = pnand %p14113_p8, %p17232_p12 }
 0xd47   : > { %p14119_p13 = por %p14118_p6, %p14117_p4 }
 0xd48   : > { %p14115_p2 = pneg %p14114_p0 }
 0xd49   : > { %p14121_p10 = por %p14120_p1, %p14119_p13 }
 0xd4b   : > { %p14122_p5 = pnand %p14121_p10, %p14115_p2 }
 0xd4d   : > { %14125 = shalt.err (!%p14122_p5)
}
 0xd4e   : > { %s14183_s22 = smov 128  }
 0xd4f   : > { %13724 = dma.vmem_to_hbm [thread:$0]  (%p17232_p12), %s16897_s25, 2048, %s16895_s12, %s12032_s13, %s14183_s22, %s14183_s22, %s14179_s28  }
 0xd50 PF: > { %s17233_s26 = sld [smem:[#allocation12_spill]]  ;;  %s17234_s27 = sld [smem:[#allocation16_spill]] }
 0xd51   : > { %p17236_p9 = scmp.ge.s32.totalorder %s14168_s20, 2 }
 0xd56   : > { %s12060_s21 = sand.u32 1, %s17233_s26   ;;  %p17235_p7 = scmp.ne.s32.totalorder %s17234_s27, 0 }
 0xd57   : > { %s12061_s1 = scalar_lea.sflag [#allocation5], %s12060_s21 }
 0xd58   : > { %p13734_p11 = pnand %p17236_p9, %p17235_p7 }
 0xd5a   : > { %14151 = dma.done.wait (!%p13734_p11), %s12061_s1, 2048  }
 0xd5b   : > { %14153 = vsyncadd (!%p13734_p11), %s12061_s1, 4294965248  ;;  %s17237_s20 = sld [smem:[#allocation14_spill]]  ;;  %s17238_s29 = sld [smem:[#allocation13_spill]] }
 0xd5c   : > { %s17239_s19 = sld [smem:[#allocation15_spill]]  ;;  %s17240_s17 = smov %s14160_s18 }
 0xd61   : > { %p27_p3 = scmp.ge.s32.totalorder %s17237_s20, 4   ;;  %s17241_s18 = smov %s17238_s29 }
 0xd63   :  { %29 = sbr.rel (!%p27_p3) target bundleno = 9 (0x9), region = 125 }
 0xd6a   :  { %12066 = vsyncpa [#allocation4], 1 }
 0xd6b   :  { %12068 = vsyncpa [#allocation4 + $0x1], 1 }
 0xd6c   :  { %12069 = vsyncpa [#allocation7], 1 }
 0xd6d   :  { %12071 = vsyncpa [#allocation7 + $0x1], 1 }
 0xd6e   :  { %12072 = vsyncpa [#allocation5], 1 }
 0xd6f   :  { %12074 = vsyncpa [#allocation5 + $0x1], 1 }

// kernel: tpu_custom_call.1
= control target key start
LH: loop header
LB: loop body
LE: loop exit
PB: predicated region body
PF: predicated region fallthrough
CT: control target
= control target key end

     0   :  { %s16944_s0 = inlined_call_operand.vmem [shape: f32[32,8,128], index: 0, kind: input, shape index: {}]   ;;  %s16945_s1 = inlined_call_operand.hbm [shape: f32[32,8,128], index: 1, kind: input, shape index: {}]   ;;  %s16946_s2 = inlined_call_operand.hbm [shape: f32[32,8,128], index: 2, kind: input, shape index: {}]   ;;  %s16947_s3 = inlined_call_operand.vmem [shape: f32[128,32], index: 3, kind: input, shape index: {}]   ;;  %s16948_s4 = inlined_call_operand.vmem [shape: f32[1,32], index: 4, kind: input, shape index: {}]   ;;  %s16949_s5 = inlined_call_operand.vmem [shape: f32[128,32], index: 5, kind: input, shape index: {}]   ;;  %s16950_s6 = inlined_call_operand.vmem [shape: f32[1,32], index: 6, kind: input, shape index: {}]   ;;  %s16951_s7 = inlined_call_operand.vmem [shape: f32[128,32], index: 7, kind: input, shape index: {}]   ;;  %s16952_s8 = inlined_call_operand.vmem [shape: f32[1,32], index: 8, kind: input, shape index: {}]   ;;  %s16953_s9 = inlined_call_operand.vmem [shape: f32[32,128], index: 9, kind: input, shape index: {}]   ;;  %s16954_s10 = inlined_call_operand.vmem [shape: f32[1,128], index: 10, kind: input, shape index: {}]   ;;  %s16955_s11 = inlined_call_operand.hbm [shape: f32[32,8,128], index: 11, kind: output, shape index: {}]  }
   0x1   :  { %17013 = sst [smem:[#allocation60_spill]] %s16945_s1 }
   0x2   :  { %16 = vsyncpa [#allocation4], 0 }
   0x3   :  { %18 = vsyncpa [#allocation4 + $0x1], 0 }
   0x4   :  { %19 = vsyncpa [#allocation7], 0 }
   0x5   :  { %21 = vsyncpa [#allocation7 + $0x1], 0 }
   0x6   :  { %22 = vsyncpa [#allocation5], 0 }
   0x7   :  { %24 = vsyncpa [#allocation5 + $0x1], 0  ;;  %s14244_s17 = smov 0   ;;  %s14246_s18 = smov 0  }
   0x8   :  { %s14248_s19 = smov 0   ;;  %s14250_s20 = smov 0  }
   0x9 LB: > { %17014 = sst [smem:[#allocation12_spill]] %s14156_s17  ;;  %s14265_s21 = sadd.s32 4294967295, %s14168_s20   ;;  %s14168_s20 = sphi %s14250_s20, %s17237_s20   ;;  %s14164_s19 = sphi %s14248_s19, %s17239_s19   ;;  %s14160_s18 = sphi %s14246_s18, %s17241_s18   ;;  %s14156_s17 = sphi %s14244_s17, %s17240_s17  }
   0xa   : > { %17015 = sst [smem:[#allocation13_spill]] %s14164_s19  ;;  %s12153_s22 = sadd.s32 4294967294, %s14168_s20  }
   0xb   : > { %s14269_s23 = sadd.s32 1, %s14168_s20   ;;  %s63_s24 = sadd.s32 1, %s14164_s19 }
   0xc   : > { %17016 = sst [smem:[#allocation14_spill]] %s14269_s23  ;;  %s60_s25 = ssub.s32 %s14168_s20, %s14269_s23 }
   0xd   : > { %p70_p0 = scmp.ne.s32.totalorder %s14164_s19, %s14160_s18  ;;  %p61_p1 = scmp.eq.s32.totalorder %s60_s25, 0 }
   0xe   : > { %p71_p2 = scmp.eq.s32.totalorder %s14168_s20, 0  ;;  %p76_p3 = scmp.ne.s32.totalorder %s14160_s18, %s14156_s17 }
   0xf   : > { %p77_p4 = scmp.eq.s32.totalorder %s14265_s21, 0  ;;  %p294_p7 = scmp.eq.s32.totalorder %s14265_s21, 1 }
  0x10   : > { %s14281_s26 = scalar_select %p61_p1, %s14164_s19, %s63_s24  }
  0x11   : > { %p14283_p5 = por %p71_p2, %p70_p0  ;;  %p14287_p6 = por %p77_p4, %p76_p3 }
  0x12   : > { %17017 = sst [smem:[#allocation15_spill]] %s14281_s26  ;;  %p300_p8 = scmp.eq.s32.totalorder %s12153_s22, 1 }
  0x13   : > { %s17019_s28 = scalar_select %p14287_p6, 1, 0 }
  0x14   : > { %p13737_p10 = scmp.lt.s32.totalorder %s14168_s20, 2  ;;  %p14294_p11 = por %p294_p7, %p70_p0 }
  0x15   : > { %p14298_p12 = por %p300_p8, %p76_p3  ;;  %s14303_s12 = sand.u32 1, %s14164_s19  }
  0x16   : > { %s17020_s29 = scalar_select %p14294_p11, 1, 0 }
  0x17   : > { %s17021_s30 = scalar_select %p14298_p12, 1, 0 }
  0x18   : > { %s16958_s13 = sshll.u32 %s14168_s20, 11  ;;  %s16957_s14 = sshll.u32 %s14303_s12, 7 }
  0x19   : > { %17022 = sst [smem:[#allocation16_spill]] %s17021_s30  ;;  %s17023_s1 = sld [smem:[#allocation60_spill]] }
  0x1a   : > { %s357_s24 = scalar_lea.vmem [#allocation3], %s16957_s14  ;;  %p14318_p13 = pnand %p13737_p10, %p14283_p5 }
  0x1b   : > { %s364_s25 = sshll.u32 %s357_s24, 4  ;;  %s14322_s25 = int_to_ptr.vmem [resolvable:$true] %s364_s25 }
  0x1c   : > { %p14040_p1 = pneg %p14318_p13 }
  0x1f   : > { %s14312_s22 = scalar_lea.hbm %s17023_s1, %s16958_s13  ;;  %s14043_s27 = scalar_lea.hbm %s17023_s1, 4096 }
  0x20   : > { %s14038_s15 = scalar_lea.hbm %s14312_s22, 2048  ;;  %p14044_p4 = scmp.lt.u32.totalorder %s14312_s22, %s17023_s1 }
  0x21   : > { %p14039_p0 = scmp.ne.s32.totalorder %s14312_s22, %s14038_s15  ;;  %p14045_p5 = scmp.lt.u32.totalorder %s14043_s27, %s14038_s15 }
  0x22   : > { %p14047_p8 = scmp.lt.u32.totalorder %s14038_s15, %s14312_s22 }
  0x23   : > { %p14041_p2 = pnand %p14040_p1, %p14039_p0  ;;  %p14046_p7 = por %p14045_p5, %p14044_p4 }
  0x25   : > { %p14042_p3 = pneg %p14041_p2  ;;  %p14048_p10 = por %p14047_p8, %p14046_p7 }
  0x27   : > { %p14049_p9 = pnand %p14048_p10, %p14042_p3 }
  0x29   : > { %14052 = shalt.err (!%p14049_p9)
}
  0x2a   : > { %s14053_s19 = scalar_lea.vmem %s14322_s25, 2048  ;;  %s14170_s16 = smov [#allocation3]  }
  0x2b   : > { %p14054_p0 = scmp.ne.s32.totalorder %s14322_s25, %s14053_s19  ;;  %s14058_s24 = sshll.u32 %s14170_s16, 4  ;;  %s14059_s24 = int_to_ptr.vmem [resolvable:$false] %s14058_s24 }
  0x2c   : > { %s14060_s13 = scalar_lea.vmem %s14059_s24, 4096  ;;  %p14061_p11 = scmp.lt.s32.totalorder %s14322_s25, %s14059_s24 }
  0x2d   : > { %p14056_p2 = pnand %p14054_p0, %p14040_p1  ;;  %p14062_p4 = scmp.lt.s32.totalorder %s14060_s13, %s14053_s19 }
  0x2f   : > { %p14057_p12 = pneg %p14056_p2  ;;  %p14063_p5 = por %p14062_p4, %p14061_p11 }
  0x31   : > { %p14064_p7 = pnand %p14063_p5, %p14057_p12 }
  0x33   : > { %14067 = shalt.err (!%p14064_p7)
}
  0x34   : > { %s16964_s14 = smov 128   ;;  %s14172_s15 = smov 8  }
  0x35   : > { %s17025_s19 = scalar_lea.sflag [#allocation4], %s14303_s12  ;;  %p12162_p9 = scmp.ge.s32.totalorder %s14168_s20, 1 }
  0x36   : > { %13729 = dma.hbm_to_vmem [thread:$0]  (!%p14318_p13), %s14312_s22, 2048, %s14322_s25, %s17025_s19, %s16964_s14, %s16964_s14, %s14172_s15  }
  0x37   : > { %p393_p11 = scmp.lt.s32.totalorder %s14168_s20, 3  ;;  %s17027_s16 = sshll.u32 %s14168_s20, 11 }
  0x38   : > { %s14366_s1 = scalar_lea.hbm %s16946_s2, %s17027_s16  ;;  %s17028_s23 = sshll.u32 %s14303_s12, 7 }
  0x39   : > { %p14357_p12 = pnand %p12162_p9, %p393_p11  ;;  %s378_s30 = scalar_lea.vmem [#allocation6], %s17028_s23 }
  0x3a   : > { %s385_s17 = sshll.u32 %s378_s30, 4  ;;  %s375_s22 = scalar_lea.sflag [#allocation7], %s14303_s12  ;;  %s14370_s17 = int_to_ptr.vmem [resolvable:$true] %s385_s17 }
  0x3b   : > { %s14068_s25 = scalar_lea.hbm %s14366_s1, 2048  ;;  %s14073_s16 = scalar_lea.hbm %s16946_s2, 4096 }
  0x3c   : > { %p14069_p3 = scmp.ne.s32.totalorder %s14366_s1, %s14068_s25  ;;  %p14074_p0 = scmp.lt.u32.totalorder %s14366_s1, %s16946_s2 }
  0x3d   : > { %p14075_p2 = scmp.lt.u32.totalorder %s14073_s16, %s14068_s25  ;;  %p14077_p5 = scmp.lt.u32.totalorder %s14068_s25, %s14366_s1 }
  0x3e   : > { %p14071_p8 = pnand %p14069_p3, %p14040_p1 }
  0x3f   : > { %p14076_p4 = por %p14075_p2, %p14074_p0 }
  0x40   : > { %p14072_p10 = pneg %p14071_p8 }
  0x41   : > { %p14078_p7 = por %p14077_p5, %p14076_p4 }
  0x43   : > { %p14079_p9 = pnand %p14078_p7, %p14072_p10 }
  0x45   : > { %14082 = shalt.err (!%p14079_p9)
}
  0x46   : > { %s14083_s23 = scalar_lea.vmem %s14370_s17, 2048  ;;  %s14173_s30 = smov [#allocation6]  }
  0x47   : > { %p14084_p11 = scmp.ne.s32.totalorder %s14370_s17, %s14083_s23  ;;  %s14088_s19 = sshll.u32 %s14173_s30, 4  ;;  %s14089_s19 = int_to_ptr.vmem [resolvable:$false] %s14088_s19 }
  0x48   : > { %s14090_s14 = scalar_lea.vmem %s14089_s19, 4096  ;;  %p14091_p6 = scmp.lt.s32.totalorder %s14370_s17, %s14089_s19 }
  0x49   : > { %p14086_p3 = pnand %p14084_p11, %p14040_p1  ;;  %p14092_p0 = scmp.lt.s32.totalorder %s14090_s14, %s14083_s23 }
  0x4b   : > { %p14087_p8 = pneg %p14086_p3  ;;  %p14093_p2 = por %p14092_p0, %p14091_p6 }
  0x4d   : > { %p14094_p4 = pnand %p14093_p2, %p14087_p8 }
  0x4f   : > { %14097 = shalt.err (!%p14094_p4)
}
  0x50   : > { %s17029_s25 = smov 128   ;;  %397 = sbr.rel (%p14357_p12) target bundleno = 3408 (0xd50), region = 64 }
  0x51   : > { %13732 = dma.hbm_to_vmem [thread:$0]  (!%p14318_p13), %s14366_s1, 2048, %s14370_s17, %s375_s22, %s17029_s25, %s17029_s25, %s14172_s15  }
  0x57   : > { %s14404_s24 = sand.u32 1, %s14160_s18   ;;  %p17030_p6 = scmp.ne.s32.totalorder %s17019_s28, 0 }
  0x58   : > { %s14407_s16 = sshll.u32 %s14404_s24, 7  ;;  %s400_s26 = scalar_lea.sflag [#allocation4], %s14404_s24 }
  0x59   : > { %s14411_s13 = scalar_lea.vmem [#allocation3], %s14407_s16 }
  0x5a   : > { %14143 = dma.done.wait (%p17030_p6), %s400_s26, 2048  }
  0x5b   : > { %14145 = vsyncadd (%p17030_p6), %s400_s26, 4294965248  ;;  %s409_s1 = scalar_lea.sflag [#allocation7], %s14404_s24  ;;  %s14419_s17 = scalar_lea.vmem [#allocation6], %s14407_s16 }
  0x5c   : > { %14147 = dma.done.wait (%p17030_p6), %s409_s1, 2048  }
  0x5d   : > { %14149 = vsyncadd (%p17030_p6), %s409_s1, 4294965248  ;;  %s12166_s12 = sshll.u32 %s14265_s21, 4  ;;  %v518_v0 = vld [vmem:[%s16947_s3] sm:$0xff]  ;;  %v519_v1 = vld [vmem:[%s16947_s3 + $0x8] sm:$0xff]  ;;  %vm14175_vm0 = vmmov 0   ;;  %vm1038_vm1 = vcmask 64512  }
  0x5e   : > { %p462_p13 = scmp.lt.s32.totalorder %s12166_s12, 31  ;;  %v686_v2 = vld [vmem:[%s16949_s5] sm:$0xff]  ;;  %v13600_v3 = vpack.c.bf16 %v519_v1, %v518_v0  ;;  %v687_v4 = vld [vmem:[%s16949_s5 + $0x8] sm:$0xff]  ;;  %v520_v5 = vld [vmem:[%s16947_s3 + $0x10] sm:$0xff]  ;;  %s14177_s19 = smov 112   ;;  %vm6335_vm2 = vcmask 130112  }
  0x5f   : > { %v521_v6 = vld [vmem:[%s16947_s3 + $0x18] sm:$0xff]  ;;  %v13632_v7 = vpack.c.bf16 %v687_v4, %v686_v2  ;;  %v688_v9 = vld [vmem:[%s16949_s5 + $0x10] sm:$0xff]  ;;  %v522_v11 = vld [vmem:[%s16947_s3 + $0x20] sm:$0xff]  ;;  %s14178_s14 = smov 104   ;;  %s14179_s28 = smov 8   ;;  %vm9056_vm3 = vcmask 195712  }
  0x60   : > { %s17243_s12 = smov (!%p462_p13, %s12166_s12), 31  ;;  %v13604_v8 = vpack.c.bf16 %v521_v6, %v520_v5  ;;  %v689_v10 = vld [vmem:[%s16949_s5 + $0x18] sm:$0xff]  ;;  %13601 = vmatprep.subr.bf16.mxu0 %v13600_v3  ;;  %v523_v13 = vld [vmem:[%s16947_s3 + $0x28] sm:$0xff]  ;;  %v690_v14 = vld [vmem:[%s16949_s5 + $0x20] sm:$0xff]  ;;  %s14180_s25 = smov 16   ;;  %vm11777_vm4 = vcmask 261312  }
  0x61   : > { %v13636_v12 = vpack.c.bf16 %v689_v10, %v688_v9  ;;  %v691_v15 = vld [vmem:[%s16949_s5 + $0x28] sm:$0xff]  ;;  %13603 = vmatpush3.bf16.msra.mxu0 %v13600_v3  ;;  %13633 = vmatprep.subr.bf16.mxu1 %v13632_v7  ;;  %s12167_s22 = sshll.u32 %s17243_s12, 3  ;;  %v13608_v16 = vpack.c.bf16 %v523_v13, %v522_v11  ;;  %v524_v18 = vld [vmem:[%s16947_s3 + $0x30] sm:$0xff]  ;;  %v525_v19 = vld [vmem:[%s16947_s3 + $0x38] sm:$0xff]  ;;  %s14181_s23 = smov 24   ;;  %vm11821_vm5 = vcmask 261120  }
  0x62   : > { %13635 = vmatpush3.bf16.msra.mxu1 %v13632_v7  ;;  %13605 = vmatprep.subr.bf16.mxu0 %v13604_v8  ;;  %v13640_v17 = vpack.c.bf16 %v691_v15, %v690_v14  ;;  %v692_v20 = vld [vmem:[%s16949_s5 + $0x30] sm:$0xff]  ;;  %v693_v21 = vld [vmem:[%s16949_s5 + $0x38] sm:$0xff]  ;;  %s14477_s27 = scalar_lea.vmem %s16944_s0, %s12167_s22  ;;  %v13612_v22 = vpack.c.bf16 %v525_v19, %v524_v18  ;;  %v526_v24 = vld [vmem:[%s16947_s3 + $0x40] sm:$0xff]  ;;  %p17232_p12 = scmp.ne.s32.totalorder %s17020_s29, 0 }
  0x63   : > { %13637 = vmatprep.subr.bf16.mxu1 %v13636_v12  ;;  %v13644_v23 = vpack.c.bf16 %v693_v21, %v692_v20  ;;  %v527_v25 = vld [vmem:[%s16947_s3 + $0x48] sm:$0xff]  ;;  %v470_v26 = vld [vmem:[%s14477_s27] sm:$0xff]  ;;  %v528_v32 = vld [vmem:[%s16947_s3 + $0x50] sm:$0xff] }
  0x64   : > { %v694_v27 = vld [vmem:[%s16949_s5 + $0x40] sm:$0xff]  ;;  %v695_v28 = vld [vmem:[%s16949_s5 + $0x48] sm:$0xff]  ;;  %12792 = vmatprep.mubr.f32.mxu0 %v470_v26  ;;  %v13616_v30 = vpack.c.bf16 %v527_v25, %v526_v24  ;;  %v529_v33 = vld [vmem:[%s16947_s3 + $0x58] sm:$0xff] }
  0x65   : > { %13607 = vmatpush3.bf16.msra.mxu0 %v13604_v8  ;;  %v486_v29 = vld [vmem:[%s14411_s13] sm:$0xff]  ;;  %v13648_v31 = vpack.c.bf16 %v695_v28, %v694_v27  ;;  %v696_v34 = vld [vmem:[%s16949_s5 + $0x50] sm:$0xff]  ;;  %v697_v35 = vld [vmem:[%s16949_s5 + $0x58] sm:$0xff]  ;;  %v13620_v36 = vpack.c.bf16 %v529_v33, %v528_v32 }
  0x66   : > { %13639 = vmatpush3.bf16.msra.mxu1 %v13636_v12  ;;  %13609 = vmatprep.subr.bf16.mxu0 %v13608_v16  ;;  %v13652_v37 = vpack.c.bf16 %v697_v35, %v696_v34  ;;  %v530_v38 = vld [vmem:[%s16947_s3 + $0x60] sm:$0xff]  ;;  %v531_v39 = vld [vmem:[%s16947_s3 + $0x68] sm:$0xff]  ;;  %v532_v44 = vld [vmem:[%s16947_s3 + $0x70] sm:$0xff] }
  0x67   : > { %13641 = vmatprep.subr.bf16.mxu1 %v13640_v17  ;;  %12848 = vmatprep.mubr.f32.mxu1 %v486_v29  ;;  %v698_v40 = vld [vmem:[%s16949_s5 + $0x60] sm:$0xff]  ;;  %v699_v41 = vld [vmem:[%s16949_s5 + $0x68] sm:$0xff]  ;;  %v13624_v42 = vpack.c.bf16 %v531_v39, %v530_v38  ;;  %v533_v45 = vld [vmem:[%s16947_s3 + $0x78] sm:$0xff] }
  0x68   : > { %v13656_v43 = vpack.c.bf16 %v699_v41, %v698_v40  ;;  %v700_v46 = vld [vmem:[%s16949_s5 + $0x70] sm:$0xff]  ;;  %v701_v47 = vld [vmem:[%s16949_s5 + $0x78] sm:$0xff]  ;;  %v13628_v48 = vpack.c.bf16 %v533_v45, %v532_v44  ;;  %v854_v50 = vld [vmem:[%s16951_s7] sm:$0xff] }
  0x69   : > { %13611 = vmatpush3.bf16.msra.mxu0 %v13608_v16  ;;  %v13660_v49 = vpack.c.bf16 %v701_v47, %v700_v46  ;;  %v855_v51 = vld [vmem:[%s16951_s7 + $0x8] sm:$0xff]  ;;  %v856_v53 = vld [vmem:[%s16951_s7 + $0x10] sm:$0xff]  ;;  %v857_v54 = vld [vmem:[%s16951_s7 + $0x18] sm:$0xff] }
  0x6a   : > { %13643 = vmatpush3.bf16.msra.mxu1 %v13640_v17  ;;  %13613 = vmatprep.subr.bf16.mxu0 %v13612_v22  ;;  %v13664_v52 = vpack.c.bf16 %v855_v51, %v854_v50  ;;  %v471_v55 = vld [vmem:[%s14477_s27 + $0x8] sm:$0xff]  ;;  %v472_v57 = vld [vmem:[%s14477_s27 + $0x10] sm:$0xff]  ;;  %v13668_v59 = vpack.c.bf16 %v857_v54, %v856_v53  ;;  %v858_v60 = vld [vmem:[%s16951_s7 + $0x20] sm:$0xff] }
  0x6b   : > { %13645 = vmatprep.subr.bf16.mxu1 %v13644_v23  ;;  %v487_v56 = vld [vmem:[%s14411_s13 + $0x8] sm:$0xff]  ;;  %v488_v58 = vld [vmem:[%s14411_s13 + $0x10] sm:$0xff]  ;;  %v473_v62 = vld [vmem:[%s14477_s27 + $0x18] sm:$0xff] }
  0x6c   : > { %v859_v61 = vld [vmem:[%s16951_s7 + $0x28] sm:$0xff]  ;;  %v489_v63 = vld [vmem:[%s14411_s13 + $0x18] sm:$0xff]  ;;  %v474_v0 = vld [vmem:[%s14477_s27 + $0x20] sm:$0xff] }
  0x6d   : > { %13615 = vmatpush3.bf16.msra.mxu0 %v13612_v22  ;;  %v490_v1 = vld [vmem:[%s14411_s13 + $0x20] sm:$0xff]  ;;  %v13672_v2 = vpack.c.bf16 %v859_v61, %v858_v60  ;;  %v860_v3 = vld [vmem:[%s16951_s7 + $0x30] sm:$0xff]  ;;  %v861_v4 = vld [vmem:[%s16951_s7 + $0x38] sm:$0xff] }
  0x6e   : > { %13647 = vmatpush3.bf16.msra.mxu1 %v13644_v23  ;;  %13617 = vmatprep.subr.bf16.mxu0 %v13616_v30  ;;  %v475_v5 = vld [vmem:[%s14477_s27 + $0x28] sm:$0xff]  ;;  %v476_v7 = vld [vmem:[%s14477_s27 + $0x30] sm:$0xff]  ;;  %v13676_v9 = vpack.c.bf16 %v861_v4, %v860_v3  ;;  %v862_v10 = vld [vmem:[%s16951_s7 + $0x40] sm:$0xff] }
  0x6f   : > { %13649 = vmatprep.subr.bf16.mxu1 %v13648_v31  ;;  %v491_v6 = vld [vmem:[%s14411_s13 + $0x28] sm:$0xff]  ;;  %v492_v8 = vld [vmem:[%s14411_s13 + $0x30] sm:$0xff]  ;;  %v477_v12 = vld [vmem:[%s14477_s27 + $0x38] sm:$0xff] }
  0x70   : > { %v863_v11 = vld [vmem:[%s16951_s7 + $0x48] sm:$0xff]  ;;  %v493_v13 = vld [vmem:[%s14411_s13 + $0x38] sm:$0xff]  ;;  %v478_v14 = vld [vmem:[%s14477_s27 + $0x40] sm:$0xff] }
  0x71   : > { %13619 = vmatpush3.bf16.msra.mxu0 %v13616_v30  ;;  %v494_v15 = vld [vmem:[%s14411_s13 + $0x40] sm:$0xff]  ;;  %v13680_v16 = vpack.c.bf16 %v863_v11, %v862_v10  ;;  %v864_v17 = vld [vmem:[%s16951_s7 + $0x50] sm:$0xff]  ;;  %v865_v18 = vld [vmem:[%s16951_s7 + $0x58] sm:$0xff] }
  0x72   : > { %13651 = vmatpush3.bf16.msra.mxu1 %v13648_v31  ;;  %13621 = vmatprep.subr.bf16.mxu0 %v13620_v36  ;;  %v479_v19 = vld [vmem:[%s14477_s27 + $0x48] sm:$0xff]  ;;  %v480_v21 = vld [vmem:[%s14477_s27 + $0x50] sm:$0xff]  ;;  %v13684_v23 = vpack.c.bf16 %v865_v18, %v864_v17  ;;  %v866_v24 = vld [vmem:[%s16951_s7 + $0x60] sm:$0xff] }
  0x73   : > { %13653 = vmatprep.subr.bf16.mxu1 %v13652_v37  ;;  %v495_v20 = vld [vmem:[%s14411_s13 + $0x48] sm:$0xff]  ;;  %v496_v22 = vld [vmem:[%s14411_s13 + $0x50] sm:$0xff]  ;;  %v481_v26 = vld [vmem:[%s14477_s27 + $0x58] sm:$0xff] }
  0x74   : > { %v867_v25 = vld [vmem:[%s16951_s7 + $0x68] sm:$0xff]  ;;  %v497_v27 = vld [vmem:[%s14411_s13 + $0x58] sm:$0xff]  ;;  %v482_v28 = vld [vmem:[%s14477_s27 + $0x60] sm:$0xff] }
  0x75   : > { %13623 = vmatpush3.bf16.msra.mxu0 %v13620_v36  ;;  %v498_v29 = vld [vmem:[%s14411_s13 + $0x60] sm:$0xff]  ;;  %v13688_v30 = vpack.c.bf16 %v867_v25, %v866_v24  ;;  %v868_v31 = vld [vmem:[%s16951_s7 + $0x70] sm:$0xff]  ;;  %v869_v32 = vld [vmem:[%s16951_s7 + $0x78] sm:$0xff] }
  0x76   : > { %13655 = vmatpush3.bf16.msra.mxu1 %v13652_v37  ;;  %13625 = vmatprep.subr.bf16.mxu0 %v13624_v42  ;;  %v483_v33 = vld [vmem:[%s14477_s27 + $0x68] sm:$0xff]  ;;  %v484_v35 = vld [vmem:[%s14477_s27 + $0x70] sm:$0xff]  ;;  %v13692_v37 = vpack.c.bf16 %v869_v32, %v868_v31  ;;  %v485_v38 = vld [vmem:[%s14477_s27 + $0x78] sm:$0xff] }
  0x77   : > { %13657 = vmatprep.subr.bf16.mxu1 %v13656_v43  ;;  %v499_v34 = vld [vmem:[%s14411_s13 + $0x68] sm:$0xff]  ;;  %v500_v36 = vld [vmem:[%s14411_s13 + $0x70] sm:$0xff]  ;;  %v501_v39 = vld [vmem:[%s14411_s13 + $0x78] sm:$0xff]  ;;  %s12032_s13 = scalar_lea.sflag [#allocation5], %s14404_s24 }
  0x78   : > { %v510_v40 = vld [vmem:[%s14419_s17 + $0x40] sm:$0xff]  ;;  %v511_v41 = vld [vmem:[%s14419_s17 + $0x48] sm:$0xff]  ;;  %v516_v46 = vld [vmem:[%s14419_s17 + $0x70] sm:$0xff] }
  0x79   : > { %13627 = vmatpush3.bf16.msra.mxu0 %v13624_v42  ;;  %v512_v42 = vld [vmem:[%s14419_s17 + $0x50] sm:$0xff]  ;;  %v514_v44 = vld [vmem:[%s14419_s17 + $0x60] sm:$0xff]  ;;  %v515_v45 = vld [vmem:[%s14419_s17 + $0x68] sm:$0xff] }
  0x7a   : > { %13659 = vmatpush3.bf16.msra.mxu1 %v13656_v43  ;;  %13629 = vmatprep.subr.bf16.mxu0 %v13628_v48  ;;  %v513_v43 = vld [vmem:[%s14419_s17 + $0x58] sm:$0xff]  ;;  %v503_v50 = vld [vmem:[%s14419_s17 + $0x8] sm:$0xff]  ;;  %v504_v51 = vld [vmem:[%s14419_s17 + $0x10] sm:$0xff] }
  0x7b   : > { %13661 = vmatprep.subr.bf16.mxu1 %v13660_v49  ;;  %v517_v47 = vld [vmem:[%s14419_s17 + $0x78] sm:$0xff]  ;;  %v506_v53 = vld [vmem:[%s14419_s17 + $0x20] sm:$0xff]  ;;  %v507_v54 = vld [vmem:[%s14419_s17 + $0x28] sm:$0xff] }
  0x7d   : > { %13631 = vmatpush3.bf16.msra.mxu0 %v13628_v48  ;;  %v16966_v48 = vmov 0.0  }
  0x7e   : > { %13663 = vmatpush3.bf16.msra.mxu1 %v13660_v49  ;;  %13665 = vmatprep.subr.bf16.mxu0 %v13664_v52  ;;  %v502_v49 = vld [vmem:[%s14419_s17] sm:$0xff] }
  0x7f   : > { %13704 = vmatprep.subr.bf16.mxu1 %v13664_v52 }
  0x80   : > { %12793 = vmatmul.mubr.f32.vlgmr.msra.gmra.mrb[0].mxu0 %v471_v55  ;;  %v508_v55 = vld [vmem:[%s14419_s17 + $0x30] sm:$0xff] }
  0x81   : > { %12849 = vmatmul.mubr.f32.vlgmr.msra.gmra.mrb[0].mxu1 %v487_v56  ;;  %12795 = vmatprep.mubr.f32.mxu0 %v472_v57  ;;  %v509_v56 = vld [vmem:[%s14419_s17 + $0x38] sm:$0xff]  ;;  %v14632_v57 = vld [vmem:[%s16948_s4] ss:$0 sm:$0xff] }
  0x82   : > { %12851 = vmatprep.mubr.f32.mxu1 %v488_v58  ;;  %13712 = vmatpush3.bf16.msra.mxu1 %v13664_v52  ;;  %v14637_v58 = vld [vmem:[%s16950_s6] ss:$0 sm:$0xff] }
  0x83   : > { %13705 = vmatprep.subr.bf16.mxu1 %v13668_v59  ;;  %13667 = vmatpush3.bf16.msra.mxu0 %v13664_v52  ;;  %v505_v52 = vld [vmem:[%s14419_s17 + $0x18] sm:$0xff]  ;;  %s14176_s17 = smov 120  }
  0x84   : > { %12796 = vmatmul.mubr.f32.gmra.mrb[2].mxu0 %v473_v62  ;;  %13669 = vmatprep.subr.bf16.mxu0 %v13668_v59 }
  0x85   : > { %12852 = vmatmul.mubr.f32.gmra.mrb[2].mxu1 %v489_v63  ;;  %12798 = vmatprep.mubr.f32.mxu0 %v474_v0 }
  0x86   : > { %12854 = vmatprep.mubr.f32.mxu1 %v490_v1  ;;  %13713 = vmatpush3.bf16.msra.mxu1 %v13668_v59 }
  0x87   : > { %13706 = vmatprep.subr.bf16.mxu1 %v13672_v2  ;;  %13671 = vmatpush3.bf16.msra.mxu0 %v13668_v59 }
  0x88   : > { %12799 = vmatmul.mubr.f32.gmra.mrb[4].mxu0 %v475_v5  ;;  %13673 = vmatprep.subr.bf16.mxu0 %v13672_v2 }
  0x89   : > { %12855 = vmatmul.mubr.f32.gmra.mrb[4].mxu1 %v491_v6  ;;  %12801 = vmatprep.mubr.f32.mxu0 %v476_v7 }
  0x8a   : > { %12857 = vmatprep.mubr.f32.mxu1 %v492_v8  ;;  %13714 = vmatpush3.bf16.msra.mxu1 %v13672_v2 }
  0x8b   : > { %13707 = vmatprep.subr.bf16.mxu1 %v13676_v9  ;;  %13675 = vmatpush3.bf16.msra.mxu0 %v13672_v2 }
  0x8c   : > { %12802 = vmatmul.mubr.f32.gmra.mrb[6].mxu0 %v477_v12  ;;  %13677 = vmatprep.subr.bf16.mxu0 %v13676_v9 }
  0x8d   : > { %12858 = vmatmul.mubr.f32.gmra.mrb[6].mxu1 %v493_v13  ;;  %12804 = vmatprep.mubr.f32.mxu0 %v478_v14 }
  0x8e   : > { %12860 = vmatprep.mubr.f32.mxu1 %v494_v15  ;;  %13715 = vmatpush3.bf16.msra.mxu1 %v13676_v9 }
  0x8f   : > { %13708 = vmatprep.subr.bf16.mxu1 %v13680_v16  ;;  %13679 = vmatpush3.bf16.msra.mxu0 %v13676_v9 }
  0x90   : > { %12805 = vmatmul.mubr.f32.gmra.mrb[8].mxu0 %v479_v19  ;;  %13681 = vmatprep.subr.bf16.mxu0 %v13680_v16 }
  0x91   : > { %12861 = vmatmul.mubr.f32.gmra.mrb[8].mxu1 %v495_v20  ;;  %12807 = vmatprep.mubr.f32.mxu0 %v480_v21 }
  0x92   : > { %12863 = vmatprep.mubr.f32.mxu1 %v496_v22  ;;  %13716 = vmatpush3.bf16.msra.mxu1 %v13680_v16 }
  0x93   : > { %13709 = vmatprep.subr.bf16.mxu1 %v13684_v23  ;;  %13683 = vmatpush3.bf16.msra.mxu0 %v13680_v16 }
  0x94   : > { %12808 = vmatmul.mubr.f32.gmra.mrb[10].mxu0 %v481_v26  ;;  %13685 = vmatprep.subr.bf16.mxu0 %v13684_v23 }
  0x95   : > { %12864 = vmatmul.mubr.f32.gmra.mrb[10].mxu1 %v497_v27  ;;  %12810 = vmatprep.mubr.f32.mxu0 %v482_v28 }
  0x96   : > { %12866 = vmatprep.mubr.f32.mxu1 %v498_v29  ;;  %13717 = vmatpush3.bf16.msra.mxu1 %v13684_v23 }
  0x97   : > { %13710 = vmatprep.subr.bf16.mxu1 %v13688_v30  ;;  %13687 = vmatpush3.bf16.msra.mxu0 %v13684_v23 }
  0x98   : > { %12811 = vmatmul.mubr.f32.gmra.mrb[12].mxu0 %v483_v33  ;;  %13689 = vmatprep.subr.bf16.mxu0 %v13688_v30 }
  0x99   : > { %12867 = vmatmul.mubr.f32.gmra.mrb[12].mxu1 %v499_v34  ;;  %12813 = vmatprep.mubr.f32.mxu0 %v484_v35 }
  0x9a   : > { %12869 = vmatprep.mubr.f32.mxu1 %v500_v36  ;;  %13718 = vmatpush3.bf16.msra.mxu1 %v13688_v30 }
  0x9b   : > { %13711 = vmatprep.subr.bf16.mxu1 %v13692_v37  ;;  %13691 = vmatpush3.bf16.msra.mxu0 %v13688_v30 }
  0x9c   : > { %12814 = vmatmul.mubr.f32.gmra.mrb[14].mxu0 %v485_v38  ;;  %13693 = vmatprep.subr.bf16.mxu0 %v13692_v37 }
  0x9d   : > { %12870 = vmatmul.mubr.f32.gmra.mrb[14].mxu1 %v501_v39  ;;  %12904 = vmatprep.mubr.f32.mxu0 %v502_v49 }
  0x9e   : > { %13719 = vmatpush3.bf16.msra.mxu1 %v13692_v37  ;;  %12916 = vmatprep.mubr.f32.mxu1 %v510_v40 }
  0x9f   : > { %13695 = vmatpush3.bf16.msra.mxu0 %v13692_v37  ;;  %12928 = vmatprep.subr.mxu1 %v16966_v48 }
  0xa0   : > { %12968 = vmatprep.subr.mxu0 %v16966_v48 }
  0xa1   : > { %12917 = vmatmul.mubr.f32.vlgmr.msra.gmra.mrb[16].mxu1 %v511_v41 }
  0xa2   : > { %12919 = vmatprep.mubr.f32.mxu1 %v512_v42  ;;  %12905 = vmatmul.mubr.f32.vlgmr.msra.gmra.mrb[16].mxu0 %v503_v50 }
  0xa3   : > { %12907 = vmatprep.mubr.f32.mxu0 %v504_v51 }
  0xa5   : > { %12920 = vmatmul.mubr.f32.gmra.mrb[18].mxu1 %v513_v43 }
  0xa6   : > { %12922 = vmatprep.mubr.f32.mxu1 %v514_v44  ;;  %12908 = vmatmul.mubr.f32.gmra.mrb[18].mxu0 %v505_v52 }
  0xa7   : > { %12910 = vmatprep.mubr.f32.mxu0 %v506_v53 }
  0xa9   : > { %12923 = vmatmul.mubr.f32.gmra.mrb[20].mxu1 %v515_v45 }
  0xaa   : > { %12925 = vmatprep.mubr.f32.mxu1 %v516_v46  ;;  %12911 = vmatmul.mubr.f32.gmra.mrb[20].mxu0 %v507_v54 }
  0xab   : > { %12913 = vmatprep.mubr.f32.mxu0 %v508_v55 }
  0xad   : > { %12926 = vmatmul.mubr.f32.gmra.mrb[22].mxu1 %v517_v47 }
  0xae   : > { %12930 = vmatprep.mubr.msk.f32.mxu1 %vm14175_vm0, %v16966_v48  ;;  %12914 = vmatmul.mubr.f32.gmra.mrb[22].mxu0 %v509_v56 }
  0xaf   : > { %12970 = vmatprep.mubr.msk.f32.mxu0 %vm14175_vm0, %v16966_v48 }
 0x153   : > { %v12794_v59 = vpop.f32.mrb[0].mxu0 }
 0x154   : > { %v14640_v60 = vadd.f32 %v12794_v59, %v14632_v57  ;;  %v607_v61 = vpop.f32.mrb[1].mxu0  ;;  %v12850_v62 = vpop.f32.mrb[0].mxu1 }
 0x155   : > { %v14643_v63 = vadd.f32 %v14632_v57, %v607_v61  ;;  %v781_v0 = vadd.f32 %v12850_v62, %v14637_v58  ;;  %v775_v1 = vpop.f32.mrb[1].mxu1 }
 0x156   : > { %17031 = vst [vmem:[#allocation17_spill] sm:$0xff] %v14640_v60  ;;  %v776_v2 = vadd.f32 %v14637_v58, %v775_v1  ;;  %3695 = vrot.lane.b32.xlu1 %v14640_v60, %s14176_s17 }
 0x157   : > { %17032 = vst [vmem:[#allocation18_spill] sm:$0xff] %v14643_v63  ;;  %v14649_v3 = vmul.f32 0.35355338, %v781_v0  ;;  %3617 = vrot.lane.b32.xlu0 %v14643_v63, %s14176_s17  ;;  %12929 = vmatpush3.xpose.msk.msra.mxu1 %vm1038_vm1, %v14643_v63  ;;  %v12797_v4 = vpop.f32.mrb[2].mxu0 }
 0x158   : > { %v14655_v5 = vmul.f32 0.35355338, %v776_v2  ;;  %12933 = vmatprep.subr.mxu1 %v16966_v48  ;;  %v617_v6 = vpop.f32.mrb[3].mxu0  ;;  %v12853_v7 = vpop.f32.mrb[2].mxu1  ;;  %v14684_v17 = vadd.f32 %v12797_v4, %v14632_v57 }
 0x159   : > { %17033 = vst [vmem:[#allocation19_spill] sm:$0xff] %v14649_v3  ;;  %v14659_v8 = vadd.f32 %v14632_v57, %v617_v6  ;;  %v785_v9 = vpop.f32.mrb[3].mxu1  ;;  %v791_v18 = vadd.f32 %v12853_v7, %v14637_v58 }
 0x15a   : > { %17034 = vst [vmem:[#allocation20_spill] sm:$0xff] %v14655_v5  ;;  %12931 = vmatmul.mubr.msk.f32.vlgmr.msra.gmra.mrb[24].mxu1 %vm1038_vm1, %v14655_v5  ;;  %v786_v10 = vadd.f32 %v14637_v58, %v785_v9  ;;  %3693 = vrot.lane.b32.xlu1 %v14649_v3, %s14176_s17  ;;  %17037 = vst [vmem:[#allocation23_spill] sm:$0xff] %v14684_v17 }
 0x15b   : > { %17035 = vst [vmem:[#allocation21_spill] sm:$0xff] %v14659_v8  ;;  %12934 = vmatpush3.xpose.msk.msra.mxu1 %vm1038_vm1, %v14640_v60  ;;  %12935 = vmatprep.mubr.msk.f32.mxu1 %vm14175_vm0, %v16966_v48  ;;  %v12800_v11 = vpop.f32.mrb[4].mxu0  ;;  %v14704_v25 = vmul.f32 0.35355338, %v791_v18 }
 0x15c   : > { %v14670_v12 = vmul.f32 0.35355338, %v786_v10  ;;  %12938 = vmatprep.subr.mxu1 %v16966_v48  ;;  %v627_v13 = vpop.f32.mrb[5].mxu0  ;;  %v12856_v14 = vpop.f32.mrb[4].mxu1  ;;  %3773 = vrot.lane.b32.xlu0 %v14659_v8, %s14176_s17  ;;  %v14726_v33 = vadd.f32 %v12800_v11, %v14632_v57 }
 0x15d   : > { %v795_v15 = vpop.f32.mrb[5].mxu1  ;;  %v14689_v19 = vadd.f32 %v14632_v57, %v627_v13  ;;  %17039 = vst [vmem:[#allocation25_spill] sm:$0xff] %v14704_v25  ;;  %v801_v34 = vadd.f32 %v12856_v14, %v14637_v58 }
 0x15e   : > { %17036 = vst [vmem:[#allocation22_spill] sm:$0xff] %v14670_v12  ;;  %12936 = vmatmul.mubr.msk.f32.vlgmr.msra.gmra.mrb[26].mxu1 %vm1038_vm1, %v14649_v3  ;;  %3615 = vrot.lane.b32.xlu1 %v14655_v5, %s14176_s17  ;;  %v796_v23 = vadd.f32 %v14637_v58, %v795_v15  ;;  %17041 = vst [vmem:[#allocation27_spill] sm:$0xff] %v14726_v33 }
 0x15f   : > { %12939 = vmatpush3.xpose.msk.msra.mxu1 %vm1038_vm1, %v14659_v8  ;;  %12940 = vmatprep.mubr.msk.f32.mxu1 %vm14175_vm0, %v16966_v48  ;;  %v12803_v16 = vpop.f32.mrb[6].mxu0  ;;  %17038 = vst [vmem:[#allocation24_spill] sm:$0xff] %v14689_v19  ;;  %v14751_v44 = vmul.f32 0.35355338, %v801_v34 }
 0x160   : > { %12943 = vmatprep.subr.mxu1 %v16966_v48  ;;  %v637_v20 = vpop.f32.mrb[7].mxu0  ;;  %v12859_v21 = vpop.f32.mrb[6].mxu1  ;;  %3771 = vrot.lane.b32.xlu0 %v14670_v12, %s14176_s17  ;;  %v14712_v30 = vmul.f32 0.35355338, %v796_v23  ;;  %v14773_v54 = vadd.f32 %v12803_v16, %v14632_v57 }
 0x161   : > { %v805_v22 = vpop.f32.mrb[7].mxu1  ;;  %v14745_v42 = vadd.f32 %v14632_v57, %v637_v20  ;;  %17043 = vst [vmem:[#allocation29_spill] sm:$0xff] %v14751_v44  ;;  %v811_v51 = vadd.f32 %v12859_v21, %v14637_v58 }
 0x162   : > { %12941 = vmatmul.mubr.msk.f32.vlgmr.msra.gmra.mrb[28].mxu1 %vm1038_vm1, %v14670_v12  ;;  %3851 = vrot.lane.b32.xlu1 %v14684_v17, %s14176_s17  ;;  %17040 = vst [vmem:[#allocation26_spill] sm:$0xff] %v14712_v30  ;;  %v806_v40 = vadd.f32 %v14637_v58, %v805_v22  ;;  %17044 = vst [vmem:[#allocation30_spill] sm:$0xff] %v14773_v54 }
 0x163   : > { %12944 = vmatpush3.xpose.msk.msra.mxu1 %vm1038_vm1, %v14684_v17  ;;  %12945 = vmatprep.mubr.msk.f32.mxu1 %vm14175_vm0, %v16966_v48  ;;  %v14702_v24 = vpop.f32.mrb[8].mxu0  ;;  %17042 = vst [vmem:[#allocation28_spill] sm:$0xff] %v14745_v42  ;;  %v14791_v1 = vmul.f32 0.35355338, %v811_v51 }
 0x164   : > { %12948 = vmatprep.subr.mxu1 %v16966_v48  ;;  %v647_v26 = vpop.f32.mrb[9].mxu0  ;;  %v12862_v27 = vpop.f32.mrb[8].mxu1  ;;  %3929 = vrot.lane.b32.xlu0 %v14689_v19, %s14176_s17  ;;  %v14766_v52 = vmul.f32 0.35355338, %v806_v40  ;;  %v14800_v6 = vadd.f32 %v14702_v24, %v14632_v57 }
 0x165   : > { %v14710_v28 = vadd.f32 %v14632_v57, %v647_v26  ;;  %v815_v29 = vpop.f32.mrb[9].mxu1  ;;  %v821_v2 = vadd.f32 %v12862_v27, %v14637_v58 }
 0x166   : > { %12946 = vmatmul.mubr.msk.f32.vlgmr.msra.gmra.mrb[30].mxu1 %vm1038_vm1, %v14704_v25  ;;  %v816_v31 = vadd.f32 %v14637_v58, %v815_v29  ;;  %3849 = vrot.lane.b32.xlu1 %v14704_v25, %s14176_s17 }
 0x167   : > { %12949 = vmatpush3.xpose.msk.msra.mxu1 %vm1038_vm1, %v14689_v19  ;;  %12950 = vmatprep.mubr.msk.f32.mxu1 %vm14175_vm0, %v16966_v48  ;;  %v14723_v32 = vpop.f32.mrb[10].mxu0  ;;  %v14819_v11 = vmul.f32 0.35355338, %v821_v2 }
 0x168   : > { %v14729_v35 = vmul.f32 0.35355338, %v816_v31  ;;  %12953 = vmatprep.subr.mxu1 %v16966_v48  ;;  %12969 = vmatpush3.xpose.msk.msra.mxu0 %vm1038_vm1, %v14710_v28  ;;  %v657_v36 = vpop.f32.mrb[11].mxu0  ;;  %v12865_v37 = vpop.f32.mrb[10].mxu1  ;;  %v14827_v14 = vadd.f32 %v14723_v32, %v14632_v57  ;;  %v14892_v31 = vld [vmem:[%s16952_s8] ss:$0 sm:$0xff] }
 0x169   : > { %v14735_v38 = vadd.f32 %v14632_v57, %v657_v36  ;;  %v825_v39 = vpop.f32.mrb[11].mxu1  ;;  %12978 = vmatprep.subr.mxu0 %v16966_v48  ;;  %v831_v13 = vadd.f32 %v12865_v37, %v14637_v58 }
 0x16a   : > { %12951 = vmatmul.mubr.msk.f32.vlgmr.msra.gmra.mrb[32].mxu1 %vm1038_vm1, %v14712_v30  ;;  %v826_v41 = vadd.f32 %v14637_v58, %v825_v39  ;;  %4007 = vrot.lane.b32.xlu1 %v14726_v33, %s14176_s17 }
 0x16b   : > { %12954 = vmatpush3.xpose.msk.msra.mxu1 %vm1038_vm1, %v14726_v33  ;;  %12955 = vmatprep.mubr.msk.f32.mxu1 %vm14175_vm0, %v16966_v48  ;;  %v12812_v43 = vpop.f32.mrb[12].mxu0  ;;  %v14842_v18 = vmul.f32 0.35355338, %v831_v13 }
 0x16c   : > { %v14753_v45 = vmul.f32 0.35355338, %v826_v41  ;;  %12958 = vmatprep.subr.mxu1 %v16966_v48  ;;  %12971 = vmatmul.mubr.msk.f32.vlgmr.msra.gmra.mrb[24].mxu0 %vm1038_vm1, %v14729_v35  ;;  %v667_v46 = vpop.f32.mrb[13].mxu0  ;;  %v12868_v47 = vpop.f32.mrb[12].mxu1  ;;  %v14848_v21 = vadd.f32 %v12812_v43, %v14632_v57 }
 0x16d   : > { %12979 = vmatpush3.xpose.msk.msra.mxu0 %vm1038_vm1, %v14735_v38  ;;  %12980 = vmatprep.mubr.msk.f32.mxu0 %vm14175_vm0, %v16966_v48  ;;  %v14763_v49 = vadd.f32 %v14632_v57, %v667_v46  ;;  %v835_v50 = vpop.f32.mrb[13].mxu1  ;;  %v841_v20 = vadd.f32 %v12868_v47, %v14637_v58 }
 0x16e   : > { %12956 = vmatmul.mubr.msk.f32.vlgmr.msra.gmra.mrb[34].mxu1 %vm1038_vm1, %v14751_v44  ;;  %v836_v53 = vadd.f32 %v14637_v58, %v835_v50  ;;  %12988 = vmatprep.subr.mxu0 %v16966_v48 }
 0x16f   : > { %12959 = vmatpush3.xpose.msk.msra.mxu1 %vm1038_vm1, %v14745_v42  ;;  %12960 = vmatprep.mubr.msk.f32.mxu1 %vm14175_vm0, %v16966_v48  ;;  %v12815_v55 = vpop.f32.mrb[14].mxu0  ;;  %v14859_v24 = vmul.f32 0.35355338, %v841_v20 }
 0x170   : > { %12981 = vmatmul.mubr.msk.f32.vlgmr.msra.gmra.mrb[26].mxu0 %vm1038_vm1, %v14753_v45  ;;  %12963 = vmatprep.subr.mxu1 %v16966_v48  ;;  %v14782_v56 = vmul.f32 0.35355338, %v836_v53  ;;  %v677_v59 = vpop.f32.mrb[15].mxu0  ;;  %v12871_v61 = vpop.f32.mrb[14].mxu1  ;;  %v14865_v27 = vadd.f32 %v12815_v55, %v14632_v57 }
 0x171   : > { %12989 = vmatpush3.xpose.msk.msra.mxu0 %vm1038_vm1, %v14763_v49  ;;  %v14787_v62 = vadd.f32 %v14632_v57, %v677_v59  ;;  %v845_v0 = vpop.f32.mrb[15].mxu1  ;;  %12990 = vmatprep.mubr.msk.f32.mxu0 %vm14175_vm0, %v16966_v48  ;;  %v851_v26 = vadd.f32 %v12871_v61, %v14637_v58 }
 0x172   : > { %12961 = vmatmul.mubr.msk.f32.vlgmr.msra.gmra.mrb[36].mxu1 %vm1038_vm1, %v14766_v52  ;;  %v846_v4 = vadd.f32 %v14637_v58, %v845_v0  ;;  %12998 = vmatprep.subr.mxu0 %v16966_v48 }
 0x173   : > { %12964 = vmatpush3.xpose.msk.msra.mxu1 %vm1038_vm1, %v14773_v54  ;;  %12965 = vmatprep.mubr.msk.f32.mxu1 %vm14175_vm0, %v16966_v48  ;;  %v14872_v29 = vmul.f32 0.35355338, %v851_v26 }
 0x174   : > { %v14806_v7 = vmul.f32 0.35355338, %v846_v4  ;;  %12991 = vmatmul.mubr.msk.f32.vlgmr.msra.gmra.mrb[28].mxu0 %vm1038_vm1, %v14782_v56  ;;  %12973 = vmatprep.subr.mxu1 %v16966_v48  ;;  %v14811_v9 = vpop.f32.mrb[16].mxu1 }
 0x175   : > { %17046 = vst [vmem:[#allocation32_spill] sm:$0xff] %v14811_v9  ;;  %12999 = vmatpush3.xpose.msk.msra.mxu0 %vm1038_vm1, %v14787_v62  ;;  %13000 = vmatprep.mubr.msk.f32.mxu0 %vm14175_vm0, %v16966_v48  ;;  %v14817_v10 = vpop.f32.mrb[17].mxu1  ;;  %17049 = vst [vmem:[#allocation35_spill] sm:$0xff] %v14872_v29  ;;  %v12906_v32 = vpop.f32.mrb[16].mxu0 }
 0x176   : > { %17045 = vst [vmem:[#allocation31_spill] sm:$0xff] %v14806_v7  ;;  %12966 = vmatmul.mubr.msk.f32.vlgmr.msra.gmra.mrb[38].mxu1 %vm1038_vm1, %v14791_v1  ;;  %13008 = vmatprep.subr.mxu0 %v16966_v48  ;;  %v14895_v34 = vadd.f32 %v12906_v32, %v14892_v31  ;;  %v943_v36 = vpop.f32.mrb[17].mxu0 }
 0x177   : > { %12974 = vmatpush3.xpose.msk.msra.mxu1 %vm1038_vm1, %v14800_v6  ;;  %12975 = vmatprep.mubr.msk.f32.mxu1 %vm14175_vm0, %v16966_v48  ;;  %v14898_v37 = vadd.f32 %v14892_v31, %v943_v36 }
 0x178   : > { %13001 = vmatmul.mubr.msk.f32.vlgmr.msra.gmra.mrb[30].mxu0 %vm1038_vm1, %v14806_v7  ;;  %12983 = vmatprep.subr.mxu1 %v16966_v48  ;;  %v14836_v15 = vpop.f32.mrb[18].mxu1  ;;  %17051 = vst [vmem:[#allocation37_spill] sm:$0xff] %v14895_v34 }
 0x179   : > { %17047 = vst [vmem:[#allocation33_spill] sm:$0xff] %v14836_v15  ;;  %v14838_v16 = vpop.f32.mrb[19].mxu1  ;;  %13010 = vmatprep.mubr.msk.f32.mxu0 %vm14175_vm0, %v16966_v48  ;;  %17052 = vst [vmem:[#allocation38_spill] sm:$0xff] %v14898_v37  ;;  %v14900_v39 = vpop.f32.mrb[18].mxu0  ;;  %13009 = vmatpush3.msra.mxu0 %v14898_v37 }
 0x17a   : > { %12976 = vmatmul.mubr.msk.f32.vlgmr.msra.gmra.mrb[40].mxu1 %vm1038_vm1, %v14819_v11  ;;  %v14903_v40 = vpop.f32.mrb[19].mxu0  ;;  %13018 = vmatprep.subr.mxu0 %v16966_v48 }
 0x17b   : > { %12984 = vmatpush3.xpose.msk.msra.mxu1 %vm1038_vm1, %v14827_v14  ;;  %12985 = vmatprep.mubr.msk.f32.mxu1 %vm14175_vm0, %v16966_v48 }
 0x17c   : > { %12993 = vmatprep.subr.mxu1 %v16966_v48  ;;  %v14855_v22 = vpop.f32.mrb[20].mxu1 }
 0x17d   : > { %17048 = vst [vmem:[#allocation34_spill] sm:$0xff] %v14855_v22  ;;  %v14857_v23 = vpop.f32.mrb[21].mxu1  ;;  %v14906_v41 = vpop.f32.mrb[20].mxu0 }
 0x17e   : > { %12986 = vmatmul.mubr.msk.f32.vlgmr.msra.gmra.mrb[42].mxu1 %vm1038_vm1, %v14842_v18  ;;  %v14909_v43 = vpop.f32.mrb[21].mxu0 }
 0x17f   : > { %12994 = vmatpush3.xpose.msk.msra.mxu1 %vm1038_vm1, %v14848_v21  ;;  %12995 = vmatprep.mubr.msk.f32.mxu1 %vm14175_vm0, %v16966_v48 }
 0x180   : > { %13003 = vmatprep.subr.mxu1 %v16966_v48  ;;  %v14885_v57 = vpop.f32.mrb[22].mxu1 }
 0x181   : > { %17050 = vst [vmem:[#allocation36_spill] sm:$0xff] %v14885_v57  ;;  %v14887_v58 = vpop.f32.mrb[23].mxu1  ;;  %v14912_v46 = vpop.f32.mrb[22].mxu0 }
 0x182   : > { %12996 = vmatmul.mubr.msk.f32.vlgmr.msra.gmra.mrb[44].mxu1 %vm1038_vm1, %v14859_v24  ;;  %v14914_v47 = vpop.f32.mrb[23].mxu0 }
 0x183   : > { %13004 = vmatpush3.xpose.msk.msra.mxu1 %vm1038_vm1, %v14865_v27  ;;  %13005 = vmatprep.mubr.msk.f32.mxu1 %vm14175_vm0, %v16966_v48 }
 0x184   : > { %13013 = vmatprep.subr.mxu1 %v16966_v48 }
 0x186   : > { %13006 = vmatmul.mubr.msk.f32.vlgmr.msra.gmra.mrb[46].mxu1 %vm1038_vm1, %v14872_v29 }
 0x187   : > { %13015 = vmatprep.mubr.msk.f32.mxu1 %vm14175_vm0, %v16966_v48  ;;  %13014 = vmatpush3.msra.mxu1 %v14895_v34 }
 0x188   : > { %13023 = vmatprep.subr.mxu1 %v16966_v48 }
 0x22d   : > { %v14916_v50 = vpop.f32.mrb[24].mxu1 }
 0x22e   : > { %v2255_v51 = vsel %vm1038_vm1, %v14916_v50, -inf  ;;  %v12932_v53 = vpop.f32.mrb[25].mxu1 }
 0x22f   : > { %2256 = vmax.xlane.f32.xlu0 %v2255_v51 }
 0x231   : > { %v14920_v55 = vpop.f32.mrb[26].mxu1 }
 0x232   : > { %v2258_v59 = vsel %vm1038_vm1, %v14920_v55, -inf  ;;  %v12937_v61 = vpop.f32.mrb[27].mxu1 }
 0x233   : > { %2259 = vmax.xlane.f32.xlu0 %v2258_v59 }
 0x235   : > { %v14924_v0 = vpop.f32.mrb[28].mxu1 }
 0x236   : > { %v2261_v2 = vsel %vm1038_vm1, %v14924_v0, -inf  ;;  %v12942_v4 = vpop.f32.mrb[29].mxu1 }
 0x237   : > { %2262 = vmax.xlane.f32.xlu1 %v2261_v2 }
 0x239   : > { %v14928_v13 = vpop.f32.mrb[30].mxu1 }
 0x23a   : > { %v2264_v20 = vsel %vm1038_vm1, %v14928_v13, -inf  ;;  %v12947_v26 = vpop.f32.mrb[31].mxu1 }
 0x23b   : > { %2265 = vmax.xlane.f32.xlu1 %v2264_v20 }
 0x23d   : > { %v14932_v32 = vpop.f32.mrb[32].mxu1 }
 0x23e   : > { %v2267_v36 = vsel %vm1038_vm1, %v14932_v32, -inf  ;;  %v12952_v51 = vpop.f32.mrb[33].mxu1 }
 0x23f   : > { %2268 = vmax.xlane.f32.xlu0 %v2267_v36  ;;  %v14936_v53 = vpop.f32.mrb[24].mxu0 }
 0x240   : > { %v2279_v59 = vsel %vm1038_vm1, %v14936_v53, -inf  ;;  %v12972_v61 = vpop.f32.mrb[25].mxu0 }
 0x241   : > { %v14940_v2 = vpop.f32.mrb[34].mxu1 }
 0x242   : > { %v2270_v4 = vsel %vm1038_vm1, %v14940_v2, -inf  ;;  %v12957_v26 = vpop.f32.mrb[35].mxu1 }
 0x243   : > { %2280 = vmax.xlane.f32.xlu0 %v2279_v59  ;;  %2271 = vmax.xlane.f32.xlu1 %v2270_v4  ;;  %v14944_v20 = vpop.f32.mrb[26].mxu0 }
 0x244   : > { %v2285_v51 = vsel %vm1038_vm1, %v14944_v20, -inf  ;;  %v12982_v36 = vpop.f32.mrb[27].mxu0 }
 0x245   : > { %v14948_v48 = vpop.f32.mrb[36].mxu1 }
 0x246   : > { %v12962_v19 = vpop.f32.mrb[37].mxu1  ;;  %v2273_v61 = vsel %vm1038_vm1, %v14948_v48, -inf }
 0x247   : > { %2286 = vmax.xlane.f32.xlu0 %v2285_v51  ;;  %v14950_v33 = vpop.f32.mrb[28].mxu0 }
 0x248   : > { %v12992_v25 = vpop.f32.mrb[29].mxu0  ;;  %v2291_v19 = vsel %vm1038_vm1, %v14950_v33, -inf }
 0x249   : > { %v14954_v17 = vpop.f32.mrb[38].mxu1 }
 0x24a   : > { %v2276_v59 = vsel %vm1038_vm1, %v14954_v17, -inf  ;;  %v12967_v4 = vpop.f32.mrb[39].mxu1 }
 0x24b   : > { %2274 = vmax.xlane.f32.xlu0 %v2273_v61  ;;  %2277 = vmax.xlane.f32.xlu1 %v2276_v59  ;;  %v14958_v26 = vpop.f32.mrb[30].mxu0 }
 0x24c   : > { %v13002_v51 = vpop.f32.mrb[31].mxu0  ;;  %v2297_v25 = vsel %vm1038_vm1, %v14958_v26, -inf }
 0x24d   : > { %v14962_v36 = vpop.f32.mrb[40].mxu1  ;;  %v14984_v51 = vpop.permute.xlu1 %3695 }
 0x24e   : > { %v12977_v3 = vpop.f32.mrb[41].mxu1  ;;  %17053 = vst [vmem:[#allocation39_spill] sm:$0xff] %v14984_v51 }
 0x24f   : > { %2292 = vmax.xlane.f32.xlu0 %v2291_v19  ;;  %v2282_v3 = vsel %vm1038_vm1, %v14962_v36, -inf }
 0x251   : > { %v14966_v60 = vpop.f32.mrb[42].mxu1 }
 0x252   : > { %v12987_v57 = vpop.f32.mrb[43].mxu1 }
 0x253   : > { %2298 = vmax.xlane.f32.xlu0 %v2297_v25  ;;  %v2288_v57 = vsel %vm1038_vm1, %v14966_v60, -inf  ;;  %v14986_v25 = vpop.permute.xlu0 %3617 }
 0x254   : > { %17054 = vst [vmem:[#allocation40_spill] sm:$0xff] %v14986_v25 }
 0x255   : > { %v14968_v4 = vpop.f32.mrb[44].mxu1 }
 0x256   : > { %v12997_v61 = vpop.f32.mrb[45].mxu1  ;;  %v2294_v19 = vsel %vm1038_vm1, %v14968_v4, -inf }
 0x257   : > { %v14988_v61 = vpop.permute.xlu1 %3693 }
 0x258   : > { %17055 = vst [vmem:[#allocation41_spill] sm:$0xff] %v14988_v61 }
 0x259   : > { %v14970_v59 = vpop.f32.mrb[46].mxu1 }
 0x25a   : > { %v13007_v22 = vpop.f32.mrb[47].mxu1 }
 0x25b   : > { %v2300_v22 = vsel %vm1038_vm1, %v14970_v59, -inf }
 0x25c   : > { %4005 = vrot.lane.b32.xlu1 %v14751_v44, %s14176_s17 }
 0x269   : > { %3927 = vrot.lane.b32.xlu0 %v14712_v30, %s14176_s17  ;;  %v14990_v30 = vpop.permute.xlu0 %3773 }
 0x26a   : > { %17056 = vst [vmem:[#allocation42_spill] sm:$0xff] %v14990_v30 }
 0x26d   : > { %v14994_v44 = vpop.permute.xlu0 %3771 }
 0x26e   : > { %17058 = vst [vmem:[#allocation44_spill] sm:$0xff] %v14994_v44 }
 0x271   : > { %v14998_v15 = vpop.permute.xlu0 %3929 }
 0x272   : > { %17060 = vst [vmem:[#allocation46_spill] sm:$0xff] %v14998_v15 }
 0x280   : > { %2283 = vmax.xlane.f32.xlu1 %v2282_v3  ;;  %v14992_v3 = vpop.permute.xlu1 %3615 }
 0x281   : > { %17057 = vst [vmem:[#allocation43_spill] sm:$0xff] %v14992_v3 }
 0x284   : > { %2289 = vmax.xlane.f32.xlu1 %v2288_v57  ;;  %v14996_v57 = vpop.permute.xlu1 %3851 }
 0x285   : > { %17059 = vst [vmem:[#allocation45_spill] sm:$0xff] %v14996_v57 }
 0x288   : > { %2295 = vmax.xlane.f32.xlu1 %v2294_v19  ;;  %v15000_v19 = vpop.permute.xlu1 %3849 }
 0x289   : > { %17061 = vst [vmem:[#allocation47_spill] sm:$0xff] %v15000_v19 }
 0x28c   : > { %2301 = vmax.xlane.f32.xlu1 %v2300_v22  ;;  %v15003_v34 = vpop.permute.xlu1 %4007 }
 0x2bc   : > { %v2257_v9 = vpop.xlane.xlu0 %2256 }
 0x2bd   : > { %v2303_v22 = vsub.f32 %v14916_v50, %v2257_v9 }
 0x2bf   : > { %v2319_v51 = vmul.f32 1.442695, %v2303_v22 }
 0x2c0   : > { %v2260_v25 = vpop.xlane.xlu0 %2259 }
 0x2c1   : > { %13782 = vpow2.f32 %v2319_v51  ;;  %v2304_v61 = vsub.f32 %v14920_v55, %v2260_v25 }
 0x2c3   : > { %v2321_v30 = vmul.f32 1.442695, %v2304_v61 }
 0x2c4   : > { %v2263_v3 = vpop.xlane.xlu1 %2262 }
 0x2c5   : > { %13784 = vpow2.f32 %v2321_v30  ;;  %v2305_v44 = vsub.f32 %v14924_v0, %v2263_v3 }
 0x2c7   : > { %v2323_v57 = vmul.f32 1.442695, %v2305_v44 }
 0x2c8   : > { %v2266_v29 = vpop.xlane.xlu1 %2265 }
 0x2c9   : > { %13786 = vpow2.f32 %v2323_v57  ;;  %v2306_v19 = vsub.f32 %v14928_v13, %v2266_v29 }
 0x2cb   : > { %v15008_v15 = vpop.eup %13782  ;;  %v2325_v9 = vmul.f32 1.442695, %v2306_v19 }
 0x2cc   : > { %v2269_v50 = vpop.xlane.xlu0 %2268  ;;  %v2351_v22 = vsel %vm1038_vm1, %v15008_v15, 0.0 }
 0x2cd   : > { %13788 = vpow2.f32 %v2325_v9  ;;  %v2307_v55 = vsub.f32 %v14932_v32, %v2269_v50  ;;  %2352 = vadd.xlane.f32.xlu0 %v2351_v22 }
 0x2cf   : > { %v15013_v51 = vpop.eup %13784  ;;  %v2327_v30 = vmul.f32 1.442695, %v2307_v55 }
 0x2d0   : > { %v2281_v0 = vpop.xlane.xlu0 %2280  ;;  %v2272_v44 = vpop.xlane.xlu1 %2271  ;;  %v2354_v25 = vsel %vm1038_vm1, %v15013_v51, 0.0 }
 0x2d1   : > { %13790 = vpow2.f32 %v2327_v30  ;;  %v2311_v29 = vsub.f32 %v14936_v53, %v2281_v0  ;;  %v2308_v13 = vsub.f32 %v14940_v2, %v2272_v44  ;;  %2355 = vadd.xlane.f32.xlu1 %v2354_v25 }
 0x2d3   : > { %v15019_v61 = vpop.eup %13786  ;;  %v2335_v3 = vmul.f32 1.442695, %v2311_v29  ;;  %v2329_v57 = vmul.f32 1.442695, %v2308_v13 }
 0x2d4   : > { %v2287_v32 = vpop.xlane.xlu0 %2286  ;;  %v2357_v19 = vsel %vm1038_vm1, %v15019_v61, 0.0 }
 0x2d5   : > { %13792 = vpow2.f32 %v2335_v3  ;;  %v2313_v9 = vsub.f32 %v14944_v20, %v2287_v32  ;;  %2358 = vadd.xlane.f32.xlu0 %v2357_v19 }
 0x2d6   : > { %13794 = vpow2.f32 %v2329_v57 }
 0x2d7   : > { %v15024_v50 = vpop.eup %13788  ;;  %v2339_v22 = vmul.f32 1.442695, %v2313_v9 }
 0x2d8   : > { %v2275_v53 = vpop.xlane.xlu0 %2274  ;;  %v2360_v2 = vsel %vm1038_vm1, %v15024_v50, 0.0  ;;  %v2278_v19 = vpop.xlane.xlu1 %2277 }
 0x2d9   : > { %13796 = vpow2.f32 %v2339_v22  ;;  %v2309_v55 = vsub.f32 %v14948_v48, %v2275_v53  ;;  %2361 = vadd.xlane.f32.xlu1 %v2360_v2  ;;  %v2310_v9 = vsub.f32 %v14954_v17, %v2278_v19 }
 0x2db   : > { %v15029_v30 = vpop.eup %13790  ;;  %v2331_v0 = vmul.f32 1.442695, %v2309_v55  ;;  %v2333_v53 = vmul.f32 1.442695, %v2310_v9 }
 0x2dc   : > { %v2363_v44 = vsel %vm1038_vm1, %v15029_v30, 0.0  ;;  %v2293_v22 = vpop.xlane.xlu0 %2292  ;;  %v15070_v19 = vpop.permute.xlu1 %4005 }
 0x2dd   : > { %13798 = vpow2.f32 %v2331_v0  ;;  %2364 = vadd.xlane.f32.xlu0 %v2363_v44  ;;  %v2315_v2 = vsub.f32 %v14950_v33, %v2293_v22 }
 0x2de   : > { %13800 = vpow2.f32 %v2333_v53 }
 0x2df   : > { %v15033_v20 = vpop.eup %13792  ;;  %v2343_v0 = vmul.f32 1.442695, %v2315_v2 }
 0x2e0   : > { %v15035_v25 = vpop.eup %13794  ;;  %v2375_v29 = vsel %vm1038_vm1, %v15033_v20, 0.0  ;;  %v2299_v55 = vpop.xlane.xlu0 %2298 }
 0x2e1   : > { %2376 = vadd.xlane.f32.xlu0 %v2375_v29  ;;  %v2366_v48 = vsel %vm1038_vm1, %v15035_v25, 0.0  ;;  %v2317_v44 = vsub.f32 %v14958_v26, %v2299_v55  ;;  %13802 = vpow2.f32 %v2343_v0 }
 0x2e2   : > { %2367 = vadd.xlane.f32.xlu1 %v2366_v48 }
 0x2e3   : > { %v15041_v13 = vpop.eup %13796  ;;  %v2347_v29 = vmul.f32 1.442695, %v2317_v44 }
 0x2e4   : > { %v2381_v3 = vsel %vm1038_vm1, %v15041_v13, 0.0 }
 0x2e5   : > { %2382 = vadd.xlane.f32.xlu0 %v2381_v3  ;;  %13804 = vpow2.f32 %v2347_v29 }
 0x2e7   : > { %v15045_v57 = vpop.eup %13798 }
 0x2e8   : > { %v2369_v32 = vsel %vm1038_vm1, %v15045_v57, 0.0  ;;  %v15056_v48 = vpop.eup %13800 }
 0x2e9   : > { %2370 = vadd.xlane.f32.xlu0 %v2369_v32  ;;  %v2372_v3 = vsel %vm1038_vm1, %v15056_v48, 0.0 }
 0x2eb   : > { %v15060_v32 = vpop.eup %13802 }
 0x2ec   : > { %v2387_v17 = vsel %vm1038_vm1, %v15060_v32, 0.0 }
 0x2ef   : > { %v15064_v33 = vpop.eup %13804 }
 0x2f0   : > { %v2393_v26 = vsel %vm1038_vm1, %v15064_v33, 0.0 }
 0x2f3   : > { %4163 = vrot.lane.b32.xlu1 %v14773_v54, %s14176_s17 }
 0x2ff   : > { %4085 = vrot.lane.b32.xlu0 %v14745_v42, %s14176_s17 }
 0x30d   : > { %v2284_v9 = vpop.xlane.xlu1 %2283 }
 0x30e   : > { %v2312_v53 = vsub.f32 %v14962_v36, %v2284_v9 }
 0x310   : > { %v2337_v55 = vmul.f32 1.442695, %v2312_v53 }
 0x311   : > { %v2290_v22 = vpop.xlane.xlu1 %2289 }
 0x312   : > { %v2314_v0 = vsub.f32 %v14966_v60, %v2290_v22  ;;  %13806 = vpow2.f32 %v2337_v55  ;;  %v15106_v55 = vpop.permute.xlu0 %3927 }
 0x314   : > { %v2341_v44 = vmul.f32 1.442695, %v2314_v0 }
 0x315   : > { %v2296_v2 = vpop.xlane.xlu1 %2295 }
 0x316   : > { %v2316_v29 = vsub.f32 %v14968_v4, %v2296_v2  ;;  %13808 = vpow2.f32 %v2341_v44 }
 0x317   : > { %2373 = vadd.xlane.f32.xlu1 %v2372_v3 }
 0x318   : > { %v2345_v36 = vmul.f32 1.442695, %v2316_v29  ;;  %v15116_v29 = vadd.f32 %v14892_v31, %v14903_v40 }
 0x319   : > { %v2302_v3 = vpop.xlane.xlu1 %2301 }
 0x31a   : > { %13810 = vpow2.f32 %v2345_v36  ;;  %17062 = vst [vmem:[#allocation48_spill] sm:$0xff] %v15116_v29  ;;  %v15122_v36 = vadd.f32 %v14892_v31, %v14909_v43 }
 0x31c   : > { %17063 = vst [vmem:[#allocation49_spill] sm:$0xff] %v15122_v36 }
 0x31e   : > { %2388 = vadd.xlane.f32.xlu0 %v2387_v17  ;;  %v2318_v17 = vsub.f32 %v14970_v59, %v2302_v3 }
 0x320   : > { %v2349_v60 = vmul.f32 1.442695, %v2318_v17 }
 0x322   : > { %2394 = vadd.xlane.f32.xlu0 %v2393_v26  ;;  %v15084_v26 = vpop.eup %13806  ;;  %13812 = vpow2.f32 %v2349_v60 }
 0x323   : > { %v2378_v4 = vsel %vm1038_vm1, %v15084_v26, 0.0  ;;  %v15090_v9 = vpop.eup %13808 }
 0x324   : > { %v2384_v59 = vsel %vm1038_vm1, %v15090_v9, 0.0  ;;  %v15096_v22 = vpop.eup %13810 }
 0x325   : > { %v2390_v53 = vsel %vm1038_vm1, %v15096_v22, 0.0 }
 0x328   : > { %4161 = vrot.lane.b32.xlu1 %v14791_v1, %s14176_s17 }
 0x32c   : > { %v15102_v2 = vpop.eup %13812 }
 0x32d   : > { %v2396_v0 = vsel %vm1038_vm1, %v15102_v2, 0.0 }
 0x338   : > { %4083 = vrot.lane.b32.xlu0 %v14766_v52, %s14176_s17 }
 0x33c   : > { %4241 = vrot.lane.b32.xlu0 %v14710_v28, %s14176_s17 }
 0x340   : > { %4239 = vrot.lane.b32.xlu0 %v14729_v35, %s14176_s17 }
 0x344   : > { %4397 = vrot.lane.b32.xlu0 %v14735_v38, %s14176_s17 }
 0x348   : > { %4395 = vrot.lane.b32.xlu0 %v14753_v45, %s14176_s17 }
 0x34c   : > { %2379 = vadd.xlane.f32.xlu1 %v2378_v4  ;;  %4553 = vrot.lane.b32.xlu0 %v14763_v49, %s14176_s17  ;;  %v15128_v4 = vadd.f32 %v14892_v31, %v14817_v10 }
 0x34e   : > { %17064 = vst [vmem:[#allocation50_spill] sm:$0xff] %v15128_v4 }
 0x350   : > { %2385 = vadd.xlane.f32.xlu1 %v2384_v59  ;;  %4551 = vrot.lane.b32.xlu0 %v14782_v56, %s14176_s17 }
 0x354   : > { %2391 = vadd.xlane.f32.xlu1 %v2390_v53  ;;  %4709 = vrot.lane.b32.xlu0 %v14787_v62, %s14176_s17  ;;  %v15139_v53 = vadd.f32 %v14892_v31, %v14838_v16 }
 0x356   : > { %17065 = vst [vmem:[#allocation51_spill] sm:$0xff] %v15139_v53 }
 0x358   : > { %2397 = vadd.xlane.f32.xlu1 %v2396_v0  ;;  %4707 = vrot.lane.b32.xlu0 %v14806_v7, %s14176_s17 }
 0x35a   : > { %v2353_v44 = vpop.xlane.xlu0 %2352 }
 0x35b   : > { %13814 = vrcp.f32 %v2353_v44  ;;  %v15147_v44 = vadd.f32 %v14900_v39, %v14892_v31 }
 0x35c   : > { %5040 = vrot.lane.b32.xlu0 %v14898_v37, %s14176_s17 }
 0x35e   : > { %v2356_v3 = vpop.xlane.xlu1 %2355 }
 0x35f   : > { %13816 = vrcp.f32 %v2356_v3 }
 0x360   : > { %5194 = vrot.lane.b32.xlu0 %v15116_v29, %s14176_s17 }
 0x362   : > { %v2359_v17 = vpop.xlane.xlu0 %2358 }
 0x363   : > { %13818 = vrcp.f32 %v2359_v17 }
 0x364   : > { %5348 = vrot.lane.b32.xlu0 %v15122_v36, %s14176_s17 }
 0x365   : > { %v13815_v60 = vpop.eup %13814 }
 0x366   : > { %v2362_v40 = vpop.xlane.xlu1 %2361  ;;  %v2415_v59 = vmul.f32 %v13815_v60, %v15008_v15  ;;  %v17066_v15 = vmov 0.0  }
 0x367   : > { %13820 = vrcp.f32 %v2362_v40 }
 0x368   : > { %5656 = vrot.lane.b32.xlu0 %v15128_v4, %s14176_s17  ;;  %13011 = vmatmul.mubr.msk.f32.vlgmr.msra.gmra.mrb[32].mxu0 %vm1038_vm1, %v2415_v59  ;;  %v15179_v59 = vadd.f32 %v14906_v41, %v14892_v31  ;;  %v15193_v41 = vadd.f32 %v14892_v31, %v14914_v47 }
 0x369   : > { %v13817_v43 = vpop.eup %13816  ;;  %13019 = vmatpush3.msra.mxu0 %v15116_v29  ;;  %4319 = vrot.lane.b32.xlu1 %v14800_v6, %s14176_s17 }
 0x36a   : > { %v2365_v10 = vpop.xlane.xlu0 %2364  ;;  %v2416_v0 = vmul.f32 %v13817_v43, %v15013_v51  ;;  %13020 = vmatprep.mubr.msk.f32.mxu0 %vm14175_vm0, %v17066_v15  ;;  %13028 = vmatprep.subr.mxu0 %v17066_v15  ;;  %v15157_v51 = vadd.f32 %v14892_v31, %v14857_v23  ;;  %v15171_v23 = vadd.f32 %v14892_v31, %v14887_v58 }
 0x36b   : > { %13822 = vrcp.f32 %v2365_v10  ;;  %v15207_v10 = vadd.f32 %v14912_v46, %v14892_v31 }
 0x36c   : > { %5810 = vrot.lane.b32.xlu0 %v15139_v53, %s14176_s17  ;;  %13016 = vmatmul.mubr.msk.f32.vlgmr.msra.gmra.mrb[48].mxu1 %vm1038_vm1, %v2416_v0  ;;  %17067 = vst [vmem:[#allocation52_spill] sm:$0xff] %v15157_v51  ;;  %17068 = vst [vmem:[#allocation53_spill] sm:$0xff] %v15171_v23 }
 0x36d   : > { %v13819_v16 = vpop.eup %13818  ;;  %4317 = vrot.lane.b32.xlu1 %v14819_v11, %s14176_s17  ;;  %13024 = vmatpush3.msra.mxu1 %v15147_v44 }
 0x36e   : > { %v2377_v3 = vpop.xlane.xlu0 %2376  ;;  %v2417_v39 = vmul.f32 %v13819_v16, %v15019_v61  ;;  %13025 = vmatprep.mubr.msk.f32.mxu1 %vm14175_vm0, %v17066_v15  ;;  %13033 = vmatprep.subr.mxu1 %v17066_v15  ;;  %v17069_v16 = vld [vmem:[#allocation35_spill] sm:$0xff] }
 0x36f   : > { %v2368_v17 = vpop.xlane.xlu1 %2367 }
 0x370   : > { %13824 = vrcp.f32 %v2368_v17  ;;  %5964 = vrot.lane.b32.xlu0 %v15157_v51, %s14176_s17  ;;  %13021 = vmatmul.mubr.msk.f32.vlgmr.msra.gmra.mrb[34].mxu0 %vm1038_vm1, %v2417_v39 }
 0x371   : > { %v13821_v60 = vpop.eup %13820  ;;  %13029 = vmatpush3.msra.mxu0 %v15122_v36  ;;  %4475 = vrot.lane.b32.xlu1 %v14827_v14, %s14176_s17 }
 0x372   : > { %v2383_v61 = vpop.xlane.xlu0 %2382  ;;  %v2418_v40 = vmul.f32 %v13821_v60, %v15024_v50  ;;  %13030 = vmatprep.mubr.msk.f32.mxu0 %vm14175_vm0, %v17066_v15  ;;  %13038 = vmatprep.subr.mxu0 %v17066_v15  ;;  %v17072_v60 = vld [vmem:[#allocation33_spill] sm:$0xff] }
 0x374   : > { %6118 = vrot.lane.b32.xlu0 %v15171_v23, %s14176_s17  ;;  %13026 = vmatmul.mubr.msk.f32.vlgmr.msra.gmra.mrb[50].mxu1 %vm1038_vm1, %v2418_v40  ;;  %v15264_v40 = vpop.permute.xlu1 %4163 }
 0x375   : > { %v13823_v43 = vpop.eup %13822  ;;  %4473 = vrot.lane.b32.xlu1 %v14842_v18, %s14176_s17  ;;  %13034 = vmatpush3.msra.mxu1 %v15179_v59 }
 0x376   : > { %v2371_v58 = vpop.xlane.xlu0 %2370  ;;  %v2419_v50 = vmul.f32 %v13823_v43, %v15029_v30  ;;  %13035 = vmatprep.mubr.msk.f32.mxu1 %vm14175_vm0, %v17066_v15  ;;  %13043 = vmatprep.subr.mxu1 %v17066_v15  ;;  %v17074_v43 = vld [vmem:[#allocation34_spill] sm:$0xff] }
 0x377   : > { %13826 = vrcp.f32 %v2371_v58  ;;  %v15270_v58 = vadd.f32 %v17074_v43, %v14892_v31 }
 0x378   : > { %6354 = vrot.lane.b32.xlu0 %v14643_v63, %s14177_s19  ;;  %13031 = vmatmul.mubr.msk.f32.vlgmr.msra.gmra.mrb[36].mxu0 %vm1038_vm1, %v2419_v50  ;;  %13828 = vrcp.f32 %v2377_v3 }
 0x379   : > { %13039 = vmatpush3.msra.mxu0 %v15193_v41  ;;  %4631 = vrot.lane.b32.xlu1 %v14848_v21, %s14176_s17  ;;  %13830 = vrcp.f32 %v2383_v61  ;;  %v15262_v61 = vadd.f32 %v17072_v60, %v14892_v31  ;;  %v17080_v60 = vld [vmem:[#allocation23_spill] sm:$0xff] }
 0x37a   : > { %v13825_v30 = vpop.eup %13824  ;;  %13040 = vmatprep.mubr.msk.f32.mxu0 %vm14175_vm0, %v17066_v15  ;;  %13048 = vmatprep.subr.mxu0 %v17066_v15 }
 0x37b   : > { %v2420_v47 = vmul.f32 %v13825_v30, %v15035_v25  ;;  %17073 = vst [vmem:[#allocation35_spill] sm:$0xff] %v15262_v61  ;;  %v17076_v30 = vld [vmem:[#allocation36_spill] sm:$0xff] }
 0x37c   : > { %6352 = vrot.lane.b32.xlu0 %v14655_v5, %s14177_s19 }
 0x37d   : > { %4629 = vrot.lane.b32.xlu1 %v14859_v24, %s14176_s17  ;;  %13036 = vmatmul.mubr.msk.f32.vlgmr.msra.gmra.mrb[52].mxu1 %vm1038_vm1, %v2420_v47  ;;  %v15276_v47 = vadd.f32 %v17076_v30, %v14892_v31  ;;  %v17081_v30 = vld [vmem:[#allocation25_spill] sm:$0xff] }
 0x37e   : > { %13044 = vmatpush3.msra.mxu1 %v15207_v10  ;;  %13045 = vmatprep.mubr.msk.f32.mxu1 %vm14175_vm0, %v17066_v15 }
 0x37f   : > { %13053 = vmatprep.subr.mxu1 %v17066_v15 }
 0x380   : > { %6510 = vrot.lane.b32.xlu0 %v14659_v8, %s14177_s19 }
 0x381   : > { %v13827_v46 = vpop.eup %13826  ;;  %4787 = vrot.lane.b32.xlu1 %v14865_v27, %s14176_s17 }
 0x382   : > { %v2421_v25 = vmul.f32 %v13827_v46, %v15045_v57  ;;  %v13829_v0 = vpop.eup %13828  ;;  %v17070_v57 = vld [vmem:[#allocation37_spill] sm:$0xff]  ;;  %v4086_v46 = vpop.permute.xlu0 %4085 }
 0x383   : > { %v2423_v3 = vmul.f32 %v13829_v0, %v15033_v20  ;;  %v13831_v39 = vpop.eup %13830  ;;  %v17071_v20 = vld [vmem:[#allocation32_spill] sm:$0xff]  ;;  %17075 = vst [vmem:[#allocation37_spill] sm:$0xff] %v15270_v58  ;;  %v17078_v0 = vld [vmem:[#allocation17_spill] sm:$0xff] }
 0x384   : > { %6508 = vrot.lane.b32.xlu0 %v14670_v12, %s14177_s19  ;;  %13041 = vmatmul.mubr.msk.f32.vlgmr.msra.gmra.mrb[38].mxu0 %vm1038_vm1, %v2421_v25  ;;  %v2425_v17 = vmul.f32 %v13831_v39, %v15041_v13  ;;  %v15256_v13 = vadd.f32 %v17071_v20, %v14892_v31  ;;  %17077 = vst [vmem:[#allocation32_spill] sm:$0xff] %v15276_v47  ;;  %v17079_v20 = vld [vmem:[#allocation19_spill] sm:$0xff]  ;;  %v17084_v12 = vld [vmem:[#allocation42_spill] sm:$0xff] }
 0x385   : > { %13049 = vmatpush3.msra.mxu0 %v15128_v4  ;;  %4785 = vrot.lane.b32.xlu1 %v17069_v16, %s14176_s17 }
 0x386   : > { %13050 = vmatprep.mubr.msk.f32.mxu0 %vm14175_vm0, %v17066_v15  ;;  %13058 = vmatprep.subr.mxu0 %v17066_v15 }
 0x388   : > { %13051 = vmatmul.mubr.msk.f32.vlgmr.msra.gmra.mrb[40].mxu0 %vm1038_vm1, %v2423_v3 }
 0x389   : > { %13059 = vmatpush3.msra.mxu0 %v15139_v53  ;;  %5117 = vrot.lane.b32.xlu1 %v17070_v57, %s14176_s17 }
 0x38a   : > { %13060 = vmatprep.mubr.msk.f32.mxu0 %vm14175_vm0, %v17066_v15  ;;  %13068 = vmatprep.subr.mxu0 %v17066_v15 }
 0x38c   : > { %13061 = vmatmul.mubr.msk.f32.vlgmr.msra.gmra.mrb[42].mxu0 %vm1038_vm1, %v2425_v17 }
 0x38d   : > { %13069 = vmatpush3.msra.mxu0 %v15157_v51  ;;  %5271 = vrot.lane.b32.xlu1 %v15147_v44, %s14176_s17  ;;  %v17093_v51 = vld [vmem:[#allocation29_spill] sm:$0xff] }
 0x38e   : > { %13070 = vmatprep.mubr.msk.f32.mxu0 %vm14175_vm0, %v17066_v15  ;;  %13078 = vmatprep.subr.mxu0 %v17066_v15 }
 0x391   : > { %5425 = vrot.lane.b32.xlu1 %v15179_v59, %s14176_s17 }
 0x395   : > { %5502 = vrot.lane.b32.xlu1 %v15193_v41, %s14176_s17 }
 0x399   : > { %5579 = vrot.lane.b32.xlu1 %v15207_v10, %s14176_s17 }
 0x39d   : > { %5733 = vrot.lane.b32.xlu1 %v15256_v13, %s14176_s17 }
 0x3a1   : > { %5887 = vrot.lane.b32.xlu1 %v15262_v61, %s14176_s17 }
 0x3a4   : > { %v2374_v50 = vpop.xlane.xlu1 %2373 }
 0x3a5   : > { %13832 = vrcp.f32 %v2374_v50  ;;  %6041 = vrot.lane.b32.xlu1 %v15270_v58, %s14176_s17 }
 0x3a9   : > { %6195 = vrot.lane.b32.xlu1 %v15276_v47, %s14176_s17 }
 0x3ab   : > { %v2389_v25 = vpop.xlane.xlu0 %2388 }
 0x3ac   : > { %13834 = vrcp.f32 %v2389_v25 }
 0x3ad   : > { %6432 = vrot.lane.b32.xlu1 %v17078_v0, %s14177_s19 }
 0x3af   : > { %v13833_v3 = vpop.eup %13832  ;;  %v2395_v39 = vpop.xlane.xlu0 %2394 }
 0x3b0   : > { %13836 = vrcp.f32 %v2395_v39  ;;  %v2422_v17 = vmul.f32 %v13833_v3, %v15056_v48 }
 0x3b1   : > { %6430 = vrot.lane.b32.xlu1 %v17079_v20, %s14177_s19 }
 0x3b2   : > { %13046 = vmatmul.mubr.msk.f32.vlgmr.msra.gmra.mrb[54].mxu1 %vm1038_vm1, %v2422_v17  ;;  %v17082_v17 = vld [vmem:[#allocation40_spill] sm:$0xff] }
 0x3b3   : > { %13054 = vmatpush3.msra.mxu1 %v15256_v13  ;;  %v4084_v31 = vpop.permute.xlu0 %4083  ;;  %13055 = vmatprep.mubr.msk.f32.mxu1 %vm14175_vm0, %v17066_v15 }
 0x3b4   : > { %13063 = vmatprep.subr.mxu1 %v17066_v15 }
 0x3b5   : > { %6588 = vrot.lane.b32.xlu1 %v17080_v60, %s14177_s19 }
 0x3b6   : > { %v13835_v43 = vpop.eup %13834 }
 0x3b7   : > { %v4242_v50 = vpop.permute.xlu0 %4241  ;;  %v2427_v48 = vmul.f32 %v13835_v43, %v15060_v32 }
 0x3b9   : > { %6586 = vrot.lane.b32.xlu1 %v17081_v30, %s14177_s19  ;;  %13071 = vmatmul.mubr.msk.f32.vlgmr.msra.gmra.mrb[44].mxu0 %vm1038_vm1, %v2427_v48  ;;  %v17083_v48 = vld [vmem:[#allocation43_spill] sm:$0xff] }
 0x3ba   : > { %v13837_v25 = vpop.eup %13836  ;;  %13079 = vmatpush3.msra.mxu0 %v15171_v23  ;;  %13080 = vmatprep.mubr.msk.f32.mxu0 %vm14175_vm0, %v17066_v15  ;;  %v17092_v23 = vld [vmem:[#allocation27_spill] sm:$0xff] }
 0x3bb   : > { %v4240_v3 = vpop.permute.xlu0 %4239  ;;  %v2429_v39 = vmul.f32 %v13837_v25, %v15064_v33  ;;  %13088 = vmatprep.subr.mxu0 %v17066_v15  ;;  %v17085_v33 = vld [vmem:[#allocation44_spill] sm:$0xff] }
 0x3bd   : > { %13081 = vmatmul.mubr.msk.f32.vlgmr.msra.gmra.mrb[46].mxu0 %vm1038_vm1, %v2429_v39  ;;  %v17086_v39 = vld [vmem:[#allocation46_spill] sm:$0xff] }
 0x3be   : > { %13090 = vmatprep.mubr.msk.f32.mxu0 %vm14175_vm0, %v17066_v15 }
 0x3bf   : > { %v4398_v32 = vpop.permute.xlu0 %4397 }
 0x3c1   : > { %13089 = vmatpush3.xpose.msk.msra.mxu0 %vm1038_vm1, %v17082_v17 }
 0x3c2   : > { %13098 = vmatprep.subr.mxu0 %v17066_v15 }
 0x3c3   : > { %v4396_v43 = vpop.permute.xlu0 %4395 }
 0x3c4   : > { %13091 = vmatmul.mubr.msk.f32.vlgmr.msra.gmra.mrb[48].mxu0 %vm1038_vm1, %v17083_v48 }
 0x3c5   : > { %13099 = vmatpush3.xpose.msk.msra.mxu0 %vm1038_vm1, %v17084_v12  ;;  %13100 = vmatprep.mubr.msk.f32.mxu0 %vm14175_vm0, %v17066_v15 }
 0x3c6   : > { %13108 = vmatprep.subr.mxu0 %v17066_v15 }
 0x3c7   : > { %v4554_v25 = vpop.permute.xlu0 %4553 }
 0x3c8   : > { %13101 = vmatmul.mubr.msk.f32.vlgmr.msra.gmra.mrb[50].mxu0 %vm1038_vm1, %v17085_v33 }
 0x3c9   : > { %13109 = vmatpush3.xpose.msk.msra.mxu0 %vm1038_vm1, %v17086_v39  ;;  %13110 = vmatprep.mubr.msk.f32.mxu0 %vm14175_vm0, %v17066_v15 }
 0x3ca   : > { %13118 = vmatprep.subr.mxu0 %v17066_v15 }
 0x3cb   : > { %v4552_v12 = vpop.permute.xlu0 %4551 }
 0x3cc   : > { %13111 = vmatmul.mubr.msk.f32.vlgmr.msra.gmra.mrb[52].mxu0 %vm1038_vm1, %v15106_v55  ;;  %v15333_v55 = vpop.permute.xlu1 %4161 }
 0x3cd   : > { %13119 = vmatpush3.xpose.msk.msra.mxu0 %vm1038_vm1, %v4086_v46  ;;  %13120 = vmatprep.mubr.msk.f32.mxu0 %vm14175_vm0, %v17066_v15 }
 0x3ce   : > { %13128 = vmatprep.subr.mxu0 %v17066_v15 }
 0x3cf   : > { %v4710_v17 = vpop.permute.xlu0 %4709 }
 0x3d0   : > { %13121 = vmatmul.mubr.msk.f32.vlgmr.msra.gmra.mrb[54].mxu0 %vm1038_vm1, %v4084_v31 }
 0x3d1   : > { %13129 = vmatpush3.xpose.msk.msra.mxu0 %vm1038_vm1, %v4242_v50  ;;  %13130 = vmatprep.mubr.msk.f32.mxu0 %vm14175_vm0, %v17066_v15 }
 0x3d2   : > { %13138 = vmatprep.subr.mxu0 %v17066_v15 }
 0x3d3   : > { %v4708_v31 = vpop.permute.xlu0 %4707 }
 0x3d4   : > { %13131 = vmatmul.mubr.msk.f32.vlgmr.msra.gmra.mrb[56].mxu0 %vm1038_vm1, %v4240_v3 }
 0x3d5   : > { %13139 = vmatpush3.xpose.msk.msra.mxu0 %vm1038_vm1, %v4398_v32  ;;  %13140 = vmatprep.mubr.msk.f32.mxu0 %vm14175_vm0, %v17066_v15 }
 0x3d6   : > { %13148 = vmatprep.subr.mxu0 %v17066_v15 }
 0x3d7   : > { %v5041_v3 = vpop.permute.xlu0 %5040 }
 0x3d8   : > { %13141 = vmatmul.mubr.msk.f32.vlgmr.msra.gmra.mrb[58].mxu0 %vm1038_vm1, %v4396_v43 }
 0x3d9   : > { %13149 = vmatpush3.xpose.msk.msra.mxu0 %vm1038_vm1, %v4554_v25  ;;  %v2380_v46 = vpop.xlane.xlu1 %2379  ;;  %13150 = vmatprep.mubr.msk.f32.mxu0 %vm14175_vm0, %v17066_v15 }
 0x3da   : > { %13838 = vrcp.f32 %v2380_v46  ;;  %13158 = vmatprep.subr.mxu0 %v17066_v15 }
 0x3dc   : > { %13151 = vmatmul.mubr.msk.f32.vlgmr.msra.gmra.mrb[60].mxu0 %vm1038_vm1, %v4552_v12 }
 0x3dd   : > { %13159 = vmatpush3.xpose.msk.msra.mxu0 %vm1038_vm1, %v4710_v17  ;;  %v2386_v50 = vpop.xlane.xlu1 %2385  ;;  %13160 = vmatprep.mubr.msk.f32.mxu0 %vm14175_vm0, %v17066_v15 }
 0x3de   : > { %13840 = vrcp.f32 %v2386_v50  ;;  %13168 = vmatprep.subr.mxu0 %v17066_v15 }
 0x3e0   : > { %13161 = vmatmul.mubr.msk.f32.vlgmr.msra.gmra.mrb[62].mxu0 %vm1038_vm1, %v4708_v31 }
 0x3e1   : > { %13169 = vmatpush3.msra.mxu0 %v5041_v3  ;;  %v2392_v32 = vpop.xlane.xlu1 %2391  ;;  %13170 = vmatprep.mubr.msk.f32.mxu0 %vm14175_vm0, %v17066_v15  ;;  %v17087_v3 = vld [vmem:[#allocation39_spill] sm:$0xff] }
 0x3e2   : > { %13842 = vrcp.f32 %v2392_v32  ;;  %13178 = vmatprep.subr.mxu0 %v17066_v15  ;;  %v17088_v32 = vld [vmem:[#allocation41_spill] sm:$0xff] }
 0x3e4   : > { %v13839_v43 = vpop.eup %13838 }
 0x3e5   : > { %v2398_v48 = vpop.xlane.xlu1 %2397  ;;  %v2424_v33 = vmul.f32 %v13839_v43, %v15084_v26  ;;  %v17089_v43 = vld [vmem:[#allocation45_spill] sm:$0xff] }
 0x3e6   : > { %13844 = vrcp.f32 %v2398_v48  ;;  %v17090_v48 = vld [vmem:[#allocation47_spill] sm:$0xff] }
 0x3e7   : > { %13056 = vmatmul.mubr.msk.f32.vlgmr.msra.gmra.mrb[56].mxu1 %vm1038_vm1, %v2424_v33 }
 0x3e8   : > { %v13841_v25 = vpop.eup %13840  ;;  %13064 = vmatpush3.msra.mxu1 %v15262_v61  ;;  %13065 = vmatprep.mubr.msk.f32.mxu1 %vm14175_vm0, %v17066_v15 }
 0x3e9   : > { %v4320_v39 = vpop.permute.xlu1 %4319  ;;  %13073 = vmatprep.subr.mxu1 %v17066_v15  ;;  %v2426_v12 = vmul.f32 %v13841_v25, %v15090_v9 }
 0x3eb   : > { %13066 = vmatmul.mubr.msk.f32.vlgmr.msra.gmra.mrb[58].mxu1 %vm1038_vm1, %v2426_v12 }
 0x3ec   : > { %v13843_v17 = vpop.eup %13842  ;;  %13074 = vmatpush3.msra.mxu1 %v15270_v58  ;;  %13075 = vmatprep.mubr.msk.f32.mxu1 %vm14175_vm0, %v17066_v15 }
 0x3ed   : > { %v4318_v26 = vpop.permute.xlu1 %4317  ;;  %13083 = vmatprep.subr.mxu1 %v17066_v15  ;;  %v2428_v46 = vmul.f32 %v13843_v17, %v15096_v22 }
 0x3ef   : > { %13076 = vmatmul.mubr.msk.f32.vlgmr.msra.gmra.mrb[60].mxu1 %vm1038_vm1, %v2428_v46 }
 0x3f0   : > { %v13845_v31 = vpop.eup %13844  ;;  %13084 = vmatpush3.msra.mxu1 %v15276_v47  ;;  %13085 = vmatprep.mubr.msk.f32.mxu1 %vm14175_vm0, %v17066_v15 }
 0x3f1   : > { %v2430_v9 = vmul.f32 %v13845_v31, %v15102_v2  ;;  %13093 = vmatprep.subr.mxu1 %v17066_v15  ;;  %v4476_v50 = vpop.permute.xlu1 %4475 }
 0x3f3   : > { %13086 = vmatmul.mubr.msk.f32.vlgmr.msra.gmra.mrb[62].mxu1 %vm1038_vm1, %v2430_v9 }
 0x3f4   : > { %13095 = vmatprep.mubr.msk.f32.mxu1 %vm14175_vm0, %v17066_v15 }
 0x3f5   : > { %v4474_v22 = vpop.permute.xlu1 %4473 }
 0x3f7   : > { %13094 = vmatpush3.xpose.msk.msra.mxu1 %vm1038_vm1, %v17087_v3 }
 0x3f8   : > { %13103 = vmatprep.subr.mxu1 %v17066_v15 }
 0x3f9   : > { %v4632_v2 = vpop.permute.xlu1 %4631 }
 0x3fa   : > { %13096 = vmatmul.mubr.msk.f32.vlgmr.msra.gmra.mrb[64].mxu1 %vm1038_vm1, %v17088_v32 }
 0x3fb   : > { %13104 = vmatpush3.xpose.msk.msra.mxu1 %vm1038_vm1, %v17089_v43  ;;  %13105 = vmatprep.mubr.msk.f32.mxu1 %vm14175_vm0, %v17066_v15 }
 0x3fc   : > { %13113 = vmatprep.subr.mxu1 %v17066_v15 }
 0x3fd   : > { %v4630_v33 = vpop.permute.xlu1 %4629 }
 0x3fe   : > { %13106 = vmatmul.mubr.msk.f32.vlgmr.msra.gmra.mrb[66].mxu1 %vm1038_vm1, %v17090_v48 }
 0x3ff   : > { %13114 = vmatpush3.xpose.msk.msra.mxu1 %vm1038_vm1, %v15003_v34  ;;  %13115 = vmatprep.mubr.msk.f32.mxu1 %vm14175_vm0, %v17066_v15 }
 0x400   : > { %13123 = vmatprep.subr.mxu1 %v17066_v15 }
 0x401   : > { %v4788_v34 = vpop.permute.xlu1 %4787 }
 0x402   : > { %13116 = vmatmul.mubr.msk.f32.vlgmr.msra.gmra.mrb[68].mxu1 %vm1038_vm1, %v15070_v19 }
 0x403   : > { %13124 = vmatpush3.xpose.msk.msra.mxu1 %vm1038_vm1, %v15264_v40  ;;  %13125 = vmatprep.mubr.msk.f32.mxu1 %vm14175_vm0, %v17066_v15 }
 0x404   : > { %13133 = vmatprep.subr.mxu1 %v17066_v15 }
 0x405   : > { %v4786_v19 = vpop.permute.xlu1 %4785 }
 0x406   : > { %13126 = vmatmul.mubr.msk.f32.vlgmr.msra.gmra.mrb[70].mxu1 %vm1038_vm1, %v15333_v55 }
 0x407   : > { %13134 = vmatpush3.xpose.msk.msra.mxu1 %vm1038_vm1, %v4320_v39  ;;  %13135 = vmatprep.mubr.msk.f32.mxu1 %vm14175_vm0, %v17066_v15 }
 0x408   : > { %13143 = vmatprep.subr.mxu1 %v17066_v15 }
 0x409   : > { %v5118_v40 = vpop.permute.xlu1 %5117 }
 0x40a   : > { %13136 = vmatmul.mubr.msk.f32.vlgmr.msra.gmra.mrb[72].mxu1 %vm1038_vm1, %v4318_v26 }
 0x40b   : > { %13144 = vmatpush3.xpose.msk.msra.mxu1 %vm1038_vm1, %v4476_v50  ;;  %13145 = vmatprep.mubr.msk.f32.mxu1 %vm14175_vm0, %v17066_v15 }
 0x40c   : > { %13153 = vmatprep.subr.mxu1 %v17066_v15 }
 0x40d   : > { %v15528_v36 = vpop.permute.xlu1 %5271 }
 0x40e   : > { %13146 = vmatmul.mubr.msk.f32.vlgmr.msra.gmra.mrb[74].mxu1 %vm1038_vm1, %v4474_v22  ;;  %17101 = vst [vmem:[#allocation25_spill] sm:$0xff] %v15528_v36 }
 0x40f   : > { %13154 = vmatpush3.xpose.msk.msra.mxu1 %vm1038_vm1, %v4632_v2  ;;  %13155 = vmatprep.mubr.msk.f32.mxu1 %vm14175_vm0, %v17066_v15 }
 0x410   : > { %13163 = vmatprep.subr.mxu1 %v17066_v15 }
 0x411   : > { %v15532_v29 = vpop.permute.xlu1 %5425 }
 0x412   : > { %13156 = vmatmul.mubr.msk.f32.vlgmr.msra.gmra.mrb[76].mxu1 %vm1038_vm1, %v4630_v33  ;;  %17103 = vst [vmem:[#allocation43_spill] sm:$0xff] %v15532_v29 }
 0x413   : > { %13164 = vmatpush3.xpose.msk.msra.mxu1 %vm1038_vm1, %v4788_v34  ;;  %13165 = vmatprep.mubr.msk.f32.mxu1 %vm14175_vm0, %v17066_v15 }
 0x414   : > { %13173 = vmatprep.subr.mxu1 %v17066_v15 }
 0x416   : > { %13166 = vmatmul.mubr.msk.f32.vlgmr.msra.gmra.mrb[78].mxu1 %vm1038_vm1, %v4786_v19 }
 0x417   : > { %13174 = vmatpush3.msra.mxu1 %v5118_v40  ;;  %13175 = vmatprep.mubr.msk.f32.mxu1 %vm14175_vm0, %v17066_v15 }
 0x418   : > { %13183 = vmatprep.subr.mxu1 %v17066_v15 }
 0x43b   : > { %v2500_v55 = vpop.f32.mrb[32].mxu0 }
 0x43c   : > { %3599 = vst.msk [vmem:[#allocation2] sm:$0xff] %vm1038_vm1, %v2500_v55  ;;  %v13012_v25 = vpop.f32.mrb[33].mxu0 }
 0x43f   : > { %v2573_v39 = vpop.f32.mrb[48].mxu1 }
 0x440   : > { %3600 = vst.msk [vmem:[#allocation2 + $0x8] sm:$0xff] %vm1038_vm1, %v2573_v39  ;;  %v13017_v12 = vpop.f32.mrb[49].mxu1 }
 0x443   : > { %v2646_v17 = vpop.f32.mrb[34].mxu0 }
 0x444   : > { %3601 = vst.msk [vmem:[#allocation2 + $0x10] sm:$0xff] %vm1038_vm1, %v2646_v17  ;;  %v13022_v26 = vpop.f32.mrb[35].mxu0 }
 0x447   : > { %v2719_v46 = vpop.f32.mrb[50].mxu1 }
 0x448   : > { %3602 = vst.msk [vmem:[#allocation2 + $0x18] sm:$0xff] %vm1038_vm1, %v2719_v46  ;;  %v13027_v31 = vpop.f32.mrb[51].mxu1 }
 0x44b   : > { %v2792_v9 = vpop.f32.mrb[36].mxu0 }
 0x44c   : > { %3603 = vst.msk [vmem:[#allocation2 + $0x20] sm:$0xff] %vm1038_vm1, %v2792_v9  ;;  %v13032_v50 = vpop.f32.mrb[37].mxu0 }
 0x450   : > { %v2865_v3 = vpop.f32.mrb[52].mxu1 }
 0x451   : > { %3604 = vst.msk [vmem:[#allocation2 + $0x28] sm:$0xff] %vm1038_vm1, %v2865_v3  ;;  %v13037_v22 = vpop.f32.mrb[53].mxu1 }
 0x457   : > { %v2938_v32 = vpop.f32.mrb[38].mxu0 }
 0x458   : > { %3605 = vst.msk [vmem:[#allocation2 + $0x30] sm:$0xff] %vm1038_vm1, %v2938_v32  ;;  %v13042_v43 = vpop.f32.mrb[39].mxu0 }
 0x45b   : > { %v3084_v2 = vpop.f32.mrb[40].mxu0 }
 0x45c   : > { %3607 = vst.msk [vmem:[#allocation2 + $0x40] sm:$0xff] %vm1038_vm1, %v3084_v2  ;;  %v13052_v48 = vpop.f32.mrb[41].mxu0 }
 0x45f   : > { %v3230_v33 = vpop.f32.mrb[42].mxu0 }
 0x460   : > { %3609 = vst.msk [vmem:[#allocation2 + $0x50] sm:$0xff] %vm1038_vm1, %v3230_v33  ;;  %v13062_v34 = vpop.f32.mrb[43].mxu0 }
 0x485   : > { %v3011_v19 = vpop.f32.mrb[54].mxu1 }
 0x486   : > { %3606 = vst.msk [vmem:[#allocation2 + $0x38] sm:$0xff] %vm1038_vm1, %v3011_v19  ;;  %v13047_v40 = vpop.f32.mrb[55].mxu1 }
 0x48c   : > { %v3376_v55 = vpop.f32.mrb[44].mxu0 }
 0x48d   : > { %3611 = vst.msk [vmem:[#allocation2 + $0x60] sm:$0xff] %vm1038_vm1, %v3376_v55  ;;  %v13072_v25 = vpop.f32.mrb[45].mxu0 }
 0x490   : > { %v3522_v39 = vpop.f32.mrb[46].mxu0 }
 0x491   : > { %3613 = vst.msk [vmem:[#allocation2 + $0x70] sm:$0xff] %vm1038_vm1, %v3522_v39  ;;  %v13082_v12 = vpop.f32.mrb[47].mxu0 }
 0x497   : > { %v15436_v17 = vpop.f32.mrb[48].mxu0 }
 0x498   : > { %v13092_v26 = vpop.f32.mrb[49].mxu0  ;;  %v4863_v46 = vsel %vm1038_vm1, %v15436_v17, -inf }
 0x499   : > { %4864 = vmax.xlane.f32.xlu0 %v4863_v46 }
 0x49b   : > { %v15440_v31 = vpop.f32.mrb[50].mxu0 }
 0x49c   : > { %v13102_v9 = vpop.f32.mrb[51].mxu0  ;;  %v4869_v50 = vsel %vm1038_vm1, %v15440_v31, -inf }
 0x49d   : > { %4870 = vmax.xlane.f32.xlu0 %v4869_v50 }
 0x49f   : > { %v15444_v3 = vpop.f32.mrb[52].mxu0 }
 0x4a0   : > { %v13112_v22 = vpop.f32.mrb[53].mxu0 }
 0x4a3   : > { %v15446_v32 = vpop.f32.mrb[54].mxu0 }
 0x4a4   : > { %v13122_v43 = vpop.f32.mrb[55].mxu0 }
 0x4a7   : > { %v15448_v2 = vpop.f32.mrb[56].mxu0 }
 0x4a8   : > { %v13132_v48 = vpop.f32.mrb[57].mxu0 }
 0x4ab   : > { %v15450_v33 = vpop.f32.mrb[58].mxu0 }
 0x4ac   : > { %v13142_v34 = vpop.f32.mrb[59].mxu0  ;;  %v4893_v8 = vsel %vm1038_vm1, %v15450_v33, -inf }
 0x4af   : > { %v15452_v19 = vpop.f32.mrb[60].mxu0 }
 0x4b0   : > { %v13152_v40 = vpop.f32.mrb[61].mxu0  ;;  %v4899_v5 = vsel %vm1038_vm1, %v15452_v19, -inf }
 0x4b3   : > { %v15454_v55 = vpop.f32.mrb[62].mxu0 }
 0x4b4   : > { %v13162_v25 = vpop.f32.mrb[63].mxu0  ;;  %v4905_v63 = vsel %vm1038_vm1, %v15454_v55, -inf }
 0x4ba   : > { %v3157_v39 = vpop.f32.mrb[56].mxu1 }
 0x4bb   : > { %3608 = vst.msk [vmem:[#allocation2 + $0x48] sm:$0xff] %vm1038_vm1, %v3157_v39  ;;  %v13057_v12 = vpop.f32.mrb[57].mxu1 }
 0x4be   : > { %v3303_v26 = vpop.f32.mrb[58].mxu1 }
 0x4bf   : > { %3610 = vst.msk [vmem:[#allocation2 + $0x58] sm:$0xff] %vm1038_vm1, %v3303_v26  ;;  %v13067_v46 = vpop.f32.mrb[59].mxu1 }
 0x4c2   : > { %v3449_v9 = vpop.f32.mrb[60].mxu1 }
 0x4c3   : > { %3612 = vst.msk [vmem:[#allocation2 + $0x68] sm:$0xff] %vm1038_vm1, %v3449_v9  ;;  %v13077_v50 = vpop.f32.mrb[61].mxu1  ;;  %v4875_v9 = vsel %vm1038_vm1, %v15444_v3, -inf }
 0x4c6   : > { %v3595_v22 = vpop.f32.mrb[62].mxu1 }
 0x4c7   : > { %3614 = vst.msk [vmem:[#allocation2 + $0x78] sm:$0xff] %vm1038_vm1, %v3595_v22  ;;  %v13087_v43 = vpop.f32.mrb[63].mxu1 }
 0x4cd   : > { %v15460_v48 = vpop.f32.mrb[64].mxu1 }
 0x4ce   : > { %v13097_v34 = vpop.f32.mrb[65].mxu1  ;;  %v4866_v40 = vsel %vm1038_vm1, %v15460_v48, -inf }
 0x4cf   : > { %4867 = vmax.xlane.f32.xlu1 %v4866_v40  ;;  %v4881_v34 = vsel %vm1038_vm1, %v15446_v32, -inf }
 0x4d1   : > { %v15464_v25 = vpop.f32.mrb[66].mxu1 }
 0x4d2   : > { %v13107_v39 = vpop.f32.mrb[67].mxu1  ;;  %v4872_v12 = vsel %vm1038_vm1, %v15464_v25, -inf }
 0x4d3   : > { %4873 = vmax.xlane.f32.xlu0 %v4872_v12 }
 0x4d5   : > { %v15468_v26 = vpop.f32.mrb[68].mxu1 }
 0x4d6   : > { %v13117_v46 = vpop.f32.mrb[69].mxu1  ;;  %v4878_v50 = vsel %vm1038_vm1, %v15468_v26, -inf }
 0x4d7   : > { %4876 = vmax.xlane.f32.xlu0 %v4875_v9  ;;  %4879 = vmax.xlane.f32.xlu1 %v4878_v50  ;;  %v4887_v46 = vsel %vm1038_vm1, %v15448_v2, -inf }
 0x4d9   : > { %v15474_v22 = vpop.f32.mrb[70].mxu1 }
 0x4da   : > { %v13127_v43 = vpop.f32.mrb[71].mxu1  ;;  %v4884_v40 = vsel %vm1038_vm1, %v15474_v22, -inf }
 0x4db   : > { %4882 = vmax.xlane.f32.xlu0 %v4881_v34  ;;  %4885 = vmax.xlane.f32.xlu1 %v4884_v40 }
 0x4dd   : > { %v15480_v39 = vpop.f32.mrb[72].mxu1 }
 0x4de   : > { %v13137_v12 = vpop.f32.mrb[73].mxu1  ;;  %v4890_v9 = vsel %vm1038_vm1, %v15480_v39, -inf }
 0x4df   : > { %4888 = vmax.xlane.f32.xlu0 %v4887_v46  ;;  %4891 = vmax.xlane.f32.xlu1 %v4890_v9 }
 0x4e1   : > { %v15486_v50 = vpop.f32.mrb[74].mxu1 }
 0x4e2   : > { %v13147_v43 = vpop.f32.mrb[75].mxu1  ;;  %v4896_v34 = vsel %vm1038_vm1, %v15486_v50, -inf }
 0x4e3   : > { %4894 = vmax.xlane.f32.xlu0 %v4893_v8  ;;  %4897 = vmax.xlane.f32.xlu1 %v4896_v34  ;;  %v15502_v8 = vpop.permute.xlu0 %5194 }
 0x4e5   : > { %v15492_v40 = vpop.f32.mrb[76].mxu1 }
 0x4e6   : > { %v13157_v12 = vpop.f32.mrb[77].mxu1  ;;  %v4902_v46 = vsel %vm1038_vm1, %v15492_v40, -inf }
 0x4e7   : > { %4900 = vmax.xlane.f32.xlu0 %v4899_v5  ;;  %4903 = vmax.xlane.f32.xlu1 %v4902_v46  ;;  %v15504_v34 = vpop.permute.xlu0 %5348  ;;  %v17095_v46 = vld [vmem:[#allocation24_spill] sm:$0xff] }
 0x4e9   : > { %v15498_v9 = vpop.f32.mrb[78].mxu1 }
 0x4ea   : > { %v13167_v43 = vpop.f32.mrb[79].mxu1 }
 0x4eb   : > { %4906 = vmax.xlane.f32.xlu0 %v4905_v63  ;;  %v15506_v12 = vpop.permute.xlu0 %5656  ;;  %v17097_v63 = vld [vmem:[#allocation26_spill] sm:$0xff] }
 0x4ec   : > { %17091 = vst [vmem:[#allocation33_spill] sm:$0xff] %v15506_v12 }
 0x4ef   : > { %v15512_v5 = vpop.permute.xlu0 %5810 }
 0x4f0   : > { %17094 = vst [vmem:[#allocation34_spill] sm:$0xff] %v15512_v5 }
 0x4f3   : > { %v15516_v43 = vpop.permute.xlu0 %5964 }
 0x4f4   : > { %17096 = vst [vmem:[#allocation36_spill] sm:$0xff] %v15516_v43  ;;  %v15538_v43 = vpop.permute.xlu1 %5502 }
 0x4f5   : > { %17105 = vst [vmem:[#allocation44_spill] sm:$0xff] %v15538_v43 }
 0x4f7   : > { %v15522_v12 = vpop.permute.xlu0 %6118 }
 0x4f8   : > { %6744 = vrot.lane.b32.xlu1 %v17092_v23, %s14177_s19  ;;  %17098 = vst [vmem:[#allocation17_spill] sm:$0xff] %v15522_v12 }
 0x4fb   : > { %v15524_v53 = vpop.permute.xlu0 %6354 }
 0x4fc   : > { %6742 = vrot.lane.b32.xlu1 %v17093_v51, %s14177_s19  ;;  %17099 = vst [vmem:[#allocation19_spill] sm:$0xff] %v15524_v53  ;;  %v15541_v53 = vpop.permute.xlu1 %5579 }
 0x4fd   : > { %17106 = vst [vmem:[#allocation46_spill] sm:$0xff] %v15541_v53 }
 0x4ff   : > { %v15526_v4 = vpop.permute.xlu0 %6352 }
 0x500   : > { %17100 = vst [vmem:[#allocation23_spill] sm:$0xff] %v15526_v4  ;;  %v15544_v29 = vpop.permute.xlu1 %5733 }
 0x501   : > { %6666 = vrot.lane.b32.xlu0 %v17095_v46, %s14177_s19  ;;  %v4908_v46 = vsel %vm1038_vm1, %v15498_v9, -inf  ;;  %17107 = vst [vmem:[#allocation39_spill] sm:$0xff] %v15544_v29 }
 0x503   : > { %v15530_v5 = vpop.permute.xlu0 %6510 }
 0x504   : > { %17102 = vst [vmem:[#allocation40_spill] sm:$0xff] %v15530_v5 }
 0x505   : > { %6664 = vrot.lane.b32.xlu0 %v17097_v63, %s14177_s19 }
 0x507   : > { %v15536_v63 = vpop.permute.xlu0 %6508 }
 0x508   : > { %17104 = vst [vmem:[#allocation42_spill] sm:$0xff] %v15536_v63 }
 0x509   : > { %6822 = vrot.lane.b32.xlu0 %v14745_v42, %s14177_s19 }
 0x520   : > { %4909 = vmax.xlane.f32.xlu1 %v4908_v46  ;;  %v15548_v46 = vpop.permute.xlu1 %5887 }
 0x521   : > { %17108 = vst [vmem:[#allocation41_spill] sm:$0xff] %v15548_v46 }
 0x526   : > { %v4865_v42 = vpop.xlane.xlu0 %4864 }
 0x527   : > { %v4911_v12 = vsub.f32 %v15436_v17, %v4865_v42 }
 0x529   : > { %v4927_v4 = vmul.f32 1.442695, %v4911_v12 }
 0x52a   : > { %v4871_v37 = vpop.xlane.xlu0 %4870 }
 0x52b   : > { %13846 = vpow2.f32 %v4927_v4  ;;  %v4913_v5 = vsub.f32 %v15440_v31, %v4871_v37  ;;  %v15556_v4 = vpop.permute.xlu1 %6041 }
 0x52c   : > { %17109 = vst [vmem:[#allocation45_spill] sm:$0xff] %v15556_v4 }
 0x52d   : > { %v4931_v36 = vmul.f32 1.442695, %v4913_v5 }
 0x52f   : > { %13848 = vpow2.f32 %v4931_v36  ;;  %v15560_v36 = vpop.permute.xlu1 %6195 }
 0x530   : > { %17110 = vst [vmem:[#allocation47_spill] sm:$0xff] %v15560_v36 }
 0x531   : > { %6900 = vrot.lane.b32.xlu1 %v14773_v54, %s14177_s19 }
 0x533   : > { %v15562_v31 = vpop.permute.xlu1 %6432 }
 0x534   : > { %17111 = vst [vmem:[#allocation27_spill] sm:$0xff] %v15562_v31 }
 0x535   : > { %v15550_v63 = vpop.eup %13846 }
 0x536   : > { %v4959_v42 = vsel %vm1038_vm1, %v15550_v63, 0.0 }
 0x537   : > { %4960 = vadd.xlane.f32.xlu0 %v4959_v42  ;;  %v15564_v12 = vpop.permute.xlu1 %6430 }
 0x538   : > { %17112 = vst [vmem:[#allocation54_spill] sm:$0xff] %v15564_v12 }
 0x539   : > { %v15554_v17 = vpop.eup %13848 }
 0x53a   : > { %v4965_v37 = vsel %vm1038_vm1, %v15554_v17, 0.0 }
 0x53b   : > { %4966 = vadd.xlane.f32.xlu0 %v4965_v37  ;;  %v15566_v5 = vpop.permute.xlu1 %6588 }
 0x53c   : > { %17113 = vst [vmem:[#allocation55_spill] sm:$0xff] %v15566_v5 }
 0x53f   : > { %v15568_v54 = vpop.permute.xlu1 %6586 }
 0x540   : > { %17114 = vst [vmem:[#allocation56_spill] sm:$0xff] %v15568_v54 }
 0x55c   : > { %v4868_v46 = vpop.xlane.xlu1 %4867 }
 0x55d   : > { %v4912_v42 = vsub.f32 %v15460_v48, %v4868_v46 }
 0x55f   : > { %v4929_v29 = vmul.f32 1.442695, %v4912_v42 }
 0x560   : > { %v4874_v53 = vpop.xlane.xlu0 %4873 }
 0x561   : > { %13850 = vpow2.f32 %v4929_v29  ;;  %v4914_v4 = vsub.f32 %v15464_v25, %v4874_v53 }
 0x563   : > { %v4933_v43 = vmul.f32 1.442695, %v4914_v4 }
 0x564   : > { %v4877_v37 = vpop.xlane.xlu0 %4876  ;;  %v4880_v51 = vpop.xlane.xlu1 %4879 }
 0x565   : > { %13852 = vpow2.f32 %v4933_v43  ;;  %v4915_v31 = vsub.f32 %v15444_v3, %v4877_v37  ;;  %v4916_v12 = vsub.f32 %v15468_v26, %v4880_v51 }
 0x567   : > { %v4935_v36 = vmul.f32 1.442695, %v4915_v31  ;;  %v4937_v5 = vmul.f32 1.442695, %v4916_v12 }
 0x568   : > { %v4883_v7 = vpop.xlane.xlu0 %4882  ;;  %v4886_v54 = vpop.xlane.xlu1 %4885 }
 0x569   : > { %13854 = vpow2.f32 %v4935_v36  ;;  %v4917_v48 = vsub.f32 %v15446_v32, %v4883_v7  ;;  %v4918_v46 = vsub.f32 %v15474_v22, %v4886_v54 }
 0x56a   : > { %13856 = vpow2.f32 %v4937_v5 }
 0x56b   : > { %v15576_v29 = vpop.eup %13850  ;;  %v4939_v53 = vmul.f32 1.442695, %v4917_v48  ;;  %v4941_v25 = vmul.f32 1.442695, %v4918_v46 }
 0x56c   : > { %v4889_v4 = vpop.xlane.xlu0 %4888  ;;  %v4892_v43 = vpop.xlane.xlu1 %4891  ;;  %v4962_v3 = vsel %vm1038_vm1, %v15576_v29, 0.0 }
 0x56d   : > { %13858 = vpow2.f32 %v4939_v53  ;;  %v4919_v51 = vsub.f32 %v15448_v2, %v4889_v4  ;;  %v4920_v26 = vsub.f32 %v15480_v39, %v4892_v43  ;;  %4963 = vadd.xlane.f32.xlu1 %v4962_v3 }
 0x56e   : > { %13860 = vpow2.f32 %v4941_v25 }
 0x56f   : > { %v15582_v7 = vpop.eup %13852  ;;  %v4943_v54 = vmul.f32 1.442695, %v4919_v51  ;;  %v4945_v32 = vmul.f32 1.442695, %v4920_v26 }
 0x570   : > { %v4895_v22 = vpop.xlane.xlu0 %4894  ;;  %v4898_v36 = vpop.xlane.xlu1 %4897  ;;  %v4968_v31 = vsel %vm1038_vm1, %v15582_v7, 0.0 }
 0x571   : > { %13862 = vpow2.f32 %v4943_v54  ;;  %v4921_v12 = vsub.f32 %v15450_v33, %v4895_v22  ;;  %v4922_v5 = vsub.f32 %v15486_v50, %v4898_v36  ;;  %4969 = vadd.xlane.f32.xlu1 %v4968_v31 }
 0x572   : > { %13864 = vpow2.f32 %v4945_v32 }
 0x573   : > { %v15588_v2 = vpop.eup %13854  ;;  %v4947_v39 = vmul.f32 1.442695, %v4921_v12  ;;  %v4949_v42 = vmul.f32 1.442695, %v4922_v5 }
 0x574   : > { %v15590_v37 = vpop.eup %13856  ;;  %v4901_v48 = vpop.xlane.xlu0 %4900  ;;  %v4971_v53 = vsel %vm1038_vm1, %v15588_v2, 0.0 }
 0x575   : > { %v4904_v46 = vpop.xlane.xlu1 %4903  ;;  %13866 = vpow2.f32 %v4947_v39  ;;  %v4923_v25 = vsub.f32 %v15452_v19, %v4901_v48  ;;  %4972 = vadd.xlane.f32.xlu0 %v4971_v53  ;;  %v4974_v50 = vsel %vm1038_vm1, %v15590_v37, 0.0 }
 0x576   : > { %v4924_v33 = vsub.f32 %v15492_v40, %v4904_v46  ;;  %13868 = vpow2.f32 %v4949_v42  ;;  %4975 = vadd.xlane.f32.xlu1 %v4974_v50 }
 0x577   : > { %v15598_v4 = vpop.eup %13858  ;;  %v4951_v43 = vmul.f32 1.442695, %v4923_v25 }
 0x578   : > { %v4953_v3 = vmul.f32 1.442695, %v4924_v33  ;;  %v15600_v51 = vpop.eup %13860  ;;  %v4907_v26 = vpop.xlane.xlu0 %4906  ;;  %v4977_v54 = vsel %vm1038_vm1, %v15598_v4, 0.0 }
 0x579   : > { %13870 = vpow2.f32 %v4951_v43  ;;  %v4925_v19 = vsub.f32 %v15454_v55, %v4907_v26  ;;  %4978 = vadd.xlane.f32.xlu0 %v4977_v54  ;;  %v4980_v40 = vsel %vm1038_vm1, %v15600_v51, 0.0  ;;  %v15639_v43 = vpop.permute.xlu1 %6744 }
 0x57a   : > { %13872 = vpow2.f32 %v4953_v3  ;;  %4981 = vadd.xlane.f32.xlu1 %v4980_v40 }
 0x57b   : > { %v15607_v32 = vpop.eup %13862  ;;  %v4955_v22 = vmul.f32 1.442695, %v4925_v19 }
 0x57c   : > { %v15609_v36 = vpop.eup %13864  ;;  %v4983_v31 = vsel %vm1038_vm1, %v15607_v32, 0.0  ;;  %v15654_v40 = vpop.permute.xlu0 %6666 }
 0x57d   : > { %13874 = vpow2.f32 %v4955_v22  ;;  %4984 = vadd.xlane.f32.xlu0 %v4983_v31  ;;  %v4986_v12 = vsel %vm1038_vm1, %v15609_v36, 0.0  ;;  %v15645_v3 = vpop.permute.xlu1 %6742 }
 0x57e   : > { %4987 = vadd.xlane.f32.xlu1 %v4986_v12 }
 0x57f   : > { %v15615_v55 = vpop.eup %13866 }
 0x580   : > { %v15617_v5 = vpop.eup %13868  ;;  %v4989_v39 = vsel %vm1038_vm1, %v15615_v55, 0.0  ;;  %v15658_v22 = vpop.permute.xlu0 %6664 }
 0x581   : > { %4990 = vadd.xlane.f32.xlu0 %v4989_v39  ;;  %v4992_v42 = vsel %vm1038_vm1, %v15617_v5, 0.0 }
 0x582   : > { %4993 = vadd.xlane.f32.xlu1 %v4992_v42 }
 0x583   : > { %v15623_v48 = vpop.eup %13870 }
 0x584   : > { %v15625_v46 = vpop.eup %13872  ;;  %v4995_v53 = vsel %vm1038_vm1, %v15623_v48, 0.0  ;;  %v15668_v12 = vpop.permute.xlu0 %6822 }
 0x585   : > { %4996 = vadd.xlane.f32.xlu0 %v4995_v53  ;;  %v4998_v25 = vsel %vm1038_vm1, %v15625_v46, 0.0 }
 0x586   : > { %4999 = vadd.xlane.f32.xlu1 %v4998_v25 }
 0x587   : > { %v15631_v33 = vpop.eup %13874 }
 0x588   : > { %v5001_v50 = vsel %vm1038_vm1, %v15631_v33, 0.0 }
 0x58a   : > { %5002 = vadd.xlane.f32.xlu1 %v5001_v50 }
 0x59b   : > { %6898 = vrot.lane.b32.xlu1 %v14791_v1, %s14177_s19 }
 0x59f   : > { %7056 = vrot.lane.b32.xlu1 %v14800_v6, %s14177_s19 }
 0x5a3   : > { %7054 = vrot.lane.b32.xlu1 %v14819_v11, %s14177_s19 }
 0x5a7   : > { %7212 = vrot.lane.b32.xlu1 %v14827_v14, %s14177_s19 }
 0x5ab   : > { %7210 = vrot.lane.b32.xlu1 %v14842_v18, %s14177_s19 }
 0x5ad   : > { %v4910_v26 = vpop.xlane.xlu1 %4909 }
 0x5ae   : > { %v4926_v54 = vsub.f32 %v15498_v9, %v4910_v26 }
 0x5af   : > { %7368 = vrot.lane.b32.xlu1 %v14848_v21, %s14177_s19 }
 0x5b0   : > { %v4957_v19 = vmul.f32 1.442695, %v4926_v54 }
 0x5b2   : > { %13876 = vpow2.f32 %v4957_v19  ;;  %v17120_v19 = vld [vmem:[#allocation50_spill] sm:$0xff] }
 0x5b3   : > { %7366 = vrot.lane.b32.xlu1 %v14859_v24, %s14177_s19 }
 0x5b7   : > { %7524 = vrot.lane.b32.xlu1 %v14865_v27, %s14177_s19 }
 0x5bb   : > { %7522 = vrot.lane.b32.xlu1 %v17069_v16, %s14177_s19 }
 0x5bc   : > { %v15662_v31 = vpop.eup %13876 }
 0x5bd   : > { %v5004_v9 = vsel %vm1038_vm1, %v15662_v31, 0.0 }
 0x5be   : > { %5005 = vadd.xlane.f32.xlu0 %v5004_v9 }
 0x5bf   : > { %7852 = vrot.lane.b32.xlu1 %v17070_v57, %s14177_s19 }
 0x5c3   : > { %8004 = vrot.lane.b32.xlu1 %v15147_v44, %s14177_s19 }
 0x5c4   : > { %v4961_v39 = vpop.xlane.xlu0 %4960 }
 0x5c5   : > { %13878 = vrcp.f32 %v4961_v39 }
 0x5c7   : > { %8156 = vrot.lane.b32.xlu1 %v15179_v59, %s14177_s19 }
 0x5c8   : > { %v4967_v42 = vpop.xlane.xlu0 %4966 }
 0x5c9   : > { %13880 = vrcp.f32 %v4967_v42 }
 0x5cb   : > { %8232 = vrot.lane.b32.xlu1 %v15193_v41, %s14177_s19 }
 0x5cf   : > { %v13879_v53 = vpop.eup %13878  ;;  %8308 = vrot.lane.b32.xlu1 %v15207_v10, %s14177_s19 }
 0x5d0   : > { %v5023_v25 = vmul.f32 %v13879_v53, %v15550_v63 }
 0x5d2   : > { %13171 = vmatmul.mubr.msk.f32.vlgmr.msra.gmra.mrb[64].mxu0 %vm1038_vm1, %v5023_v25  ;;  %v17121_v25 = vld [vmem:[#allocation51_spill] sm:$0xff] }
 0x5d3   : > { %v13881_v50 = vpop.eup %13880  ;;  %8460 = vrot.lane.b32.xlu1 %v15256_v13, %s14177_s19  ;;  %13179 = vmatpush3.msra.mxu0 %v15502_v8  ;;  %v17116_v8 = vld [vmem:[#allocation29_spill] sm:$0xff] }
 0x5d4   : > { %6820 = vrot.lane.b32.xlu0 %v14766_v52, %s14177_s19  ;;  %13180 = vmatprep.mubr.msk.f32.mxu0 %vm14175_vm0, %v17066_v15  ;;  %v5025_v26 = vmul.f32 %v13881_v50, %v15554_v17 }
 0x5d5   : > { %13188 = vmatprep.subr.mxu0 %v17066_v15 }
 0x5d6   : > { %13181 = vmatmul.mubr.msk.f32.vlgmr.msra.gmra.mrb[66].mxu0 %vm1038_vm1, %v5025_v26  ;;  %v17122_v26 = vld [vmem:[#allocation25_spill] sm:$0xff] }
 0x5d7   : > { %8612 = vrot.lane.b32.xlu1 %v15262_v61, %s14177_s19  ;;  %13189 = vmatpush3.msra.mxu0 %v15504_v34 }
 0x5d8   : > { %6978 = vrot.lane.b32.xlu0 %v14710_v28, %s14177_s19  ;;  %13190 = vmatprep.mubr.msk.f32.mxu0 %vm14175_vm0, %v17066_v15 }
 0x5d9   : > { %13198 = vmatprep.subr.mxu0 %v17066_v15 }
 0x5db   : > { %8764 = vrot.lane.b32.xlu1 %v15270_v58, %s14177_s19 }
 0x5dc   : > { %6976 = vrot.lane.b32.xlu0 %v14729_v35, %s14177_s19 }
 0x5df   : > { %8916 = vrot.lane.b32.xlu1 %v15276_v47, %s14177_s19 }
 0x5e0   : > { %7134 = vrot.lane.b32.xlu0 %v14735_v38, %s14177_s19 }
 0x5e3   : > { %9153 = vrot.lane.b32.xlu1 %v17078_v0, %s14178_s14  ;;  %v17115_v0 = vld [vmem:[#allocation31_spill] sm:$0xff] }
 0x5e4   : > { %7132 = vrot.lane.b32.xlu0 %v14753_v45, %s14177_s19 }
 0x5e7   : > { %9151 = vrot.lane.b32.xlu1 %v17079_v20, %s14178_s14  ;;  %v15726_v20 = vpop.permute.xlu1 %6900 }
 0x5e8   : > { %7290 = vrot.lane.b32.xlu0 %v14763_v49, %s14177_s19 }
 0x5eb   : > { %9309 = vrot.lane.b32.xlu1 %v17080_v60, %s14178_s14  ;;  %v17117_v60 = vld [vmem:[#allocation38_spill] sm:$0xff] }
 0x5ec   : > { %7288 = vrot.lane.b32.xlu0 %v14782_v56, %s14177_s19 }
 0x5ef   : > { %9307 = vrot.lane.b32.xlu1 %v17081_v30, %s14178_s14  ;;  %v17118_v30 = vld [vmem:[#allocation48_spill] sm:$0xff] }
 0x5f0   : > { %7446 = vrot.lane.b32.xlu0 %v14787_v62, %s14177_s19 }
 0x5f3   : > { %9465 = vrot.lane.b32.xlu1 %v17092_v23, %s14178_s14  ;;  %v17119_v23 = vld [vmem:[#allocation49_spill] sm:$0xff] }
 0x5f4   : > { %7444 = vrot.lane.b32.xlu0 %v17115_v0, %s14177_s19 }
 0x5f7   : > { %9463 = vrot.lane.b32.xlu1 %v17116_v8, %s14178_s14 }
 0x5f8   : > { %7776 = vrot.lane.b32.xlu0 %v17117_v60, %s14177_s19 }
 0x5fa   : > { %v4964_v34 = vpop.xlane.xlu1 %4963 }
 0x5fb   : > { %13882 = vrcp.f32 %v4964_v34 }
 0x5fc   : > { %7928 = vrot.lane.b32.xlu0 %v17118_v30, %s14177_s19 }
 0x5fe   : > { %v4970_v63 = vpop.xlane.xlu1 %4969 }
 0x5ff   : > { %13884 = vrcp.f32 %v4970_v63  ;;  %v17123_v63 = vld [vmem:[#allocation52_spill] sm:$0xff] }
 0x600   : > { %8080 = vrot.lane.b32.xlu0 %v17119_v23, %s14177_s19 }
 0x602   : > { %v4973_v17 = vpop.xlane.xlu0 %4972 }
 0x603   : > { %13886 = vrcp.f32 %v4973_v17  ;;  %v4976_v54 = vpop.xlane.xlu1 %4975 }
 0x604   : > { %13888 = vrcp.f32 %v4976_v54  ;;  %8384 = vrot.lane.b32.xlu0 %v17120_v19, %s14177_s19  ;;  %v17124_v54 = vld [vmem:[#allocation43_spill] sm:$0xff] }
 0x605   : > { %v13883_v9 = vpop.eup %13882 }
 0x606   : > { %v4979_v39 = vpop.xlane.xlu0 %4978  ;;  %v5024_v42 = vmul.f32 %v13883_v9, %v15576_v29 }
 0x607   : > { %13890 = vrcp.f32 %v4979_v39  ;;  %v4982_v53 = vpop.xlane.xlu1 %4981 }
 0x608   : > { %13892 = vrcp.f32 %v4982_v53  ;;  %8536 = vrot.lane.b32.xlu0 %v17121_v25, %s14177_s19  ;;  %13176 = vmatmul.mubr.msk.f32.vlgmr.msra.gmra.mrb[80].mxu1 %vm1038_vm1, %v5024_v42 }
 0x609   : > { %v13885_v50 = vpop.eup %13884  ;;  %13184 = vmatpush3.msra.mxu1 %v17122_v26  ;;  %13185 = vmatprep.mubr.msk.f32.mxu1 %vm14175_vm0, %v17066_v15 }
 0x60a   : > { %v4985_v8 = vpop.xlane.xlu0 %4984  ;;  %13193 = vmatprep.subr.mxu1 %v17066_v15  ;;  %v5026_v34 = vmul.f32 %v13885_v50, %v15582_v7  ;;  %v17125_v50 = vld [vmem:[#allocation53_spill] sm:$0xff] }
 0x60b   : > { %13894 = vrcp.f32 %v4985_v8  ;;  %v4988_v29 = vpop.xlane.xlu1 %4987  ;;  %v17126_v8 = vld [vmem:[#allocation44_spill] sm:$0xff] }
 0x60c   : > { %13896 = vrcp.f32 %v4988_v29  ;;  %8688 = vrot.lane.b32.xlu0 %v17123_v63, %s14177_s19  ;;  %13186 = vmatmul.mubr.msk.f32.vlgmr.msra.gmra.mrb[82].mxu1 %vm1038_vm1, %v5026_v34  ;;  %v17127_v29 = vld [vmem:[#allocation46_spill] sm:$0xff] }
 0x60d   : > { %v13887_v17 = vpop.eup %13886  ;;  %13194 = vmatpush3.msra.mxu1 %v17124_v54  ;;  %13195 = vmatprep.mubr.msk.f32.mxu1 %vm14175_vm0, %v17066_v15 }
 0x60e   : > { %v13889_v9 = vpop.eup %13888  ;;  %v4991_v39 = vpop.xlane.xlu0 %4990  ;;  %13203 = vmatprep.subr.mxu1 %v17066_v15  ;;  %v5027_v7 = vmul.f32 %v13887_v17, %v15588_v2 }
 0x60f   : > { %13898 = vrcp.f32 %v4991_v39  ;;  %v4994_v42 = vpop.xlane.xlu1 %4993  ;;  %v5028_v53 = vmul.f32 %v13889_v9, %v15590_v37  ;;  %v17128_v39 = vld [vmem:[#allocation33_spill] sm:$0xff] }
 0x610   : > { %13900 = vrcp.f32 %v4994_v42  ;;  %13191 = vmatmul.mubr.msk.f32.vlgmr.msra.gmra.mrb[68].mxu0 %vm1038_vm1, %v5027_v7  ;;  %8840 = vrot.lane.b32.xlu0 %v17125_v50, %s14177_s19  ;;  %v17129_v7 = vld [vmem:[#allocation18_spill] sm:$0xff] }
 0x611   : > { %v13891_v26 = vpop.eup %13890  ;;  %13199 = vmatpush3.msra.mxu0 %v17126_v8  ;;  %13196 = vmatmul.mubr.msk.f32.vlgmr.msra.gmra.mrb[84].mxu1 %vm1038_vm1, %v5028_v53 }
 0x612   : > { %v13893_v34 = vpop.eup %13892  ;;  %13204 = vmatpush3.msra.mxu1 %v17127_v29  ;;  %v4997_v54 = vpop.xlane.xlu0 %4996  ;;  %13200 = vmatprep.mubr.msk.f32.mxu0 %vm14175_vm0, %v17066_v15  ;;  %v5029_v2 = vmul.f32 %v13891_v26, %v15598_v4  ;;  %v17132_v29 = vld [vmem:[#allocation34_spill] sm:$0xff] }
 0x613   : > { %13902 = vrcp.f32 %v4997_v54  ;;  %v5000_v37 = vpop.xlane.xlu1 %4999  ;;  %13205 = vmatprep.mubr.msk.f32.mxu1 %vm14175_vm0, %v17066_v15  ;;  %13208 = vmatprep.subr.mxu0 %v17066_v15  ;;  %v5030_v17 = vmul.f32 %v13893_v34, %v15600_v51  ;;  %v17130_v51 = vld [vmem:[#allocation39_spill] sm:$0xff]  ;;  %v17131_v34 = vld [vmem:[#allocation20_spill] sm:$0xff] }
 0x614   : > { %13904 = vrcp.f32 %v5000_v37  ;;  %13213 = vmatprep.subr.mxu1 %v17066_v15  ;;  %13201 = vmatmul.mubr.msk.f32.vlgmr.msra.gmra.mrb[70].mxu0 %vm1038_vm1, %v5029_v2  ;;  %v17133_v2 = vld [vmem:[#allocation41_spill] sm:$0xff] }
 0x615   : > { %v13895_v9 = vpop.eup %13894  ;;  %13209 = vmatpush3.msra.mxu0 %v17128_v39  ;;  %9075 = vrot.lane.b32.xlu0 %v17129_v7, %s14178_s14  ;;  %v17136_v7 = vld [vmem:[#allocation45_spill] sm:$0xff] }
 0x616   : > { %v13897_v4 = vpop.eup %13896  ;;  %13206 = vmatmul.mubr.msk.f32.vlgmr.msra.gmra.mrb[86].mxu1 %vm1038_vm1, %v5030_v17  ;;  %13210 = vmatprep.mubr.msk.f32.mxu0 %vm14175_vm0, %v17066_v15  ;;  %v5031_v42 = vmul.f32 %v13895_v9, %v15607_v32  ;;  %v17134_v9 = vld [vmem:[#allocation36_spill] sm:$0xff] }
 0x617   : > { %13214 = vmatpush3.msra.mxu1 %v17130_v51  ;;  %v5003_v53 = vpop.xlane.xlu1 %5002  ;;  %13215 = vmatprep.mubr.msk.f32.mxu1 %vm14175_vm0, %v17066_v15  ;;  %v5032_v26 = vmul.f32 %v13897_v4, %v15609_v36  ;;  %v17139_v51 = vld [vmem:[#allocation47_spill] sm:$0xff] }
 0x618   : > { %13906 = vrcp.f32 %v5003_v53  ;;  %13218 = vmatprep.subr.mxu0 %v17066_v15  ;;  %13223 = vmatprep.subr.mxu1 %v17066_v15  ;;  %v17140_v53 = vld [vmem:[#allocation24_spill] sm:$0xff] }
 0x619   : > { %v13899_v8 = vpop.eup %13898  ;;  %13211 = vmatmul.mubr.msk.f32.vlgmr.msra.gmra.mrb[72].mxu0 %vm1038_vm1, %v5031_v42  ;;  %9073 = vrot.lane.b32.xlu0 %v17131_v34, %s14178_s14  ;;  %v17138_v42 = vld [vmem:[#allocation17_spill] sm:$0xff]  ;;  %v17144_v34 = vld [vmem:[#allocation40_spill] sm:$0xff] }
 0x61a   : > { %v13901_v32 = vpop.eup %13900  ;;  %13219 = vmatpush3.msra.mxu0 %v17132_v29  ;;  %13216 = vmatmul.mubr.msk.f32.vlgmr.msra.gmra.mrb[88].mxu1 %vm1038_vm1, %v5032_v26  ;;  %v5033_v54 = vmul.f32 %v13899_v8, %v15615_v55  ;;  %v17135_v55 = vld [vmem:[#allocation21_spill] sm:$0xff]  ;;  %v17142_v26 = vld [vmem:[#allocation26_spill] sm:$0xff]  ;;  %v17143_v8 = vld [vmem:[#allocation23_spill] sm:$0xff] }
 0x61b   : > { %13224 = vmatpush3.msra.mxu1 %v17133_v2  ;;  %13220 = vmatprep.mubr.msk.f32.mxu0 %vm14175_vm0, %v17066_v15  ;;  %v5034_v36 = vmul.f32 %v13901_v32, %v15617_v5  ;;  %v17145_v32 = vld [vmem:[#allocation42_spill] sm:$0xff]  ;;  %v6899_v29 = vpop.permute.xlu1 %6898 }
 0x61c   : > { %13225 = vmatprep.mubr.msk.f32.mxu1 %vm14175_vm0, %v17066_v15  ;;  %13228 = vmatprep.subr.mxu0 %v17066_v15 }
 0x61d   : > { %v13903_v37 = vpop.eup %13902  ;;  %13233 = vmatprep.subr.mxu1 %v17066_v15  ;;  %13221 = vmatmul.mubr.msk.f32.vlgmr.msra.gmra.mrb[74].mxu0 %vm1038_vm1, %v5033_v54 }
 0x61e   : > { %v13905_v17 = vpop.eup %13904  ;;  %13229 = vmatpush3.msra.mxu0 %v17134_v9  ;;  %9231 = vrot.lane.b32.xlu0 %v17135_v55, %s14178_s14  ;;  %v5035_v39 = vmul.f32 %v13903_v37, %v15623_v48  ;;  %v17137_v48 = vld [vmem:[#allocation22_spill] sm:$0xff]  ;;  %v17146_v55 = vld [vmem:[#allocation27_spill] sm:$0xff] }
 0x61f   : > { %13226 = vmatmul.mubr.msk.f32.vlgmr.msra.gmra.mrb[90].mxu1 %vm1038_vm1, %v5034_v36  ;;  %13230 = vmatprep.mubr.msk.f32.mxu0 %vm14175_vm0, %v17066_v15  ;;  %v5036_v5 = vmul.f32 %v13905_v17, %v15625_v46  ;;  %v7057_v54 = vpop.permute.xlu1 %7056 }
 0x620   : > { %13234 = vmatpush3.msra.mxu1 %v17136_v7  ;;  %13235 = vmatprep.mubr.msk.f32.mxu1 %vm14175_vm0, %v17066_v15  ;;  %v17148_v7 = vld [vmem:[#allocation55_spill] sm:$0xff] }
 0x621   : > { %13238 = vmatprep.subr.mxu0 %v17066_v15  ;;  %13243 = vmatprep.subr.mxu1 %v17066_v15 }
 0x622   : > { %v13907_v4 = vpop.eup %13906  ;;  %13231 = vmatmul.mubr.msk.f32.vlgmr.msra.gmra.mrb[76].mxu0 %vm1038_vm1, %v5035_v39  ;;  %9229 = vrot.lane.b32.xlu0 %v17137_v48, %s14178_s14 }
 0x623   : > { %13239 = vmatpush3.msra.mxu0 %v17138_v42  ;;  %13236 = vmatmul.mubr.msk.f32.vlgmr.msra.gmra.mrb[92].mxu1 %vm1038_vm1, %v5036_v5  ;;  %v5037_v46 = vmul.f32 %v13907_v4, %v15631_v33  ;;  %v17141_v33 = vld [vmem:[#allocation19_spill] sm:$0xff]  ;;  %v17149_v42 = vld [vmem:[#allocation56_spill] sm:$0xff] }
 0x624   : > { %13244 = vmatpush3.msra.mxu1 %v17139_v51  ;;  %13240 = vmatprep.mubr.msk.f32.mxu0 %vm14175_vm0, %v17066_v15 }
 0x625   : > { %13248 = vmatprep.subr.mxu0 %v17066_v15  ;;  %13245 = vmatprep.mubr.msk.f32.mxu1 %vm14175_vm0, %v17066_v15 }
 0x626   : > { %9387 = vrot.lane.b32.xlu0 %v17140_v53, %s14178_s14  ;;  %13241 = vmatmul.mubr.msk.f32.vlgmr.msra.gmra.mrb[78].mxu0 %vm1038_vm1, %v5037_v46 }
 0x627   : > { %13250 = vmatprep.mubr.msk.f32.mxu0 %vm14175_vm0, %v17066_v15  ;;  %13253 = vmatprep.subr.mxu1 %v17066_v15 }
 0x62a   : > { %13249 = vmatpush3.xpose.msk.msra.mxu0 %vm1038_vm1, %v17141_v33  ;;  %9385 = vrot.lane.b32.xlu0 %v17142_v26, %s14178_s14 }
 0x62b   : > { %13258 = vmatprep.subr.mxu0 %v17066_v15 }
 0x62d   : > { %13251 = vmatmul.mubr.msk.f32.vlgmr.msra.gmra.mrb[80].mxu0 %vm1038_vm1, %v17143_v8 }
 0x62e   : > { %13259 = vmatpush3.xpose.msk.msra.mxu0 %vm1038_vm1, %v17144_v34  ;;  %13260 = vmatprep.mubr.msk.f32.mxu0 %vm14175_vm0, %v17066_v15 }
 0x62f   : > { %13268 = vmatprep.subr.mxu0 %v17066_v15 }
 0x631   : > { %13261 = vmatmul.mubr.msk.f32.vlgmr.msra.gmra.mrb[82].mxu0 %vm1038_vm1, %v17145_v32 }
 0x632   : > { %13269 = vmatpush3.xpose.msk.msra.mxu0 %vm1038_vm1, %v15654_v40  ;;  %13270 = vmatprep.mubr.msk.f32.mxu0 %vm14175_vm0, %v17066_v15  ;;  %v7055_v40 = vpop.permute.xlu1 %7054 }
 0x633   : > { %13278 = vmatprep.subr.mxu0 %v17066_v15 }
 0x635   : > { %13271 = vmatmul.mubr.msk.f32.vlgmr.msra.gmra.mrb[84].mxu0 %vm1038_vm1, %v15658_v22 }
 0x636   : > { %13279 = vmatpush3.xpose.msk.msra.mxu0 %vm1038_vm1, %v15668_v12  ;;  %13280 = vmatprep.mubr.msk.f32.mxu0 %vm14175_vm0, %v17066_v15  ;;  %v7213_v12 = vpop.permute.xlu1 %7212 }
 0x637   : > { %13288 = vmatprep.subr.mxu0 %v17066_v15 }
 0x63a   : > { %v7211_v39 = vpop.permute.xlu1 %7210 }
 0x63e   : > { %v7369_v48 = vpop.permute.xlu1 %7368 }
 0x64b   : > { %v5006_v2 = vpop.xlane.xlu0 %5005 }
 0x64c   : > { %13908 = vrcp.f32 %v5006_v2 }
 0x64f   : > { %v6821_v36 = vpop.permute.xlu0 %6820 }
 0x650   : > { %13281 = vmatmul.mubr.msk.f32.vlgmr.msra.gmra.mrb[86].mxu0 %vm1038_vm1, %v6821_v36 }
 0x651   : > { %13290 = vmatprep.mubr.msk.f32.mxu0 %vm14175_vm0, %v17066_v15 }
 0x653   : > { %v6979_v22 = vpop.permute.xlu0 %6978 }
 0x654   : > { %13289 = vmatpush3.xpose.msk.msra.mxu0 %vm1038_vm1, %v6979_v22 }
 0x655   : > { %13298 = vmatprep.subr.mxu0 %v17066_v15 }
 0x656   : > { %v13909_v37 = vpop.eup %13908 }
 0x657   : > { %v6977_v17 = vpop.permute.xlu0 %6976  ;;  %v5038_v9 = vmul.f32 %v13909_v37, %v15662_v31  ;;  %v17147_v31 = vld [vmem:[#allocation54_spill] sm:$0xff] }
 0x658   : > { %13291 = vmatmul.mubr.msk.f32.vlgmr.msra.gmra.mrb[88].mxu0 %vm1038_vm1, %v6977_v17 }
 0x659   : > { %13246 = vmatmul.mubr.msk.f32.vlgmr.msra.gmra.mrb[94].mxu1 %vm1038_vm1, %v5038_v9  ;;  %13300 = vmatprep.mubr.msk.f32.mxu0 %vm14175_vm0, %v17066_v15 }
 0x65a   : > { %13254 = vmatpush3.xpose.msk.msra.mxu1 %vm1038_vm1, %v17146_v55  ;;  %13255 = vmatprep.mubr.msk.f32.mxu1 %vm14175_vm0, %v17066_v15 }
 0x65b   : > { %v7135_v5 = vpop.permute.xlu0 %7134  ;;  %13263 = vmatprep.subr.mxu1 %v17066_v15 }
 0x65c   : > { %13299 = vmatpush3.xpose.msk.msra.mxu0 %vm1038_vm1, %v7135_v5 }
 0x65d   : > { %13256 = vmatmul.mubr.msk.f32.vlgmr.msra.gmra.mrb[96].mxu1 %vm1038_vm1, %v17147_v31  ;;  %13308 = vmatprep.subr.mxu0 %v17066_v15 }
 0x65e   : > { %13264 = vmatpush3.xpose.msk.msra.mxu1 %vm1038_vm1, %v17148_v7  ;;  %13265 = vmatprep.mubr.msk.f32.mxu1 %vm14175_vm0, %v17066_v15 }
 0x65f   : > { %v7133_v4 = vpop.permute.xlu0 %7132  ;;  %13273 = vmatprep.subr.mxu1 %v17066_v15 }
 0x660   : > { %13301 = vmatmul.mubr.msk.f32.vlgmr.msra.gmra.mrb[90].mxu0 %vm1038_vm1, %v7133_v4 }
 0x661   : > { %13266 = vmatmul.mubr.msk.f32.vlgmr.msra.gmra.mrb[98].mxu1 %vm1038_vm1, %v17149_v42  ;;  %13310 = vmatprep.mubr.msk.f32.mxu0 %vm14175_vm0, %v17066_v15 }
 0x662   : > { %13274 = vmatpush3.xpose.msk.msra.mxu1 %vm1038_vm1, %v15639_v43  ;;  %13275 = vmatprep.mubr.msk.f32.mxu1 %vm14175_vm0, %v17066_v15  ;;  %v7367_v43 = vpop.permute.xlu1 %7366 }
 0x663   : > { %v7291_v46 = vpop.permute.xlu0 %7290  ;;  %13283 = vmatprep.subr.mxu1 %v17066_v15 }
 0x664   : > { %13309 = vmatpush3.xpose.msk.msra.mxu0 %vm1038_vm1, %v7291_v46 }
 0x665   : > { %13276 = vmatmul.mubr.msk.f32.vlgmr.msra.gmra.mrb[100].mxu1 %vm1038_vm1, %v15645_v3  ;;  %13318 = vmatprep.subr.mxu0 %v17066_v15 }
 0x666   : > { %13284 = vmatpush3.xpose.msk.msra.mxu1 %vm1038_vm1, %v15726_v20  ;;  %13285 = vmatprep.mubr.msk.f32.mxu1 %vm14175_vm0, %v17066_v15  ;;  %v7525_v20 = vpop.permute.xlu1 %7524 }
 0x667   : > { %v7289_v51 = vpop.permute.xlu0 %7288  ;;  %13293 = vmatprep.subr.mxu1 %v17066_v15 }
 0x668   : > { %13311 = vmatmul.mubr.msk.f32.vlgmr.msra.gmra.mrb[92].mxu0 %vm1038_vm1, %v7289_v51 }
 0x669   : > { %13286 = vmatmul.mubr.msk.f32.vlgmr.msra.gmra.mrb[102].mxu1 %vm1038_vm1, %v6899_v29  ;;  %13320 = vmatprep.mubr.msk.f32.mxu0 %vm14175_vm0, %v17066_v15 }
 0x66a   : > { %13294 = vmatpush3.xpose.msk.msra.mxu1 %vm1038_vm1, %v7057_v54  ;;  %13295 = vmatprep.mubr.msk.f32.mxu1 %vm14175_vm0, %v17066_v15  ;;  %v7523_v33 = vpop.permute.xlu1 %7522 }
 0x66b   : > { %v7447_v3 = vpop.permute.xlu0 %7446  ;;  %13303 = vmatprep.subr.mxu1 %v17066_v15 }
 0x66c   : > { %13319 = vmatpush3.xpose.msk.msra.mxu0 %vm1038_vm1, %v7447_v3 }
 0x66d   : > { %13296 = vmatmul.mubr.msk.f32.vlgmr.msra.gmra.mrb[104].mxu1 %vm1038_vm1, %v7055_v40  ;;  %13328 = vmatprep.subr.mxu0 %v17066_v15 }
 0x66e   : > { %13304 = vmatpush3.xpose.msk.msra.mxu1 %vm1038_vm1, %v7213_v12  ;;  %13305 = vmatprep.mubr.msk.f32.mxu1 %vm14175_vm0, %v17066_v15  ;;  %v7853_v8 = vpop.permute.xlu1 %7852 }
 0x66f   : > { %v7445_v53 = vpop.permute.xlu0 %7444  ;;  %13313 = vmatprep.subr.mxu1 %v17066_v15 }
 0x670   : > { %13321 = vmatmul.mubr.msk.f32.vlgmr.msra.gmra.mrb[94].mxu0 %vm1038_vm1, %v7445_v53 }
 0x671   : > { %13306 = vmatmul.mubr.msk.f32.vlgmr.msra.gmra.mrb[106].mxu1 %vm1038_vm1, %v7211_v39  ;;  %13330 = vmatprep.mubr.msk.f32.mxu0 %vm14175_vm0, %v17066_v15 }
 0x672   : > { %13314 = vmatpush3.xpose.msk.msra.mxu1 %vm1038_vm1, %v7369_v48  ;;  %13315 = vmatprep.mubr.msk.f32.mxu1 %vm14175_vm0, %v17066_v15 }
 0x673   : > { %v7777_v26 = vpop.permute.xlu0 %7776  ;;  %13323 = vmatprep.subr.mxu1 %v17066_v15 }
 0x674   : > { %13329 = vmatpush3.msra.mxu0 %v7777_v26 }
 0x675   : > { %13316 = vmatmul.mubr.msk.f32.vlgmr.msra.gmra.mrb[108].mxu1 %vm1038_vm1, %v7367_v43  ;;  %13338 = vmatprep.subr.mxu0 %v17066_v15 }
 0x676   : > { %13324 = vmatpush3.xpose.msk.msra.mxu1 %vm1038_vm1, %v7525_v20  ;;  %13325 = vmatprep.mubr.msk.f32.mxu1 %vm14175_vm0, %v17066_v15 }
 0x677   : > { %13333 = vmatprep.subr.mxu1 %v17066_v15 }
 0x679   : > { %13326 = vmatmul.mubr.msk.f32.vlgmr.msra.gmra.mrb[110].mxu1 %vm1038_vm1, %v7523_v33 }
 0x67a   : > { %13334 = vmatpush3.msra.mxu1 %v7853_v8  ;;  %13335 = vmatprep.mubr.msk.f32.mxu1 %vm14175_vm0, %v17066_v15 }
 0x67b   : > { %13343 = vmatprep.subr.mxu1 %v17066_v15 }
 0x6a5   : > { %v15932_v34 = vpop.f32.mrb[64].mxu0 }
 0x6a6   : > { %17150 = vst [vmem:[#allocation31_spill] sm:$0xff] %v15932_v34  ;;  %v13172_v32 = vpop.f32.mrb[65].mxu0  ;;  %v16018_v34 = vpop.permute.xlu0 %7928 }
 0x6a9   : > { %v15934_v29 = vpop.f32.mrb[66].mxu0 }
 0x6aa   : > { %17151 = vst [vmem:[#allocation29_spill] sm:$0xff] %v15934_v29  ;;  %v13182_v54 = vpop.f32.mrb[67].mxu0 }
 0x6db   : > { %v15936_v2 = vpop.f32.mrb[80].mxu1 }
 0x6dc   : > { %17152 = vst [vmem:[#allocation38_spill] sm:$0xff] %v15936_v2  ;;  %v13177_v40 = vpop.f32.mrb[81].mxu1 }
 0x6df   : > { %v15938_v36 = vpop.f32.mrb[82].mxu1 }
 0x6e0   : > { %17153 = vst [vmem:[#allocation48_spill] sm:$0xff] %v15938_v36  ;;  %v13187_v22 = vpop.f32.mrb[83].mxu1 }
 0x6e3   : > { %v15940_v12 = vpop.f32.mrb[68].mxu0 }
 0x6e4   : > { %17154 = vst [vmem:[#allocation49_spill] sm:$0xff] %v15940_v12  ;;  %v15942_v37 = vpop.f32.mrb[84].mxu1  ;;  %v13192_v17 = vpop.f32.mrb[69].mxu0 }
 0x6e5   : > { %17155 = vst [vmem:[#allocation50_spill] sm:$0xff] %v15942_v37  ;;  %v13197_v9 = vpop.f32.mrb[85].mxu1 }
 0x6e7   : > { %v15944_v55 = vpop.f32.mrb[70].mxu0 }
 0x6e8   : > { %17156 = vst [vmem:[#allocation25_spill] sm:$0xff] %v15944_v55  ;;  %v13202_v39 = vpop.f32.mrb[71].mxu0 }
 0x6e9   : > { %v15946_v5 = vpop.f32.mrb[86].mxu1 }
 0x6ea   : > { %17157 = vst [vmem:[#allocation43_spill] sm:$0xff] %v15946_v5  ;;  %v13207_v31 = vpop.f32.mrb[87].mxu1  ;;  %v16044_v5 = vpop.permute.xlu1 %8004 }
 0x6ec   : > { %v15948_v7 = vpop.f32.mrb[72].mxu0 }
 0x6ed   : > { %17158 = vst [vmem:[#allocation44_spill] sm:$0xff] %v15948_v7  ;;  %v15950_v4 = vpop.f32.mrb[88].mxu1  ;;  %v13212_v48 = vpop.f32.mrb[73].mxu0 }
 0x6ee   : > { %17159 = vst [vmem:[#allocation46_spill] sm:$0xff] %v15950_v4  ;;  %v13217_v42 = vpop.f32.mrb[89].mxu1 }
 0x6f0   : > { %v15952_v46 = vpop.f32.mrb[74].mxu0 }
 0x6f1   : > { %17160 = vst [vmem:[#allocation33_spill] sm:$0xff] %v15952_v46  ;;  %v13222_v43 = vpop.f32.mrb[75].mxu0 }
 0x6f2   : > { %v15954_v51 = vpop.f32.mrb[90].mxu1 }
 0x6f3   : > { %17161 = vst [vmem:[#allocation18_spill] sm:$0xff] %v15954_v51  ;;  %v13227_v3 = vpop.f32.mrb[91].mxu1 }
 0x6f5   : > { %v15956_v20 = vpop.f32.mrb[76].mxu0 }
 0x6f6   : > { %17162 = vst [vmem:[#allocation39_spill] sm:$0xff] %v15956_v20  ;;  %v15958_v53 = vpop.f32.mrb[92].mxu1  ;;  %v13232_v33 = vpop.f32.mrb[77].mxu0 }
 0x6f7   : > { %17163 = vst [vmem:[#allocation20_spill] sm:$0xff] %v15958_v53  ;;  %v13237_v26 = vpop.f32.mrb[93].mxu1 }
 0x6f9   : > { %v15960_v8 = vpop.f32.mrb[78].mxu0 }
 0x6fa   : > { %17164 = vst [vmem:[#allocation34_spill] sm:$0xff] %v15960_v8  ;;  %v13242_v32 = vpop.f32.mrb[79].mxu0 }
 0x700   : > { %v15962_v54 = vpop.f32.mrb[80].mxu0 }
 0x701   : > { %v13252_v40 = vpop.f32.mrb[81].mxu0  ;;  %v7600_v22 = vsel %vm1038_vm1, %v15962_v54, -inf }
 0x702   : > { %7601 = vmax.xlane.f32.xlu0 %v7600_v22 }
 0x704   : > { %v15966_v17 = vpop.f32.mrb[82].mxu0 }
 0x705   : > { %v13262_v9 = vpop.f32.mrb[83].mxu0  ;;  %v7606_v39 = vsel %vm1038_vm1, %v15966_v17, -inf }
 0x706   : > { %7607 = vmax.xlane.f32.xlu0 %v7606_v39 }
 0x708   : > { %v15970_v31 = vpop.f32.mrb[84].mxu0 }
 0x709   : > { %v13272_v48 = vpop.f32.mrb[85].mxu0 }
 0x723   : > { %v15972_v42 = vpop.f32.mrb[86].mxu0 }
 0x724   : > { %v13282_v43 = vpop.f32.mrb[87].mxu0 }
 0x72b   : > { %v15974_v3 = vpop.f32.mrb[88].mxu0 }
 0x72c   : > { %v15976_v33 = vpop.f32.mrb[94].mxu1  ;;  %v13292_v26 = vpop.f32.mrb[89].mxu0 }
 0x72d   : > { %17165 = vst [vmem:[#allocation41_spill] sm:$0xff] %v15976_v33  ;;  %v13247_v32 = vpop.f32.mrb[95].mxu1 }
 0x72e   : > { %v7612_v32 = vsel %vm1038_vm1, %v15970_v31, -inf }
 0x730   : > { %v15978_v40 = vpop.f32.mrb[96].mxu1 }
 0x731   : > { %v13257_v22 = vpop.f32.mrb[97].mxu1  ;;  %v7603_v9 = vsel %vm1038_vm1, %v15978_v40, -inf }
 0x732   : > { %7604 = vmax.xlane.f32.xlu1 %v7603_v9 }
 0x733   : > { %v15982_v39 = vpop.f32.mrb[90].mxu0 }
 0x734   : > { %v15984_v8 = vpop.f32.mrb[98].mxu1  ;;  %v13302_v48 = vpop.f32.mrb[91].mxu0 }
 0x735   : > { %v13267_v20 = vpop.f32.mrb[99].mxu1  ;;  %v7609_v43 = vsel %vm1038_vm1, %v15984_v8, -inf }
 0x736   : > { %7610 = vmax.xlane.f32.xlu0 %v7609_v43  ;;  %v7618_v43 = vsel %vm1038_vm1, %v15972_v42, -inf }
 0x738   : > { %v15988_v46 = vpop.f32.mrb[100].mxu1 }
 0x739   : > { %v13277_v26 = vpop.f32.mrb[101].mxu1  ;;  %v7615_v22 = vsel %vm1038_vm1, %v15988_v46, -inf }
 0x73a   : > { %7613 = vmax.xlane.f32.xlu0 %v7612_v32  ;;  %7616 = vmax.xlane.f32.xlu1 %v7615_v22  ;;  %v7624_v32 = vsel %vm1038_vm1, %v15974_v3, -inf }
 0x73b   : > { %v15994_v9 = vpop.f32.mrb[92].mxu0 }
 0x73c   : > { %v15996_v7 = vpop.f32.mrb[102].mxu1  ;;  %v13312_v20 = vpop.f32.mrb[93].mxu0 }
 0x73d   : > { %v13287_v48 = vpop.f32.mrb[103].mxu1  ;;  %v7621_v26 = vsel %vm1038_vm1, %v15996_v7, -inf }
 0x73e   : > { %7619 = vmax.xlane.f32.xlu0 %v7618_v43  ;;  %7622 = vmax.xlane.f32.xlu1 %v7621_v26  ;;  %v7630_v43 = vsel %vm1038_vm1, %v15982_v39, -inf }
 0x740   : > { %v16002_v55 = vpop.f32.mrb[104].mxu1 }
 0x741   : > { %v13297_v12 = vpop.f32.mrb[105].mxu1  ;;  %v7627_v22 = vsel %vm1038_vm1, %v16002_v55, -inf }
 0x742   : > { %7625 = vmax.xlane.f32.xlu0 %v7624_v32  ;;  %7628 = vmax.xlane.f32.xlu1 %v7627_v22  ;;  %v7636_v22 = vsel %vm1038_vm1, %v15994_v9, -inf }
 0x743   : > { %v16008_v20 = vpop.f32.mrb[94].mxu0 }
 0x744   : > { %v16010_v48 = vpop.f32.mrb[106].mxu1  ;;  %v13322_v29 = vpop.f32.mrb[95].mxu0 }
 0x745   : > { %v13307_v33 = vpop.f32.mrb[107].mxu1  ;;  %v7633_v12 = vsel %vm1038_vm1, %v16010_v48, -inf }
 0x746   : > { %7631 = vmax.xlane.f32.xlu0 %v7630_v43  ;;  %7634 = vmax.xlane.f32.xlu1 %v7633_v12  ;;  %v7642_v43 = vsel %vm1038_vm1, %v16008_v20, -inf }
 0x748   : > { %v16016_v26 = vpop.f32.mrb[108].mxu1 }
 0x749   : > { %v13317_v32 = vpop.f32.mrb[109].mxu1  ;;  %v7639_v29 = vsel %vm1038_vm1, %v16016_v26, -inf }
 0x74a   : > { %7637 = vmax.xlane.f32.xlu0 %v7636_v22  ;;  %7640 = vmax.xlane.f32.xlu1 %v7639_v29  ;;  %v16030_v32 = vpop.permute.xlu0 %8080  ;;  %v17168_v22 = vld [vmem:[#allocation30_spill] sm:$0xff] }
 0x74c   : > { %v16024_v33 = vpop.f32.mrb[110].mxu1 }
 0x74d   : > { %v13327_v50 = vpop.f32.mrb[111].mxu1  ;;  %v7645_v12 = vsel %vm1038_vm1, %v16024_v33, -inf }
 0x74e   : > { %7643 = vmax.xlane.f32.xlu0 %v7642_v43  ;;  %7646 = vmax.xlane.f32.xlu1 %v7645_v12  ;;  %v16032_v53 = vpop.permute.xlu0 %8384  ;;  %v17170_v50 = vld [vmem:[#allocation28_spill] sm:$0xff]  ;;  %v16048_v12 = vpop.permute.xlu1 %8156 }
 0x74f   : > { %17166 = vst [vmem:[#allocation36_spill] sm:$0xff] %v16032_v53 }
 0x752   : > { %v16034_v51 = vpop.permute.xlu0 %8536  ;;  %v16052_v36 = vpop.permute.xlu1 %8232 }
 0x753   : > { %17167 = vst [vmem:[#allocation21_spill] sm:$0xff] %v16034_v51 }
 0x756   : > { %v16038_v29 = vpop.permute.xlu0 %8688 }
 0x757   : > { %17169 = vst [vmem:[#allocation45_spill] sm:$0xff] %v16038_v29 }
 0x75a   : > { %v16042_v4 = vpop.permute.xlu0 %8840 }
 0x75b   : > { %17171 = vst [vmem:[#allocation22_spill] sm:$0xff] %v16042_v4 }
 0x75e   : > { %v16046_v43 = vpop.permute.xlu0 %9075 }
 0x75f   : > { %9621 = vrot.lane.b32.xlu1 %v17168_v22, %s14178_s14  ;;  %17172 = vst [vmem:[#allocation17_spill] sm:$0xff] %v16046_v43  ;;  %v16056_v22 = vpop.permute.xlu1 %8308 }
 0x760   : > { %17175 = vst [vmem:[#allocation19_spill] sm:$0xff] %v16056_v22 }
 0x762   : > { %v16050_v37 = vpop.permute.xlu0 %9073 }
 0x763   : > { %17173 = vst [vmem:[#allocation47_spill] sm:$0xff] %v16050_v37  ;;  %v16060_v58 = vpop.permute.xlu1 %8460 }
 0x764   : > { %9543 = vrot.lane.b32.xlu0 %v17170_v50, %s14178_s14  ;;  %17177 = vst [vmem:[#allocation23_spill] sm:$0xff] %v16060_v58 }
 0x766   : > { %v16054_v2 = vpop.permute.xlu0 %9231 }
 0x767   : > { %17174 = vst [vmem:[#allocation24_spill] sm:$0xff] %v16054_v2  ;;  %v16064_v63 = vpop.permute.xlu1 %8612 }
 0x768   : > { %17179 = vst [vmem:[#allocation42_spill] sm:$0xff] %v16064_v63 }
 0x76a   : > { %v16058_v47 = vpop.permute.xlu0 %9229 }
 0x76b   : > { %17176 = vst [vmem:[#allocation26_spill] sm:$0xff] %v16058_v47  ;;  %v16069_v37 = vpop.permute.xlu1 %8764 }
 0x76c   : > { %17181 = vst [vmem:[#allocation54_spill] sm:$0xff] %v16069_v37 }
 0x76e   : > { %v16062_v50 = vpop.permute.xlu0 %9387 }
 0x76f   : > { %17178 = vst [vmem:[#allocation40_spill] sm:$0xff] %v16062_v50  ;;  %v16072_v47 = vpop.permute.xlu1 %8916 }
 0x770   : > { %17182 = vst [vmem:[#allocation55_spill] sm:$0xff] %v16072_v47 }
 0x772   : > { %v16066_v25 = vpop.permute.xlu0 %9385 }
 0x773   : > { %17180 = vst [vmem:[#allocation27_spill] sm:$0xff] %v16066_v25  ;;  %v16074_v58 = vpop.permute.xlu1 %9153 }
 0x774   : > { %17183 = vst [vmem:[#allocation56_spill] sm:$0xff] %v16074_v58 }
 0x78f   : > { %v7602_v61 = vpop.xlane.xlu0 %7601 }
 0x790   : > { %v7648_v43 = vsub.f32 %v15962_v54, %v7602_v61  ;;  %v16082_v54 = vpop.permute.xlu1 %9151 }
 0x791   : > { %17184 = vst [vmem:[#allocation30_spill] sm:$0xff] %v16082_v54 }
 0x792   : > { %v7664_v4 = vmul.f32 1.442695, %v7648_v43 }
 0x793   : > { %v7608_v29 = vpop.xlane.xlu0 %7607 }
 0x794   : > { %13910 = vpow2.f32 %v7664_v4  ;;  %v7650_v2 = vsub.f32 %v15966_v17, %v7608_v29 }
 0x796   : > { %v7668_v51 = vmul.f32 1.442695, %v7650_v2  ;;  %v16086_v2 = vpop.permute.xlu1 %9309 }
 0x797   : > { %17185 = vst [vmem:[#allocation28_spill] sm:$0xff] %v16086_v2 }
 0x798   : > { %13912 = vpow2.f32 %v7668_v51 }
 0x79a   : > { %v16088_v17 = vpop.permute.xlu1 %9307 }
 0x79b   : > { %17186 = vst [vmem:[#allocation57_spill] sm:$0xff] %v16088_v17 }
 0x79e   : > { %v16076_v50 = vpop.eup %13910  ;;  %v16090_v51 = vpop.permute.xlu1 %9465 }
 0x79f   : > { %v7696_v25 = vsel %vm1038_vm1, %v16076_v50, 0.0  ;;  %17187 = vst [vmem:[#allocation58_spill] sm:$0xff] %v16090_v51 }
 0x7a0   : > { %7697 = vadd.xlane.f32.xlu0 %v7696_v25 }
 0x7a2   : > { %v16080_v61 = vpop.eup %13912  ;;  %v16092_v29 = vpop.permute.xlu1 %9463 }
 0x7a3   : > { %v7702_v4 = vsel %vm1038_vm1, %v16080_v61, 0.0  ;;  %17188 = vst [vmem:[#allocation59_spill] sm:$0xff] %v16092_v29 }
 0x7a4   : > { %7703 = vadd.xlane.f32.xlu0 %v7702_v4 }
 0x7bf   : > { %v7605_v43 = vpop.xlane.xlu1 %7604 }
 0x7c0   : > { %v7649_v58 = vsub.f32 %v15978_v40, %v7605_v43 }
 0x7c2   : > { %v7666_v25 = vmul.f32 1.442695, %v7649_v58 }
 0x7c3   : > { %v7611_v47 = vpop.xlane.xlu0 %7610 }
 0x7c4   : > { %13914 = vpow2.f32 %v7666_v25  ;;  %v7651_v54 = vsub.f32 %v15984_v8, %v7611_v47 }
 0x7c6   : > { %v7670_v37 = vmul.f32 1.442695, %v7651_v54 }
 0x7c7   : > { %v7614_v63 = vpop.xlane.xlu0 %7613  ;;  %v7617_v53 = vpop.xlane.xlu1 %7616 }
 0x7c8   : > { %13916 = vpow2.f32 %v7670_v37  ;;  %v7652_v4 = vsub.f32 %v15970_v31, %v7614_v63  ;;  %v7653_v17 = vsub.f32 %v15988_v46, %v7617_v53 }
 0x7ca   : > { %v7672_v2 = vmul.f32 1.442695, %v7652_v4  ;;  %v7674_v51 = vmul.f32 1.442695, %v7653_v17 }
 0x7cb   : > { %v7620_v22 = vpop.xlane.xlu0 %7619  ;;  %v7623_v29 = vpop.xlane.xlu1 %7622 }
 0x7cc   : > { %13918 = vpow2.f32 %v7672_v2  ;;  %v7654_v40 = vsub.f32 %v15972_v42, %v7620_v22  ;;  %v7655_v58 = vsub.f32 %v15996_v7, %v7623_v29 }
 0x7cd   : > { %13920 = vpow2.f32 %v7674_v51 }
 0x7ce   : > { %v16100_v43 = vpop.eup %13914  ;;  %v7676_v47 = vmul.f32 1.442695, %v7654_v40  ;;  %v7678_v8 = vmul.f32 1.442695, %v7655_v58 }
 0x7cf   : > { %v7626_v54 = vpop.xlane.xlu0 %7625  ;;  %v7629_v37 = vpop.xlane.xlu1 %7628  ;;  %v7699_v63 = vsel %vm1038_vm1, %v16100_v43, 0.0 }
 0x7d0   : > { %13922 = vpow2.f32 %v7676_v47  ;;  %v7656_v46 = vsub.f32 %v15974_v3, %v7626_v54  ;;  %v7657_v53 = vsub.f32 %v16002_v55, %v7629_v37  ;;  %7700 = vadd.xlane.f32.xlu1 %v7699_v63 }
 0x7d1   : > { %13924 = vpow2.f32 %v7678_v8 }
 0x7d2   : > { %v16106_v31 = vpop.eup %13916  ;;  %v7680_v7 = vmul.f32 1.442695, %v7656_v46  ;;  %v7682_v42 = vmul.f32 1.442695, %v7657_v53 }
 0x7d3   : > { %v7632_v22 = vpop.xlane.xlu0 %7631  ;;  %v7635_v2 = vpop.xlane.xlu1 %7634  ;;  %v7705_v17 = vsel %vm1038_vm1, %v16106_v31, 0.0 }
 0x7d4   : > { %13926 = vpow2.f32 %v7680_v7  ;;  %v7658_v51 = vsub.f32 %v15982_v39, %v7632_v22  ;;  %v7659_v29 = vsub.f32 %v16010_v48, %v7635_v2  ;;  %7706 = vadd.xlane.f32.xlu1 %v7705_v17 }
 0x7d5   : > { %13928 = vpow2.f32 %v7682_v42 }
 0x7d6   : > { %v16112_v3 = vpop.eup %13918  ;;  %v7684_v55 = vmul.f32 1.442695, %v7658_v51  ;;  %v7686_v25 = vmul.f32 1.442695, %v7659_v29 }
 0x7d7   : > { %v16114_v4 = vpop.eup %13920  ;;  %v7638_v40 = vpop.xlane.xlu0 %7637  ;;  %v7708_v58 = vsel %vm1038_vm1, %v16112_v3, 0.0 }
 0x7d8   : > { %13930 = vpow2.f32 %v7684_v55  ;;  %v7660_v47 = vsub.f32 %v15994_v9, %v7638_v40  ;;  %7709 = vadd.xlane.f32.xlu0 %v7708_v58  ;;  %v7711_v39 = vsel %vm1038_vm1, %v16114_v4, 0.0  ;;  %v7641_v55 = vpop.xlane.xlu1 %7640 }
 0x7d9   : > { %13932 = vpow2.f32 %v7686_v25  ;;  %7712 = vadd.xlane.f32.xlu1 %v7711_v39  ;;  %v7661_v25 = vsub.f32 %v16016_v26, %v7641_v55 }
 0x7da   : > { %v16121_v48 = vpop.eup %13922  ;;  %v7688_v8 = vmul.f32 1.442695, %v7660_v47 }
 0x7db   : > { %v16123_v54 = vpop.eup %13924  ;;  %v7714_v37 = vsel %vm1038_vm1, %v16121_v48, 0.0  ;;  %v7644_v58 = vpop.xlane.xlu0 %7643  ;;  %v7690_v39 = vmul.f32 1.442695, %v7661_v25  ;;  %v17195_v25 = vld [vmem:[#allocation54_spill] sm:$0xff] }
 0x7dc   : > { %13934 = vpow2.f32 %v7688_v8  ;;  %7715 = vadd.xlane.f32.xlu0 %v7714_v37  ;;  %v7717_v63 = vsel %vm1038_vm1, %v16123_v54, 0.0  ;;  %v7647_v40 = vpop.xlane.xlu1 %7646  ;;  %v7662_v8 = vsub.f32 %v16008_v20, %v7644_v58 }
 0x7dd   : > { %7718 = vadd.xlane.f32.xlu1 %v7717_v63  ;;  %v7663_v47 = vsub.f32 %v16024_v33, %v7647_v40  ;;  %13936 = vpow2.f32 %v7690_v39 }
 0x7de   : > { %v16129_v9 = vpop.eup %13926  ;;  %v7692_v63 = vmul.f32 1.442695, %v7662_v8 }
 0x7df   : > { %v16131_v46 = vpop.eup %13928  ;;  %v7720_v53 = vsel %vm1038_vm1, %v16129_v9, 0.0  ;;  %v7694_v37 = vmul.f32 1.442695, %v7663_v47 }
 0x7e0   : > { %7721 = vadd.xlane.f32.xlu0 %v7720_v53  ;;  %v7723_v7 = vsel %vm1038_vm1, %v16131_v46, 0.0 }
 0x7e1   : > { %7724 = vadd.xlane.f32.xlu1 %v7723_v7  ;;  %13938 = vpow2.f32 %v7694_v37  ;;  %v16168_v7 = vpop.permute.xlu0 %9543 }
 0x7e2   : > { %v16137_v42 = vpop.eup %13930  ;;  %13940 = vpow2.f32 %v7692_v63 }
 0x7e3   : > { %v16139_v22 = vpop.eup %13932  ;;  %v7726_v2 = vsel %vm1038_vm1, %v16137_v42, 0.0 }
 0x7e4   : > { %7727 = vadd.xlane.f32.xlu0 %v7726_v2  ;;  %v7729_v17 = vsel %vm1038_vm1, %v16139_v22, 0.0 }
 0x7e5   : > { %7730 = vadd.xlane.f32.xlu1 %v7729_v17 }
 0x7e6   : > { %v16145_v51 = vpop.eup %13934 }
 0x7e7   : > { %v7732_v29 = vsel %vm1038_vm1, %v16145_v51, 0.0  ;;  %v16156_v53 = vpop.eup %13936 }
 0x7e8   : > { %7733 = vadd.xlane.f32.xlu0 %v7732_v29 }
 0x7f6   : > { %9619 = vrot.lane.b32.xlu1 %v14791_v1, %s14178_s14  ;;  %v16158_v1 = vpop.eup %13938 }
 0x7f7   : > { %v16162_v26 = vpop.eup %13940  ;;  %v7741_v33 = vsel %vm1038_vm1, %v16158_v1, 0.0 }
 0x7f8   : > { %v7738_v20 = vsel %vm1038_vm1, %v16162_v26, 0.0 }
 0x7fe   : > { %9541 = vrot.lane.b32.xlu0 %v14766_v52, %s14178_s14  ;;  %v7735_v52 = vsel %vm1038_vm1, %v16156_v53, 0.0 }
 0x81a   : > { %7736 = vadd.xlane.f32.xlu1 %v7735_v52 }
 0x81d   : > { %7742 = vadd.xlane.f32.xlu0 %v7741_v33 }
 0x81e   : > { %7739 = vadd.xlane.f32.xlu1 %v7738_v20 }
 0x82d   : > { %v7698_v2 = vpop.xlane.xlu0 %7697 }
 0x82e   : > { %13942 = vrcp.f32 %v7698_v2 }
 0x82f   : > { %9777 = vrot.lane.b32.xlu1 %v14800_v6, %s14178_s14 }
 0x831   : > { %v7704_v17 = vpop.xlane.xlu0 %7703 }
 0x832   : > { %13944 = vrcp.f32 %v7704_v17 }
 0x833   : > { %9775 = vrot.lane.b32.xlu1 %v14819_v11, %s14178_s14  ;;  %9699 = vrot.lane.b32.xlu0 %v14710_v28, %s14178_s14 }
 0x837   : > { %9933 = vrot.lane.b32.xlu1 %v14827_v14, %s14178_s14  ;;  %9697 = vrot.lane.b32.xlu0 %v14729_v35, %s14178_s14  ;;  %v16222_v35 = vpop.permute.xlu1 %9621 }
 0x838   : > { %v13943_v29 = vpop.eup %13942 }
 0x839   : > { %v7760_v55 = vmul.f32 %v13943_v29, %v16076_v50  ;;  %v17197_v29 = vld [vmem:[#allocation55_spill] sm:$0xff] }
 0x83b   : > { %13331 = vmatmul.mubr.msk.f32.vlgmr.msra.gmra.mrb[96].mxu0 %vm1038_vm1, %v7760_v55  ;;  %9931 = vrot.lane.b32.xlu1 %v14842_v18, %s14178_s14 }
 0x83c   : > { %v13945_v6 = vpop.eup %13944  ;;  %13339 = vmatpush3.msra.mxu0 %v16018_v34  ;;  %13340 = vmatprep.mubr.msk.f32.mxu0 %vm14175_vm0, %v17066_v15 }
 0x83d   : > { %13348 = vmatprep.subr.mxu0 %v17066_v15  ;;  %9855 = vrot.lane.b32.xlu0 %v14735_v38, %s14178_s14  ;;  %v7762_v28 = vmul.f32 %v13945_v6, %v16080_v61 }
 0x83f   : > { %13341 = vmatmul.mubr.msk.f32.vlgmr.msra.gmra.mrb[98].mxu0 %vm1038_vm1, %v7762_v28  ;;  %10089 = vrot.lane.b32.xlu1 %v14848_v21, %s14178_s14 }
 0x840   : > { %13349 = vmatpush3.msra.mxu0 %v16030_v32  ;;  %13350 = vmatprep.mubr.msk.f32.mxu0 %vm14175_vm0, %v17066_v15 }
 0x841   : > { %9853 = vrot.lane.b32.xlu0 %v14753_v45, %s14178_s14  ;;  %13358 = vmatprep.subr.mxu0 %v17066_v15 }
 0x843   : > { %10087 = vrot.lane.b32.xlu1 %v14859_v24, %s14178_s14 }
 0x845   : > { %10011 = vrot.lane.b32.xlu0 %v14763_v49, %s14178_s14 }
 0x847   : > { %10245 = vrot.lane.b32.xlu1 %v14865_v27, %s14178_s14 }
 0x849   : > { %10009 = vrot.lane.b32.xlu0 %v14782_v56, %s14178_s14 }
 0x84b   : > { %10243 = vrot.lane.b32.xlu1 %v17069_v16, %s14178_s14 }
 0x84d   : > { %10167 = vrot.lane.b32.xlu0 %v14787_v62, %s14178_s14 }
 0x84f   : > { %10573 = vrot.lane.b32.xlu1 %v17070_v57, %s14178_s14 }
 0x851   : > { %10165 = vrot.lane.b32.xlu0 %v17115_v0, %s14178_s14 }
 0x853   : > { %10725 = vrot.lane.b32.xlu1 %v15147_v44, %s14178_s14 }
 0x855   : > { %10497 = vrot.lane.b32.xlu0 %v17117_v60, %s14178_s14 }
 0x857   : > { %10801 = vrot.lane.b32.xlu1 %v17119_v23, %s14178_s14 }
 0x859   : > { %10649 = vrot.lane.b32.xlu0 %v17118_v30, %s14178_s14  ;;  %v17189_v30 = vld [vmem:[#allocation19_spill] sm:$0xff] }
 0x85b   : > { %10877 = vrot.lane.b32.xlu1 %v15179_v59, %s14178_s14 }
 0x85d   : > { %10953 = vrot.lane.b32.xlu0 %v15193_v41, %s14178_s14  ;;  %v7701_v38 = vpop.xlane.xlu1 %7700 }
 0x85e   : > { %13946 = vrcp.f32 %v7701_v38 }
 0x85f   : > { %11029 = vrot.lane.b32.xlu1 %v15207_v10, %s14178_s14 }
 0x861   : > { %11105 = vrot.lane.b32.xlu0 %v17120_v19, %s14178_s14  ;;  %v7707_v45 = vpop.xlane.xlu1 %7706 }
 0x862   : > { %13948 = vrcp.f32 %v7707_v45 }
 0x863   : > { %11181 = vrot.lane.b32.xlu1 %v15256_v13, %s14178_s14 }
 0x865   : > { %v7710_v49 = vpop.xlane.xlu0 %7709 }
 0x866   : > { %13950 = vrcp.f32 %v7710_v49  ;;  %v7713_v56 = vpop.xlane.xlu1 %7712 }
 0x867   : > { %13952 = vrcp.f32 %v7713_v56  ;;  %v17201_v56 = vld [vmem:[#allocation24_spill] sm:$0xff] }
 0x868   : > { %v13947_v62 = vpop.eup %13946 }
 0x869   : > { %v7716_v11 = vpop.xlane.xlu0 %7715  ;;  %v7761_v14 = vmul.f32 %v13947_v62, %v16100_v43  ;;  %v17202_v62 = vld [vmem:[#allocation30_spill] sm:$0xff] }
 0x86a   : > { %13954 = vrcp.f32 %v7716_v11  ;;  %v7719_v18 = vpop.xlane.xlu1 %7718 }
 0x86b   : > { %13956 = vrcp.f32 %v7719_v18  ;;  %13336 = vmatmul.mubr.msk.f32.vlgmr.msra.gmra.mrb[112].mxu1 %vm1038_vm1, %v7761_v14  ;;  %v17203_v14 = vld [vmem:[#allocation28_spill] sm:$0xff]  ;;  %v17204_v18 = vld [vmem:[#allocation26_spill] sm:$0xff] }
 0x86c   : > { %v13949_v21 = vpop.eup %13948  ;;  %13344 = vmatpush3.msra.mxu1 %v16044_v5  ;;  %13345 = vmatprep.mubr.msk.f32.mxu1 %vm14175_vm0, %v17066_v15  ;;  %v17190_v5 = vld [vmem:[#allocation36_spill] sm:$0xff] }
 0x86d   : > { %v7722_v24 = vpop.xlane.xlu0 %7721  ;;  %13353 = vmatprep.subr.mxu1 %v17066_v15  ;;  %v7763_v27 = vmul.f32 %v13949_v21, %v16106_v31  ;;  %v17192_v31 = vld [vmem:[#allocation21_spill] sm:$0xff]  ;;  %v17205_v21 = vld [vmem:[#allocation40_spill] sm:$0xff] }
 0x86e   : > { %13958 = vrcp.f32 %v7722_v24  ;;  %v7725_v44 = vpop.xlane.xlu1 %7724 }
 0x86f   : > { %13960 = vrcp.f32 %v7725_v44  ;;  %13346 = vmatmul.mubr.msk.f32.vlgmr.msra.gmra.mrb[114].mxu1 %vm1038_vm1, %v7763_v27  ;;  %v17206_v27 = vld [vmem:[#allocation57_spill] sm:$0xff]  ;;  %v17207_v44 = vld [vmem:[#allocation58_spill] sm:$0xff] }
 0x870   : > { %v13951_v59 = vpop.eup %13950  ;;  %13354 = vmatpush3.msra.mxu1 %v16048_v12  ;;  %13355 = vmatprep.mubr.msk.f32.mxu1 %vm14175_vm0, %v17066_v15  ;;  %v17191_v12 = vld [vmem:[#allocation23_spill] sm:$0xff] }
 0x871   : > { %v13953_v41 = vpop.eup %13952  ;;  %v7728_v10 = vpop.xlane.xlu0 %7727  ;;  %13363 = vmatprep.subr.mxu1 %v17066_v15  ;;  %v7764_v16 = vmul.f32 %v13951_v59, %v16112_v3  ;;  %v17208_v59 = vld [vmem:[#allocation27_spill] sm:$0xff] }
 0x872   : > { %13962 = vrcp.f32 %v7728_v10  ;;  %v7731_v57 = vpop.xlane.xlu1 %7730  ;;  %v7765_v13 = vmul.f32 %v13953_v41, %v16114_v4  ;;  %v17193_v4 = vld [vmem:[#allocation42_spill] sm:$0xff]  ;;  %v17209_v10 = vld [vmem:[#allocation59_spill] sm:$0xff] }
 0x873   : > { %13964 = vrcp.f32 %v7731_v57  ;;  %13351 = vmatmul.mubr.msk.f32.vlgmr.msra.gmra.mrb[100].mxu0 %vm1038_vm1, %v7764_v16 }
 0x874   : > { %v13955_v0 = vpop.eup %13954  ;;  %13356 = vmatmul.mubr.msk.f32.vlgmr.msra.gmra.mrb[116].mxu1 %vm1038_vm1, %v7765_v13  ;;  %13359 = vmatpush3.msra.mxu0 %v16052_v36 }
 0x875   : > { %v13957_v60 = vpop.eup %13956  ;;  %13364 = vmatpush3.msra.mxu1 %v17189_v30  ;;  %v7734_v23 = vpop.xlane.xlu0 %7733  ;;  %13360 = vmatprep.mubr.msk.f32.mxu0 %vm14175_vm0, %v17066_v15  ;;  %v7766_v19 = vmul.f32 %v13955_v0, %v16121_v48 }
 0x876   : > { %13966 = vrcp.f32 %v7734_v23  ;;  %13365 = vmatprep.mubr.msk.f32.mxu1 %vm14175_vm0, %v17066_v15  ;;  %13368 = vmatprep.subr.mxu0 %v17066_v15  ;;  %v7767_v34 = vmul.f32 %v13957_v60, %v16123_v54  ;;  %v16302_v40 = vpop.permute.xlu1 %9619 }
 0x877   : > { %13373 = vmatprep.subr.mxu1 %v17066_v15  ;;  %13361 = vmatmul.mubr.msk.f32.vlgmr.msra.gmra.mrb[102].mxu0 %vm1038_vm1, %v7766_v19 }
 0x878   : > { %v13959_v36 = vpop.eup %13958  ;;  %13366 = vmatmul.mubr.msk.f32.vlgmr.msra.gmra.mrb[118].mxu1 %vm1038_vm1, %v7767_v34  ;;  %13369 = vmatpush3.msra.mxu0 %v17190_v5 }
 0x879   : > { %v13961_v32 = vpop.eup %13960  ;;  %13374 = vmatpush3.msra.mxu1 %v17191_v12  ;;  %13370 = vmatprep.mubr.msk.f32.mxu0 %vm14175_vm0, %v17066_v15  ;;  %v7768_v50 = vmul.f32 %v13959_v36, %v16129_v9  ;;  %v9542_v58 = vpop.permute.xlu0 %9541 }
 0x87a   : > { %13375 = vmatprep.mubr.msk.f32.mxu1 %vm14175_vm0, %v17066_v15  ;;  %13378 = vmatprep.subr.mxu0 %v17066_v15  ;;  %v7769_v61 = vmul.f32 %v13961_v32, %v16131_v46  ;;  %v17194_v46 = vld [vmem:[#allocation45_spill] sm:$0xff] }
 0x87b   : > { %13383 = vmatprep.subr.mxu1 %v17066_v15  ;;  %13371 = vmatmul.mubr.msk.f32.vlgmr.msra.gmra.mrb[104].mxu0 %vm1038_vm1, %v7768_v50 }
 0x87c   : > { %v13963_v43 = vpop.eup %13962  ;;  %13376 = vmatmul.mubr.msk.f32.vlgmr.msra.gmra.mrb[120].mxu1 %vm1038_vm1, %v7769_v61  ;;  %13379 = vmatpush3.msra.mxu0 %v17192_v31 }
 0x87d   : > { %v13965_v3 = vpop.eup %13964  ;;  %13384 = vmatpush3.msra.mxu1 %v17193_v4  ;;  %13380 = vmatprep.mubr.msk.f32.mxu0 %vm14175_vm0, %v17066_v15  ;;  %v7770_v48 = vmul.f32 %v13963_v43, %v16137_v42 }
 0x87e   : > { %13385 = vmatprep.mubr.msk.f32.mxu1 %vm14175_vm0, %v17066_v15  ;;  %13388 = vmatprep.subr.mxu0 %v17066_v15  ;;  %v7771_v54 = vmul.f32 %v13965_v3, %v16139_v22  ;;  %v17196_v22 = vld [vmem:[#allocation22_spill] sm:$0xff] }
 0x87f   : > { %13393 = vmatprep.subr.mxu1 %v17066_v15  ;;  %13381 = vmatmul.mubr.msk.f32.vlgmr.msra.gmra.mrb[106].mxu0 %vm1038_vm1, %v7770_v48 }
 0x880   : > { %v13967_v9 = vpop.eup %13966  ;;  %13386 = vmatmul.mubr.msk.f32.vlgmr.msra.gmra.mrb[122].mxu1 %vm1038_vm1, %v7771_v54  ;;  %13389 = vmatpush3.msra.mxu0 %v17194_v46 }
 0x881   : > { %13394 = vmatpush3.msra.mxu1 %v17195_v25  ;;  %13390 = vmatprep.mubr.msk.f32.mxu0 %vm14175_vm0, %v17066_v15  ;;  %v7772_v42 = vmul.f32 %v13967_v9, %v16145_v51 }
 0x882   : > { %13398 = vmatprep.subr.mxu0 %v17066_v15  ;;  %13395 = vmatprep.mubr.msk.f32.mxu1 %vm14175_vm0, %v17066_v15 }
 0x883   : > { %13391 = vmatmul.mubr.msk.f32.vlgmr.msra.gmra.mrb[108].mxu0 %vm1038_vm1, %v7772_v42  ;;  %13403 = vmatprep.subr.mxu1 %v17066_v15 }
 0x884   : > { %13399 = vmatpush3.msra.mxu0 %v17196_v22  ;;  %13400 = vmatprep.mubr.msk.f32.mxu0 %vm14175_vm0, %v17066_v15 }
 0x885   : > { %13408 = vmatprep.subr.mxu0 %v17066_v15 }
 0x8a7   : > { %v7737_v51 = vpop.xlane.xlu1 %7736 }
 0x8a8   : > { %13968 = vrcp.f32 %v7737_v51 }
 0x8aa   : > { %v7743_v47 = vpop.xlane.xlu0 %7742 }
 0x8ab   : > { %13970 = vrcp.f32 %v7743_v47  ;;  %v7740_v39 = vpop.xlane.xlu1 %7739 }
 0x8ac   : > { %13972 = vrcp.f32 %v7740_v39 }
 0x8ae   : > { %v9700_v8 = vpop.permute.xlu0 %9699 }
 0x8af   : > { %v9778_v37 = vpop.permute.xlu1 %9777 }
 0x8b2   : > { %v13969_v63 = vpop.eup %13968  ;;  %v9698_v52 = vpop.permute.xlu0 %9697 }
 0x8b3   : > { %v16304_v33 = vpop.permute.xlu1 %9775  ;;  %v7773_v20 = vmul.f32 %v13969_v63, %v16156_v53  ;;  %v17198_v53 = vld [vmem:[#allocation17_spill] sm:$0xff] }
 0x8b5   : > { %v13971_v2 = vpop.eup %13970  ;;  %13396 = vmatmul.mubr.msk.f32.vlgmr.msra.gmra.mrb[124].mxu1 %vm1038_vm1, %v7773_v20 }
 0x8b6   : > { %v13973_v17 = vpop.eup %13972  ;;  %13404 = vmatpush3.msra.mxu1 %v17197_v29  ;;  %v9856_v55 = vpop.permute.xlu0 %9855  ;;  %13405 = vmatprep.mubr.msk.f32.mxu1 %vm14175_vm0, %v17066_v15  ;;  %v7775_v6 = vmul.f32 %v13971_v2, %v16158_v1  ;;  %v17199_v1 = vld [vmem:[#allocation56_spill] sm:$0xff] }
 0x8b7   : > { %v7774_v28 = vmul.f32 %v13973_v17, %v16162_v26  ;;  %13413 = vmatprep.subr.mxu1 %v17066_v15  ;;  %v9934_v38 = vpop.permute.xlu1 %9933  ;;  %v17200_v26 = vld [vmem:[#allocation47_spill] sm:$0xff] }
 0x8b9   : > { %13401 = vmatmul.mubr.msk.f32.vlgmr.msra.gmra.mrb[110].mxu0 %vm1038_vm1, %v7774_v28  ;;  %13406 = vmatmul.mubr.msk.f32.vlgmr.msra.gmra.mrb[126].mxu1 %vm1038_vm1, %v7775_v6 }
 0x8ba   : > { %13409 = vmatpush3.xpose.msk.msra.mxu0 %vm1038_vm1, %v17198_v53  ;;  %13410 = vmatprep.mubr.msk.f32.mxu0 %vm14175_vm0, %v17066_v15  ;;  %v9854_v45 = vpop.permute.xlu0 %9853 }
 0x8bb   : > { %13418 = vmatprep.subr.mxu0 %v17066_v15  ;;  %13415 = vmatprep.mubr.msk.f32.mxu1 %vm14175_vm0, %v17066_v15  ;;  %v9932_v49 = vpop.permute.xlu1 %9931 }
 0x8bd   : > { %13414 = vmatpush3.xpose.msk.msra.mxu1 %vm1038_vm1, %v17199_v1  ;;  %13411 = vmatmul.mubr.msk.f32.vlgmr.msra.gmra.mrb[112].mxu0 %vm1038_vm1, %v17200_v26 }
 0x8be   : > { %13419 = vmatpush3.xpose.msk.msra.mxu0 %vm1038_vm1, %v17201_v56  ;;  %13423 = vmatprep.subr.mxu1 %v17066_v15  ;;  %v10012_v11 = vpop.permute.xlu0 %10011 }
 0x8bf   : > { %13420 = vmatprep.mubr.msk.f32.mxu0 %vm14175_vm0, %v17066_v15  ;;  %13428 = vmatprep.subr.mxu0 %v17066_v15  ;;  %v10090_v24 = vpop.permute.xlu1 %10089 }
 0x8c0   : > { %13416 = vmatmul.mubr.msk.f32.vlgmr.msra.gmra.mrb[128].mxu1 %vm1038_vm1, %v17202_v62 }
 0x8c1   : > { %13424 = vmatpush3.xpose.msk.msra.mxu1 %vm1038_vm1, %v17203_v14  ;;  %13421 = vmatmul.mubr.msk.f32.vlgmr.msra.gmra.mrb[114].mxu0 %vm1038_vm1, %v17204_v18 }
 0x8c2   : > { %13429 = vmatpush3.xpose.msk.msra.mxu0 %vm1038_vm1, %v17205_v21  ;;  %13425 = vmatprep.mubr.msk.f32.mxu1 %vm14175_vm0, %v17066_v15  ;;  %v10010_v41 = vpop.permute.xlu0 %10009 }
 0x8c3   : > { %13433 = vmatprep.subr.mxu1 %v17066_v15  ;;  %13430 = vmatprep.mubr.msk.f32.mxu0 %vm14175_vm0, %v17066_v15 }
 0x8c4   : > { %13426 = vmatmul.mubr.msk.f32.vlgmr.msra.gmra.mrb[130].mxu1 %vm1038_vm1, %v17206_v27  ;;  %13438 = vmatprep.subr.mxu0 %v17066_v15 }
 0x8c5   : > { %13434 = vmatpush3.xpose.msk.msra.mxu1 %vm1038_vm1, %v17207_v44  ;;  %13431 = vmatmul.mubr.msk.f32.vlgmr.msra.gmra.mrb[116].mxu0 %vm1038_vm1, %v17208_v59 }
 0x8c6   : > { %13439 = vmatpush3.xpose.msk.msra.mxu0 %vm1038_vm1, %v16168_v7  ;;  %13435 = vmatprep.mubr.msk.f32.mxu1 %vm14175_vm0, %v17066_v15  ;;  %v10088_v7 = vpop.permute.xlu1 %10087  ;;  %v10168_v16 = vpop.permute.xlu0 %10167 }
 0x8c7   : > { %13443 = vmatprep.subr.mxu1 %v17066_v15  ;;  %13440 = vmatprep.mubr.msk.f32.mxu0 %vm14175_vm0, %v17066_v15 }
 0x8c8   : > { %13436 = vmatmul.mubr.msk.f32.vlgmr.msra.gmra.mrb[132].mxu1 %vm1038_vm1, %v17209_v10  ;;  %13448 = vmatprep.subr.mxu0 %v17066_v15 }
 0x8c9   : > { %13444 = vmatpush3.xpose.msk.msra.mxu1 %vm1038_vm1, %v16222_v35  ;;  %13441 = vmatmul.mubr.msk.f32.vlgmr.msra.gmra.mrb[118].mxu0 %vm1038_vm1, %v9542_v58 }
 0x8ca   : > { %13449 = vmatpush3.xpose.msk.msra.mxu0 %vm1038_vm1, %v9700_v8  ;;  %13445 = vmatprep.mubr.msk.f32.mxu1 %vm14175_vm0, %v17066_v15  ;;  %v10246_v35 = vpop.permute.xlu1 %10245  ;;  %v10166_v57 = vpop.permute.xlu0 %10165 }
 0x8cb   : > { %13453 = vmatprep.subr.mxu1 %v17066_v15  ;;  %13450 = vmatprep.mubr.msk.f32.mxu0 %vm14175_vm0, %v17066_v15 }
 0x8cc   : > { %13446 = vmatmul.mubr.msk.f32.vlgmr.msra.gmra.mrb[134].mxu1 %vm1038_vm1, %v16302_v40  ;;  %13458 = vmatprep.subr.mxu0 %v17066_v15 }
 0x8cd   : > { %13454 = vmatpush3.xpose.msk.msra.mxu1 %vm1038_vm1, %v9778_v37  ;;  %13451 = vmatmul.mubr.msk.f32.vlgmr.msra.gmra.mrb[120].mxu0 %vm1038_vm1, %v9698_v52 }
 0x8ce   : > { %13459 = vmatpush3.xpose.msk.msra.mxu0 %vm1038_vm1, %v9856_v55  ;;  %13455 = vmatprep.mubr.msk.f32.mxu1 %vm14175_vm0, %v17066_v15  ;;  %v10244_v13 = vpop.permute.xlu1 %10243  ;;  %v10498_v0 = vpop.permute.xlu0 %10497 }
 0x8cf   : > { %13463 = vmatprep.subr.mxu1 %v17066_v15  ;;  %13460 = vmatprep.mubr.msk.f32.mxu0 %vm14175_vm0, %v17066_v15 }
 0x8d0   : > { %13456 = vmatmul.mubr.msk.f32.vlgmr.msra.gmra.mrb[136].mxu1 %vm1038_vm1, %v16304_v33  ;;  %13468 = vmatprep.subr.mxu0 %v17066_v15 }
 0x8d1   : > { %13464 = vmatpush3.xpose.msk.msra.mxu1 %vm1038_vm1, %v9934_v38  ;;  %13461 = vmatmul.mubr.msk.f32.vlgmr.msra.gmra.mrb[122].mxu0 %vm1038_vm1, %v9854_v45 }
 0x8d2   : > { %13469 = vmatpush3.xpose.msk.msra.mxu0 %vm1038_vm1, %v10012_v11  ;;  %13465 = vmatprep.mubr.msk.f32.mxu1 %vm14175_vm0, %v17066_v15  ;;  %v10574_v60 = vpop.permute.xlu1 %10573 }
 0x8d3   : > { %13473 = vmatprep.subr.mxu1 %v17066_v15  ;;  %13470 = vmatprep.mubr.msk.f32.mxu0 %vm14175_vm0, %v17066_v15 }
 0x8d4   : > { %13466 = vmatmul.mubr.msk.f32.vlgmr.msra.gmra.mrb[138].mxu1 %vm1038_vm1, %v9932_v49  ;;  %13478 = vmatprep.subr.mxu0 %v17066_v15 }
 0x8d5   : > { %13474 = vmatpush3.xpose.msk.msra.mxu1 %vm1038_vm1, %v10090_v24  ;;  %13471 = vmatmul.mubr.msk.f32.vlgmr.msra.gmra.mrb[124].mxu0 %vm1038_vm1, %v10010_v41 }
 0x8d6   : > { %13479 = vmatpush3.xpose.msk.msra.mxu0 %vm1038_vm1, %v10168_v16  ;;  %13475 = vmatprep.mubr.msk.f32.mxu1 %vm14175_vm0, %v17066_v15 }
 0x8d7   : > { %13483 = vmatprep.subr.mxu1 %v17066_v15  ;;  %13480 = vmatprep.mubr.msk.f32.mxu0 %vm14175_vm0, %v17066_v15 }
 0x8d8   : > { %13476 = vmatmul.mubr.msk.f32.vlgmr.msra.gmra.mrb[140].mxu1 %vm1038_vm1, %v10088_v7  ;;  %13488 = vmatprep.subr.mxu0 %v17066_v15 }
 0x8d9   : > { %13484 = vmatpush3.xpose.msk.msra.mxu1 %vm1038_vm1, %v10246_v35  ;;  %13481 = vmatmul.mubr.msk.f32.vlgmr.msra.gmra.mrb[126].mxu0 %vm1038_vm1, %v10166_v57 }
 0x8da   : > { %13489 = vmatpush3.msra.mxu0 %v10498_v0  ;;  %13485 = vmatprep.mubr.msk.f32.mxu1 %vm14175_vm0, %v17066_v15 }
 0x8db   : > { %13493 = vmatprep.subr.mxu1 %v17066_v15  ;;  %13490 = vmatprep.mubr.msk.f32.mxu0 %vm14175_vm0, %v17066_v15 }
 0x8dc   : > { %13486 = vmatmul.mubr.msk.f32.vlgmr.msra.gmra.mrb[142].mxu1 %vm1038_vm1, %v10244_v13  ;;  %13498 = vmatprep.subr.mxu0 %v17066_v15 }
 0x8dd   : > { %13494 = vmatpush3.msra.mxu1 %v10574_v60  ;;  %13495 = vmatprep.mubr.msk.f32.mxu1 %vm14175_vm0, %v17066_v15 }
 0x8de   : > { %13503 = vmatprep.subr.mxu1 %v17066_v15 }
 0x90e   : > { %v16418_v30 = vpop.f32.mrb[96].mxu0 }
 0x90f   : > { %v13332_v23 = vpop.f32.mrb[97].mxu0 }
 0x912   : > { %v16420_v19 = vpop.f32.mrb[98].mxu0 }
 0x913   : > { %v13342_v34 = vpop.f32.mrb[99].mxu0 }
 0x93e   : > { %v16422_v36 = vpop.f32.mrb[112].mxu1 }
 0x93f   : > { %v13337_v5 = vpop.f32.mrb[113].mxu1 }
 0x942   : > { %v16424_v32 = vpop.f32.mrb[114].mxu1 }
 0x943   : > { %v13347_v12 = vpop.f32.mrb[115].mxu1 }
 0x946   : > { %v16426_v50 = vpop.f32.mrb[100].mxu0 }
 0x947   : > { %v16428_v61 = vpop.f32.mrb[116].mxu1  ;;  %v13352_v43 = vpop.f32.mrb[101].mxu0 }
 0x948   : > { %v13357_v31 = vpop.f32.mrb[117].mxu1 }
 0x94a   : > { %v16430_v3 = vpop.f32.mrb[102].mxu0 }
 0x94b   : > { %v16432_v4 = vpop.f32.mrb[118].mxu1  ;;  %v13362_v48 = vpop.f32.mrb[103].mxu0 }
 0x94c   : > { %v13367_v54 = vpop.f32.mrb[119].mxu1 }
 0x94e   : > { %v16434_v9 = vpop.f32.mrb[104].mxu0 }
 0x94f   : > { %v16436_v46 = vpop.f32.mrb[120].mxu1  ;;  %v13372_v25 = vpop.f32.mrb[105].mxu0 }
 0x950   : > { %v13377_v42 = vpop.f32.mrb[121].mxu1 }
 0x952   : > { %v16438_v22 = vpop.f32.mrb[106].mxu0 }
 0x953   : > { %v16440_v40 = vpop.f32.mrb[122].mxu1  ;;  %v13382_v58 = vpop.f32.mrb[107].mxu0 }
 0x954   : > { %v13387_v51 = vpop.f32.mrb[123].mxu1 }
 0x956   : > { %v16442_v47 = vpop.f32.mrb[108].mxu0 }
 0x957   : > { %v13392_v39 = vpop.f32.mrb[109].mxu0 }
 0x988   : > { %v16444_v8 = vpop.f32.mrb[124].mxu1 }
 0x989   : > { %v13397_v37 = vpop.f32.mrb[125].mxu1 }
 0x98c   : > { %v16446_v63 = vpop.f32.mrb[110].mxu0  ;;  %v16448_v52 = vpop.f32.mrb[126].mxu1 }
 0x98d   : > { %v13402_v33 = vpop.f32.mrb[111].mxu0  ;;  %v13407_v20 = vpop.f32.mrb[127].mxu1 }
 0x990   : > { %v16450_v2 = vpop.f32.mrb[112].mxu0 }
 0x991   : > { %v13412_v17 = vpop.f32.mrb[113].mxu0  ;;  %v10321_v29 = vsel %vm1038_vm1, %v16450_v2, -inf }
 0x992   : > { %10322 = vmax.xlane.f32.xlu0 %v10321_v29  ;;  %v17210_v17 = vld [vmem:[#allocation35_spill] sm:$0xff] }
 0x993   : > { %v16454_v55 = vpop.f32.mrb[128].mxu1  ;;  %v17211_v29 = vld [vmem:[#allocation51_spill] sm:$0xff] }
 0x994   : > { %v13417_v6 = vpop.f32.mrb[129].mxu1  ;;  %v16456_v28 = vpop.f32.mrb[114].mxu0  ;;  %v10324_v38 = vsel %vm1038_vm1, %v16454_v55, -inf }
 0x995   : > { %10325 = vmax.xlane.f32.xlu1 %v10324_v38  ;;  %v13422_v53 = vpop.f32.mrb[115].mxu0  ;;  %v10327_v45 = vsel %vm1038_vm1, %v16456_v28, -inf  ;;  %v17212_v6 = vld [vmem:[#allocation52_spill] sm:$0xff] }
 0x996   : > { %10328 = vmax.xlane.f32.xlu0 %v10327_v45  ;;  %v17213_v53 = vld [vmem:[#allocation37_spill] sm:$0xff]  ;;  %v16522_v45 = vpop.permute.xlu1 %10725 }
 0x997   : > { %v16462_v1 = vpop.f32.mrb[130].mxu1 }
 0x998   : > { %v13427_v26 = vpop.f32.mrb[131].mxu1  ;;  %v16464_v49 = vpop.f32.mrb[116].mxu0  ;;  %v10330_v62 = vsel %vm1038_vm1, %v16462_v1, -inf }
 0x999   : > { %v13432_v56 = vpop.f32.mrb[117].mxu0  ;;  %v10333_v27 = vsel %vm1038_vm1, %v16464_v49, -inf }
 0x99a   : > { %10331 = vmax.xlane.f32.xlu0 %v10330_v62  ;;  %v16524_v26 = vpop.permute.xlu1 %10801  ;;  %v16526_v56 = vpop.permute.xlu0 %10649 }
 0x99b   : > { %v16468_v11 = vpop.f32.mrb[132].mxu1 }
 0x99c   : > { %v13437_v14 = vpop.f32.mrb[133].mxu1  ;;  %v16470_v18 = vpop.f32.mrb[118].mxu0  ;;  %v10336_v21 = vsel %vm1038_vm1, %v16468_v11, -inf }
 0x99d   : > { %10337 = vmax.xlane.f32.xlu1 %v10336_v21  ;;  %v13442_v24 = vpop.f32.mrb[119].mxu0  ;;  %v10339_v16 = vsel %vm1038_vm1, %v16470_v18, -inf }
 0x99e   : > { %10334 = vmax.xlane.f32.xlu0 %v10333_v27  ;;  %v16528_v62 = vpop.permute.xlu1 %10877  ;;  %v16530_v14 = vpop.permute.xlu0 %10953 }
 0x99f   : > { %v16476_v44 = vpop.f32.mrb[134].mxu1 }
 0x9a0   : > { %v13447_v59 = vpop.f32.mrb[135].mxu1  ;;  %v16478_v41 = vpop.f32.mrb[120].mxu0  ;;  %v10342_v10 = vsel %vm1038_vm1, %v16476_v44, -inf }
 0x9a1   : > { %10343 = vmax.xlane.f32.xlu1 %v10342_v10  ;;  %v13452_v7 = vpop.f32.mrb[121].mxu0  ;;  %v10345_v23 = vsel %vm1038_vm1, %v16478_v41, -inf }
 0x9a2   : > { %10340 = vmax.xlane.f32.xlu0 %v10339_v16  ;;  %v16532_v21 = vpop.permute.xlu1 %11029  ;;  %v16534_v24 = vpop.permute.xlu0 %11105 }
 0x9a3   : > { %v16484_v35 = vpop.f32.mrb[136].mxu1 }
 0x9a4   : > { %v13457_v57 = vpop.f32.mrb[137].mxu1  ;;  %v16486_v13 = vpop.f32.mrb[122].mxu0  ;;  %v10348_v0 = vsel %vm1038_vm1, %v16484_v35, -inf }
 0x9a5   : > { %10349 = vmax.xlane.f32.xlu1 %v10348_v0  ;;  %v13462_v60 = vpop.f32.mrb[123].mxu0  ;;  %v10351_v48 = vsel %vm1038_vm1, %v16486_v13, -inf }
 0x9a6   : > { %10346 = vmax.xlane.f32.xlu0 %v10345_v23  ;;  %v16536_v27 = vpop.permute.xlu1 %11181 }
 0x9a7   : > { %v16492_v34 = vpop.f32.mrb[138].mxu1 }
 0x9a8   : > { %v13467_v5 = vpop.f32.mrb[139].mxu1  ;;  %v16494_v12 = vpop.f32.mrb[124].mxu0  ;;  %v10354_v43 = vsel %vm1038_vm1, %v16492_v34, -inf }
 0x9a9   : > { %10355 = vmax.xlane.f32.xlu1 %v10354_v43  ;;  %v13472_v31 = vpop.f32.mrb[125].mxu0  ;;  %v10357_v39 = vsel %vm1038_vm1, %v16494_v12, -inf }
 0x9aa   : > { %10352 = vmax.xlane.f32.xlu0 %v10351_v48 }
 0x9ab   : > { %v16500_v54 = vpop.f32.mrb[140].mxu1 }
 0x9ac   : > { %v13477_v25 = vpop.f32.mrb[141].mxu1  ;;  %v16502_v42 = vpop.f32.mrb[126].mxu0  ;;  %v10360_v58 = vsel %vm1038_vm1, %v16500_v54, -inf }
 0x9ad   : > { %10361 = vmax.xlane.f32.xlu1 %v10360_v58  ;;  %v13482_v51 = vpop.f32.mrb[127].mxu0  ;;  %v10363_v20 = vsel %vm1038_vm1, %v16502_v42, -inf }
 0x9ae   : > { %10358 = vmax.xlane.f32.xlu0 %v10357_v39 }
 0x9af   : > { %v16508_v37 = vpop.f32.mrb[142].mxu1 }
 0x9b0   : > { %v13487_v33 = vpop.f32.mrb[143].mxu1  ;;  %v10366_v38 = vsel %vm1038_vm1, %v16508_v37, -inf }
 0x9b2   : > { %10364 = vmax.xlane.f32.xlu0 %v10363_v20 }
 0x9be   : > { %11333 = vrot.lane.b32.xlu1 %v17210_v17, %s14178_s14 }
 0x9c8   : > { %11257 = vrot.lane.b32.xlu0 %v17211_v29, %s14178_s14 }
 0x9cc   : > { %11409 = vrot.lane.b32.xlu0 %v17212_v6, %s14178_s14 }
 0x9e2   : > { %10367 = vmax.xlane.f32.xlu1 %v10366_v38 }
 0x9f3   : > { %11485 = vrot.lane.b32.xlu1 %v17213_v53, %s14178_s14 }
 0xa1f   : > { %v10323_v59 = vpop.xlane.xlu0 %10322 }
 0xa20   : > { %v10369_v10 = vsub.f32 %v16450_v2, %v10323_v59 }
 0xa22   : > { %v10385_v7 = vmul.f32 1.442695, %v10369_v10  ;;  %v10326_v16 = vpop.xlane.xlu1 %10325 }
 0xa23   : > { %v10370_v57 = vsub.f32 %v16454_v55, %v10326_v16  ;;  %v10329_v0 = vpop.xlane.xlu0 %10328 }
 0xa24   : > { %13974 = vpow2.f32 %v10385_v7  ;;  %v10371_v60 = vsub.f32 %v16456_v28, %v10329_v0 }
 0xa25   : > { %v10387_v23 = vmul.f32 1.442695, %v10370_v57 }
 0xa26   : > { %v10389_v5 = vmul.f32 1.442695, %v10371_v60 }
 0xa27   : > { %13976 = vpow2.f32 %v10387_v23  ;;  %v10332_v43 = vpop.xlane.xlu0 %10331 }
 0xa28   : > { %13978 = vpow2.f32 %v10389_v5  ;;  %v10372_v31 = vsub.f32 %v16462_v1, %v10332_v43 }
 0xa2a   : > { %v10391_v48 = vmul.f32 1.442695, %v10372_v31  ;;  %v10338_v25 = vpop.xlane.xlu1 %10337 }
 0xa2b   : > { %v10374_v58 = vsub.f32 %v16468_v11, %v10338_v25  ;;  %v10335_v2 = vpop.xlane.xlu0 %10334 }
 0xa2c   : > { %13980 = vpow2.f32 %v10391_v48  ;;  %v10373_v51 = vsub.f32 %v16464_v49, %v10335_v2 }
 0xa2d   : > { %v10395_v55 = vmul.f32 1.442695, %v10374_v58 }
 0xa2e   : > { %v16544_v39 = vpop.eup %13974  ;;  %v10393_v33 = vmul.f32 1.442695, %v10373_v51  ;;  %v10344_v28 = vpop.xlane.xlu1 %10343 }
 0xa2f   : > { %13982 = vpow2.f32 %v10395_v55  ;;  %v10376_v20 = vsub.f32 %v16476_v44, %v10344_v28  ;;  %v10341_v17 = vpop.xlane.xlu0 %10340  ;;  %v10417_v1 = vsel %vm1038_vm1, %v16544_v39, 0.0 }
 0xa30   : > { %13984 = vpow2.f32 %v10393_v33  ;;  %v10375_v29 = vsub.f32 %v16470_v18, %v10341_v17  ;;  %10418 = vadd.xlane.f32.xlu0 %v10417_v1 }
 0xa31   : > { %v16550_v11 = vpop.eup %13976  ;;  %v10399_v6 = vmul.f32 1.442695, %v10376_v20 }
 0xa32   : > { %v16552_v49 = vpop.eup %13978  ;;  %v10397_v38 = vmul.f32 1.442695, %v10375_v29  ;;  %v10350_v53 = vpop.xlane.xlu1 %10349  ;;  %v10420_v59 = vsel %vm1038_vm1, %v16550_v11, 0.0 }
 0xa33   : > { %13986 = vpow2.f32 %v10399_v6  ;;  %v10378_v44 = vsub.f32 %v16484_v35, %v10350_v53  ;;  %10421 = vadd.xlane.f32.xlu1 %v10420_v59  ;;  %v10347_v10 = vpop.xlane.xlu0 %10346  ;;  %v10423_v7 = vsel %vm1038_vm1, %v16552_v49, 0.0 }
 0xa34   : > { %13988 = vpow2.f32 %v10397_v38  ;;  %v10377_v18 = vsub.f32 %v16478_v41, %v10347_v10  ;;  %10424 = vadd.xlane.f32.xlu0 %v10423_v7 }
 0xa35   : > { %v10403_v16 = vmul.f32 1.442695, %v10378_v44 }
 0xa36   : > { %v16560_v57 = vpop.eup %13980  ;;  %v10401_v0 = vmul.f32 1.442695, %v10377_v18  ;;  %v10356_v60 = vpop.xlane.xlu1 %10355 }
 0xa37   : > { %13990 = vpow2.f32 %v10403_v16  ;;  %v10380_v23 = vsub.f32 %v16492_v34, %v10356_v60  ;;  %v10353_v5 = vpop.xlane.xlu0 %10352  ;;  %v10426_v35 = vsel %vm1038_vm1, %v16560_v57, 0.0 }
 0xa38   : > { %13992 = vpow2.f32 %v10401_v0  ;;  %v10379_v43 = vsub.f32 %v16486_v13, %v10353_v5  ;;  %10427 = vadd.xlane.f32.xlu1 %v10426_v35 }
 0xa39   : > { %v16566_v31 = vpop.eup %13982  ;;  %v10407_v41 = vmul.f32 1.442695, %v10380_v23 }
 0xa3a   : > { %v16568_v48 = vpop.eup %13984  ;;  %v10405_v25 = vmul.f32 1.442695, %v10379_v43  ;;  %v10362_v58 = vpop.xlane.xlu1 %10361  ;;  %v10432_v55 = vsel %vm1038_vm1, %v16566_v31, 0.0  ;;  %v17214_v43 = vld [vmem:[#allocation32_spill] sm:$0xff] }
 0xa3b   : > { %13994 = vpow2.f32 %v10407_v41  ;;  %v10382_v2 = vsub.f32 %v16500_v54, %v10362_v58  ;;  %v10359_v51 = vpop.xlane.xlu0 %10358  ;;  %v10429_v34 = vsel %vm1038_vm1, %v16568_v48, 0.0  ;;  %v17215_v41 = vld [vmem:[#allocation38_spill] sm:$0xff]  ;;  %v17216_v58 = vld [vmem:[#allocation48_spill] sm:$0xff] }
 0xa3c   : > { %13996 = vpow2.f32 %v10405_v25  ;;  %v10381_v13 = vsub.f32 %v16494_v12, %v10359_v51  ;;  %10430 = vadd.xlane.f32.xlu0 %v10429_v34  ;;  %10433 = vadd.xlane.f32.xlu1 %v10432_v55  ;;  %v17217_v55 = vld [vmem:[#allocation50_spill] sm:$0xff] }
 0xa3d   : > { %v16576_v33 = vpop.eup %13986  ;;  %v10411_v28 = vmul.f32 1.442695, %v10382_v2 }
 0xa3e   : > { %v16578_v20 = vpop.eup %13988  ;;  %v10409_v17 = vmul.f32 1.442695, %v10381_v13  ;;  %v10438_v29 = vsel %vm1038_vm1, %v16576_v33, 0.0  ;;  %v16619_v25 = vpop.permute.xlu1 %11333 }
 0xa3f   : > { %13998 = vpow2.f32 %v10411_v28  ;;  %v10365_v54 = vpop.xlane.xlu0 %10364  ;;  %v10435_v1 = vsel %vm1038_vm1, %v16578_v20, 0.0 }
 0xa40   : > { %14000 = vpow2.f32 %v10409_v17  ;;  %v10383_v6 = vsub.f32 %v16502_v42, %v10365_v54  ;;  %10436 = vadd.xlane.f32.xlu0 %v10435_v1  ;;  %10439 = vadd.xlane.f32.xlu1 %v10438_v29  ;;  %v17222_v17 = vld [vmem:[#allocation53_spill] sm:$0xff] }
 0xa41   : > { %v16585_v12 = vpop.eup %13990  ;;  %v17227_v54 = vld [vmem:[#allocation25_spill] sm:$0xff] }
 0xa42   : > { %v16587_v38 = vpop.eup %13992  ;;  %v10413_v53 = vmul.f32 1.442695, %v10383_v6  ;;  %v10444_v44 = vsel %vm1038_vm1, %v16585_v12, 0.0 }
 0xa43   : > { %v10441_v59 = vsel %vm1038_vm1, %v16587_v38, 0.0  ;;  %v16670_v1 = vpop.permute.xlu0 %11257 }
 0xa44   : > { %14002 = vpow2.f32 %v10413_v53  ;;  %10442 = vadd.xlane.f32.xlu0 %v10441_v59  ;;  %10445 = vadd.xlane.f32.xlu1 %v10444_v44  ;;  %v17229_v53 = vld [vmem:[#allocation33_spill] sm:$0xff] }
 0xa45   : > { %v16593_v10 = vpop.eup %13994 }
 0xa46   : > { %v16595_v7 = vpop.eup %13996  ;;  %v10450_v18 = vsel %vm1038_vm1, %v16593_v10, 0.0 }
 0xa47   : > { %v10447_v42 = vsel %vm1038_vm1, %v16595_v7, 0.0 }
 0xa48   : > { %10448 = vadd.xlane.f32.xlu0 %v10447_v42  ;;  %10451 = vadd.xlane.f32.xlu1 %v10450_v18 }
 0xa49   : > { %v16601_v16 = vpop.eup %13998 }
 0xa4a   : > { %v16603_v0 = vpop.eup %14000  ;;  %v10456_v23 = vsel %vm1038_vm1, %v16601_v16, 0.0 }
 0xa4b   : > { %v10453_v60 = vsel %vm1038_vm1, %v16603_v0, 0.0 }
 0xa4c   : > { %10454 = vadd.xlane.f32.xlu0 %v10453_v60  ;;  %10457 = vadd.xlane.f32.xlu1 %v10456_v23 }
 0xa4e   : > { %v16609_v5 = vpop.eup %14002 }
 0xa4f   : > { %v10459_v35 = vsel %vm1038_vm1, %v16609_v5, 0.0 }
 0xa50   : > { %10460 = vadd.xlane.f32.xlu1 %v10459_v35 }
 0xa61   : > { %11637 = vrot.lane.b32.xlu1 %v17214_v43, %s14178_s14 }
 0xa65   : > { %6289 = vrot.lane.b32.xlu1 %v17215_v41, %s14179_s28 }
 0xa69   : > { %9010 = vrot.lane.b32.xlu1 %v16422_v36, %s14180_s25  ;;  %v17218_v36 = vld [vmem:[#allocation43_spill] sm:$0xff] }
 0xa6d   : > { %6293 = vrot.lane.b32.xlu1 %v17216_v58, %s14179_s28 }
 0xa6f   : > { %v10368_v2 = vpop.xlane.xlu1 %10367 }
 0xa70   : > { %v10384_v51 = vsub.f32 %v16508_v37, %v10368_v2  ;;  %v17221_v37 = vld [vmem:[#allocation20_spill] sm:$0xff] }
 0xa71   : > { %9014 = vrot.lane.b32.xlu1 %v16424_v32, %s14180_s25  ;;  %v17219_v32 = vld [vmem:[#allocation46_spill] sm:$0xff] }
 0xa72   : > { %v10415_v34 = vmul.f32 1.442695, %v10384_v51 }
 0xa74   : > { %14004 = vpow2.f32 %v10415_v34 }
 0xa75   : > { %6297 = vrot.lane.b32.xlu1 %v17217_v55, %s14179_s28 }
 0xa79   : > { %9018 = vrot.lane.b32.xlu1 %v16428_v61, %s14180_s25  ;;  %v17220_v61 = vld [vmem:[#allocation18_spill] sm:$0xff] }
 0xa7d   : > { %6301 = vrot.lane.b32.xlu1 %v17218_v36, %s14179_s28 }
 0xa7e   : > { %v16632_v13 = vpop.eup %14004 }
 0xa7f   : > { %v10462_v28 = vsel %vm1038_vm1, %v16632_v13, 0.0 }
 0xa80   : > { %10463 = vadd.xlane.f32.xlu0 %v10462_v28 }
 0xa81   : > { %9022 = vrot.lane.b32.xlu1 %v16432_v4, %s14180_s25  ;;  %v17223_v4 = vld [vmem:[#allocation31_spill] sm:$0xff] }
 0xa85   : > { %6305 = vrot.lane.b32.xlu1 %v17219_v32, %s14179_s28 }
 0xa89   : > { %9026 = vrot.lane.b32.xlu1 %v16436_v46, %s14180_s25  ;;  %v17224_v46 = vld [vmem:[#allocation41_spill] sm:$0xff] }
 0xa8d   : > { %6309 = vrot.lane.b32.xlu1 %v17220_v61, %s14179_s28 }
 0xa91   : > { %9030 = vrot.lane.b32.xlu1 %v16440_v40, %s14180_s25  ;;  %v17225_v40 = vld [vmem:[#allocation29_spill] sm:$0xff] }
 0xa95   : > { %6313 = vrot.lane.b32.xlu1 %v17221_v37, %s14179_s28 }
 0xa96   : > { %11561 = vrot.lane.b32.xlu0 %v17222_v17, %s14178_s14  ;;  %s16874_s14 = scalar_lea.vmem [#allocation8], %s14407_s16  ;;  %s12387_s16 = sshll.u32 %s14265_s21, 11 }
 0xa97   : > { %s16895_s12 = scalar_lea.hbm %s16955_s11, %s12387_s16  ;;  %s14182_s21 = smov [#allocation8]  }
 0xa98   : > { %s14102_s1 = sshll.u32 %s14182_s21, 4  ;;  %s14103_s1 = int_to_ptr.vmem [resolvable:$false] %s14102_s1 }
 0xa99   : > { %9034 = vrot.lane.b32.xlu1 %v16444_v8, %s14180_s25  ;;  %v17226_v8 = vld [vmem:[#allocation49_spill] sm:$0xff]  ;;  %s14104_s15 = scalar_lea.vmem %s14103_s1, 4096 }
 0xa9a   : > { %6287 = vrot.lane.b32.xlu0 %v17223_v4, %s14179_s28 }
 0xa9d   : > { %6317 = vrot.lane.b32.xlu1 %v17224_v46, %s14179_s28 }
 0xa9e   : > { %9008 = vrot.lane.b32.xlu0 %v16418_v30, %s14180_s25  ;;  %v16674_v30 = vpop.permute.xlu0 %11409 }
 0xaa1   : > { %9038 = vrot.lane.b32.xlu1 %v16448_v52, %s14180_s25  ;;  %v17228_v52 = vld [vmem:[#allocation44_spill] sm:$0xff] }
 0xaa2   : > { %6291 = vrot.lane.b32.xlu0 %v17225_v40, %s14179_s28 }
 0xaa6   : > { %9012 = vrot.lane.b32.xlu0 %v16420_v19, %s14180_s25  ;;  %v16678_v19 = vpop.permute.xlu1 %11485 }
 0xaaa   : > { %6295 = vrot.lane.b32.xlu0 %v17226_v8, %s14179_s28 }
 0xaae   : > { %9016 = vrot.lane.b32.xlu0 %v16426_v50, %s14180_s25 }
 0xab2   : > { %6299 = vrot.lane.b32.xlu0 %v17227_v54, %s14179_s28 }
 0xab6   : > { %9020 = vrot.lane.b32.xlu0 %v16430_v3, %s14180_s25 }
 0xaba   : > { %6303 = vrot.lane.b32.xlu0 %v17228_v52, %s14179_s28 }
 0xabd   : > { %v10419_v29 = vpop.xlane.xlu0 %10418 }
 0xabe   : > { %14006 = vrcp.f32 %v10419_v29  ;;  %9024 = vrot.lane.b32.xlu0 %v16434_v9, %s14180_s25  ;;  %v17230_v9 = vld [vmem:[#allocation39_spill] sm:$0xff] }
 0xac0   : > { %v10422_v50 = vpop.xlane.xlu1 %10421 }
 0xac1   : > { %14008 = vrcp.f32 %v10422_v50  ;;  %v10425_v6 = vpop.xlane.xlu0 %10424 }
 0xac2   : > { %14010 = vrcp.f32 %v10425_v6  ;;  %6307 = vrot.lane.b32.xlu0 %v17229_v53, %s14179_s28 }
 0xac5   : > { %v10428_v3 = vpop.xlane.xlu1 %10427 }
 0xac6   : > { %9028 = vrot.lane.b32.xlu0 %v16438_v22, %s14180_s25  ;;  %14012 = vrcp.f32 %v10428_v3 }
 0xac8   : > { %v14007_v59 = vpop.eup %14006 }
 0xac9   : > { %v10481_v44 = vmul.f32 %v14007_v59, %v16544_v39  ;;  %v10431_v42 = vpop.xlane.xlu0 %10430  ;;  %v10434_v18 = vpop.xlane.xlu1 %10433 }
 0xaca   : > { %14014 = vrcp.f32 %v10431_v42  ;;  %6311 = vrot.lane.b32.xlu0 %v17230_v9, %s14179_s28 }
 0xacb   : > { %v14009_v60 = vpop.eup %14008  ;;  %14016 = vrcp.f32 %v10434_v18  ;;  %13491 = vmatmul.mubr.msk.f32.vlgmr.msra.gmra.mrb[128].mxu0 %vm1038_vm1, %v10481_v44 }
 0xacc   : > { %v14011_v23 = vpop.eup %14010  ;;  %v10482_v35 = vmul.f32 %v14009_v60, %v16550_v11  ;;  %13499 = vmatpush3.msra.mxu0 %v16526_v56  ;;  %13500 = vmatprep.mubr.msk.f32.mxu0 %vm14175_vm0, %v17066_v15 }
 0xacd   : > { %v10483_v22 = vmul.f32 %v14011_v23, %v16552_v49  ;;  %v10437_v39 = vpop.xlane.xlu0 %10436  ;;  %v10440_v43 = vpop.xlane.xlu1 %10439  ;;  %13508 = vmatprep.subr.mxu0 %v17066_v15 }
 0xace   : > { %14018 = vrcp.f32 %v10437_v39  ;;  %9032 = vrot.lane.b32.xlu0 %v16442_v47, %s14180_s25  ;;  %13496 = vmatmul.mubr.msk.f32.vlgmr.msra.gmra.mrb[144].mxu1 %vm1038_vm1, %v10482_v35  ;;  %v17231_v47 = vld [vmem:[#allocation34_spill] sm:$0xff] }
 0xacf   : > { %13504 = vmatpush3.msra.mxu1 %v16522_v45  ;;  %14020 = vrcp.f32 %v10440_v43  ;;  %13501 = vmatmul.mubr.msk.f32.vlgmr.msra.gmra.mrb[130].mxu0 %vm1038_vm1, %v10483_v22 }
 0xad0   : > { %v14013_v56 = vpop.eup %14012  ;;  %13509 = vmatpush3.msra.mxu0 %v16524_v26  ;;  %13505 = vmatprep.mubr.msk.f32.mxu1 %vm14175_vm0, %v17066_v15 }
 0xad1   : > { %v10484_v11 = vmul.f32 %v14013_v56, %v16560_v57  ;;  %v10443_v49 = vpop.xlane.xlu0 %10442  ;;  %v10446_v41 = vpop.xlane.xlu1 %10445  ;;  %13513 = vmatprep.subr.mxu1 %v17066_v15  ;;  %13510 = vmatprep.mubr.msk.f32.mxu0 %vm14175_vm0, %v17066_v15 }
 0xad2   : > { %14022 = vrcp.f32 %v10443_v49  ;;  %6315 = vrot.lane.b32.xlu0 %v17231_v47, %s14179_s28  ;;  %13518 = vmatprep.subr.mxu0 %v17066_v15 }
 0xad3   : > { %14024 = vrcp.f32 %v10446_v41  ;;  %13506 = vmatmul.mubr.msk.f32.vlgmr.msra.gmra.mrb[146].mxu1 %vm1038_vm1, %v10484_v11 }
 0xad4   : > { %v14015_v45 = vpop.eup %14014  ;;  %13514 = vmatpush3.msra.mxu1 %v16528_v62  ;;  %13515 = vmatprep.mubr.msk.f32.mxu1 %vm14175_vm0, %v17066_v15 }
 0xad5   : > { %v14017_v26 = vpop.eup %14016  ;;  %v10485_v57 = vmul.f32 %v14015_v45, %v16568_v48  ;;  %v10449_v58 = vpop.xlane.xlu0 %10448  ;;  %13523 = vmatprep.subr.mxu1 %v17066_v15  ;;  %v11810_v45 = vld [vmem:[%s16953_s9] sm:$0xff] }
 0xad6   : > { %v10452_v2 = vpop.xlane.xlu1 %10451  ;;  %v10486_v51 = vmul.f32 %v14017_v26, %v16566_v31  ;;  %14026 = vrcp.f32 %v10449_v58  ;;  %9036 = vrot.lane.b32.xlu0 %v16446_v63, %s14180_s25  ;;  %v11811_v26 = vld [vmem:[%s16953_s9 + $0x8] sm:$0xff]  ;;  %v11812_v58 = vld [vmem:[%s16953_s9 + $0x10] sm:$0xff]  ;;  %s12045_s25 = sshll.u32 %s16874_s14, 4  ;;  %s16897_s25 = int_to_ptr.vmem [resolvable:$true] %s12045_s25 }
 0xad7   : > { %14028 = vrcp.f32 %v10452_v2  ;;  %13511 = vmatmul.mubr.msk.f32.vlgmr.msra.gmra.mrb[132].mxu0 %vm1038_vm1, %v10485_v57  ;;  %v13696_v57 = vpack.c.bf16 %v11811_v26, %v11810_v45  ;;  %v11813_v2 = vld [vmem:[%s16953_s9 + $0x18] sm:$0xff]  ;;  %s14098_s27 = scalar_lea.vmem %s16897_s25, 2048  ;;  %p14105_p7 = scmp.lt.s32.totalorder %s16897_s25, %s14103_s1 }
 0xad8   : > { %v14019_v62 = vpop.eup %14018  ;;  %13516 = vmatmul.mubr.msk.f32.vlgmr.msra.gmra.mrb[148].mxu1 %vm1038_vm1, %v10486_v51  ;;  %13519 = vmatpush3.msra.mxu0 %v16530_v14  ;;  %v13700_v51 = vpack.c.bf16 %v11813_v2, %v11812_v58  ;;  %p14099_p1 = scmp.ne.s32.totalorder %s16897_s25, %s14098_s27  ;;  %p14106_p9 = scmp.lt.s32.totalorder %s14104_s15, %s14098_s27 }
 0xad9   : > { %v14021_v34 = vpop.eup %14020  ;;  %v10487_v48 = vmul.f32 %v14019_v62, %v16578_v20  ;;  %13524 = vmatpush3.msra.mxu1 %v16532_v21  ;;  %v10455_v55 = vpop.xlane.xlu0 %10454  ;;  %13520 = vmatprep.mubr.msk.f32.mxu0 %vm14175_vm0, %v17066_v15 }
 0xada   : > { %v10458_v36 = vpop.xlane.xlu1 %10457  ;;  %v10488_v63 = vmul.f32 %v14021_v34, %v16576_v33  ;;  %14030 = vrcp.f32 %v10455_v55  ;;  %13525 = vmatprep.mubr.msk.f32.mxu1 %vm14175_vm0, %v17066_v15  ;;  %13528 = vmatprep.subr.mxu0 %v17066_v15  ;;  %p14100_p10 = pnand %p14099_p1, %p17232_p12  ;;  %p14107_p11 = por %p14106_p9, %p14105_p7 }
 0xadb   : > { %14032 = vrcp.f32 %v10458_v36  ;;  %13533 = vmatprep.subr.mxu1 %v17066_v15  ;;  %13521 = vmatmul.mubr.msk.f32.vlgmr.msra.gmra.mrb[134].mxu0 %vm1038_vm1, %v10487_v48 }
 0xadc   : > { %v14023_v14 = vpop.eup %14022  ;;  %13526 = vmatmul.mubr.msk.f32.vlgmr.msra.gmra.mrb[150].mxu1 %vm1038_vm1, %v10488_v63  ;;  %13529 = vmatpush3.msra.mxu0 %v16534_v24  ;;  %p14101_p5 = pneg %p14100_p10 }
 0xadd   : > { %v14025_v21 = vpop.eup %14024  ;;  %v10489_v31 = vmul.f32 %v14023_v14, %v16587_v38  ;;  %13534 = vmatpush3.msra.mxu1 %v16536_v27  ;;  %13530 = vmatprep.mubr.msk.f32.mxu0 %vm14175_vm0, %v17066_v15 }
 0xade   : > { %v10461_v33 = vpop.xlane.xlu1 %10460  ;;  %v10490_v20 = vmul.f32 %v14025_v21, %v16585_v12  ;;  %13535 = vmatprep.mubr.msk.f32.mxu1 %vm14175_vm0, %v17066_v15  ;;  %13538 = vmatprep.subr.mxu0 %v17066_v15  ;;  %p14108_p3 = pnand %p14107_p11, %p14101_p5 }
 0xadf   : > { %13543 = vmatprep.subr.mxu1 %v17066_v15  ;;  %13531 = vmatmul.mubr.msk.f32.vlgmr.msra.gmra.mrb[136].mxu0 %vm1038_vm1, %v10489_v31  ;;  %14034 = vrcp.f32 %v10461_v33 }
 0xae0   : > { %v14027_v24 = vpop.eup %14026  ;;  %13536 = vmatmul.mubr.msk.f32.vlgmr.msra.gmra.mrb[152].mxu1 %vm1038_vm1, %v10490_v20  ;;  %13539 = vmatpush3.msra.mxu0 %v16670_v1 }
 0xae1   : > { %v14029_v27 = vpop.eup %14028  ;;  %v10491_v38 = vmul.f32 %v14027_v24, %v16595_v7  ;;  %13544 = vmatpush3.msra.mxu1 %v16619_v25  ;;  %13540 = vmatprep.mubr.msk.f32.mxu0 %vm14175_vm0, %v17066_v15 }
 0xae2   : > { %v11638_v12 = vpop.permute.xlu1 %11637  ;;  %v10492_v28 = vmul.f32 %v14029_v27, %v16593_v10  ;;  %13545 = vmatprep.mubr.msk.f32.mxu1 %vm14175_vm0, %v17066_v15  ;;  %13548 = vmatprep.subr.mxu0 %v17066_v15 }
 0xae3   : > { %13553 = vmatprep.subr.mxu1 %v17066_v15  ;;  %13541 = vmatmul.mubr.msk.f32.vlgmr.msra.gmra.mrb[138].mxu0 %vm1038_vm1, %v10491_v38 }
 0xae4   : > { %v14031_v32 = vpop.eup %14030  ;;  %13546 = vmatmul.mubr.msk.f32.vlgmr.msra.gmra.mrb[154].mxu1 %vm1038_vm1, %v10492_v28  ;;  %13549 = vmatpush3.msra.mxu0 %v16674_v30 }
 0xae5   : > { %v14033_v7 = vpop.eup %14032  ;;  %v10493_v25 = vmul.f32 %v14031_v32, %v16603_v0  ;;  %13554 = vmatpush3.msra.mxu1 %v16678_v19  ;;  %13550 = vmatprep.mubr.msk.f32.mxu0 %vm14175_vm0, %v17066_v15 }
 0xae6   : > { %v6290_v10 = vpop.permute.xlu1 %6289  ;;  %v10494_v61 = vmul.f32 %v14033_v7, %v16601_v16  ;;  %13555 = vmatprep.mubr.msk.f32.mxu1 %vm14175_vm0, %v17066_v15  ;;  %13563 = vmatprep.subr.mxu1 %v17066_v15 }
 0xae7   : > { %6337 = vst.msk [vmem:[#allocation2 + $0x8] sm:$0xff] %vm6335_vm2, %v6290_v10  ;;  %13551 = vmatmul.mubr.msk.f32.vlgmr.msra.gmra.mrb[140].mxu0 %vm1038_vm1, %v10493_v25  ;;  %13558 = vmatprep.subr.mxu0 %v17066_v15 }
 0xae8   : > { %13556 = vmatmul.mubr.msk.f32.vlgmr.msra.gmra.mrb[156].mxu1 %vm1038_vm1, %v10494_v61  ;;  %13560 = vmatprep.mubr.msk.f32.mxu0 %vm14175_vm0, %v17066_v15 }
 0xae9   : > { %13564 = vmatpush3.msra.mxu1 %v11638_v12  ;;  %13565 = vmatprep.mubr.msk.f32.mxu1 %vm14175_vm0, %v17066_v15  ;;  %v14035_v30 = vpop.eup %14034 }
 0xaea   : > { %v9011_v0 = vpop.permute.xlu1 %9010  ;;  %v10495_v52 = vmul.f32 %v14035_v30, %v16609_v5 }
 0xaeb   : > { %9058 = vst.msk [vmem:[#allocation2 + $0x8] sm:$0xff] %vm9056_vm3, %v9011_v0 }
 0xaee   : > { %v6294_v16 = vpop.permute.xlu1 %6293 }
 0xaef   : > { %6339 = vst.msk [vmem:[#allocation2 + $0x18] sm:$0xff] %vm6335_vm2, %v6294_v16 }
 0xaf2   : > { %v9015_v37 = vpop.permute.xlu1 %9014 }
 0xaf3   : > { %9060 = vst.msk [vmem:[#allocation2 + $0x18] sm:$0xff] %vm9056_vm3, %v9015_v37 }
 0xaf6   : > { %v6298_v17 = vpop.permute.xlu1 %6297 }
 0xaf7   : > { %6341 = vst.msk [vmem:[#allocation2 + $0x28] sm:$0xff] %vm6335_vm2, %v6298_v17 }
 0xafa   : > { %v9019_v4 = vpop.permute.xlu1 %9018 }
 0xafb   : > { %9062 = vst.msk [vmem:[#allocation2 + $0x28] sm:$0xff] %vm9056_vm3, %v9019_v4 }
 0xafe   : > { %v6302_v46 = vpop.permute.xlu1 %6301 }
 0xaff   : > { %6343 = vst.msk [vmem:[#allocation2 + $0x38] sm:$0xff] %vm6335_vm2, %v6302_v46 }
 0xb02   : > { %v9023_v40 = vpop.permute.xlu1 %9022 }
 0xb03   : > { %9064 = vst.msk [vmem:[#allocation2 + $0x38] sm:$0xff] %vm9056_vm3, %v9023_v40 }
 0xb06   : > { %v6306_v15 = vpop.permute.xlu1 %6305 }
 0xb07   : > { %6345 = vst.msk [vmem:[#allocation2 + $0x48] sm:$0xff] %vm6335_vm2, %v6306_v15 }
 0xb0a   : > { %v9027_v8 = vpop.permute.xlu1 %9026 }
 0xb0b   : > { %9066 = vst.msk [vmem:[#allocation2 + $0x48] sm:$0xff] %vm9056_vm3, %v9027_v8 }
 0xb0d   : > { %v10464_v54 = vpop.xlane.xlu0 %10463 }
 0xb0e   : > { %v6310_v1 = vpop.permute.xlu1 %6309  ;;  %14036 = vrcp.f32 %v10464_v54 }
 0xb0f   : > { %6347 = vst.msk [vmem:[#allocation2 + $0x58] sm:$0xff] %vm6335_vm2, %v6310_v1 }
 0xb11   : > { %v11562_v19 = vpop.permute.xlu0 %11561 }
 0xb12   : > { %v9031_v29 = vpop.permute.xlu1 %9030  ;;  %13559 = vmatpush3.msra.mxu0 %v11562_v19 }
 0xb13   : > { %9068 = vst.msk [vmem:[#allocation2 + $0x58] sm:$0xff] %vm9056_vm3, %v9031_v29  ;;  %13561 = vmatmul.mubr.msk.f32.vlgmr.msra.gmra.mrb[142].mxu0 %vm1038_vm1, %v10495_v52  ;;  %13697 = vmatprep.subr.bf16.mxu0 %v13696_v57 }
 0xb14   : > { %13699 = vmatpush3.bf16.msra.mxu0 %v13696_v57 }
 0xb15   : > { %v6288_v50 = vpop.permute.xlu0 %6287  ;;  %13701 = vmatprep.subr.bf16.mxu0 %v13700_v51 }
 0xb16   : > { %v6314_v6 = vpop.permute.xlu1 %6313  ;;  %6336 = vst.msk [vmem:[#allocation2] sm:$0xff] %vm6335_vm2, %v6288_v50 }
 0xb17   : > { %6349 = vst.msk [vmem:[#allocation2 + $0x68] sm:$0xff] %vm6335_vm2, %v6314_v6 }
 0xb18   : > { %v14037_v53 = vpop.eup %14036  ;;  %13703 = vmatpush3.bf16.msra.mxu0 %v13700_v51 }
 0xb19   : > { %v10496_v3 = vmul.f32 %v14037_v53, %v16632_v13  ;;  %v9009_v59 = vpop.permute.xlu0 %9008 }
 0xb1a   : > { %v9035_v44 = vpop.permute.xlu1 %9034  ;;  %9057 = vst.msk [vmem:[#allocation2] sm:$0xff] %vm9056_vm3, %v9009_v59 }
 0xb1b   : > { %9070 = vst.msk [vmem:[#allocation2 + $0x68] sm:$0xff] %vm9056_vm3, %v9035_v44  ;;  %13566 = vmatmul.mubr.msk.f32.vlgmr.msra.gmra.mrb[158].mxu1 %vm1038_vm1, %v10496_v3 }
 0xb1d   : > { %v6292_v5 = vpop.permute.xlu0 %6291 }
 0xb1e   : > { %v6318_v42 = vpop.permute.xlu1 %6317  ;;  %6338 = vst.msk [vmem:[#allocation2 + $0x10] sm:$0xff] %vm6335_vm2, %v6292_v5 }
 0xb1f   : > { %6351 = vst.msk [vmem:[#allocation2 + $0x78] sm:$0xff] %vm6335_vm2, %v6318_v42 }
 0xb21   : > { %v9013_v18 = vpop.permute.xlu0 %9012 }
 0xb22   : > { %v9039_v9 = vpop.permute.xlu1 %9038  ;;  %9059 = vst.msk [vmem:[#allocation2 + $0x10] sm:$0xff] %vm9056_vm3, %v9013_v18 }
 0xb23   : > { %9072 = vst.msk [vmem:[#allocation2 + $0x78] sm:$0xff] %vm9056_vm3, %v9039_v9 }
 0xb25   : > { %v6296_v13 = vpop.permute.xlu0 %6295 }
 0xb26   : > { %6340 = vst.msk [vmem:[#allocation2 + $0x20] sm:$0xff] %vm6335_vm2, %v6296_v13 }
 0xb29   : > { %v9017_v60 = vpop.permute.xlu0 %9016 }
 0xb2a   : > { %9061 = vst.msk [vmem:[#allocation2 + $0x20] sm:$0xff] %vm9056_vm3, %v9017_v60 }
 0xb2d   : > { %v6300_v23 = vpop.permute.xlu0 %6299 }
 0xb2e   : > { %6342 = vst.msk [vmem:[#allocation2 + $0x30] sm:$0xff] %vm6335_vm2, %v6300_v23 }
 0xb31   : > { %v9021_v35 = vpop.permute.xlu0 %9020 }
 0xb32   : > { %9063 = vst.msk [vmem:[#allocation2 + $0x30] sm:$0xff] %vm9056_vm3, %v9021_v35 }
 0xb35   : > { %v6304_v22 = vpop.permute.xlu0 %6303 }
 0xb36   : > { %6344 = vst.msk [vmem:[#allocation2 + $0x40] sm:$0xff] %vm6335_vm2, %v6304_v22 }
 0xb39   : > { %v9025_v39 = vpop.permute.xlu0 %9024 }
 0xb3a   : > { %9065 = vst.msk [vmem:[#allocation2 + $0x40] sm:$0xff] %vm9056_vm3, %v9025_v39 }
 0xb3d   : > { %v6308_v43 = vpop.permute.xlu0 %6307 }
 0xb3e   : > { %6346 = vst.msk [vmem:[#allocation2 + $0x50] sm:$0xff] %vm6335_vm2, %v6308_v43 }
 0xb41   : > { %v9029_v56 = vpop.permute.xlu0 %9028 }
 0xb42   : > { %9067 = vst.msk [vmem:[#allocation2 + $0x50] sm:$0xff] %vm9056_vm3, %v9029_v56 }
 0xb45   : > { %v6312_v11 = vpop.permute.xlu0 %6311 }
 0xb46   : > { %6348 = vst.msk [vmem:[#allocation2 + $0x60] sm:$0xff] %vm6335_vm2, %v6312_v11 }
 0xb49   : > { %v9033_v49 = vpop.permute.xlu0 %9032 }
 0xb4a   : > { %9069 = vst.msk [vmem:[#allocation2 + $0x60] sm:$0xff] %vm9056_vm3, %v9033_v49 }
 0xb4d   : > { %v6316_v41 = vpop.permute.xlu0 %6315 }
 0xb4e   : > { %6350 = vst.msk [vmem:[#allocation2 + $0x70] sm:$0xff] %vm6335_vm2, %v6316_v41 }
 0xb51   : > { %v9037_v47 = vpop.permute.xlu0 %9036 }
 0xb52   : > { %9071 = vst.msk [vmem:[#allocation2 + $0x70] sm:$0xff] %vm9056_vm3, %v9037_v47 }
 0xb9e   : > { %v10569_v62 = vpop.f32.mrb[128].mxu0 }
 0xb9f   : > { %v13492_v34 = vpop.f32.mrb[129].mxu0  ;;  %11729 = vrot.lane.b32.xlu0 %v10569_v62, %s14181_s23  ;;  %v12363_v62 = vld [vmem:[%s16954_s10] ss:$0 sm:$0xff] }
 0xba1   : > { %v10645_v48 = vpop.f32.mrb[144].mxu1 }
 0xba2   : > { %11731 = vrot.lane.b32.xlu1 %v10645_v48, %s14181_s23  ;;  %v13497_v55 = vpop.f32.mrb[145].mxu1  ;;  %v10721_v36 = vpop.f32.mrb[130].mxu0 }
 0xba3   : > { %v13502_v63 = vpop.f32.mrb[131].mxu0  ;;  %11733 = vrot.lane.b32.xlu0 %v10721_v36, %s14181_s23 }
 0xba6   : > { %v10797_v14 = vpop.f32.mrb[146].mxu1 }
 0xba7   : > { %11735 = vrot.lane.b32.xlu1 %v10797_v14, %s14181_s23  ;;  %v13507_v21 = vpop.f32.mrb[147].mxu1 }
 0xbaa   : > { %v10873_v31 = vpop.f32.mrb[132].mxu0 }
 0xbab   : > { %v10949_v33 = vpop.f32.mrb[148].mxu1  ;;  %v13512_v20 = vpop.f32.mrb[133].mxu0  ;;  %11737 = vrot.lane.b32.xlu0 %v10873_v31, %s14181_s23 }
 0xbac   : > { %11739 = vrot.lane.b32.xlu1 %v10949_v33, %s14181_s23  ;;  %v13517_v24 = vpop.f32.mrb[149].mxu1 }
 0xbae   : > { %v11025_v27 = vpop.f32.mrb[134].mxu0 }
 0xbaf   : > { %v11101_v38 = vpop.f32.mrb[150].mxu1  ;;  %v13522_v12 = vpop.f32.mrb[135].mxu0  ;;  %11741 = vrot.lane.b32.xlu0 %v11025_v27, %s14181_s23 }
 0xbb0   : > { %11743 = vrot.lane.b32.xlu1 %v11101_v38, %s14181_s23  ;;  %v13527_v28 = vpop.f32.mrb[151].mxu1 }
 0xbb2   : > { %v11177_v32 = vpop.f32.mrb[136].mxu0 }
 0xbb3   : > { %v11253_v7 = vpop.f32.mrb[152].mxu1  ;;  %v13532_v25 = vpop.f32.mrb[137].mxu0  ;;  %11745 = vrot.lane.b32.xlu0 %v11177_v32, %s14181_s23 }
 0xbb4   : > { %11747 = vrot.lane.b32.xlu1 %v11253_v7, %s14181_s23  ;;  %v13537_v10 = vpop.f32.mrb[153].mxu1 }
 0xbb6   : > { %v11329_v61 = vpop.f32.mrb[138].mxu0 }
 0xbb7   : > { %v11405_v0 = vpop.f32.mrb[154].mxu1  ;;  %v13542_v16 = vpop.f32.mrb[139].mxu0  ;;  %11749 = vrot.lane.b32.xlu0 %v11329_v61, %s14181_s23 }
 0xbb8   : > { %11751 = vrot.lane.b32.xlu1 %v11405_v0, %s14181_s23  ;;  %v13547_v37 = vpop.f32.mrb[155].mxu1 }
 0xbba   : > { %v11481_v17 = vpop.f32.mrb[140].mxu0 }
 0xbbb   : > { %v11557_v4 = vpop.f32.mrb[156].mxu1  ;;  %v13552_v46 = vpop.f32.mrb[141].mxu0  ;;  %11753 = vrot.lane.b32.xlu0 %v11481_v17, %s14181_s23 }
 0xbbc   : > { %11755 = vrot.lane.b32.xlu1 %v11557_v4, %s14181_s23  ;;  %v13557_v40 = vpop.f32.mrb[157].mxu1 }
 0xbe6   : > { %v11633_v15 = vpop.f32.mrb[142].mxu0 }
 0xbe7   : > { %11757 = vrot.lane.b32.xlu0 %v11633_v15, %s14181_s23  ;;  %v13562_v8 = vpop.f32.mrb[143].mxu0 }
 0xbee   : > { %v11709_v54 = vpop.f32.mrb[158].mxu1 }
 0xbef   : > { %11759 = vrot.lane.b32.xlu1 %v11709_v54, %s14181_s23  ;;  %v13567_v1 = vpop.f32.mrb[159].mxu1 }
 0xc11   : > { %v11730_v30 = vpop.permute.xlu0 %11729 }
 0xc12   : > { %11778 = vst.msk [vmem:[#allocation2] sm:$0xff] %vm11777_vm4, %v11730_v30 }
 0xc14   : > { %v11732_v52 = vpop.permute.xlu1 %11731 }
 0xc15   : > { %11779 = vst.msk [vmem:[#allocation2 + $0x8] sm:$0xff] %vm11777_vm4, %v11732_v52  ;;  %v11734_v19 = vpop.permute.xlu0 %11733 }
 0xc16   : > { %11780 = vst.msk [vmem:[#allocation2 + $0x10] sm:$0xff] %vm11777_vm4, %v11734_v19 }
 0xc19   : > { %v11736_v29 = vpop.permute.xlu1 %11735  ;;  %v11794_v50 = vld [vmem:[#allocation2] sm:$0xff] }
 0xc1a   : > { %11781 = vst.msk [vmem:[#allocation2 + $0x18] sm:$0xff] %vm11777_vm4, %v11736_v29  ;;  %13576 = vmatprep.mubr.msk.f32.mxu0 %vm11821_vm5, %v11794_v50 }
 0xc1c   : > { %v11795_v6 = vld [vmem:[#allocation2 + $0x8] sm:$0xff] }
 0xc1d   : > { %13577 = vmatmul.mubr.msk.f32.vlgmr.msra.gmra.mrb[144].mxu0 %vm11821_vm5, %v11795_v6  ;;  %v11738_v53 = vpop.permute.xlu0 %11737  ;;  %v11796_v3 = vld [vmem:[#allocation2 + $0x10] sm:$0xff] }
 0xc1e   : > { %11782 = vst.msk [vmem:[#allocation2 + $0x20] sm:$0xff] %vm11777_vm4, %v11738_v53  ;;  %v11740_v59 = vpop.permute.xlu1 %11739  ;;  %13579 = vmatprep.mubr.msk.f32.mxu0 %vm11821_vm5, %v11796_v3 }
 0xc1f   : > { %11783 = vst.msk [vmem:[#allocation2 + $0x28] sm:$0xff] %vm11777_vm4, %v11740_v59 }
 0xc21   : > { %v11742_v44 = vpop.permute.xlu0 %11741  ;;  %v11797_v5 = vld [vmem:[#allocation2 + $0x18] sm:$0xff] }
 0xc22   : > { %11784 = vst.msk [vmem:[#allocation2 + $0x30] sm:$0xff] %vm11777_vm4, %v11742_v44  ;;  %v11744_v42 = vpop.permute.xlu1 %11743  ;;  %13580 = vmatmul.mubr.msk.f32.gmra.mrb[146].mxu0 %vm11821_vm5, %v11797_v5 }
 0xc23   : > { %11785 = vst.msk [vmem:[#allocation2 + $0x38] sm:$0xff] %vm11777_vm4, %v11744_v42 }
 0xc25   : > { %v11746_v18 = vpop.permute.xlu0 %11745  ;;  %v11798_v9 = vld [vmem:[#allocation2 + $0x20] sm:$0xff] }
 0xc26   : > { %11786 = vst.msk [vmem:[#allocation2 + $0x40] sm:$0xff] %vm11777_vm4, %v11746_v18  ;;  %v11748_v13 = vpop.permute.xlu1 %11747  ;;  %13582 = vmatprep.mubr.msk.f32.mxu0 %vm11821_vm5, %v11798_v9  ;;  %v11799_v60 = vld [vmem:[#allocation2 + $0x28] sm:$0xff] }
 0xc27   : > { %11787 = vst.msk [vmem:[#allocation2 + $0x48] sm:$0xff] %vm11777_vm4, %v11748_v13  ;;  %13583 = vmatmul.mubr.msk.f32.gmra.mrb[148].mxu0 %vm11821_vm5, %v11799_v60 }
 0xc29   : > { %v11750_v23 = vpop.permute.xlu0 %11749  ;;  %v11800_v35 = vld [vmem:[#allocation2 + $0x30] sm:$0xff] }
 0xc2a   : > { %11788 = vst.msk [vmem:[#allocation2 + $0x50] sm:$0xff] %vm11777_vm4, %v11750_v23  ;;  %v11752_v22 = vpop.permute.xlu1 %11751  ;;  %13585 = vmatprep.mubr.msk.f32.mxu0 %vm11821_vm5, %v11800_v35  ;;  %v11801_v39 = vld [vmem:[#allocation2 + $0x38] sm:$0xff] }
 0xc2b   : > { %11789 = vst.msk [vmem:[#allocation2 + $0x58] sm:$0xff] %vm11777_vm4, %v11752_v22  ;;  %13586 = vmatmul.mubr.msk.f32.gmra.mrb[150].mxu0 %vm11821_vm5, %v11801_v39 }
 0xc2d   : > { %v11754_v43 = vpop.permute.xlu0 %11753  ;;  %v11802_v56 = vld [vmem:[#allocation2 + $0x40] sm:$0xff] }
 0xc2e   : > { %11790 = vst.msk [vmem:[#allocation2 + $0x60] sm:$0xff] %vm11777_vm4, %v11754_v43  ;;  %v11756_v11 = vpop.permute.xlu1 %11755  ;;  %13588 = vmatprep.mubr.msk.f32.mxu0 %vm11821_vm5, %v11802_v56  ;;  %v11803_v49 = vld [vmem:[#allocation2 + $0x48] sm:$0xff] }
 0xc2f   : > { %11791 = vst.msk [vmem:[#allocation2 + $0x68] sm:$0xff] %vm11777_vm4, %v11756_v11  ;;  %13589 = vmatmul.mubr.msk.f32.gmra.mrb[152].mxu0 %vm11821_vm5, %v11803_v49 }
 0xc31   : > { %v11804_v41 = vld [vmem:[#allocation2 + $0x50] sm:$0xff] }
 0xc32   : > { %13591 = vmatprep.mubr.msk.f32.mxu0 %vm11821_vm5, %v11804_v41  ;;  %v11805_v47 = vld [vmem:[#allocation2 + $0x58] sm:$0xff] }
 0xc33   : > { %13592 = vmatmul.mubr.msk.f32.gmra.mrb[154].mxu0 %vm11821_vm5, %v11805_v47 }
 0xc35   : > { %v11806_v45 = vld [vmem:[#allocation2 + $0x60] sm:$0xff] }
 0xc36   : > { %13594 = vmatprep.mubr.msk.f32.mxu0 %vm11821_vm5, %v11806_v45  ;;  %v11807_v26 = vld [vmem:[#allocation2 + $0x68] sm:$0xff] }
 0xc37   : > { %13595 = vmatmul.mubr.msk.f32.gmra.mrb[156].mxu0 %vm11821_vm5, %v11807_v26 }
 0xc59   : > { %v11758_v57 = vpop.permute.xlu0 %11757 }
 0xc5a   : > { %11792 = vst.msk [vmem:[#allocation2 + $0x70] sm:$0xff] %vm11777_vm4, %v11758_v57 }
 0xc61   : > { %v11760_v58 = vpop.permute.xlu1 %11759  ;;  %v11808_v2 = vld [vmem:[#allocation2 + $0x70] sm:$0xff] }
 0xc62   : > { %11793 = vst.msk [vmem:[#allocation2 + $0x78] sm:$0xff] %vm11777_vm4, %v11760_v58  ;;  %13597 = vmatprep.mubr.msk.f32.mxu0 %vm11821_vm5, %v11808_v2 }
 0xc69   : > { %v11809_v51 = vld [vmem:[#allocation2 + $0x78] sm:$0xff] }
 0xc6a   : > { %13598 = vmatmul.mubr.msk.f32.gmra.mrb[158].mxu0 %vm11821_vm5, %v11809_v51 }
 0xcf0   : > { %v13578_v34 = vpop.f32.mrb[144].mxu0 }
 0xcf1   : > { %v11942_v48 = vadd.f32 %v13578_v34, %v12363_v62  ;;  %v11936_v55 = vpop.f32.mrb[145].mxu0 }
 0xcf2   : > { %v11937_v36 = vadd.f32 %v12363_v62, %v11936_v55 }
 0xcf3   : > { %12016 = vst [vmem:[%s16874_s14 + $0x8] sm:$0xff] %v11942_v48 }
 0xcf4   : > { %12015 = vst [vmem:[%s16874_s14] sm:$0xff] %v11937_v36 }
 0xcf5   : > { %v13581_v63 = vpop.f32.mrb[146].mxu0 }
 0xcf6   : > { %v11952_v14 = vadd.f32 %v13581_v63, %v12363_v62  ;;  %v11946_v21 = vpop.f32.mrb[147].mxu0 }
 0xcf7   : > { %v11947_v31 = vadd.f32 %v12363_v62, %v11946_v21 }
 0xcf8   : > { %12018 = vst [vmem:[%s16874_s14 + $0x18] sm:$0xff] %v11952_v14 }
 0xcf9   : > { %12017 = vst [vmem:[%s16874_s14 + $0x10] sm:$0xff] %v11947_v31 }
 0xcfa   : > { %v13584_v33 = vpop.f32.mrb[148].mxu0 }
 0xcfb   : > { %v11962_v20 = vadd.f32 %v13584_v33, %v12363_v62  ;;  %v11956_v24 = vpop.f32.mrb[149].mxu0 }
 0xcfc   : > { %v11957_v27 = vadd.f32 %v12363_v62, %v11956_v24 }
 0xcfd   : > { %12020 = vst [vmem:[%s16874_s14 + $0x28] sm:$0xff] %v11962_v20 }
 0xcfe   : > { %12019 = vst [vmem:[%s16874_s14 + $0x20] sm:$0xff] %v11957_v27  ;;  %v13587_v38 = vpop.f32.mrb[150].mxu0 }
 0xcff   : > { %v11972_v12 = vadd.f32 %v13587_v38, %v12363_v62  ;;  %v11966_v28 = vpop.f32.mrb[151].mxu0 }
 0xd00   : > { %v11967_v32 = vadd.f32 %v12363_v62, %v11966_v28 }
 0xd01   : > { %12022 = vst [vmem:[%s16874_s14 + $0x38] sm:$0xff] %v11972_v12 }
 0xd02   : > { %12021 = vst [vmem:[%s16874_s14 + $0x30] sm:$0xff] %v11967_v32  ;;  %v13590_v7 = vpop.f32.mrb[152].mxu0 }
 0xd03   : > { %v11982_v25 = vadd.f32 %v13590_v7, %v12363_v62  ;;  %v11976_v10 = vpop.f32.mrb[153].mxu0 }
 0xd04   : > { %v11977_v61 = vadd.f32 %v12363_v62, %v11976_v10 }
 0xd05   : > { %12024 = vst [vmem:[%s16874_s14 + $0x48] sm:$0xff] %v11982_v25 }
 0xd06   : > { %12023 = vst [vmem:[%s16874_s14 + $0x40] sm:$0xff] %v11977_v61  ;;  %v13593_v0 = vpop.f32.mrb[154].mxu0 }
 0xd07   : > { %v11992_v16 = vadd.f32 %v13593_v0, %v12363_v62  ;;  %v11986_v37 = vpop.f32.mrb[155].mxu0 }
 0xd08   : > { %v11987_v17 = vadd.f32 %v12363_v62, %v11986_v37 }
 0xd09   : > { %12026 = vst [vmem:[%s16874_s14 + $0x58] sm:$0xff] %v11992_v16 }
 0xd0a   : > { %12025 = vst [vmem:[%s16874_s14 + $0x50] sm:$0xff] %v11987_v17  ;;  %v13596_v4 = vpop.f32.mrb[156].mxu0 }
 0xd0b   : > { %v12002_v46 = vadd.f32 %v13596_v4, %v12363_v62  ;;  %v11996_v40 = vpop.f32.mrb[157].mxu0 }
 0xd0c   : > { %v11997_v15 = vadd.f32 %v12363_v62, %v11996_v40 }
 0xd0d   : > { %12028 = vst [vmem:[%s16874_s14 + $0x68] sm:$0xff] %v12002_v46 }
 0xd0e   : > { %12027 = vst [vmem:[%s16874_s14 + $0x60] sm:$0xff] %v11997_v15 }
 0xd3d   : > { %v13599_v8 = vpop.f32.mrb[158].mxu0 }
 0xd3e   : > { %v12012_v54 = vadd.f32 %v13599_v8, %v12363_v62  ;;  %v12006_v1 = vpop.f32.mrb[159].mxu0 }
 0xd3f   : > { %v12007_v30 = vadd.f32 %v12363_v62, %v12006_v1 }
 0xd40   : > { %12030 = vst [vmem:[%s16874_s14 + $0x78] sm:$0xff] %v12012_v54 }
 0xd41   : > { %12029 = vst [vmem:[%s16874_s14 + $0x70] sm:$0xff] %v12007_v30 }
 0xd42   : > { %14111 = shalt.err (!%p14108_p3)
}
 0xd43   : > { %s14112_s17 = scalar_lea.hbm %s16895_s12, 2048  ;;  %s14116_s19 = scalar_lea.hbm %s16955_s11, 4096 }
 0xd44   : > { %p14113_p8 = scmp.ne.s32.totalorder %s16895_s12, %s14112_s17  ;;  %p14117_p4 = scmp.lt.u32.totalorder %s16895_s12, %s16955_s11 }
 0xd45   : > { %p14118_p6 = scmp.lt.u32.totalorder %s14116_s19, %s14112_s17  ;;  %p14120_p1 = scmp.lt.u32.totalorder %s14112_s17, %s16895_s12 }
 0xd46   : > { %p14114_p0 = pnand %p14113_p8, %p17232_p12 }
 0xd47   : > { %p14119_p13 = por %p14118_p6, %p14117_p4 }
 0xd48   : > { %p14115_p2 = pneg %p14114_p0 }
 0xd49   : > { %p14121_p10 = por %p14120_p1, %p14119_p13 }
 0xd4b   : > { %p14122_p5 = pnand %p14121_p10, %p14115_p2 }
 0xd4d   : > { %14125 = shalt.err (!%p14122_p5)
}
 0xd4e   : > { %s14183_s22 = smov 128  }
 0xd4f   : > { %13724 = dma.vmem_to_hbm [thread:$0]  (%p17232_p12), %s16897_s25, 2048, %s16895_s12, %s12032_s13, %s14183_s22, %s14183_s22, %s14179_s28  }
 0xd50 PF: > { %s17233_s26 = sld [smem:[#allocation12_spill]]  ;;  %s17234_s27 = sld [smem:[#allocation16_spill]] }
 0xd51   : > { %p17236_p9 = scmp.ge.s32.totalorder %s14168_s20, 2 }
 0xd56   : > { %s12060_s21 = sand.u32 1, %s17233_s26   ;;  %p17235_p7 = scmp.ne.s32.totalorder %s17234_s27, 0 }
 0xd57   : > { %s12061_s1 = scalar_lea.sflag [#allocation5], %s12060_s21 }
 0xd58   : > { %p13734_p11 = pnand %p17236_p9, %p17235_p7 }
 0xd5a   : > { %14151 = dma.done.wait (!%p13734_p11), %s12061_s1, 2048  }
 0xd5b   : > { %14153 = vsyncadd (!%p13734_p11), %s12061_s1, 4294965248  ;;  %s17237_s20 = sld [smem:[#allocation14_spill]]  ;;  %s17238_s29 = sld [smem:[#allocation13_spill]] }
 0xd5c   : > { %s17239_s19 = sld [smem:[#allocation15_spill]]  ;;  %s17240_s17 = smov %s14160_s18 }
 0xd61   : > { %p27_p3 = scmp.ge.s32.totalorder %s17237_s20, 4   ;;  %s17241_s18 = smov %s17238_s29 }
 0xd63   :  { %29 = sbr.rel (!%p27_p3) target bundleno = 9 (0x9), region = 125 }
 0xd6a   :  { %12066 = vsyncpa [#allocation4], 1 }
 0xd6b   :  { %12068 = vsyncpa [#allocation4 + $0x1], 1 }
 0xd6c   :  { %12069 = vsyncpa [#allocation7], 1 }
 0xd6d   :  { %12071 = vsyncpa [#allocation7 + $0x1], 1 }
 0xd6e   :  { %12072 = vsyncpa [#allocation5], 1 }
 0xd6f   :  { %12074 = vsyncpa [#allocation5 + $0x1], 1 }

</bundles_post_ra>
